<compile_context>
chip_gen: v7x
topology: tpu7x:2x2x1
jax: 0.10.0
libtpu: 0.0.40
codegen_flags: <defaults>
</compile_context>

<pallas_src>
import jax
import jax.numpy as jnp
from jax.experimental import pallas as pl
from jax.experimental.pallas import tpu as pltpu

# ---------------------------------------------------------------------------
# Model / problem sizes (small, consistent with the module's forward pass)
# ---------------------------------------------------------------------------
B = 8           # 4 chosen + 4 rejected
S = 16          # sequence length
H = 512         # hidden size expected by v_head = Linear(512, 1, bias=False)
EMB = 128       # synthetic embedding width
VOCAB = 32
EOS_ID = 2
PAD_ID = 1
BOS_ID = 0
NPAIR = 4

_HP = jax.lax.Precision.HIGHEST   # keep f32 accuracy through the MXU


def _lane_min(x):
    """Min over the last axis (keepdims) via a max-reduction (XLU-friendly)."""
    return -jnp.max(-x, axis=1, keepdims=True)


# ---------------------------------------------------------------------------
# Fully fused Pallas kernel:
#   synthetic backbone (one-hot gather -> MLP -> tanh)     [MXU]
#   v_head mat-vec                                         [MXU]
#   per-pair slice-bound derivation (start / end)          [VPU/XLU]
#   pairwise -logsigmoid(vc - vr) loss + scalar reductions [VPU/EUP]
# ---------------------------------------------------------------------------
def critic_fused_kernel(ids_col_ref, mask_ref, ids2d_ref, embed_ref, w0_ref,
                        wv_ref, out_ref):
    # ids_col_ref : (B*S, 1)     int32  VMEM   token ids, flattened row-major
    # mask_ref    : (B*S, 1)     f32    VMEM   attention mask, flattened
    # ids2d_ref   : (B, S)       int32  VMEM   token ids, (batch, seq) layout
    # embed_ref   : (VOCAB, EMB) f32    VMEM   synthetic embedding table
    # w0_ref      : (EMB, H)     f32    VMEM   synthetic MLP weight
    # wv_ref      : (H, 1)       f32    VMEM   v_head weight (Linear(512,1))
    # out_ref     : (1, 128)     f32    VMEM   lanes 0..2 = loss, vc_sum, vr_sum
    f32 = jnp.float32

    ids_col = ids_col_ref[...]                                # (B*S, 1) i32
    amask = mask_ref[...]                                     # (B*S, 1) f32

    # ---- synthetic backbone (stand-in for OPT-1.3b last_hidden_state) ----
    vocab_iota = jax.lax.broadcasted_iota(jnp.int32, (B * S, VOCAB), 1)
    one_hot = (ids_col == vocab_iota).astype(f32) * amask      # (B*S, VOCAB)
    emb = jnp.dot(one_hot, embed_ref[...],
                  preferred_element_type=f32, precision=_HP)   # (B*S, EMB)
    hidden = jnp.tanh(jnp.dot(emb, w0_ref[...],
                              preferred_element_type=f32,
                              precision=_HP))                  # (B*S, H)

    # ---- v_head: Linear(512, 1, bias=False).squeeze(-1) on the MXU -------
    v = jnp.dot(hidden, wv_ref[...],
                preferred_element_type=f32, precision=_HP)     # (B*S, 1)

    # ---- per-pair slice bounds, derived on-chip -----------------------------
    ids2 = ids2d_ref[...]                                      # (B, S) i32
    idc = ids2[:NPAIR, :]                                      # (4, S) chosen
    idr = ids2[NPAIR:, :]                                      # (4, S) rejected
    pos = jax.lax.broadcasted_iota(jnp.int32, (NPAIR, S), 1).astype(f32)
    big = float(S)
    # start = first index where chosen != rejected
    start = _lane_min(jnp.where(idc != idr, pos, big))         # (4, 1) f32
    # end = max(first eos in chosen, first eos in rejected) + 1
    eos_c = _lane_min(jnp.where(idc == EOS_ID, pos, big))
    eos_r = _lane_min(jnp.where(idr == EOS_ID, pos, big))
    end = jnp.maximum(eos_c, eos_r) + 1.0                      # (4, 1) f32
    inv = 1.0 / jnp.maximum(end - start, 1.0)                  # 1/count, guarded

    # absolute row-index bounds inside the flattened (NPAIR*S, 1) layout
    base = jax.lax.broadcasted_iota(jnp.int32, (NPAIR, 1), 0).astype(f32) * big
    start_abs = start + base                                   # (4, 1)
    end_abs = end + base                                       # (4, 1)

    # broadcast per-pair scalars to rows with a 0/1 selection matmul (MXU,
    # exact for these small integer-valued floats; no relayout needed)
    rows = jax.lax.broadcasted_iota(jnp.int32, (NPAIR * S, 1), 0)       # (64,1)
    pair_base = jax.lax.broadcasted_iota(jnp.int32, (NPAIR * S, NPAIR), 1) * S
    R = ((rows >= pair_base) & (rows < pair_base + S)).astype(f32)      # (64,4)
    start_b = jnp.dot(R, start_abs, preferred_element_type=f32, precision=_HP)
    end_b = jnp.dot(R, end_abs, preferred_element_type=f32, precision=_HP)
    inv_b = jnp.dot(R, inv, preferred_element_type=f32, precision=_HP)

    rows_f = rows.astype(f32)
    sel = (rows_f >= start_b) & (rows_f < end_b)
    w_row = jnp.where(sel, inv_b, 0.0)                          # (64, 1)

    # ---- pairwise ranking loss -------------------------------------------
    vc = v[:NPAIR * S]                                          # (64, 1) chosen
    vr = v[NPAIR * S:]                                          # (64, 1) rejected
    diff = vc - vr
    # -logsigmoid(x) = max(-x, 0) + log(1 + exp(-|x|))   (numerically stable)
    nls = jnp.maximum(-diff, 0.0) + jnp.log(1.0 + jnp.exp(-jnp.abs(diff)))

    loss = jnp.sum(nls * w_row, axis=0, keepdims=True) * (1.0 / NPAIR)  # (1,1)
    vc_s = jnp.sum(vc * w_row, axis=0, keepdims=True)                   # (1,1)
    vr_s = jnp.sum(vr * w_row, axis=0, keepdims=True)                   # (1,1)

    # single lane-dense output: lane0=loss, lane1=vc_sum, lane2=vr_sum
    lane = jax.lax.broadcasted_iota(jnp.int32, (1, 128), 1)
    out_ref[...] = jnp.where(lane == 0, loss,
                             jnp.where(lane == 1, vc_s,
                                       jnp.where(lane == 2, vr_s, 0.0)))


def _run_critic_kernel(params, input_ids, attention_mask):
    """input_ids/attention_mask: (B, S)."""
    ids_col = input_ids.reshape(B * S, 1).astype(jnp.int32)
    mask_col = attention_mask.reshape(B * S, 1).astype(jnp.float32)
    ids_2d = input_ids.astype(jnp.int32)
    embed = params["embed"]                       # (VOCAB, EMB)
    w0 = params["w0"]                             # (EMB, H)
    wv = params["v_head_w"].reshape(H, 1)         # (H, 1)

    vmem = pltpu.MemorySpace.VMEM
    out = pl.pallas_call(
        critic_fused_kernel,
        out_shape=jax.ShapeDtypeStruct((1, 128), jnp.float32),
        in_specs=[pl.BlockSpec(memory_space=vmem)] * 6,
        out_specs=pl.BlockSpec(memory_space=vmem),
    )(ids_col, mask_col, ids_2d, embed, w0, wv)
    return out[0, 0], out[0, 1], out[0, 2]


@jax.jit
def critic_forward(params, input_ids, attention_mask):
    return _run_critic_kernel(params, input_ids, attention_mask)


# ---------------------------------------------------------------------------
# Parameters
# ---------------------------------------------------------------------------
def make_params(key):
    k1, k2, k3 = jax.random.split(key, 3)
    embed = jax.random.normal(k1, (VOCAB, EMB), jnp.float32) * 0.1
    w0 = jax.random.normal(k2, (EMB, H), jnp.float32) * 0.1
    v_head_w = jax.random.normal(k3, (H,), jnp.float32) * 0.05
    return {"embed": embed, "w0": w0, "v_head_w": v_head_w}


# ---------------------------------------------------------------------------
# Pure-JAX reference mirroring the PyTorch forward, for verification
# ---------------------------------------------------------------------------
def synthetic_last_hidden_state(params, input_ids, attention_mask):
    # stand-in for AutoModel('facebook/opt-1.3b').last_hidden_state
    emb = jnp.take(params["embed"], input_ids, axis=0)          # (B, S, EMB)
    emb = emb * attention_mask[..., None].astype(jnp.float32)
    return jnp.tanh(jnp.dot(emb, params["w0"], precision=_HP))  # (B, S, H)


def critic_forward_ref(params, input_ids, attention_mask):
    hidden = synthetic_last_hidden_state(params, input_ids, attention_mask)
    out = jnp.dot(hidden, params["v_head_w"], precision=_HP)    # (B, S)
    ids_c = input_ids[:NPAIR]
    ids_r = input_ids[NPAIR:]
    start = jnp.argmax(ids_c != ids_r, axis=1)
    end = jnp.maximum(jnp.argmax(ids_c == EOS_ID, axis=1),
                      jnp.argmax(ids_r == EOS_ID, axis=1)) + 1
    loss_sum, vcs, vrs = 0.0, 0.0, 0.0
    for i in range(NPAIR):
        s, e = int(start[i]), int(end[i])
        vc = out[i, s:e]
        vr = out[NPAIR + i, s:e]
        loss_sum += -jnp.mean(jax.nn.log_sigmoid(vc - vr))
        vcs += float(jnp.mean(vc))
        vrs += float(jnp.mean(vr))
    return loss_sum / NPAIR, vcs, vrs


# ---------------------------------------------------------------------------
# Main
# ---------------------------------------------------------------------------
if __name__ == "__main__":
    key = jax.random.PRNGKey(0)
    pkey, dkey = jax.random.split(key)
    params = make_params(pkey)

    # Deterministic token ids: 4 chosen + 4 rejected, shared prefix,
    # guaranteed mismatch at position 4, eos present, pads after eos.
    ids = jax.random.randint(dkey, (B, S), 3, VOCAB).astype(jnp.int32)
    ids = ids.at[:, 0].set(BOS_ID)
    ids = ids.at[NPAIR:, :4].set(ids[:NPAIR, :4])
    ids = ids.at[NPAIR:, 4].set((ids[:NPAIR, 4] % (VOCAB - 4)) + 3 + 1)
    ids = ids.at[:NPAIR, 10].set(EOS_ID)
    ids = ids.at[:NPAIR, 11:].set(PAD_ID)
    ids = ids.at[NPAIR:, 12].set(EOS_ID)
    ids = ids.at[NPAIR:, 13:].set(PAD_ID)
    attention_mask = (ids != PAD_ID).astype(jnp.int32)

    loss, vc_sum, vr_sum = critic_forward(params, ids, attention_mask)
    jax.block_until_ready((loss, vc_sum, vr_sum))

    # sanity check against a pure-JAX reference of the same math
    loss_r, vc_r, vr_r = critic_forward_ref(params, ids, attention_mask)
    assert jnp.allclose(loss, loss_r, rtol=5e-3, atol=1e-4), (loss, loss_r)
    assert abs(float(vc_sum) - vc_r) < 5e-3, (vc_sum, vc_r)
    assert abs(float(vr_sum) - vr_r) < 5e-3, (vr_sum, vr_r)

    print("KERNEL_OK")
</pallas_src>

<mosaic_0001>
module attributes {stable_mosaic.version = 11 : i64} {
  func.func @critic_fused_kernel(%arg0: memref<128x1xi32, #tpu.memory_space<vmem>>, %arg1: memref<128x1xf32, #tpu.memory_space<vmem>>, %arg2: memref<8x16xi32, #tpu.memory_space<vmem>>, %arg3: memref<32x128xf32, #tpu.memory_space<vmem>>, %arg4: memref<128x512xf32, #tpu.memory_space<vmem>>, %arg5: memref<512x1xf32, #tpu.memory_space<vmem>>, %arg6: memref<1x128xf32, #tpu.memory_space<vmem>>) attributes {dimension_semantics = [], scalar_prefetch = 0 : i64, scratch_operands = 0 : i64, tpu.core_type = #tpu.core_type<tc>} {
    %c0 = arith.constant 0 : index
    %c0_0 = arith.constant 0 : index
    %0 = vector.load %arg0[%c0, %c0_0] : memref<128x1xi32, #tpu.memory_space<vmem>>, vector<128x1xi32>
    %c0_1 = arith.constant 0 : index
    %c0_2 = arith.constant 0 : index
    %1 = vector.load %arg1[%c0_1, %c0_2] : memref<128x1xf32, #tpu.memory_space<vmem>>, vector<128x1xf32>
    %2 = tpu.iota {dimensions = array<i32: 1>} : vector<128x32xi32>
    %3 = vector.broadcast %0 : vector<128x1xi32> to vector<128x32xi32>
    %4 = arith.cmpi eq, %3, %2 : vector<128x32xi32>
    %5 = arith.extui %4 : vector<128x32xi1> to vector<128x32xi32>
    %6 = arith.sitofp %5 : vector<128x32xi32> to vector<128x32xf32>
    %7 = vector.broadcast %1 : vector<128x1xf32> to vector<128x32xf32>
    %8 = arith.mulf %6, %7 : vector<128x32xf32>
    %c0_3 = arith.constant 0 : index
    %c0_4 = arith.constant 0 : index
    %9 = vector.load %arg3[%c0_3, %c0_4] : memref<32x128xf32, #tpu.memory_space<vmem>>, vector<32x128xf32>
    %cst = arith.constant dense<0.000000e+00> : vector<128x128xf32>
    %10 = tpu.matmul %8, %9, %cst {dimension_numbers = #tpu.dot_dimension_numbers<[1], [0], [0], [1], [0, 0, 1, 1], [], []>, precision = #tpu.contract_precision<fp32>} : vector<128x32xf32>, vector<32x128xf32>, vector<128x128xf32> -> vector<128x128xf32>
    %c0_5 = arith.constant 0 : index
    %c0_6 = arith.constant 0 : index
    %11 = vector.load %arg4[%c0_5, %c0_6] : memref<128x512xf32, #tpu.memory_space<vmem>>, vector<128x512xf32>
    %cst_7 = arith.constant dense<0.000000e+00> : vector<128x512xf32>
    %12 = tpu.matmul %10, %11, %cst_7 {dimension_numbers = #tpu.dot_dimension_numbers<[1], [0], [0], [1], [0, 0, 1, 1], [], []>, precision = #tpu.contract_precision<fp32>} : vector<128x128xf32>, vector<128x512xf32>, vector<128x512xf32> -> vector<128x512xf32>
    %13 = math.tanh %12 : vector<128x512xf32>
    %c0_8 = arith.constant 0 : index
    %c0_9 = arith.constant 0 : index
    %14 = vector.load %arg5[%c0_8, %c0_9] : memref<512x1xf32, #tpu.memory_space<vmem>>, vector<512x1xf32>
    %cst_10 = arith.constant dense<0.000000e+00> : vector<128x1xf32>
    %15 = tpu.matmul %13, %14, %cst_10 {dimension_numbers = #tpu.dot_dimension_numbers<[1], [0], [0], [1], [0, 0, 1, 1], [], []>, precision = #tpu.contract_precision<fp32>} : vector<128x512xf32>, vector<512x1xf32>, vector<128x1xf32> -> vector<128x1xf32>
    %c0_11 = arith.constant 0 : index
    %c0_12 = arith.constant 0 : index
    %16 = vector.load %arg2[%c0_11, %c0_12] : memref<8x16xi32, #tpu.memory_space<vmem>>, vector<8x16xi32>
    %17 = vector.extract_strided_slice %16 {offsets = [0, 0], sizes = [4, 16], strides = [1, 1]} : vector<8x16xi32> to vector<4x16xi32>
    %18 = vector.extract_strided_slice %16 {offsets = [4, 0], sizes = [4, 16], strides = [1, 1]} : vector<8x16xi32> to vector<4x16xi32>
    %19 = tpu.iota {dimensions = array<i32: 1>} : vector<4x16xi32>
    %20 = arith.sitofp %19 : vector<4x16xi32> to vector<4x16xf32>
    %21 = arith.cmpi ne, %17, %18 : vector<4x16xi32>
    %cst_13 = arith.constant 1.600000e+01 : f32
    %22 = vector.broadcast %cst_13 : f32 to vector<4x16xf32>
    %23 = arith.select %21, %20, %22 : vector<4x16xi1>, vector<4x16xf32>
    %cst_14 = arith.constant 0.000000e+00 : f32
    %24 = vector.broadcast %cst_14 : f32 to vector<4x16xf32>
    %25 = arith.subf %24, %23 : vector<4x16xf32>
    %cst_15 = arith.constant dense<0xFF800000> : vector<4xf32>
    %26 = vector.multi_reduction <maximumf>, %25, %cst_15 [1] : vector<4x16xf32> to vector<4xf32>
    %27 = vector.shape_cast %26 : vector<4xf32> to vector<4x1xf32>
    %cst_16 = arith.constant 0.000000e+00 : f32
    %28 = vector.broadcast %cst_16 : f32 to vector<4x1xf32>
    %29 = arith.subf %28, %27 : vector<4x1xf32>
    %c2_i32 = arith.constant 2 : i32
    %30 = vector.broadcast %c2_i32 : i32 to vector<4x16xi32>
    %31 = arith.cmpi eq, %17, %30 : vector<4x16xi32>
    %cst_17 = arith.constant 1.600000e+01 : f32
    %32 = vector.broadcast %cst_17 : f32 to vector<4x16xf32>
    %33 = arith.select %31, %20, %32 : vector<4x16xi1>, vector<4x16xf32>
    %cst_18 = arith.constant 0.000000e+00 : f32
    %34 = vector.broadcast %cst_18 : f32 to vector<4x16xf32>
    %35 = arith.subf %34, %33 : vector<4x16xf32>
    %cst_19 = arith.constant dense<0xFF800000> : vector<4xf32>
    %36 = vector.multi_reduction <maximumf>, %35, %cst_19 [1] : vector<4x16xf32> to vector<4xf32>
    %37 = vector.shape_cast %36 : vector<4xf32> to vector<4x1xf32>
    %cst_20 = arith.constant 0.000000e+00 : f32
    %38 = vector.broadcast %cst_20 : f32 to vector<4x1xf32>
    %39 = arith.subf %38, %37 : vector<4x1xf32>
    %c2_i32_21 = arith.constant 2 : i32
    %40 = vector.broadcast %c2_i32_21 : i32 to vector<4x16xi32>
    %41 = arith.cmpi eq, %18, %40 : vector<4x16xi32>
    %cst_22 = arith.constant 1.600000e+01 : f32
    %42 = vector.broadcast %cst_22 : f32 to vector<4x16xf32>
    %43 = arith.select %41, %20, %42 : vector<4x16xi1>, vector<4x16xf32>
    %cst_23 = arith.constant 0.000000e+00 : f32
    %44 = vector.broadcast %cst_23 : f32 to vector<4x16xf32>
    %45 = arith.subf %44, %43 : vector<4x16xf32>
    %cst_24 = arith.constant dense<0xFF800000> : vector<4xf32>
    %46 = vector.multi_reduction <maximumf>, %45, %cst_24 [1] : vector<4x16xf32> to vector<4xf32>
    %47 = vector.shape_cast %46 : vector<4xf32> to vector<4x1xf32>
    %cst_25 = arith.constant 0.000000e+00 : f32
    %48 = vector.broadcast %cst_25 : f32 to vector<4x1xf32>
    %49 = arith.subf %48, %47 : vector<4x1xf32>
    %50 = arith.maximumf %39, %49 : vector<4x1xf32>
    %cst_26 = arith.constant 1.000000e+00 : f32
    %51 = vector.broadcast %cst_26 : f32 to vector<4x1xf32>
    %52 = arith.addf %50, %51 : vector<4x1xf32>
    %53 = arith.subf %52, %29 : vector<4x1xf32>
    %cst_27 = arith.constant 1.000000e+00 : f32
    %54 = vector.broadcast %cst_27 : f32 to vector<4x1xf32>
    %55 = arith.maximumf %53, %54 : vector<4x1xf32>
    %cst_28 = arith.constant 1.000000e+00 : f32
    %56 = vector.broadcast %cst_28 : f32 to vector<4x1xf32>
    %57 = arith.divf %56, %55 : vector<4x1xf32>
    %58 = tpu.iota {dimensions = array<i32: 0>} : vector<4x1xi32>
    %59 = arith.sitofp %58 : vector<4x1xi32> to vector<4x1xf32>
    %cst_29 = arith.constant 1.600000e+01 : f32
    %60 = vector.broadcast %cst_29 : f32 to vector<4x1xf32>
    %61 = arith.mulf %59, %60 : vector<4x1xf32>
    %62 = arith.addf %29, %61 : vector<4x1xf32>
    %63 = arith.addf %52, %61 : vector<4x1xf32>
    %64 = tpu.iota {dimensions = array<i32: 0>} : vector<64x1xi32>
    %65 = tpu.iota {dimensions = array<i32: 1>} : vector<64x4xi32>
    %c16_i32 = arith.constant 16 : i32
    %66 = vector.broadcast %c16_i32 : i32 to vector<64x4xi32>
    %67 = arith.muli %65, %66 : vector<64x4xi32>
    %68 = vector.broadcast %64 : vector<64x1xi32> to vector<64x4xi32>
    %69 = arith.cmpi sge, %68, %67 : vector<64x4xi32>
    %c16_i32_30 = arith.constant 16 : i32
    %70 = vector.broadcast %c16_i32_30 : i32 to vector<64x4xi32>
    %71 = arith.addi %67, %70 : vector<64x4xi32>
    %72 = vector.broadcast %64 : vector<64x1xi32> to vector<64x4xi32>
    %73 = arith.cmpi slt, %72, %71 : vector<64x4xi32>
    %74 = arith.andi %69, %73 : vector<64x4xi1>
    %75 = arith.extui %74 : vector<64x4xi1> to vector<64x4xi32>
    %76 = arith.sitofp %75 : vector<64x4xi32> to vector<64x4xf32>
    %cst_31 = arith.constant dense<0.000000e+00> : vector<64x1xf32>
    %77 = tpu.matmul %76, %62, %cst_31 {dimension_numbers = #tpu.dot_dimension_numbers<[1], [0], [0], [1], [0, 0, 1, 1], [], []>, precision = #tpu.contract_precision<fp32>} : vector<64x4xf32>, vector<4x1xf32>, vector<64x1xf32> -> vector<64x1xf32>
    %cst_32 = arith.constant dense<0.000000e+00> : vector<64x1xf32>
    %78 = tpu.matmul %76, %63, %cst_32 {dimension_numbers = #tpu.dot_dimension_numbers<[1], [0], [0], [1], [0, 0, 1, 1], [], []>, precision = #tpu.contract_precision<fp32>} : vector<64x4xf32>, vector<4x1xf32>, vector<64x1xf32> -> vector<64x1xf32>
    %cst_33 = arith.constant dense<0.000000e+00> : vector<64x1xf32>
    %79 = tpu.matmul %76, %57, %cst_33 {dimension_numbers = #tpu.dot_dimension_numbers<[1], [0], [0], [1], [0, 0, 1, 1], [], []>, precision = #tpu.contract_precision<fp32>} : vector<64x4xf32>, vector<4x1xf32>, vector<64x1xf32> -> vector<64x1xf32>
    %80 = arith.sitofp %64 : vector<64x1xi32> to vector<64x1xf32>
    %81 = arith.cmpf oge, %80, %77 : vector<64x1xf32>
    %82 = arith.cmpf olt, %80, %78 : vector<64x1xf32>
    %83 = arith.andi %81, %82 : vector<64x1xi1>
    %cst_34 = arith.constant 0.000000e+00 : f32
    %84 = vector.broadcast %cst_34 : f32 to vector<64x1xf32>
    %85 = arith.select %83, %79, %84 : vector<64x1xi1>, vector<64x1xf32>
    %86 = vector.extract_strided_slice %15 {offsets = [0, 0], sizes = [64, 1], strides = [1, 1]} : vector<128x1xf32> to vector<64x1xf32>
    %87 = vector.extract_strided_slice %15 {offsets = [64, 0], sizes = [64, 1], strides = [1, 1]} : vector<128x1xf32> to vector<64x1xf32>
    %88 = arith.subf %86, %87 : vector<64x1xf32>
    %cst_35 = arith.constant 0.000000e+00 : f32
    %89 = vector.broadcast %cst_35 : f32 to vector<64x1xf32>
    %90 = arith.subf %89, %88 : vector<64x1xf32>
    %cst_36 = arith.constant 0.000000e+00 : f32
    %91 = vector.broadcast %cst_36 : f32 to vector<64x1xf32>
    %92 = arith.maximumf %90, %91 : vector<64x1xf32>
    %93 = math.absf %88 : vector<64x1xf32>
    %cst_37 = arith.constant 0.000000e+00 : f32
    %94 = vector.broadcast %cst_37 : f32 to vector<64x1xf32>
    %95 = arith.subf %94, %93 : vector<64x1xf32>
    %96 = math.exp %95 : vector<64x1xf32>
    %cst_38 = arith.constant 1.000000e+00 : f32
    %97 = vector.broadcast %cst_38 : f32 to vector<64x1xf32>
    %98 = arith.addf %97, %96 : vector<64x1xf32>
    %99 = math.log %98 : vector<64x1xf32>
    %100 = arith.addf %92, %99 : vector<64x1xf32>
    %101 = arith.mulf %100, %85 : vector<64x1xf32>
    %cst_39 = arith.constant dense<0.000000e+00> : vector<1xf32>
    %102 = vector.multi_reduction <add>, %101, %cst_39 [0] : vector<64x1xf32> to vector<1xf32>
    %103 = vector.shape_cast %102 : vector<1xf32> to vector<1x1xf32>
    %cst_40 = arith.constant 2.500000e-01 : f32
    %104 = vector.broadcast %cst_40 : f32 to vector<1x1xf32>
    %105 = arith.mulf %103, %104 : vector<1x1xf32>
    %106 = arith.mulf %86, %85 : vector<64x1xf32>
    %cst_41 = arith.constant dense<0.000000e+00> : vector<1xf32>
    %107 = vector.multi_reduction <add>, %106, %cst_41 [0] : vector<64x1xf32> to vector<1xf32>
    %108 = vector.shape_cast %107 : vector<1xf32> to vector<1x1xf32>
    %109 = arith.mulf %87, %85 : vector<64x1xf32>
    %cst_42 = arith.constant dense<0.000000e+00> : vector<1xf32>
    %110 = vector.multi_reduction <add>, %109, %cst_42 [0] : vector<64x1xf32> to vector<1xf32>
    %111 = vector.shape_cast %110 : vector<1xf32> to vector<1x1xf32>
    %112 = tpu.iota {dimensions = array<i32: 1>} : vector<1x128xi32>
    %c0_i32 = arith.constant 0 : i32
    %113 = vector.broadcast %c0_i32 : i32 to vector<1x128xi32>
    %114 = arith.cmpi eq, %112, %113 : vector<1x128xi32>
    %c1_i32 = arith.constant 1 : i32
    %115 = vector.broadcast %c1_i32 : i32 to vector<1x128xi32>
    %116 = arith.cmpi eq, %112, %115 : vector<1x128xi32>
    %c2_i32_43 = arith.constant 2 : i32
    %117 = vector.broadcast %c2_i32_43 : i32 to vector<1x128xi32>
    %118 = arith.cmpi eq, %112, %117 : vector<1x128xi32>
    %cst_44 = arith.constant 0.000000e+00 : f32
    %119 = vector.shape_cast %111 : vector<1x1xf32> to vector<1x1xf32>
    %120 = vector.broadcast %119 : vector<1x1xf32> to vector<1x128xf32>
    %121 = vector.broadcast %cst_44 : f32 to vector<1x128xf32>
    %122 = arith.select %118, %120, %121 : vector<1x128xi1>, vector<1x128xf32>
    %123 = vector.shape_cast %108 : vector<1x1xf32> to vector<1x1xf32>
    %124 = vector.broadcast %123 : vector<1x1xf32> to vector<1x128xf32>
    %125 = arith.select %116, %124, %122 : vector<1x128xi1>, vector<1x128xf32>
    %126 = vector.shape_cast %105 : vector<1x1xf32> to vector<1x1xf32>
    %127 = vector.broadcast %126 : vector<1x1xf32> to vector<1x128xf32>
    %128 = arith.select %114, %127, %125 : vector<1x128xi1>, vector<1x128xf32>
    %c0_45 = arith.constant 0 : index
    %c0_46 = arith.constant 0 : index
    %129 = vector.load %arg6[%c0_45, %c0_46] : memref<1x128xf32, #tpu.memory_space<vmem>>, vector<1x128xf32>
    tpu.vector_store %arg6[%c0_45, %c0_46], %128 {strides = array<i32>} : memref<1x128xf32, #tpu.memory_space<vmem>>, vector<1x128xf32>,
    return
  }
}

</mosaic_0001>

<bundles_post_ra>
// kernel: critic_forward.1
= control target key start
LH: loop header
LB: loop body
LE: loop exit
PB: predicated region body
PF: predicated region fallthrough
CT: control target
= control target key end

     0   :  { %v14129_v0 = vmov 0   ;;  %v20493_v5 = vmov 0.0   ;;  %vm253_vm1 = vcmask 261120   ;;  %s20483_s1 = inlined_call_operand.vmem [shape: f32[128,1], index: 1, kind: input, shape index: {}]   ;;  %s20484_s0 = inlined_call_operand.vmem [shape: s32[128,1], index: 0, kind: input, shape index: {}]   ;;  %s20485_s3 = inlined_call_operand.vmem [shape: f32[32,128], index: 3, kind: input, shape index: {}]   ;;  %s20486_s4 = inlined_call_operand.vmem [shape: f32[128,512], index: 4, kind: input, shape index: {}]   ;;  %s20487_s5 = inlined_call_operand.vmem [shape: f32[512,1], index: 5, kind: input, shape index: {}]   ;;  %s20488_s2 = inlined_call_operand.vmem [shape: s32[8,16], index: 2, kind: input, shape index: {}]   ;;  %s20489_s6 = inlined_call_operand.vmem [shape: f32[1,128], index: 6, kind: output, shape index: {}]  }
   0x1   :  { %13966 = vset.pattern.permute.xlu1 %v14129_v0  ;;  %13965 = vset.pattern.permute.xlu0 %v14129_v0  ;;  %v39_v1 = vld [vmem:[%s20483_s1] sm:$0xff]  ;;  %v40_v3 = vld [vmem:[%s20483_s1 + $0x8] sm:$0xff]  ;;  %v26_v6 = vld [vmem:[%s20484_s0 + $0x18] sm:$0xff]  ;;  %v20490_v0 = vlaneseq }
   0x2   :  { %v23_v2 = vld [vmem:[%s20484_s0] sm:$0xff]  ;;  %155 = vperm.xlu1 %13966, %v39_v1   ;;  %v24_v4 = vld [vmem:[%s20484_s0 + $0x8] sm:$0xff]  ;;  %1680 = vmatprep.mubr.f32.mxu1 %v20493_v5  ;;  %v25_v7 = vld [vmem:[%s20484_s0 + $0x10] sm:$0xff] }
   0x3   :  { %58 = vperm.xlu0 %13965, %v23_v2   ;;  %v42_v8 = vld [vmem:[%s20483_s1 + $0x18] sm:$0xff]  ;;  %v41_v9 = vld [vmem:[%s20483_s1 + $0x10] sm:$0xff]  ;;  %v249_v10 = vld [vmem:[%s20485_s3] sm:$0xff]  ;;  %v14337_v1 = vand.u32 127, %v20490_v0 }
   0x4   :  { %v250_v11 = vld [vmem:[%s20485_s3 + $0x8] sm:$0xff]  ;;  %v303_v12 = vand.u32 4294901760, %v249_v10  ;;  %v14200_v13 = vld [vmem:[%s20485_s3 + $0x10] sm:$0xff]  ;;  %v14205_v14 = vld [vmem:[%s20485_s3 + $0x18] sm:$0xff] }
   0x5   :  { %v306_v15 = vand.u32 4294901760, %v250_v11  ;;  %v309_v16 = vand.u32 4294901760, %v14200_v13  ;;  %v312_v17 = vand.u32 4294901760, %v14205_v14  ;;  %v28_v18 = vld [vmem:[%s20484_s0 + $0x28] sm:$0xff]  ;;  %v27_v19 = vld [vmem:[%s20484_s0 + $0x20] sm:$0xff]  ;;  %v30_v24 = vld [vmem:[%s20484_s0 + $0x38] sm:$0xff] }
   0x6   :  { %160 = vperm.xlu1 %13966, %v40_v3   ;;  %v44_v22 = vld [vmem:[%s20483_s1 + $0x28] sm:$0xff]  ;;  %v43_v23 = vld [vmem:[%s20483_s1 + $0x20] sm:$0xff]  ;;  %v29_v25 = vld [vmem:[%s20484_s0 + $0x30] sm:$0xff]  ;;  %v14281_v40 = vsub.f32 %v249_v10, %v303_v12  ;;  %21320 = vst [vmem:[#allocation2_spill] sm:$0xff] %v14337_v1 }
   0x7   :  { %61 = vperm.xlu0 %13965, %v24_v4   ;;  %v14215_v20 = vpack.c.bf16 %v306_v15, %v303_v12  ;;  %v14221_v21 = vpack.c.bf16 %v312_v17, %v309_v16  ;;  %v46_v26 = vld [vmem:[%s20483_s1 + $0x38] sm:$0xff]  ;;  %v45_v27 = vld [vmem:[%s20483_s1 + $0x30] sm:$0xff]  ;;  %v32_v28 = vld [vmem:[%s20484_s0 + $0x48] sm:$0xff]  ;;  %v14283_v41 = vsub.f32 %v250_v11, %v306_v15  ;;  %v14311_v53 = vsub.f32 %v14200_v13, %v309_v16 }
   0x8   :  { %v31_v29 = vld [vmem:[%s20484_s0 + $0x40] sm:$0xff]  ;;  %v48_v30 = vld [vmem:[%s20483_s1 + $0x48] sm:$0xff]  ;;  %v34_v32 = vld [vmem:[%s20484_s0 + $0x58] sm:$0xff]  ;;  %v534_v42 = vand.u32 4294901760, %v14281_v40  ;;  %v14316_v54 = vsub.f32 %v14205_v14, %v312_v17 }
   0x9   :  { %12596 = vmatprep.subr.bf16.mxu0 %v14215_v20  ;;  %v47_v31 = vld [vmem:[%s20483_s1 + $0x40] sm:$0xff]  ;;  %v33_v33 = vld [vmem:[%s20484_s0 + $0x50] sm:$0xff]  ;;  %v50_v34 = vld [vmem:[%s20483_s1 + $0x58] sm:$0xff]  ;;  %v541_v43 = vand.u32 4294901760, %v14283_v41  ;;  %v20511_v55 = vand.u32 4294901760, %v14311_v53  ;;  %v14330_v62 = vpack.c.bf16 %v14283_v41, %v14281_v40 }
   0xa   :  { %67 = vperm.xlu1 %13966, %v26_v6   ;;  %12598 = vmatpush3.bf16.msra.mxu0 %v14215_v20  ;;  %v49_v35 = vld [vmem:[%s20483_s1 + $0x50] sm:$0xff]  ;;  %v36_v36 = vld [vmem:[%s20484_s0 + $0x68] sm:$0xff]  ;;  %v35_v37 = vld [vmem:[%s20484_s0 + $0x60] sm:$0xff]  ;;  %v535_v46 = vsub.f32 %v14281_v40, %v534_v42  ;;  %v20510_v56 = vand.u32 4294901760, %v14316_v54  ;;  %v14334_v63 = vpack.c.bf16 %v14316_v54, %v14311_v53 }
   0xb   :  { %64 = vperm.xlu0 %13965, %v25_v7   ;;  %12600 = vmatprep.subr.bf16.mxu0 %v14221_v21  ;;  %v52_v38 = vld [vmem:[%s20483_s1 + $0x68] sm:$0xff]  ;;  %v51_v39 = vld [vmem:[%s20483_s1 + $0x60] sm:$0xff]  ;;  %v38_v44 = vld [vmem:[%s20484_s0 + $0x78] sm:$0xff]  ;;  %v542_v47 = vsub.f32 %v14283_v41, %v541_v43  ;;  %v549_v57 = vsub.f32 %v14311_v53, %v20511_v55 }
   0xc   :  { %v37_v45 = vld [vmem:[%s20484_s0 + $0x70] sm:$0xff]  ;;  %v536_v48 = vand.u32 4294901760, %v535_v46  ;;  %v54_v50 = vld [vmem:[%s20483_s1 + $0x78] sm:$0xff]  ;;  %v556_v58 = vsub.f32 %v14316_v54, %v20510_v56  ;;  %v14601_v40 = vld [vmem:[%s20486_s4 + $0x88] sm:$0xff] }
   0xd   :  { %v543_v49 = vand.u32 4294901760, %v542_v47  ;;  %v53_v51 = vld [vmem:[%s20483_s1 + $0x70] sm:$0xff]  ;;  %v550_v59 = vand.u32 4294901760, %v549_v57  ;;  %21325 = vst [vmem:[#allocation7_spill] sm:$0xff] %v14601_v40 }
   0xe   :  { %170 = vperm.xlu1 %13966, %v42_v8   ;;  %12602 = vmatpush3.bf16.msra.mxu0 %v14221_v21  ;;  %v557_v60 = vand.u32 4294901760, %v556_v58 }
   0xf   :  { %165 = vperm.xlu0 %13965, %v41_v9   ;;  %v14305_v52 = vpack.c.bf16 %v543_v49, %v536_v48 }
  0x10   :  { %v14326_v61 = vpack.c.bf16 %v557_v60, %v550_v59 }
  0x11   :  { %12604 = vmatprep.subr.bf16.mxu0 %v14305_v52 }
  0x12   :  { %73 = vperm.xlu1 %13966, %v28_v18  }
  0x13   :  { %70 = vperm.xlu0 %13965, %v27_v19  }
  0x16   :  { %180 = vperm.xlu1 %13966, %v44_v22  }
  0x17   :  { %175 = vperm.xlu0 %13965, %v43_v23  }
  0x1a   :  { %79 = vperm.xlu1 %13966, %v30_v24  }
  0x1b   :  { %76 = vperm.xlu0 %13965, %v29_v25  }
  0x1e   :  { %190 = vperm.xlu1 %13966, %v46_v26  }
  0x1f   :  { %185 = vperm.xlu0 %13965, %v45_v27  }
  0x22   :  { %85 = vperm.xlu1 %13966, %v32_v28  }
  0x23   :  { %82 = vperm.xlu0 %13965, %v31_v29  }
  0x26   :  { %200 = vperm.xlu1 %13966, %v48_v30  }
  0x27   :  { %195 = vperm.xlu0 %13965, %v47_v31  }
  0x2a   :  { %91 = vperm.xlu1 %13966, %v34_v32  }
  0x2b   :  { %88 = vperm.xlu0 %13965, %v33_v33  }
  0x2e   :  { %210 = vperm.xlu1 %13966, %v50_v34  }
  0x2f   :  { %205 = vperm.xlu0 %13965, %v49_v35  }
  0x32   :  { %97 = vperm.xlu1 %13966, %v36_v36  }
  0x33   :  { %94 = vperm.xlu0 %13965, %v35_v37  }
  0x36   :  { %220 = vperm.xlu1 %13966, %v52_v38  }
  0x37   :  { %215 = vperm.xlu0 %13965, %v51_v39  }
  0x3a   :  { %103 = vperm.xlu1 %13966, %v38_v44  }
  0x3b   :  { %100 = vperm.xlu0 %13965, %v37_v45  }
  0x3e   :  { %230 = vperm.xlu1 %13966, %v54_v50  }
  0x3f   :  { %225 = vperm.xlu0 %13965, %v53_v51  }
  0x81   :  { %v156_v2 = vpop.permute.xlu1 %155 }
  0x82   :  { %v59_v3 = vpop.permute.xlu0 %58 }
  0x83   :  { %vm105_vm0 = vcmp.eq.s32.totalorder %v59_v3, %v14337_v1 }
  0x84   :  { %v10813_v4 = vsel %vm105_vm0, 1.0, %v20493_v5 }
  0x85   :  { %v233_v6 = vmul.f32 %v10813_v4, %v156_v2  ;;  %v161_v7 = vpop.permute.xlu1 %160 }
  0x86   :  { %v62_v8 = vpop.permute.xlu0 %61 }
  0x87   :  { %v255_v9 = vsel %vm253_vm1, %v233_v6, 0  ;;  %vm106_vm2 = vcmp.eq.s32.totalorder %v62_v8, %v14337_v1 }
  0x88   :  { %v14343_v10 = vand.u32 4294901760, %v255_v9  ;;  %v10814_v11 = vsel %vm106_vm2, 1.0, %v20493_v5 }
  0x89   :  { %v234_v12 = vmul.f32 %v10814_v11, %v161_v7  ;;  %v68_v13 = vpop.permute.xlu1 %67 }
  0x8a   :  { %v65_v14 = vpop.permute.xlu0 %64  ;;  %v14347_v15 = vsub.f32 %v255_v9, %v14343_v10  ;;  %vm108_vm3 = vcmp.eq.s32.totalorder %v68_v13, %v14337_v1 }
  0x8b   :  { %v258_v16 = vsel %vm253_vm1, %v234_v12, 0  ;;  %vm107_vm4 = vcmp.eq.s32.totalorder %v65_v14, %v14337_v1  ;;  %v10816_v22 = vsel %vm108_vm3, 1.0, %v20493_v5  ;;  %vm8214_vm3 = vcmask 125952  }
  0x8c   :  { %v14352_v17 = vand.u32 4294901760, %v258_v16  ;;  %v20514_v18 = vand.u32 4294901760, %v14347_v15  ;;  %v10815_v24 = vsel %vm107_vm4, 1.0, %v20493_v5  ;;  %vm8226_vm4 = vcmask 130052  }
  0x8d   :  { %v171_v23 = vpop.permute.xlu1 %170 }
  0x8e   :  { %v14356_v19 = vsub.f32 %v258_v16, %v14352_v17  ;;  %v166_v25 = vpop.permute.xlu0 %165  ;;  %v374_v26 = vsub.f32 %v14347_v15, %v20514_v18  ;;  %v236_v27 = vmul.f32 %v10816_v22, %v171_v23 }
  0x8f   :  { %v235_v28 = vmul.f32 %v10815_v24, %v166_v25 }
  0x90   :  { %v375_v29 = vand.u32 4294901760, %v374_v26  ;;  %v20509_v30 = vand.u32 4294901760, %v14356_v19  ;;  %v264_v31 = vsel %vm253_vm1, %v236_v27, 0 }
  0x91   :  { %v261_v32 = vsel %vm253_vm1, %v235_v28, 0  ;;  %v14366_v33 = vand.u32 4294901760, %v264_v31  ;;  %v74_v35 = vpop.permute.xlu1 %73 }
  0x92   :  { %v14368_v34 = vand.u32 4294901760, %v261_v32  ;;  %12159 = vmatprep.mubr.f32.mxu0 %v375_v29  ;;  %v71_v36 = vpop.permute.xlu0 %70  ;;  %v384_v37 = vsub.f32 %v14356_v19, %v20509_v30  ;;  %vm110_vm5 = vcmp.eq.s32.totalorder %v74_v35, %v14337_v1  ;;  %v1456_v30 = vld [vmem:[%s20486_s4 + $0xc0] sm:$0xff] }
  0x93   :  { %vm109_vm6 = vcmp.eq.s32.totalorder %v71_v36, %v14337_v1  ;;  %v14376_v38 = vsub.f32 %v264_v31, %v14366_v33  ;;  %v10818_v45 = vsel %vm110_vm5, 1.0, %v20493_v5  ;;  %v1522_v18 = vand.u32 4294901760, %v1456_v30 }
  0x94   :  { %v14379_v39 = vsub.f32 %v261_v32, %v14368_v34  ;;  %v385_v44 = vand.u32 4294901760, %v384_v37  ;;  %v10817_v47 = vsel %vm109_vm6, 1.0, %v20493_v5  ;;  %vm8295_vm6 = vcmask 31744  }
  0x95   :  { %v181_v46 = vpop.permute.xlu1 %180  ;;  %v20505_v50 = vand.u32 4294901760, %v14376_v38 }
  0x96   :  { %12160 = vmatmul.mubr.f32.vlgmr.msra.gmra.mrb[0].mxu0 %v385_v44  ;;  %v176_v48 = vpop.permute.xlu0 %175  ;;  %v20506_v49 = vand.u32 4294901760, %v14379_v39  ;;  %v238_v51 = vmul.f32 %v10818_v45, %v181_v46 }
  0x97   :  { %v237_v57 = vmul.f32 %v10817_v47, %v176_v48  ;;  %12606 = vmatpush3.bf16.msra.mxu0 %v14305_v52  ;;  %v404_v59 = vsub.f32 %v14376_v38, %v20505_v50  ;;  %v1448_v50 = vld [vmem:[%s20486_s4 + $0x80] sm:$0xff] }
  0x98   :  { %v394_v58 = vsub.f32 %v14379_v39, %v20506_v49  ;;  %12608 = vmatprep.subr.bf16.mxu0 %v14326_v61  ;;  %v270_v60 = vsel %vm253_vm1, %v238_v51, 0  ;;  %v1452_v49 = vld [vmem:[%s20486_s4 + $0xa0] sm:$0xff] }
  0x99   :  { %v267_v2 = vsel %vm253_vm1, %v237_v57, 0  ;;  %v14395_v3 = vand.u32 4294901760, %v270_v60  ;;  %v80_v6 = vpop.permute.xlu1 %79  ;;  %v405_v8 = vand.u32 4294901760, %v404_v59 }
  0x9a   :  { %v14397_v4 = vand.u32 4294901760, %v267_v2  ;;  %v77_v52 = vpop.permute.xlu0 %76  ;;  %v395_v7 = vand.u32 4294901760, %v394_v58  ;;  %vm112_vm7 = vcmp.eq.s32.totalorder %v80_v6, %v14337_v1 }
  0x9b   :  { %vm111_vm8 = vcmp.eq.s32.totalorder %v77_v52, %v14337_v1  ;;  %12610 = vmatpush3.bf16.msra.mxu0 %v14326_v61  ;;  %v14403_v9 = vsub.f32 %v270_v60, %v14395_v3  ;;  %v10820_v12 = vsel %vm112_vm7, 1.0, %v20493_v5 }
  0x9c   :  { %v14406_v11 = vsub.f32 %v267_v2, %v14397_v4  ;;  %12162 = vmatprep.mubr.f32.mxu0 %v395_v7  ;;  %12612 = vmatprep.subr.bf16.mxu0 %v14330_v62  ;;  %v10819_v14 = vsel %vm111_vm8, 1.0, %v20493_v5 }
  0x9d   :  { %12163 = vmatmul.mubr.f32.gmra.mrb[2].mxu0 %v405_v8  ;;  %v191_v13 = vpop.permute.xlu1 %190  ;;  %v20503_v61 = vand.u32 4294901760, %v14403_v9 }
  0x9e   :  { %v186_v16 = vpop.permute.xlu0 %185  ;;  %v20504_v22 = vand.u32 4294901760, %v14406_v11  ;;  %v240_v23 = vmul.f32 %v10820_v12, %v191_v13 }
  0x9f   :  { %v239_v24 = vmul.f32 %v10819_v14, %v186_v16  ;;  %v424_v26 = vsub.f32 %v14403_v9, %v20503_v61 }
  0xa0   :  { %v414_v25 = vsub.f32 %v14406_v11, %v20504_v22  ;;  %v276_v27 = vsel %vm253_vm1, %v240_v23, 0  ;;  %v14615_v22 = vld [vmem:[%s20486_s4 + $0xa8] sm:$0xff] }
  0xa1   :  { %v273_v28 = vsel %vm253_vm1, %v239_v24, 0  ;;  %v14421_v29 = vand.u32 4294901760, %v276_v27  ;;  %v86_v32 = vpop.permute.xlu1 %85  ;;  %v425_v37 = vand.u32 4294901760, %v424_v26  ;;  %21328 = vst [vmem:[#allocation10_spill] sm:$0xff] %v14615_v22 }
  0xa2   :  { %v14423_v31 = vand.u32 4294901760, %v273_v28  ;;  %v83_v35 = vpop.permute.xlu0 %82  ;;  %v415_v36 = vand.u32 4294901760, %v414_v25  ;;  %vm114_vm9 = vcmp.eq.s32.totalorder %v86_v32, %v14337_v1 }
  0xa3   :  { %vm113_vm10 = vcmp.eq.s32.totalorder %v83_v35, %v14337_v1  ;;  %v14428_v44 = vsub.f32 %v276_v27, %v14421_v29  ;;  %v10822_v46 = vsel %vm114_vm9, 1.0, %v20493_v5 }
  0xa4   :  { %v14431_v45 = vsub.f32 %v273_v28, %v14423_v31  ;;  %12165 = vmatprep.mubr.f32.mxu0 %v415_v36  ;;  %v10821_v48 = vsel %vm113_vm10, 1.0, %v20493_v5  ;;  %vm8320_vm10 = vcmask 1043456  }
  0xa5   :  { %12166 = vmatmul.mubr.f32.gmra.mrb[4].mxu0 %v425_v37  ;;  %v201_v47 = vpop.permute.xlu1 %200  ;;  %v20497_v58 = vand.u32 4294901760, %v14428_v44 }
  0xa6   :  { %v196_v51 = vpop.permute.xlu0 %195  ;;  %v20502_v57 = vand.u32 4294901760, %v14431_v45  ;;  %v242_v59 = vmul.f32 %v10822_v46, %v201_v47 }
  0xa7   :  { %v241_v60 = vmul.f32 %v10821_v48, %v196_v51  ;;  %v444_v6 = vsub.f32 %v14428_v44, %v20497_v58 }
  0xa8   :  { %v434_v2 = vsub.f32 %v14431_v45, %v20502_v57  ;;  %v282_v52 = vsel %vm253_vm1, %v242_v59, 0  ;;  %v1444_v57 = vld [vmem:[%s20486_s4 + $0x60] sm:$0xff] }
  0xa9   :  { %v279_v7 = vsel %vm253_vm1, %v241_v60, 0  ;;  %v14445_v8 = vand.u32 4294901760, %v282_v52  ;;  %v92_v13 = vpop.permute.xlu1 %91  ;;  %v445_v23 = vand.u32 4294901760, %v444_v6  ;;  %v1510_v61 = vand.u32 4294901760, %v1444_v57 }
  0xaa   :  { %v14447_v12 = vand.u32 4294901760, %v279_v7  ;;  %v89_v14 = vpop.permute.xlu0 %88  ;;  %v435_v16 = vand.u32 4294901760, %v434_v2  ;;  %vm116_vm11 = vcmp.eq.s32.totalorder %v92_v13, %v14337_v1 }
  0xab   :  { %vm115_vm12 = vcmp.eq.s32.totalorder %v89_v14, %v14337_v1  ;;  %v14452_v24 = vsub.f32 %v282_v52, %v14445_v8  ;;  %v10824_v26 = vsel %vm116_vm11, 1.0, %v20493_v5  ;;  %v14641_v55 = vsub.f32 %v1444_v57, %v1510_v61  ;;  %v14657_v57 = vld [vmem:[%s20486_s4 + $0xe8] sm:$0xff] }
  0xac   :  { %v14455_v25 = vsub.f32 %v279_v7, %v14447_v12  ;;  %12168 = vmatprep.mubr.f32.mxu0 %v435_v16  ;;  %v10823_v28 = vsel %vm115_vm12, 1.0, %v20493_v5 }
  0xad   :  { %12169 = vmatmul.mubr.f32.gmra.mrb[6].mxu0 %v445_v23  ;;  %v211_v27 = vpop.permute.xlu1 %210  ;;  %v20495_v36 = vand.u32 4294901760, %v14452_v24  ;;  %21333 = vst [vmem:[#allocation15_spill] sm:$0xff] %v14641_v55 }
  0xae   :  { %v206_v32 = vpop.permute.xlu0 %205  ;;  %v20496_v35 = vand.u32 4294901760, %v14455_v25  ;;  %v244_v37 = vmul.f32 %v10824_v26, %v211_v27 }
  0xaf   :  { %v243_v46 = vmul.f32 %v10823_v28, %v206_v32  ;;  %v464_v48 = vsub.f32 %v14452_v24, %v20495_v36 }
  0xb0   :  { %v454_v47 = vsub.f32 %v14455_v25, %v20496_v35  ;;  %v288_v51 = vsel %vm253_vm1, %v244_v37, 0 }
  0xb1   :  { %v285_v59 = vsel %vm253_vm1, %v243_v46, 0  ;;  %v14469_v60 = vand.u32 4294901760, %v288_v51  ;;  %v98_v6 = vpop.permute.xlu1 %97  ;;  %v465_v13 = vand.u32 4294901760, %v464_v48 }
  0xb2   :  { %v14471_v2 = vand.u32 4294901760, %v285_v59  ;;  %v95_v52 = vpop.permute.xlu0 %94  ;;  %v455_v7 = vand.u32 4294901760, %v454_v47  ;;  %vm118_vm13 = vcmp.eq.s32.totalorder %v98_v6, %v14337_v1 }
  0xb3   :  { %vm117_vm14 = vcmp.eq.s32.totalorder %v95_v52, %v14337_v1  ;;  %v14476_v14 = vsub.f32 %v288_v51, %v14469_v60  ;;  %v10826_v23 = vsel %vm118_vm13, 1.0, %v20493_v5 }
  0xb4   :  { %v14479_v16 = vsub.f32 %v285_v59, %v14471_v2  ;;  %12171 = vmatprep.mubr.f32.mxu0 %v455_v7  ;;  %v10825_v27 = vsel %vm117_vm14, 1.0, %v20493_v5 }
  0xb5   :  { %12172 = vmatmul.mubr.f32.gmra.mrb[8].mxu0 %v465_v13  ;;  %v221_v26 = vpop.permute.xlu1 %220  ;;  %v20491_v37 = vand.u32 4294901760, %v14476_v14 }
  0xb6   :  { %v216_v28 = vpop.permute.xlu0 %215  ;;  %v20492_v32 = vand.u32 4294901760, %v14479_v16  ;;  %v246_v46 = vmul.f32 %v10826_v23, %v221_v26 }
  0xb7   :  { %v245_v47 = vmul.f32 %v10825_v27, %v216_v28  ;;  %v484_v51 = vsub.f32 %v14476_v14, %v20491_v37 }
  0xb8   :  { %v474_v48 = vsub.f32 %v14479_v16, %v20492_v32  ;;  %v294_v59 = vsel %vm253_vm1, %v246_v46, 0 }
  0xb9   :  { %v291_v6 = vsel %vm253_vm1, %v245_v47, 0  ;;  %v14493_v52 = vand.u32 4294901760, %v294_v59  ;;  %v104_v13 = vpop.permute.xlu1 %103  ;;  %v485_v26 = vand.u32 4294901760, %v484_v51 }
  0xba   :  { %v14495_v7 = vand.u32 4294901760, %v291_v6  ;;  %v101_v0 = vpop.permute.xlu0 %100  ;;  %v475_v23 = vand.u32 4294901760, %v474_v48  ;;  %vm120_vm15 = vcmp.eq.s32.totalorder %v104_v13, %v14337_v1 }
  0xbb   :  { %vm119_vm0 = vcmp.eq.s32.totalorder %v101_v0, %v14337_v1  ;;  %v14500_v27 = vsub.f32 %v294_v59, %v14493_v52  ;;  %v10828_v46 = vsel %vm120_vm15, 1.0, %v20493_v5  ;;  %v1468_v1 = vld [vmem:[%s20486_s4 + $0x120] sm:$0xff] }
  0xbc   :  { %v14503_v28 = vsub.f32 %v291_v6, %v14495_v7  ;;  %12174 = vmatprep.mubr.f32.mxu0 %v475_v23  ;;  %v10827_v37 = vsel %vm119_vm0, 1.0, %v20493_v5 }
  0xbd   :  { %12175 = vmatmul.mubr.f32.gmra.mrb[10].mxu0 %v485_v26  ;;  %v231_v47 = vpop.permute.xlu1 %230  ;;  %v20500_v51 = vand.u32 4294901760, %v14500_v27 }
  0xbe   :  { %v226_v32 = vpop.permute.xlu0 %225  ;;  %v20501_v48 = vand.u32 4294901760, %v14503_v28  ;;  %v248_v13 = vmul.f32 %v10828_v46, %v231_v47 }
  0xbf   :  { %v247_v0 = vmul.f32 %v10827_v37, %v226_v32  ;;  %v504_v6 = vsub.f32 %v14500_v27, %v20500_v51 }
  0xc0   :  { %v494_v59 = vsub.f32 %v14503_v28, %v20501_v48  ;;  %v300_v23 = vsel %vm253_vm1, %v248_v13, 0  ;;  %v1440_v48 = vld [vmem:[%s20486_s4 + $0x40] sm:$0xff] }
  0xc1   :  { %v297_v26 = vsel %vm253_vm1, %v247_v0, 0  ;;  %v14517_v5 = vand.u32 4294901760, %v300_v23  ;;  %v505_v58 = vand.u32 4294901760, %v504_v6 }
  0xc2   :  { %v14519_v36 = vand.u32 4294901760, %v297_v26  ;;  %v495_v35 = vand.u32 4294901760, %v494_v59 }
  0xc3   :  { %v14522_v32 = vsub.f32 %v300_v23, %v14517_v5 }
  0xc4   :  { %v14525_v37 = vsub.f32 %v297_v26, %v14519_v36  ;;  %12177 = vmatprep.mubr.f32.mxu0 %v495_v35  ;;  %v1436_v26 = vld [vmem:[%s20486_s4 + $0x20] sm:$0xff] }
  0xc5   :  { %12178 = vmatmul.mubr.f32.gmra.mrb[12].mxu0 %v505_v58  ;;  %v20498_v47 = vand.u32 4294901760, %v14522_v32  ;;  %v1432_v58 = vld [vmem:[%s20486_s4] sm:$0xff] }
  0xc6   :  { %v20499_v46 = vand.u32 4294901760, %v14525_v37 }
  0xc7   :  { %v524_v0 = vsub.f32 %v14522_v32, %v20498_v47  ;;  %v1502_v47 = vand.u32 4294901760, %v1436_v26 }
  0xc8   :  { %v514_v13 = vsub.f32 %v14525_v37, %v20499_v46 }
  0xc9   :  { %v525_v6 = vand.u32 4294901760, %v524_v0  ;;  %v14577_v0 = vld [vmem:[%s20486_s4 + $0x48] sm:$0xff] }
  0xca   :  { %v515_v59 = vand.u32 4294901760, %v514_v13  ;;  %v1498_v13 = vand.u32 4294901760, %v1432_v58  ;;  %21323 = vst [vmem:[#allocation5_spill] sm:$0xff] %v14577_v0  ;;  %v20513_v46 = vand.u32 4294901760, %v14577_v0 }
  0xcc   :  { %12180 = vmatprep.mubr.f32.mxu0 %v515_v59  ;;  %v14582_v59 = vld [vmem:[%s20486_s4 + $0x68] sm:$0xff] }
  0xcd   :  { %12181 = vmatmul.mubr.f32.gmra.mrb[14].mxu0 %v525_v6  ;;  %21324 = vst [vmem:[#allocation6_spill] sm:$0xff] %v14582_v59  ;;  %v14588_v6 = vpack.c.bf16 %v541_v43, %v534_v42  ;;  %v20512_v51 = vand.u32 4294901760, %v14582_v59  ;;  %v14610_v42 = vsub.f32 %v1432_v58, %v1498_v13  ;;  %v1506_v43 = vand.u32 4294901760, %v1440_v48 }
  0xce   :  { %12191 = vmatprep.mubr.f32.mxu0 %v14343_v10  ;;  %v14625_v58 = vpack.c.bf16 %v1502_v47, %v1498_v13  ;;  %v1464_v13 = vld [vmem:[%s20486_s4 + $0x100] sm:$0xff] }
  0xcf   :  { %21327 = vst [vmem:[#allocation9_spill] sm:$0xff] %v14610_v42  ;;  %v14639_v56 = vsub.f32 %v1440_v48, %v1506_v43  ;;  %v1518_v48 = vand.u32 4294901760, %v1452_v49  ;;  %v14670_v59 = vpack.c.bf16 %v1510_v61, %v1506_v43  ;;  %v21338_v42 = vand.u32 4294901760, %v14615_v22 }
  0xd0   :  { %21329 = vst [vmem:[#allocation11_spill] sm:$0xff] %v14625_v58  ;;  %v1530_v43 = vand.u32 4294901760, %v1464_v13 }
  0xd1   :  { %12192 = vmatmul.mubr.f32.vlgmr.msra.gmra.mrb[0].mxu0 %v14352_v17  ;;  %21332 = vst [vmem:[#allocation14_spill] sm:$0xff] %v14639_v56  ;;  %21334 = vst [vmem:[#allocation16_spill] sm:$0xff] %v14670_v59  ;;  %v14674_v55 = vsub.f32 %v1452_v49, %v1518_v48  ;;  %v14692_v49 = vld [vmem:[%s20486_s4 + $0x108] sm:$0xff]  ;;  %v1534_v56 = vand.u32 4294901760, %v1468_v1 }
  0xd2   :  { %12614 = vmatpush3.bf16.msra.mxu0 %v14330_v62  ;;  %12194 = vmatprep.mubr.f32.mxu0 %v14368_v34  ;;  %v14559_v62 = vld [vmem:[%s20486_s4 + $0x8] sm:$0xff] }
  0xd3   :  { %12616 = vmatprep.subr.bf16.mxu0 %v14334_v63  ;;  %21321 = vst [vmem:[#allocation3_spill] sm:$0xff] %v14559_v62  ;;  %v20508_v35 = vand.u32 4294901760, %v14559_v62  ;;  %21336 = vst [vmem:[#allocation18_spill] sm:$0xff] %v14674_v55  ;;  %v20538_v62 = vand.u32 4294901760, %v14657_v57 }
  0xd5   :  { %12195 = vmatmul.mubr.f32.gmra.mrb[2].mxu0 %v14366_v33 }
  0xd6   :  { %12197 = vmatprep.mubr.f32.mxu0 %v14397_v4  ;;  %12618 = vmatpush3.bf16.msra.mxu0 %v14334_v63  ;;  %v14564_v63 = vld [vmem:[%s20486_s4 + $0x28] sm:$0xff] }
  0xd7   :  { %12620 = vmatprep.subr.bf16.mxu0 %v14215_v20  ;;  %21322 = vst [vmem:[#allocation4_spill] sm:$0xff] %v14564_v63  ;;  %v20507_v23 = vand.u32 4294901760, %v14564_v63 }
  0xd9   :  { %12198 = vmatmul.mubr.f32.gmra.mrb[4].mxu0 %v14395_v3  ;;  %v14608_v41 = vpack.c.bf16 %v20507_v23, %v20508_v35  ;;  %v14627_v23 = vsub.f32 %v1436_v26, %v1502_v47  ;;  %v14633_v35 = vpack.c.bf16 %v20512_v51, %v20513_v46  ;;  %v14648_v26 = vld [vmem:[%s20486_s4 + $0xc8] sm:$0xff]  ;;  %v1460_v51 = vld [vmem:[%s20486_s4 + $0xe0] sm:$0xff]  ;;  %v1514_v46 = vand.u32 4294901760, %v1448_v50 }
  0xda   :  { %12200 = vmatprep.mubr.f32.mxu0 %v14423_v31  ;;  %v1526_v47 = vand.u32 4294901760, %v1460_v51 }
  0xdb   :  { %21326 = vst [vmem:[#allocation8_spill] sm:$0xff] %v14608_v41  ;;  %21330 = vst [vmem:[#allocation12_spill] sm:$0xff] %v14627_v23  ;;  %13411 = vmatprep.subr.bf16.mxu1 %v14608_v41  ;;  %v14672_v0 = vsub.f32 %v1448_v50, %v1514_v46  ;;  %v21337_v23 = vand.u32 4294901760, %v14601_v40  ;;  %v14697_v50 = vld [vmem:[%s20486_s4 + $0x128] sm:$0xff]  ;;  %v20537_v40 = vand.u32 4294901760, %v14692_v49 }
  0xdc   :  { %21331 = vst [vmem:[#allocation13_spill] sm:$0xff] %v14633_v35  ;;  %13419 = vmatpush1.bf16.msra.mxu1 %v14625_v58  ;;  %v14687_v61 = vsub.f32 %v1460_v51, %v1526_v47  ;;  %v14705_v51 = vsub.f32 %v1464_v13, %v1530_v43  ;;  %v14733_v13 = vpack.c.bf16 %v1534_v56, %v1530_v43  ;;  %v21353_v43 = vand.u32 4294901760, %v14356_v19 }
  0xdd   :  { %12201 = vmatmul.mubr.f32.gmra.mrb[6].mxu0 %v14421_v29  ;;  %13412 = vmatprep.subr.bf16.mxu1 %v14633_v35  ;;  %21335 = vst [vmem:[#allocation17_spill] sm:$0xff] %v14672_v0  ;;  %v14682_v63 = vpack.c.bf16 %v21338_v42, %v21337_v23  ;;  %v14685_v35 = vsub.f32 %v1456_v30, %v1522_v18  ;;  %v21345_v42 = vand.u32 4294901760, %v14648_v26 }
  0xde   :  { %12203 = vmatprep.mubr.f32.mxu0 %v14447_v12  ;;  %21341 = vst [vmem:[#allocation21_spill] sm:$0xff] %v14687_v61  ;;  %v14703_v30 = vpack.c.bf16 %v1518_v48, %v1514_v46  ;;  %21343 = vst [vmem:[#allocation23_spill] sm:$0xff] %v14705_v51  ;;  %v14707_v23 = vsub.f32 %v1468_v1, %v1534_v56  ;;  %v20536_v61 = vand.u32 4294901760, %v14697_v50  ;;  %v21352_v56 = vand.u32 4294901760, %v14316_v54 }
  0xdf   :  { %21339 = vst [vmem:[#allocation19_spill] sm:$0xff] %v14682_v63  ;;  %21340 = vst [vmem:[#allocation20_spill] sm:$0xff] %v14685_v35  ;;  %v14713_v22 = vpack.c.bf16 %v20538_v62, %v21345_v42  ;;  %v14721_v1 = vpack.c.bf16 %v1526_v47, %v1522_v18  ;;  %v21350_v18 = vand.u32 4294901760, %v14347_v15  ;;  %v21351_v47 = vand.u32 4294901760, %v14311_v53 }
  0xe0   :  { %13420 = vmatpush1.bf16.msra.mxu1 %v14670_v59  ;;  %21342 = vst [vmem:[#allocation22_spill] sm:$0xff] %v14703_v30  ;;  %21344 = vst [vmem:[#allocation24_spill] sm:$0xff] %v14707_v23  ;;  %v14727_v46 = vpack.c.bf16 %v20536_v61, %v20537_v40  ;;  %v21354_v42 = vand.u32 4294901760, %v14379_v39  ;;  %v21355_v61 = vand.u32 4294901760, %v14376_v38  ;;  %v21357_v53 = vand.u32 4294901760, %v14403_v9 }
  0xe1   :  { %12204 = vmatmul.mubr.f32.gmra.mrb[8].mxu0 %v14445_v8  ;;  %13413 = vmatprep.subr.bf16.mxu1 %v14682_v63  ;;  %21346 = vst [vmem:[#allocation25_spill] sm:$0xff] %v14713_v22  ;;  %21347 = vst [vmem:[#allocation26_spill] sm:$0xff] %v14721_v1  ;;  %v12631_v48 = vpack.c.bf16 %v21352_v56, %v21351_v47  ;;  %v21358_v54 = vand.u32 4294901760, %v14431_v45  ;;  %v1492_v47 = vld [vmem:[%s20486_s4 + $0x1e0] sm:$0xff] }
  0xe2   :  { %12206 = vmatprep.mubr.f32.mxu0 %v14471_v2  ;;  %21348 = vst [vmem:[#allocation27_spill] sm:$0xff] %v14727_v46  ;;  %21349 = vst [vmem:[#allocation28_spill] sm:$0xff] %v14733_v13 }
  0xe4   :  { %13421 = vmatpush1.bf16.msra.mxu1 %v14703_v30 }
  0xe5   :  { %12207 = vmatmul.mubr.f32.gmra.mrb[10].mxu0 %v14469_v60  ;;  %13414 = vmatprep.subr.bf16.mxu1 %v14713_v22 }
  0xe6   :  { %12209 = vmatprep.mubr.f32.mxu0 %v14495_v7 }
  0xe8   :  { %13422 = vmatpush1.bf16.msra.mxu1 %v14721_v1 }
  0xe9   :  { %12210 = vmatmul.mubr.f32.gmra.mrb[12].mxu0 %v14493_v52  ;;  %13415 = vmatprep.subr.bf16.mxu1 %v14727_v46 }
  0xea   :  { %12212 = vmatprep.mubr.f32.mxu0 %v14519_v36 }
  0xec   :  { %13423 = vmatpush1.bf16.msra.mxu1 %v14733_v13 }
  0xed   :  { %12213 = vmatmul.mubr.f32.gmra.mrb[14].mxu0 %v14517_v5 }
  0xee   :  { %12223 = vmatprep.mubr.f32.mxu0 %v14347_v15  ;;  %v21356_v15 = vand.u32 4294901760, %v14406_v11 }
  0xf1   :  { %12224 = vmatmul.mubr.f32.vlgmr.msra.gmra.mrb[0].mxu0 %v14356_v19  ;;  %v21359_v19 = vand.u32 4294901760, %v14428_v44 }
  0xf2   :  { %12622 = vmatpush3.bf16.msra.mxu0 %v14215_v20  ;;  %12226 = vmatprep.mubr.f32.mxu0 %v14379_v39  ;;  %v21360_v39 = vand.u32 4294901760, %v14455_v25 }
  0xf3   :  { %12624 = vmatprep.subr.bf16.mxu0 %v14221_v21 }
  0xf5   :  { %12227 = vmatmul.mubr.f32.gmra.mrb[2].mxu0 %v14376_v38  ;;  %v21361_v38 = vand.u32 4294901760, %v14452_v24 }
  0xf6   :  { %12229 = vmatprep.mubr.f32.mxu0 %v14406_v11  ;;  %12626 = vmatpush3.bf16.msra.mxu0 %v14221_v21  ;;  %v21362_v11 = vand.u32 4294901760, %v14479_v16 }
  0xf7   :  { %12628 = vmatprep.subr.bf16.mxu0 %v14588_v6 }
  0xf9   :  { %12230 = vmatmul.mubr.f32.gmra.mrb[4].mxu0 %v14403_v9  ;;  %v21364_v9 = vand.u32 4294901760, %v14503_v28 }
  0xfa   :  { %12232 = vmatprep.mubr.f32.mxu0 %v14431_v45  ;;  %v21365_v45 = vand.u32 4294901760, %v14500_v27 }
  0xfd   :  { %12233 = vmatmul.mubr.f32.gmra.mrb[6].mxu0 %v14428_v44  ;;  %v21366_v44 = vand.u32 4294901760, %v14525_v37 }
  0xfe   :  { %12235 = vmatprep.mubr.f32.mxu0 %v14455_v25  ;;  %v21367_v25 = vand.u32 4294901760, %v14522_v32 }
 0x101   :  { %12236 = vmatmul.mubr.f32.gmra.mrb[8].mxu0 %v14452_v24  ;;  %v14859_v24 = vld [vmem:[%s20486_s4 + $0x1a8] sm:$0xff] }
 0x102   :  { %12238 = vmatprep.mubr.f32.mxu0 %v14479_v16 }
 0x105   :  { %12239 = vmatmul.mubr.f32.gmra.mrb[10].mxu0 %v14476_v14 }
 0x106   :  { %12241 = vmatprep.mubr.f32.mxu0 %v14503_v28  ;;  %v14884_v28 = vld [vmem:[%s20486_s4 + $0x1c8] sm:$0xff] }
 0x109   :  { %12242 = vmatmul.mubr.f32.gmra.mrb[12].mxu0 %v14500_v27 }
 0x10a   :  { %12244 = vmatprep.mubr.f32.mxu0 %v14525_v37  ;;  %v20541_v37 = vand.u32 4294901760, %v14884_v28 }
 0x10d   :  { %12245 = vmatmul.mubr.f32.gmra.mrb[14].mxu0 %v14522_v32  ;;  %v14889_v32 = vld [vmem:[%s20486_s4 + $0x1e8] sm:$0xff] }
 0x10e   :  { %12255 = vmatprep.mubr.f32.mxu0 %v21350_v18  ;;  %v1488_v18 = vld [vmem:[%s20486_s4 + $0x1c0] sm:$0xff] }
 0x10f   :  { %v1554_v56 = vand.u32 4294901760, %v1488_v18 }
 0x111   :  { %12256 = vmatmul.mubr.f32.vlgmr.msra.gmra.mrb[0].mxu0 %v21353_v43 }
 0x112   :  { %12630 = vmatpush3.bf16.msra.mxu0 %v14588_v6  ;;  %12258 = vmatprep.mubr.f32.mxu0 %v21354_v42  ;;  %v21363_v6 = vand.u32 4294901760, %v14476_v14  ;;  %v1484_v14 = vld [vmem:[%s20486_s4 + $0x1a0] sm:$0xff] }
 0x113   :  { %12632 = vmatprep.subr.bf16.mxu0 %v12631_v48 }
 0x115   :  { %12259 = vmatmul.mubr.f32.gmra.mrb[2].mxu0 %v21355_v61  ;;  %v20540_v61 = vand.u32 4294901760, %v14889_v32 }
 0x116   :  { %12261 = vmatprep.mubr.f32.mxu0 %v21356_v15  ;;  %12634 = vmatpush3.bf16.msra.mxu0 %v12631_v48  ;;  %v1558_v48 = vand.u32 4294901760, %v1492_v47  ;;  %v1435_v15 = vld [vmem:[%s20486_s4 + $0x18] sm:$0xff] }
 0x117   :  { %12636 = vmatprep.subr.bf16.mxu0 %v14215_v20  ;;  %v14907_v43 = vpack.c.bf16 %v20540_v61, %v20541_v37  ;;  %v21394_v37 = vld [vmem:[#allocation15_spill] sm:$0xff] }
 0x118   :  { %v14909_v42 = vpack.c.bf16 %v1558_v48, %v1554_v56 }
 0x119   :  { %12262 = vmatmul.mubr.f32.gmra.mrb[4].mxu0 %v21357_v53  ;;  %21374 = vst [vmem:[#allocation33_spill] sm:$0xff] %v14907_v43  ;;  %v1439_v53 = vld [vmem:[%s20486_s4 + $0x38] sm:$0xff] }
 0x11a   :  { %12264 = vmatprep.mubr.f32.mxu0 %v21358_v54  ;;  %21375 = vst [vmem:[#allocation34_spill] sm:$0xff] %v14909_v42  ;;  %v3086_v54 = vand.u32 4294901760, %v1435_v15 }
 0x11d   :  { %12265 = vmatmul.mubr.f32.gmra.mrb[6].mxu0 %v21359_v19  ;;  %v3090_v19 = vand.u32 4294901760, %v1439_v53 }
 0x11e   :  { %12267 = vmatprep.mubr.f32.mxu0 %v21360_v39 }
 0x121   :  { %12268 = vmatmul.mubr.f32.gmra.mrb[8].mxu0 %v21361_v38 }
 0x122   :  { %12270 = vmatprep.mubr.f32.mxu0 %v21362_v11 }
 0x125   :  { %12271 = vmatmul.mubr.f32.gmra.mrb[10].mxu0 %v21363_v6 }
 0x126   :  { %12273 = vmatprep.mubr.f32.mxu0 %v21364_v9  ;;  %v14928_v9 = vpack.c.bf16 %v3090_v19, %v3086_v54 }
 0x128   :  { %21380 = vst [vmem:[#allocation39_spill] sm:$0xff] %v14928_v9 }
 0x129   :  { %12274 = vmatmul.mubr.f32.gmra.mrb[12].mxu0 %v21365_v45  ;;  %v14931_v45 = vsub.f32 %v1488_v18, %v1554_v56 }
 0x12a   :  { %12276 = vmatprep.mubr.f32.mxu0 %v21366_v44  ;;  %v14933_v44 = vsub.f32 %v1492_v47, %v1558_v48  ;;  %v21391_v47 = vld [vmem:[#allocation9_spill] sm:$0xff] }
 0x12b   :  { %21381 = vst [vmem:[#allocation40_spill] sm:$0xff] %v14931_v45  ;;  %v20543_v56 = vand.u32 4294901760, %v21391_v47 }
 0x12c   :  { %21382 = vst [vmem:[#allocation41_spill] sm:$0xff] %v14933_v44 }
 0x12d   :  { %12277 = vmatmul.mubr.f32.gmra.mrb[14].mxu0 %v21367_v25  ;;  %v14936_v25 = vsub.f32 %v1435_v15, %v3086_v54  ;;  %v1778_v54 = vsub.f32 %v21391_v47, %v20543_v56 }
 0x12e   :  { %12287 = vmatprep.mubr.f32.mxu0 %v14343_v10 }
 0x12f   :  { %21383 = vst [vmem:[#allocation42_spill] sm:$0xff] %v14936_v25 }
 0x131   :  { %12288 = vmatmul.mubr.f32.vlgmr.msra.gmra.mrb[0].mxu0 %v14352_v17 }
 0x132   :  { %12638 = vmatpush3.bf16.msra.mxu0 %v14215_v20  ;;  %12290 = vmatprep.mubr.f32.mxu0 %v14368_v34  ;;  %v21368_v20 = vld [vmem:[#allocation13_spill] sm:$0xff] }
 0x133   :  { %12640 = vmatprep.subr.bf16.mxu0 %v14221_v21 }
 0x135   :  { %12291 = vmatmul.mubr.f32.gmra.mrb[2].mxu0 %v14366_v33 }
 0x136   :  { %12293 = vmatprep.mubr.f32.mxu0 %v14397_v4  ;;  %12642 = vmatpush3.bf16.msra.mxu0 %v14221_v21  ;;  %v21369_v21 = vmov 0.0  }
 0x137   :  { %12644 = vmatprep.subr.bf16.mxu0 %v14608_v41 }
 0x139   :  { %12294 = vmatmul.mubr.f32.gmra.mrb[4].mxu0 %v14395_v3 }
 0x13a   :  { %12296 = vmatprep.mubr.f32.mxu0 %v14423_v31 }
 0x13d   :  { %12297 = vmatmul.mubr.f32.gmra.mrb[6].mxu0 %v14421_v29 }
 0x13e   :  { %12299 = vmatprep.mubr.f32.mxu0 %v14447_v12 }
 0x141   :  { %12300 = vmatmul.mubr.f32.gmra.mrb[8].mxu0 %v14445_v8 }
 0x142   :  { %12302 = vmatprep.mubr.f32.mxu0 %v14471_v2 }
 0x145   :  { %12303 = vmatmul.mubr.f32.gmra.mrb[10].mxu0 %v14469_v60 }
 0x146   :  { %12305 = vmatprep.mubr.f32.mxu0 %v14495_v7 }
 0x149   :  { %12306 = vmatmul.mubr.f32.gmra.mrb[12].mxu0 %v14493_v52 }
 0x14a   :  { %12308 = vmatprep.mubr.f32.mxu0 %v14519_v36 }
 0x14d   :  { %12309 = vmatmul.mubr.f32.gmra.mrb[14].mxu0 %v14517_v5 }
 0x14e   :  { %12319 = vmatprep.mubr.f32.mxu0 %v14343_v10  ;;  %v14828_v10 = vld [vmem:[%s20486_s4 + $0x148] sm:$0xff] }
 0x151   :  { %12320 = vmatmul.mubr.f32.vlgmr.msra.gmra.mrb[0].mxu0 %v14352_v17  ;;  %v14833_v17 = vld [vmem:[%s20486_s4 + $0x168] sm:$0xff] }
 0x152   :  { %12322 = vmatprep.mubr.f32.mxu0 %v14368_v34  ;;  %12646 = vmatpush1.bf16.msra.mxu0 %v14625_v58  ;;  %v1540_v34 = vand.u32 4294901760, %v14833_v17 }
 0x153   :  { %12648 = vmatprep.subr.bf16.mxu0 %v21368_v20 }
 0x155   :  { %12323 = vmatmul.mubr.f32.gmra.mrb[2].mxu0 %v14366_v33  ;;  %v1536_v33 = vand.u32 4294901760, %v14828_v10 }
 0x156   :  { %12325 = vmatprep.mubr.f32.mxu0 %v14397_v4  ;;  %12650 = vmatpush1.bf16.msra.mxu0 %v14670_v59 }
 0x157   :  { %12652 = vmatprep.subr.bf16.mxu0 %v14682_v63 }
 0x159   :  { %12326 = vmatmul.mubr.f32.gmra.mrb[4].mxu0 %v14395_v3  ;;  %v1476_v3 = vld [vmem:[%s20486_s4 + $0x160] sm:$0xff] }
 0x15a   :  { %12328 = vmatprep.mubr.f32.mxu0 %v14423_v31  ;;  %12654 = vmatpush1.bf16.msra.mxu0 %v14703_v30  ;;  %v14847_v31 = vpack.c.bf16 %v1540_v34, %v1536_v33 }
 0x15b   :  { %12656 = vmatprep.subr.bf16.mxu0 %v14713_v22 }
 0x15c   :  { %21370 = vst [vmem:[#allocation29_spill] sm:$0xff] %v14847_v31  ;;  %13416 = vmatprep.subr.bf16.mxu1 %v14847_v31 }
 0x15d   :  { %12329 = vmatmul.mubr.f32.gmra.mrb[6].mxu0 %v14421_v29  ;;  %v1542_v29 = vand.u32 4294901760, %v1476_v3 }
 0x15e   :  { %12331 = vmatprep.mubr.f32.mxu0 %v14447_v12  ;;  %12658 = vmatpush1.bf16.msra.mxu0 %v14721_v1  ;;  %v14854_v12 = vld [vmem:[%s20486_s4 + $0x188] sm:$0xff] }
 0x15f   :  { %12660 = vmatprep.subr.bf16.mxu0 %v14727_v46  ;;  %v14921_v38 = vsub.f32 %v1476_v3, %v1542_v29  ;;  %v21385_v3 = vld [vmem:[#allocation3_spill] sm:$0xff] }
 0x161   :  { %12332 = vmatmul.mubr.f32.gmra.mrb[8].mxu0 %v14445_v8  ;;  %21377 = vst [vmem:[#allocation36_spill] sm:$0xff] %v14921_v38 }
 0x162   :  { %12334 = vmatprep.mubr.f32.mxu0 %v14471_v2  ;;  %12662 = vmatpush1.bf16.msra.mxu0 %v14733_v13  ;;  %v1480_v2 = vld [vmem:[%s20486_s4 + $0x180] sm:$0xff] }
 0x163   :  { %12664 = vmatprep.subr.bf16.mxu0 %v14847_v31  ;;  %v1546_v16 = vand.u32 4294901760, %v1480_v2 }
 0x165   :  { %12335 = vmatmul.mubr.f32.gmra.mrb[10].mxu0 %v14469_v60  ;;  %v20544_v60 = vand.u32 4294901760, %v14859_v24  ;;  %v14923_v11 = vsub.f32 %v1480_v2, %v1546_v16  ;;  %v21388_v2 = vld [vmem:[#allocation4_spill] sm:$0xff] }
 0x166   :  { %12337 = vmatprep.mubr.f32.mxu0 %v14495_v7 }
 0x167   :  { %21378 = vst [vmem:[#allocation37_spill] sm:$0xff] %v14923_v11 }
 0x169   :  { %12338 = vmatmul.mubr.f32.gmra.mrb[12].mxu0 %v14493_v52  ;;  %v1550_v52 = vand.u32 4294901760, %v1484_v14 }
 0x16a   :  { %12340 = vmatprep.mubr.f32.mxu0 %v14519_v36  ;;  %v20549_v36 = vand.u32 4294901760, %v14854_v12 }
 0x16b   :  { %v14879_v27 = vpack.c.bf16 %v1550_v52, %v1546_v16  ;;  %v14925_v6 = vsub.f32 %v1484_v14, %v1550_v52  ;;  %v21389_v14 = vand.u32 4294901760, %v21388_v2 }
 0x16c   :  { %v14877_v7 = vpack.c.bf16 %v20544_v60, %v20549_v36 }
 0x16d   :  { %12341 = vmatmul.mubr.f32.gmra.mrb[14].mxu0 %v14517_v5  ;;  %v1472_v5 = vld [vmem:[%s20486_s4 + $0x140] sm:$0xff]  ;;  %21373 = vst [vmem:[#allocation32_spill] sm:$0xff] %v14879_v27  ;;  %21379 = vst [vmem:[#allocation38_spill] sm:$0xff] %v14925_v6  ;;  %v14948_v16 = vsub.f32 %v21388_v2, %v21389_v14  ;;  %v1779_v2 = vand.u32 4294901760, %v1778_v54 }
 0x16e   :  { %1592 = vmatprep.mubr.f32.mxu0 %v21369_v21  ;;  %v1538_v4 = vand.u32 4294901760, %v1472_v5  ;;  %21372 = vst [vmem:[#allocation31_spill] sm:$0xff] %v14877_v7 }
 0x16f   :  { %21390 = vst [vmem:[#allocation4_spill] sm:$0xff] %v14948_v16  ;;  %v20542_v18 = vand.u32 4294901760, %v14948_v16 }
 0x170   :  { %v14849_v8 = vpack.c.bf16 %v1542_v29, %v1538_v4  ;;  %v14919_v39 = vsub.f32 %v1472_v5, %v1538_v4  ;;  %v14938_v5 = vsub.f32 %v1439_v53, %v3090_v19  ;;  %v21386_v4 = vand.u32 4294901760, %v21385_v3  ;;  %v21392_v19 = vld [vmem:[#allocation12_spill] sm:$0xff] }
 0x171   :  { %v1784_v15 = vsub.f32 %v14948_v16, %v20542_v18  ;;  %v20546_v18 = vand.u32 4294901760, %v21394_v37 }
 0x172   :  { %21371 = vst [vmem:[#allocation30_spill] sm:$0xff] %v14849_v8  ;;  %12666 = vmatpush1.bf16.msra.mxu0 %v14849_v8  ;;  %13424 = vmatpush1.bf16.msra.mxu1 %v14849_v8  ;;  %21376 = vst [vmem:[#allocation35_spill] sm:$0xff] %v14919_v39  ;;  %v14943_v29 = vsub.f32 %v21385_v3, %v21386_v4  ;;  %v20547_v3 = vand.u32 4294901760, %v21392_v19 }
 0x173   :  { %12668 = vmatprep.subr.bf16.mxu0 %v14877_v7  ;;  %13417 = vmatprep.subr.bf16.mxu1 %v14877_v7  ;;  %21384 = vst [vmem:[#allocation43_spill] sm:$0xff] %v14938_v5  ;;  %v1785_v4 = vand.u32 4294901760, %v1784_v15  ;;  %v1814_v15 = vsub.f32 %v21394_v37, %v20546_v18  ;;  %v20552_v18 = vand.u32 4294901760, %v14685_v35 }
 0x174   :  { %21387 = vst [vmem:[#allocation3_spill] sm:$0xff] %v14943_v29  ;;  %v20539_v52 = vand.u32 4294901760, %v14943_v29  ;;  %v1790_v14 = vsub.f32 %v21392_v19, %v20547_v3 }
 0x175   :  { %v1815_v60 = vand.u32 4294901760, %v1814_v15  ;;  %v21395_v15 = vld [vmem:[#allocation21_spill] sm:$0xff] }
 0x176   :  { %12670 = vmatpush1.bf16.msra.mxu0 %v14879_v27  ;;  %13425 = vmatpush1.bf16.msra.mxu1 %v14879_v27  ;;  %v1772_v48 = vsub.f32 %v14943_v29, %v20539_v52  ;;  %v1791_v62 = vand.u32 4294901760, %v1790_v14  ;;  %v21393_v52 = vld [vmem:[#allocation14_spill] sm:$0xff]  ;;  %v20551_v3 = vand.u32 4294901760, %v21395_v15 }
 0x177   :  { %12672 = vmatprep.subr.bf16.mxu0 %v14907_v43  ;;  %13418 = vmatprep.subr.bf16.mxu1 %v14907_v43  ;;  %v20545_v61 = vand.u32 4294901760, %v21393_v52 }
 0x178   :  { %v1773_v53 = vand.u32 4294901760, %v1772_v48  ;;  %v14968_v48 = vpack.c.bf16 %v1791_v62, %v1779_v2  ;;  %v20550_v62 = vand.u32 4294901760, %v14674_v55 }
 0x179   :  { %v1802_v56 = vsub.f32 %v21393_v52, %v20545_v61  ;;  %v15290_v52 = vld [vmem:[%s20486_s4 + $0x150] sm:$0xff] }
 0x17a   :  { %12674 = vmatpush1.bf16.msra.mxu0 %v14909_v42  ;;  %13426 = vmatpush1.bf16.msra.mxu1 %v14909_v42  ;;  %v12675_v40 = vpack.c.bf16 %v1785_v4, %v1773_v53  ;;  %v20548_v53 = vand.u32 4294901760, %v14672_v0  ;;  %v1838_v14 = vsub.f32 %v14674_v55, %v20550_v62  ;;  %v20553_v62 = vand.u32 4294901760, %v14707_v23  ;;  %21441 = vst [vmem:[#allocation77_spill] sm:$0xff] %v15290_v52 }
 0x17b   :  { %12836 = vmatprep.subr.bf16.mxu0 %v14928_v9  ;;  %v1803_v54 = vand.u32 4294901760, %v1802_v56 }
 0x17c   :  { %12676 = vmatprep.subr.bf16.mxu1 %v12675_v40  ;;  %v1826_v40 = vsub.f32 %v14672_v0, %v20548_v53  ;;  %v1839_v61 = vand.u32 4294901760, %v1838_v14  ;;  %v20554_v14 = vand.u32 4294901760, %v14705_v51 }
 0x17d   :  { %v14977_v4 = vpack.c.bf16 %v1815_v60, %v1803_v54  ;;  %v1850_v60 = vsub.f32 %v14685_v35, %v20552_v18  ;;  %v1862_v54 = vsub.f32 %v21395_v15, %v20551_v3 }
 0x17e   :  { %v1827_v2 = vand.u32 4294901760, %v1826_v40 }
 0x17f   :  { %v1851_v40 = vand.u32 4294901760, %v1850_v60  ;;  %v1863_v53 = vand.u32 4294901760, %v1862_v54  ;;  %v1874_v60 = vsub.f32 %v14705_v51, %v20554_v14  ;;  %v20559_v54 = vand.u32 4294901760, %v14919_v39 }
 0x180   :  { %v14987_v56 = vpack.c.bf16 %v1839_v61, %v1827_v2  ;;  %v15003_v61 = vsub.f32 %v14828_v10, %v1536_v33  ;;  %v15008_v2 = vsub.f32 %v14833_v17, %v1540_v34  ;;  %v20568_v33 = vand.u32 4294901760, %v14921_v38 }
 0x181   :  { %v14996_v36 = vpack.c.bf16 %v1863_v53, %v1851_v40  ;;  %v1886_v53 = vsub.f32 %v14707_v23, %v20553_v62  ;;  %v1875_v3 = vand.u32 4294901760, %v1874_v60  ;;  %v1898_v17 = vsub.f32 %v14919_v39, %v20559_v54 }
 0x182   :  { %21396 = vst [vmem:[#allocation44_spill] sm:$0xff] %v15003_v61  ;;  %21397 = vst [vmem:[#allocation45_spill] sm:$0xff] %v15008_v2  ;;  %v20564_v40 = vand.u32 4294901760, %v15003_v61  ;;  %v20567_v10 = vand.u32 4294901760, %v15008_v2  ;;  %v1910_v14 = vsub.f32 %v14921_v38, %v20568_v33  ;;  %v20569_v33 = vand.u32 4294901760, %v14923_v11 }
 0x183   :  { %v1887_v18 = vand.u32 4294901760, %v1886_v53  ;;  %v1899_v60 = vand.u32 4294901760, %v1898_v17  ;;  %v21399_v53 = vand.u32 4294901760, %v14854_v12 }
 0x184   :  { %v1892_v34 = vsub.f32 %v15003_v61, %v20564_v40  ;;  %v1904_v62 = vsub.f32 %v15008_v2, %v20567_v10  ;;  %v1911_v7 = vand.u32 4294901760, %v1910_v14  ;;  %v21401_v40 = vand.u32 4294901760, %v14859_v24  ;;  %v15198_v2 = vld [vmem:[%s20486_s4 + $0xf8] sm:$0xff] }
 0x185   :  { %v15032_v42 = vpack.c.bf16 %v1887_v18, %v1875_v3  ;;  %v15037_v43 = vsub.f32 %v14854_v12, %v21399_v53  ;;  %v20571_v18 = vand.u32 4294901760, %v14925_v6  ;;  %v20585_v53 = vand.u32 4294901760, %v14933_v44 }
 0x186   :  { %v1893_v54 = vand.u32 4294901760, %v1892_v34  ;;  %v1905_v27 = vand.u32 4294901760, %v1904_v62  ;;  %v15042_v8 = vsub.f32 %v14859_v24, %v21401_v40  ;;  %v15049_v17 = vpack.c.bf16 %v1911_v7, %v1899_v60 }
 0x187   :  { %21398 = vst [vmem:[#allocation46_spill] sm:$0xff] %v15032_v42  ;;  %21400 = vst [vmem:[#allocation47_spill] sm:$0xff] %v15037_v43  ;;  %v20570_v10 = vand.u32 4294901760, %v15037_v43  ;;  %v21405_v62 = vand.u32 4294901760, %v14884_v28  ;;  %v1922_v40 = vsub.f32 %v14923_v11, %v20569_v33  ;;  %v1934_v7 = vsub.f32 %v14925_v6, %v20571_v18  ;;  %v21418_v6 = vld [vmem:[#allocation6_spill] sm:$0xff] }
 0x188   :  { %21402 = vst [vmem:[#allocation48_spill] sm:$0xff] %v15042_v8  ;;  %v15047_v3 = vpack.c.bf16 %v1905_v27, %v1893_v54  ;;  %21404 = vst [vmem:[#allocation50_spill] sm:$0xff] %v15049_v17  ;;  %v20574_v12 = vand.u32 4294901760, %v15042_v8  ;;  %v21407_v27 = vand.u32 4294901760, %v14889_v32  ;;  %v20578_v60 = vand.u32 4294901760, %v14931_v45 }
 0x189   :  { %v15055_v14 = vsub.f32 %v14884_v28, %v21405_v62  ;;  %v1916_v24 = vsub.f32 %v15037_v43, %v20570_v10  ;;  %v1923_v33 = vand.u32 4294901760, %v1922_v40  ;;  %v1935_v10 = vand.u32 4294901760, %v1934_v7  ;;  %v15159_v7 = vld [vmem:[%s20486_s4 + $0x90] sm:$0xff] }
 0x18a   :  { %21403 = vst [vmem:[#allocation49_spill] sm:$0xff] %v15047_v3  ;;  %v15069_v54 = vsub.f32 %v14889_v32, %v21407_v27  ;;  %v1928_v28 = vsub.f32 %v15042_v8, %v20574_v12  ;;  %v1946_v27 = vsub.f32 %v14931_v45, %v20578_v60  ;;  %v1958_v12 = vsub.f32 %v14933_v44, %v20585_v53  ;;  %v15164_v40 = vld [vmem:[%s20486_s4 + $0xb0] sm:$0xff]  ;;  %v15175_v44 = vld [vmem:[%s20486_s4 + $0xd8] sm:$0xff] }
 0x18b   :  { %21406 = vst [vmem:[#allocation51_spill] sm:$0xff] %v15055_v14  ;;  %v20577_v34 = vand.u32 4294901760, %v15055_v14  ;;  %v1917_v62 = vand.u32 4294901760, %v1916_v24  ;;  %v15087_v9 = vpack.c.bf16 %v1935_v10, %v1923_v33  ;;  %v20588_v53 = vand.u32 4294901760, %v14936_v25 }
 0x18c   :  { %21408 = vst [vmem:[#allocation52_spill] sm:$0xff] %v15069_v54  ;;  %v20586_v18 = vand.u32 4294901760, %v15069_v54  ;;  %v1929_v31 = vand.u32 4294901760, %v1928_v28  ;;  %v1947_v60 = vand.u32 4294901760, %v1946_v27  ;;  %v1959_v13 = vand.u32 4294901760, %v1958_v12  ;;  %v1455_v27 = vld [vmem:[%s20486_s4 + $0xb8] sm:$0xff] }
 0x18d   :  { %v1940_v32 = vsub.f32 %v15055_v14, %v20577_v34  ;;  %21409 = vst [vmem:[#allocation53_spill] sm:$0xff] %v15087_v9  ;;  %v3106_v59 = vand.u32 4294901760, %v1455_v27  ;;  %v21415_v14 = vld [vmem:[#allocation5_spill] sm:$0xff]  ;;  %v21419_v43 = vand.u32 4294901760, %v21418_v6 }
 0x18e   :  { %v1952_v24 = vsub.f32 %v15069_v54, %v20586_v18  ;;  %v15096_v28 = vpack.c.bf16 %v1929_v31, %v1917_v62  ;;  %v15098_v1 = vpack.c.bf16 %v1959_v13, %v1947_v60  ;;  %v20587_v18 = vand.u32 4294901760, %v14938_v5 }
 0x18f   :  { %v1941_v34 = vand.u32 4294901760, %v1940_v32  ;;  %v3362_v31 = vsub.f32 %v14936_v25, %v20588_v53  ;;  %v1438_v53 = vld [vmem:[%s20486_s4 + $0x30] sm:$0xff]  ;;  %v21416_v54 = vand.u32 4294901760, %v21415_v14  ;;  %v15185_v20 = vsub.f32 %v21418_v6, %v21419_v43 }
 0x190   :  { %21410 = vst [vmem:[#allocation54_spill] sm:$0xff] %v15096_v28  ;;  %v1953_v46 = vand.u32 4294901760, %v1952_v24  ;;  %21411 = vst [vmem:[#allocation55_spill] sm:$0xff] %v15098_v1  ;;  %v3374_v12 = vsub.f32 %v14938_v5, %v20587_v18  ;;  %v1434_v18 = vld [vmem:[%s20486_s4 + $0x10] sm:$0xff]  ;;  %v1451_v24 = vld [vmem:[%s20486_s4 + $0x98] sm:$0xff]  ;;  %v15280_v37 = vsub.f32 %v1455_v27, %v3106_v59 }
 0x191   :  { %v3363_v62 = vand.u32 4294901760, %v3362_v31  ;;  %v1443_v31 = vld [vmem:[%s20486_s4 + $0x58] sm:$0xff]  ;;  %v3088_v32 = vand.u32 4294901760, %v1434_v18  ;;  %v3102_v63 = vand.u32 4294901760, %v1451_v24  ;;  %v15180_v11 = vsub.f32 %v21415_v14, %v21416_v54  ;;  %21420 = vst [vmem:[#allocation6_spill] sm:$0xff] %v15185_v20  ;;  %v21449_v28 = vld [vmem:[#allocation10_spill] sm:$0xff] }
 0x192   :  { %v15100_v10 = vpack.c.bf16 %v1953_v46, %v1941_v34  ;;  %v3375_v13 = vand.u32 4294901760, %v3374_v12  ;;  %v1447_v12 = vld [vmem:[%s20486_s4 + $0x78] sm:$0xff]  ;;  %v3092_v34 = vand.u32 4294901760, %v1438_v53  ;;  %v3094_v46 = vand.u32 4294901760, %v1443_v31  ;;  %21439 = vst [vmem:[#allocation75_spill] sm:$0xff] %v15280_v37 }
 0x193   :  { %v3098_v33 = vand.u32 4294901760, %v1447_v12  ;;  %21417 = vst [vmem:[#allocation5_spill] sm:$0xff] %v15180_v11  ;;  %v15187_v8 = vsub.f32 %v1434_v18, %v3088_v32  ;;  %v15206_v6 = vpack.c.bf16 %v3106_v59, %v3102_v63  ;;  %v15211_v18 = vld [vmem:[%s20486_s4 + $0xd0] sm:$0xff]  ;;  %v15253_v15 = vsub.f32 %v1451_v24, %v3102_v63  ;;  %v15270_v63 = vld [vmem:[%s20486_s4 + $0x158] sm:$0xff] }
 0x194   :  { %21412 = vst [vmem:[#allocation56_spill] sm:$0xff] %v15100_v10  ;;  %v15112_v60 = vpack.c.bf16 %v3375_v13, %v3363_v62  ;;  %v1442_v13 = vld [vmem:[%s20486_s4 + $0x50] sm:$0xff]  ;;  %v15168_v41 = vpack.c.bf16 %v3092_v34, %v3088_v32  ;;  %v15189_v39 = vsub.f32 %v1438_v53, %v3092_v34  ;;  %v15191_v38 = vsub.f32 %v1443_v31, %v3094_v46 }
 0x195   :  { %v1446_v62 = vld [vmem:[%s20486_s4 + $0x70] sm:$0xff]  ;;  %v3096_v22 = vand.u32 4294901760, %v1442_v13  ;;  %v15170_v45 = vpack.c.bf16 %v3098_v33, %v3094_v46  ;;  %v15202_v51 = vsub.f32 %v1447_v12, %v3098_v33  ;;  %21424 = vst [vmem:[#allocation62_spill] sm:$0xff] %v15206_v6  ;;  %v21427_v33 = vand.u32 4294901760, %v15159_v7  ;;  %v15232_v12 = vld [vmem:[%s20486_s4 + $0x118] sm:$0xff]  ;;  %21432 = vst [vmem:[#allocation68_spill] sm:$0xff] %v15253_v15 }
 0x196   :  { %v3100_v30 = vand.u32 4294901760, %v1446_v62  ;;  %21413 = vst [vmem:[#allocation57_spill] sm:$0xff] %v15168_v41  ;;  %v15216_v53 = vld [vmem:[%s20486_s4 + $0xf0] sm:$0xff]  ;;  %21435 = vst [vmem:[#allocation71_spill] sm:$0xff] %v15270_v63  ;;  %v21443_v59 = vand.u32 4294901760, %v15180_v11  ;;  %v21444_v47 = vand.u32 4294901760, %v15185_v20 }
 0x197   :  { %21414 = vst [vmem:[#allocation58_spill] sm:$0xff] %v15170_v45  ;;  %v15204_v43 = vsub.f32 %v1442_v13, %v3096_v22  ;;  %v15237_v13 = vld [vmem:[%s20486_s4 + $0x138] sm:$0xff]  ;;  %v15295_v31 = vld [vmem:[%s20486_s4 + $0x170] sm:$0xff] }
 0x198   :  { %v15193_v61 = vpack.c.bf16 %v3100_v30, %v3096_v22  ;;  %v15220_v34 = vsub.f32 %v1446_v62, %v3100_v30  ;;  %v21428_v22 = vand.u32 4294901760, %v15164_v40  ;;  %v15242_v30 = vld [vmem:[%s20486_s4 + $0x110] sm:$0xff]  ;;  %21442 = vst [vmem:[#allocation78_spill] sm:$0xff] %v15295_v31  ;;  %v1796_v27 = vsub.f32 %v15180_v11, %v21443_v59 }
 0x199   :  { %21423 = vst [vmem:[#allocation61_spill] sm:$0xff] %v15204_v43  ;;  %v1808_v19 = vsub.f32 %v15185_v20, %v21444_v47  ;;  %v21450_v59 = vand.u32 4294901760, %v21449_v28 }
 0x19a   :  { %21421 = vst [vmem:[#allocation59_spill] sm:$0xff] %v15193_v61  ;;  %21426 = vst [vmem:[#allocation64_spill] sm:$0xff] %v15220_v34  ;;  %v15226_v32 = vpack.c.bf16 %v21428_v22, %v21427_v33 }
 0x19b   :  { %v15318_v11 = vsub.f32 %v21449_v28, %v21450_v59  ;;  %v1797_v59 = vand.u32 4294901760, %v1796_v27  ;;  %v21459_v27 = vand.u32 4294901760, %v15216_v53 }
 0x19c   :  { %21429 = vst [vmem:[#allocation65_spill] sm:$0xff] %v15226_v32 }
 0x19d   :  { %21451 = vst [vmem:[#allocation10_spill] sm:$0xff] %v15318_v11 }
 0x224   :  { %v12321_v58 = vpop.f32.mrb[0].mxu0 }
 0x225   :  { %v15200_v14 = vand.u32 4294901760, %v12321_v58  ;;  %v1338_v54 = vpop.f32.mrb[1].mxu0 }
 0x226   :  { %v15218_v46 = vand.u32 4294901760, %v1338_v54 }
 0x227   :  { %21422 = vst [vmem:[#allocation60_spill] sm:$0xff] %v15200_v14  ;;  %v15245_v62 = vsub.f32 %v12321_v58, %v15200_v14  ;;  %v15260_v58 = vld [vmem:[%s20486_s4 + $0x130] sm:$0xff] }
 0x228   :  { %21425 = vst [vmem:[#allocation63_spill] sm:$0xff] %v15218_v46  ;;  %v15251_v23 = vsub.f32 %v1338_v54, %v15218_v46  ;;  %v12324_v35 = vpop.f32.mrb[2].mxu0  ;;  %21433 = vst [vmem:[#allocation69_spill] sm:$0xff] %v15260_v58  ;;  %v15285_v54 = vld [vmem:[%s20486_s4 + $0x178] sm:$0xff]  ;;  %v21445_v46 = vld [vmem:[#allocation7_spill] sm:$0xff] }
 0x229   :  { %21430 = vst [vmem:[#allocation66_spill] sm:$0xff] %v15245_v62  ;;  %v15262_v33 = vand.u32 4294901760, %v12324_v35  ;;  %v1350_v22 = vpop.f32.mrb[3].mxu0  ;;  %v15278_v0 = vand.u32 4294901760, %v15245_v62  ;;  %21440 = vst [vmem:[#allocation76_spill] sm:$0xff] %v15285_v54  ;;  %v21446_v29 = vand.u32 4294901760, %v21445_v46 }
 0x22a   :  { %21431 = vst [vmem:[#allocation67_spill] sm:$0xff] %v15251_v23  ;;  %v15273_v24 = vand.u32 4294901760, %v15251_v23  ;;  %v15275_v55 = vand.u32 4294901760, %v1350_v22 }
 0x22b   :  { %21434 = vst [vmem:[#allocation70_spill] sm:$0xff] %v15262_v33  ;;  %21438 = vst [vmem:[#allocation74_spill] sm:$0xff] %v15278_v0  ;;  %v15307_v16 = vsub.f32 %v21445_v46, %v21446_v29  ;;  %v15321_v47 = vsub.f32 %v12324_v35, %v15262_v33  ;;  %v1607_v9 = vsub.f32 %v15245_v62, %v15278_v0  ;;  %v1809_v35 = vand.u32 4294901760, %v1808_v19 }
 0x22c   :  { %21436 = vst [vmem:[#allocation72_spill] sm:$0xff] %v15273_v24  ;;  %21437 = vst [vmem:[#allocation73_spill] sm:$0xff] %v15275_v55  ;;  %v1596_v1 = vsub.f32 %v15251_v23, %v15273_v24  ;;  %v15312_v10 = vsub.f32 %v1350_v22, %v15275_v55  ;;  %v12327_v14 = vpop.f32.mrb[4].mxu0  ;;  %v21456_v24 = vand.u32 4294901760, %v15198_v2  ;;  %v21458_v0 = vand.u32 4294901760, %v15211_v18 }
 0x22d   :  { %21447 = vst [vmem:[#allocation7_spill] sm:$0xff] %v15307_v16  ;;  %21452 = vst [vmem:[#allocation80_spill] sm:$0xff] %v15321_v47  ;;  %v1362_v20 = vpop.f32.mrb[5].mxu0  ;;  %v21461_v33 = vand.u32 4294901760, %v15232_v12  ;;  %v21462_v29 = vand.u32 4294901760, %v15237_v13  ;;  %v15360_v5 = vand.u32 4294901760, %v12327_v14  ;;  %v15408_v3 = vpack.c.bf16 %v1809_v35, %v1797_v59 }
 0x22e   :  { %21448 = vst [vmem:[#allocation79_spill] sm:$0xff] %v15312_v10  ;;  %v15326_v22 = vand.u32 4294901760, %v1596_v1  ;;  %v15328_v23 = vand.u32 4294901760, %v1362_v20  ;;  %v15333_v28 = vand.u32 4294901760, %v15312_v10  ;;  %v21455_v1 = vand.u32 4294901760, %v15175_v44 }
 0x22f   :  { %v15351_v19 = vpack.c.bf16 %v21459_v27, %v21458_v0  ;;  %v15357_v62 = vpack.c.bf16 %v21462_v29, %v21461_v33  ;;  %21464 = vst [vmem:[#allocation86_spill] sm:$0xff] %v15360_v5  ;;  %v21466_v0 = vand.u32 4294901760, %v15242_v30  ;;  %v21469_v33 = vand.u32 4294901760, %v15270_v63 }
 0x230   :  { %21453 = vst [vmem:[#allocation81_spill] sm:$0xff] %v15328_v23  ;;  %21454 = vst [vmem:[#allocation82_spill] sm:$0xff] %v15333_v28  ;;  %v15338_v46 = vpop.f32.mrb[6].mxu0  ;;  %1598 = vmatmul.mubr.f32.vlgmr.msra.gmra.mrb[16].mxu0 %v15326_v22  ;;  %v15345_v55 = vpack.c.bf16 %v21456_v24, %v21455_v1  ;;  %v15363_v17 = vsub.f32 %v1362_v20, %v15328_v23  ;;  %v21467_v1 = vand.u32 4294901760, %v15260_v58  ;;  %v21470_v29 = vand.u32 4294901760, %v15285_v54  ;;  %v15382_v20 = vld [vmem:[%s20486_s4 + $0x198] sm:$0xff] }
 0x231   :  { %21460 = vst [vmem:[#allocation84_spill] sm:$0xff] %v15351_v19  ;;  %21463 = vst [vmem:[#allocation85_spill] sm:$0xff] %v15357_v62  ;;  %v1374_v24 = vpop.f32.mrb[7].mxu0  ;;  %12838 = vmatpush1.bf16.msra.mxu0 %v15168_v41  ;;  %1603 = vmatprep.mubr.f32.mxu0 %v21369_v21  ;;  %v15387_v41 = vld [vmem:[%s20486_s4 + $0x1b8] sm:$0xff]  ;;  %v21476_v23 = vand.u32 4294901760, %v15290_v52  ;;  %v21477_v54 = vand.u32 4294901760, %v15295_v31 }
 0x232   :  { %21457 = vst [vmem:[#allocation83_spill] sm:$0xff] %v15345_v55  ;;  %21465 = vst [vmem:[#allocation87_spill] sm:$0xff] %v15363_v17  ;;  %v15371_v27 = vpack.c.bf16 %v21467_v1, %v21466_v0  ;;  %v15377_v25 = vpack.c.bf16 %v21470_v29, %v21469_v33  ;;  %v15392_v0 = vld [vmem:[%s20486_s4 + $0x190] sm:$0xff]  ;;  %v15394_v1 = vand.u32 4294901760, %v1607_v9  ;;  %12840 = vmatprep.subr.bf16.mxu0 %v15170_v45  ;;  %v15400_v29 = vand.u32 4294901760, %v15321_v47 }
 0x233   :  { %21472 = vst [vmem:[#allocation90_spill] sm:$0xff] %v15382_v20  ;;  %21473 = vst [vmem:[#allocation91_spill] sm:$0xff] %v15387_v41  ;;  %v1618_v33 = vsub.f32 %v15312_v10, %v15333_v28  ;;  %v15406_v63 = vpack.c.bf16 %v21477_v54, %v21476_v23  ;;  %v21479_v58 = vand.u32 4294901760, %v15307_v16  ;;  %v15418_v28 = vld [vmem:[%s20486_s4 + $0x1b0] sm:$0xff]  ;;  %v21480_v45 = vand.u32 4294901760, %v14648_v26 }
 0x234   :  { %21468 = vst [vmem:[#allocation88_spill] sm:$0xff] %v15371_v27  ;;  %21471 = vst [vmem:[#allocation89_spill] sm:$0xff] %v15377_v25  ;;  %v21482_v23 = vand.u32 4294901760, %v14657_v57  ;;  %v12333_v59 = vpop.f32.mrb[8].mxu0  ;;  %1609 = vmatmul.mubr.f32.gmra.mrb[18].mxu0 %v15394_v1  ;;  %v15442_v52 = vand.u32 4294901760, %v1374_v24 }
 0x235   :  { %21474 = vst [vmem:[#allocation92_spill] sm:$0xff] %v15394_v1  ;;  %21475 = vst [vmem:[#allocation93_spill] sm:$0xff] %v15400_v29  ;;  %v15413_v9 = vsub.f32 %v15307_v16, %v21479_v58  ;;  %v15423_v10 = vsub.f32 %v14648_v26, %v21480_v45  ;;  %v21484_v58 = vand.u32 4294901760, %v15318_v11  ;;  %v15440_v45 = vsub.f32 %v12327_v14, %v15360_v5 }
 0x236   :  { %21478 = vst [vmem:[#allocation94_spill] sm:$0xff] %v15406_v63  ;;  %v15428_v54 = vsub.f32 %v14657_v57, %v21482_v23  ;;  %21486 = vst [vmem:[#allocation98_spill] sm:$0xff] %v15442_v52  ;;  %v15444_v57 = vand.u32 4294901760, %v12333_v59  ;;  %v1386_v23 = vpop.f32.mrb[9].mxu0  ;;  %12842 = vmatpush1.bf16.msra.mxu0 %v15193_v61  ;;  %1614 = vmatprep.mubr.f32.mxu0 %v21369_v21  ;;  %v15453_v31 = vand.u32 4294901760, %v1618_v33  ;;  %v21492_v1 = vand.u32 4294901760, %v14692_v49 }
 0x237   :  { %21481 = vst [vmem:[#allocation95_spill] sm:$0xff] %v15423_v10  ;;  %v15434_v35 = vsub.f32 %v15318_v11, %v21484_v58  ;;  %21485 = vst [vmem:[#allocation97_spill] sm:$0xff] %v15440_v45  ;;  %v15449_v58 = vand.u32 4294901760, %v15363_v17  ;;  %v15451_v16 = vand.u32 4294901760, %v1386_v23  ;;  %12844 = vmatprep.subr.bf16.mxu0 %v15206_v6  ;;  %v1629_v14 = vsub.f32 %v15321_v47, %v15400_v29 }
 0x238   :  { %21483 = vst [vmem:[#allocation96_spill] sm:$0xff] %v15428_v54  ;;  %21487 = vst [vmem:[#allocation99_spill] sm:$0xff] %v15444_v57  ;;  %v15460_v5 = vsub.f32 %v12333_v59, %v15444_v57  ;;  %v15467_v42 = vsub.f32 %v14692_v49, %v21492_v1  ;;  %v15470_v33 = vand.u32 4294901760, %v15338_v46  ;;  %v12336_v29 = vpop.f32.mrb[10].mxu0  ;;  %1620 = vmatmul.mubr.f32.gmra.mrb[20].mxu0 %v15453_v31  ;;  %v21496_v26 = vand.u32 4294901760, %v14697_v50 }
 0x239   :  { %21488 = vst [vmem:[#allocation100_spill] sm:$0xff] %v15449_v58  ;;  %21489 = vst [vmem:[#allocation101_spill] sm:$0xff] %v15451_v16  ;;  %v15473_v6 = vsub.f32 %v1386_v23, %v15451_v16  ;;  %v15483_v61 = vsub.f32 %v1374_v24, %v15442_v52  ;;  %v15485_v49 = vand.u32 4294901760, %v12336_v29  ;;  %v1398_v1 = vpop.f32.mrb[11].mxu0  ;;  %1625 = vmatprep.mubr.f32.mxu0 %v21369_v21  ;;  %v15492_v59 = vand.u32 4294901760, %v15440_v45 }
 0x23a   :  { %21490 = vst [vmem:[#allocation102_spill] sm:$0xff] %v15453_v31  ;;  %21491 = vst [vmem:[#allocation103_spill] sm:$0xff] %v15460_v5  ;;  %v15480_v11 = vsub.f32 %v14697_v50, %v21496_v26  ;;  %12846 = vmatpush1.bf16.msra.mxu0 %v15226_v32  ;;  %v1640_v23 = vsub.f32 %v15363_v17, %v15449_v58  ;;  %v15494_v47 = vand.u32 4294901760, %v1398_v1  ;;  %v15496_v50 = vand.u32 4294901760, %v1629_v14 }
 0x23b   :  { %21493 = vst [vmem:[#allocation104_spill] sm:$0xff] %v15467_v42  ;;  %21494 = vst [vmem:[#allocation105_spill] sm:$0xff] %v15470_v33  ;;  %12848 = vmatprep.subr.bf16.mxu0 %v15345_v55  ;;  %v15500_v24 = vand.u32 4294901760, %v15473_v6  ;;  %v15503_v26 = vand.u32 4294901760, %v15460_v5  ;;  %v21504_v32 = vand.u32 4294901760, %v15382_v20  ;;  %v21505_v57 = vand.u32 4294901760, %v15387_v41 }
 0x23c   :  { %21495 = vst [vmem:[#allocation106_spill] sm:$0xff] %v15473_v6  ;;  %21497 = vst [vmem:[#allocation107_spill] sm:$0xff] %v15480_v11  ;;  %v21507_v17 = vand.u32 4294901760, %v15423_v10  ;;  %v21508_v14 = vand.u32 4294901760, %v15428_v54  ;;  %v15520_v31 = vsub.f32 %v15338_v46, %v15470_v33  ;;  %v15523_v20 = vsub.f32 %v1398_v1, %v15494_v47  ;;  %v12339_v41 = vpop.f32.mrb[12].mxu0  ;;  %1631 = vmatmul.mubr.f32.gmra.mrb[22].mxu0 %v15496_v50 }
 0x23d   :  { %21498 = vst [vmem:[#allocation108_spill] sm:$0xff] %v15483_v61  ;;  %21499 = vst [vmem:[#allocation109_spill] sm:$0xff] %v15485_v49  ;;  %v15509_v58 = vpack.c.bf16 %v21505_v57, %v21504_v32  ;;  %v1684_v32 = vsub.f32 %v15473_v6, %v15500_v24  ;;  %v15536_v57 = vld [vmem:[%s20486_s4 + $0x1f8] sm:$0xff]  ;;  %v15540_v1 = vsub.f32 %v12336_v29, %v15485_v49  ;;  %1636 = vmatprep.mubr.f32.mxu0 %v21369_v21 }
 0x23e   :  { %21500 = vst [vmem:[#allocation110_spill] sm:$0xff] %v15492_v59  ;;  %21501 = vst [vmem:[#allocation111_spill] sm:$0xff] %v15494_v47  ;;  %v1844_v16 = vsub.f32 %v15423_v10, %v21507_v17  ;;  %v1856_v55 = vsub.f32 %v15428_v54, %v21508_v14  ;;  %v15531_v17 = vld [vmem:[%s20486_s4 + $0x1d8] sm:$0xff]  ;;  %v1410_v14 = vpop.f32.mrb[13].mxu0  ;;  %12850 = vmatpush1.bf16.msra.mxu0 %v15351_v19  ;;  %v15544_v52 = vand.u32 4294901760, %v1640_v23  ;;  %v15549_v6 = vand.u32 4294901760, %v15483_v61 }
 0x23f   :  { %21502 = vst [vmem:[#allocation112_spill] sm:$0xff] %v15500_v24  ;;  %21503 = vst [vmem:[#allocation113_spill] sm:$0xff] %v15503_v26  ;;  %v1651_v24 = vsub.f32 %v15440_v45, %v15492_v59  ;;  %v15551_v47 = vand.u32 4294901760, %v1410_v14  ;;  %v15553_v33 = vand.u32 4294901760, %v1684_v32  ;;  %12852 = vmatprep.subr.bf16.mxu0 %v15357_v62  ;;  %v1695_v29 = vsub.f32 %v15460_v5, %v15503_v26 }
 0x240   :  { %21506 = vst [vmem:[#allocation114_spill] sm:$0xff] %v15509_v58  ;;  %21509 = vst [vmem:[#allocation115_spill] sm:$0xff] %v15520_v31  ;;  %v15559_v46 = vand.u32 4294901760, %v15523_v20  ;;  %v1833_v23 = vand.u32 4294901760, %v15434_v35  ;;  %v21516_v19 = vand.u32 4294901760, %v15392_v0  ;;  %v21517_v59 = vand.u32 4294901760, %v15418_v28  ;;  %1642 = vmatmul.mubr.f32.gmra.mrb[24].mxu0 %v15544_v52 }
 0x241   :  { %21510 = vst [vmem:[#allocation116_spill] sm:$0xff] %v15523_v20  ;;  %21511 = vst [vmem:[#allocation117_spill] sm:$0xff] %v15540_v1  ;;  %v15570_v54 = vpop.f32.mrb[14].mxu0  ;;  %1686 = vmatmul.mubr.f32.vlgmr.msra.gmra.mrb[0].mxu1 %v15553_v33  ;;  %v1845_v26 = vand.u32 4294901760, %v1844_v16  ;;  %v1857_v62 = vand.u32 4294901760, %v1856_v55  ;;  %v15577_v35 = vld [vmem:[%s20486_s4 + $0x1d0] sm:$0xff]  ;;  %v1662_v16 = vsub.f32 %v15483_v61, %v15549_v6  ;;  %1647 = vmatprep.mubr.f32.mxu0 %v21369_v21 }
 0x242   :  { %21512 = vst [vmem:[#allocation118_spill] sm:$0xff] %v15549_v6  ;;  %21513 = vst [vmem:[#allocation119_spill] sm:$0xff] %v15551_v47  ;;  %v15566_v45 = vpack.c.bf16 %v21517_v59, %v21516_v19  ;;  %v21519_v19 = vand.u32 4294901760, %v15467_v42  ;;  %v21520_v49 = vand.u32 4294901760, %v15480_v11  ;;  %v15585_v5 = vand.u32 4294901760, %v12339_v41  ;;  %12678 = vmatpush1.bf16.msra.mxu1 %v14968_v48  ;;  %12854 = vmatpush1.bf16.msra.mxu0 %v15371_v27 }
 0x243   :  { %21514 = vst [vmem:[#allocation120_spill] sm:$0xff] %v15553_v33  ;;  %21515 = vst [vmem:[#allocation121_spill] sm:$0xff] %v15559_v46  ;;  %v1422_v33 = vpop.f32.mrb[15].mxu0  ;;  %v15589_v55 = vand.u32 4294901760, %v1651_v24  ;;  %v15594_v10 = vand.u32 4294901760, %v15520_v31  ;;  %1691 = vmatprep.mubr.f32.mxu1 %v21369_v21  ;;  %v15606_v48 = vand.u32 4294901760, %v1695_v29  ;;  %v1706_v24 = vsub.f32 %v15523_v20, %v15559_v46  ;;  %12680 = vmatprep.subr.bf16.mxu1 %v15408_v3 }
 0x244   :  { %21518 = vst [vmem:[#allocation122_spill] sm:$0xff] %v15566_v45  ;;  %v1868_v59 = vsub.f32 %v15467_v42, %v21519_v19  ;;  %v1880_v32 = vsub.f32 %v15480_v11, %v21520_v49  ;;  %21521 = vst [vmem:[#allocation123_spill] sm:$0xff] %v15585_v5  ;;  %v15599_v19 = vld [vmem:[%s20486_s4 + $0x1f0] sm:$0xff]  ;;  %v15602_v49 = vsub.f32 %v1410_v14, %v15551_v47  ;;  %v15611_v6 = vand.u32 4294901760, %v15540_v1 }
 0x245   :  { %21522 = vst [vmem:[#allocation124_spill] sm:$0xff] %v15594_v10  ;;  %12856 = vmatprep.subr.bf16.mxu0 %v15377_v25  ;;  %v21525_v27 = vand.u32 4294901760, %v15413_v9  ;;  %v20767_v47 = vand.u32 4294901760, %v15187_v8  ;;  %1653 = vmatmul.mubr.f32.gmra.mrb[26].mxu0 %v15589_v55  ;;  %v12687_v46 = vpack.c.bf16 %v1857_v62, %v1845_v26  ;;  %v21526_v20 = vand.u32 4294901760, %v15531_v17 }
 0x246   :  { %21523 = vst [vmem:[#allocation125_spill] sm:$0xff] %v15602_v49  ;;  %21524 = vst [vmem:[#allocation126_spill] sm:$0xff] %v15611_v6  ;;  %1697 = vmatmul.mubr.f32.gmra.mrb[2].mxu1 %v15606_v48  ;;  %v21527_v3 = vand.u32 4294901760, %v15536_v57  ;;  %12858 = vmatpush1.bf16.msra.mxu0 %v15406_v63  ;;  %v15634_v61 = vand.u32 4294901760, %v1662_v16  ;;  %v1673_v62 = vsub.f32 %v15520_v31, %v15594_v10  ;;  %v1881_v26 = vand.u32 4294901760, %v1880_v32 }
 0x247   :  { %v12683_v14 = vpack.c.bf16 %v1833_v23, %v21525_v27  ;;  %v1869_v27 = vand.u32 4294901760, %v1868_v59  ;;  %v15630_v23 = vsub.f32 %v12339_v41, %v15585_v5  ;;  %12682 = vmatpush1.bf16.msra.mxu1 %v14977_v4  ;;  %v15638_v29 = vand.u32 4294901760, %v1422_v33  ;;  %1658 = vmatprep.mubr.f32.mxu0 %v21369_v21 }
 0x248   :  { %v15626_v11 = vpack.c.bf16 %v21527_v3, %v21526_v20  ;;  %1702 = vmatprep.mubr.f32.mxu1 %v21369_v21  ;;  %v15642_v20 = vand.u32 4294901760, %v1706_v24  ;;  %v1717_v41 = vsub.f32 %v15540_v1, %v15611_v6  ;;  %v15647_v4 = vand.u32 4294901760, %v15602_v49  ;;  %12860 = vmatprep.subr.bf16.mxu0 %v15509_v58 }
 0x249   :  { %21529 = vst [vmem:[#allocation128_spill] sm:$0xff] %v15630_v23  ;;  %21530 = vst [vmem:[#allocation129_spill] sm:$0xff] %v15638_v29  ;;  %12684 = vmatprep.subr.bf16.mxu1 %v12683_v14  ;;  %v3368_v32 = vsub.f32 %v15187_v8, %v20767_v47  ;;  %v21532_v59 = vand.u32 4294901760, %v15189_v39  ;;  %v21533_v9 = vand.u32 4294901760, %v15159_v7  ;;  %v21534_v14 = vand.u32 4294901760, %v15164_v40  ;;  %1664 = vmatmul.mubr.f32.gmra.mrb[28].mxu0 %v15634_v61 }
 0x24a   :  { %21528 = vst [vmem:[#allocation127_spill] sm:$0xff] %v15626_v11  ;;  %21531 = vst [vmem:[#allocation130_spill] sm:$0xff] %v15647_v4  ;;  %1708 = vmatmul.mubr.f32.gmra.mrb[4].mxu1 %v15642_v20  ;;  %v21537_v47 = vand.u32 4294901760, %v15599_v19  ;;  %12862 = vmatpush1.bf16.msra.mxu0 %v15566_v45  ;;  %v15686_v58 = vsub.f32 %v1422_v33, %v15638_v29  ;;  %v21542_v33 = vand.u32 4294901760, %v15191_v38  ;;  %v21544_v3 = vand.u32 4294901760, %v15175_v44  ;;  %v21614_v29 = vld [vmem:[#allocation63_spill] sm:$0xff] }
 0x24b   :  { %v3380_v16 = vsub.f32 %v15189_v39, %v21532_v59  ;;  %v15661_v6 = vsub.f32 %v15159_v7, %v21533_v9  ;;  %v15666_v10 = vsub.f32 %v15164_v40, %v21534_v14  ;;  %v21536_v59 = vand.u32 4294901760, %v15577_v35  ;;  %12686 = vmatpush1.bf16.msra.mxu1 %v14987_v56  ;;  %1669 = vmatprep.mubr.f32.mxu0 %v21369_v21 }
 0x24c   :  { %v15678_v7 = vand.u32 4294901760, %v15570_v54  ;;  %v15682_v40 = vand.u32 4294901760, %v1673_v62  ;;  %v12691_v9 = vpack.c.bf16 %v1881_v26, %v1869_v27  ;;  %21540 = vst [vmem:[#allocation134_spill] sm:$0xff] %v15686_v58  ;;  %1713 = vmatprep.mubr.f32.mxu1 %v21369_v21  ;;  %v15695_v56 = vand.u32 4294901760, %v15630_v23  ;;  %12688 = vmatprep.subr.bf16.mxu1 %v12687_v46 }
 0x24d   :  { %21535 = vst [vmem:[#allocation131_spill] sm:$0xff] %v15666_v10  ;;  %v15674_v24 = vpack.c.bf16 %v21537_v47, %v21536_v59  ;;  %v15690_v47 = vand.u32 4294901760, %v1717_v41  ;;  %v1728_v59 = vsub.f32 %v15602_v49, %v15647_v4  ;;  %12864 = vmatprep.subr.bf16.mxu0 %v15626_v11  ;;  %v3369_v27 = vand.u32 4294901760, %v3368_v32 }
 0x24e   :  { %21539 = vst [vmem:[#allocation133_spill] sm:$0xff] %v15678_v7  ;;  %21541 = vst [vmem:[#allocation135_spill] sm:$0xff] %v15695_v56  ;;  %v3381_v62 = vand.u32 4294901760, %v3380_v16  ;;  %v3386_v26 = vsub.f32 %v15191_v38, %v21542_v33  ;;  %v21543_v14 = vand.u32 4294901760, %v15202_v51  ;;  %v15707_v4 = vsub.f32 %v15175_v44, %v21544_v3  ;;  %1675 = vmatmul.mubr.f32.gmra.mrb[30].mxu0 %v15682_v40 }
 0x24f   :  { %21538 = vst [vmem:[#allocation132_spill] sm:$0xff] %v15674_v24  ;;  %v21546_v45 = vand.u32 4294901760, %v15198_v2  ;;  %1719 = vmatmul.mubr.f32.gmra.mrb[6].mxu1 %v15690_v47  ;;  %v21548_v32 = vand.u32 4294901760, %v15204_v43  ;;  %v21551_v44 = vand.u32 4294901760, %v15216_v53  ;;  %12866 = vmatpush1.bf16.msra.mxu0 %v15674_v24  ;;  %v15737_v11 = vsub.f32 %v15570_v54, %v15678_v7 }
 0x250   :  { %v3398_v41 = vsub.f32 %v15202_v51, %v21543_v14  ;;  %21545 = vst [vmem:[#allocation136_spill] sm:$0xff] %v15707_v4  ;;  %v21549_v14 = vand.u32 4294901760, %v15211_v18  ;;  %12690 = vmatpush1.bf16.msra.mxu1 %v14996_v36  ;;  %1724 = vmatprep.mubr.f32.mxu1 %v21369_v21  ;;  %v1739_v36 = vsub.f32 %v15630_v23, %v15695_v56  ;;  %v20794_v54 = vand.u32 4294901760, %v15280_v37  ;;  %v21575_v23 = vld [vmem:[#allocation78_spill] sm:$0xff] }
 0x251   :  { %v15712_v46 = vsub.f32 %v15198_v2, %v21546_v45  ;;  %v3392_v16 = vsub.f32 %v15204_v43, %v21548_v32  ;;  %v15727_v3 = vsub.f32 %v15216_v53, %v21551_v44  ;;  %v21553_v2 = vand.u32 4294901760, %v15220_v34  ;;  %21554 = vst [vmem:[#allocation140_spill] sm:$0xff] %v15737_v11  ;;  %12692 = vmatprep.subr.bf16.mxu1 %v12691_v9 }
 0x252   :  { %v15722_v33 = vsub.f32 %v15211_v18, %v21549_v14  ;;  %v15740_v18 = vand.u32 4294901760, %v1728_v59  ;;  %v15745_v53 = vand.u32 4294901760, %v15686_v58  ;;  %3182 = vmatprep.mubr.f32.mxu0 %v21369_v21  ;;  %12868 = vmatprep.subr.bf16.mxu0 %v15112_v60  ;;  %v12869_v14 = vpack.c.bf16 %v3381_v62, %v3369_v27  ;;  %v21562_v27 = vld [vmem:[#allocation46_spill] sm:$0xff] }
 0x253   :  { %21547 = vst [vmem:[#allocation137_spill] sm:$0xff] %v15712_v46  ;;  %21552 = vst [vmem:[#allocation139_spill] sm:$0xff] %v15727_v3  ;;  %v3404_v45 = vsub.f32 %v15220_v34, %v21553_v2  ;;  %v3387_v44 = vand.u32 4294901760, %v3386_v26  ;;  %v3399_v2 = vand.u32 4294901760, %v3398_v41  ;;  %v21556_v32 = vand.u32 4294901760, %v15232_v12  ;;  %3188 = vmatmul.mubr.f32.vlgmr.msra.gmra.mrb[32].mxu0 %v15326_v22  ;;  %v21567_v22 = vld [vmem:[#allocation49_spill] sm:$0xff] }
 0x254   :  { %21550 = vst [vmem:[#allocation138_spill] sm:$0xff] %v15722_v33  ;;  %21555 = vst [vmem:[#allocation141_spill] sm:$0xff] %v15745_v53  ;;  %v21558_v59 = vand.u32 4294901760, %v15237_v13  ;;  %v21560_v24 = vand.u32 4294901760, %v15242_v30  ;;  %1730 = vmatmul.mubr.f32.gmra.mrb[8].mxu1 %v15740_v18  ;;  %v3393_v60 = vand.u32 4294901760, %v3392_v16  ;;  %v21563_v62 = vand.u32 4294901760, %v15253_v15  ;;  %3193 = vmatprep.mubr.f32.mxu0 %v21369_v21 }
 0x255   :  { %v15753_v9 = vsub.f32 %v15232_v12, %v21556_v32  ;;  %12694 = vmatpush1.bf16.msra.mxu1 %v21562_v27  ;;  %1735 = vmatprep.mubr.f32.mxu1 %v21369_v21  ;;  %v3405_v12 = vand.u32 4294901760, %v3404_v45  ;;  %v15781_v16 = vand.u32 4294901760, %v1739_v36  ;;  %v1750_v45 = vsub.f32 %v15686_v58, %v15745_v53  ;;  %v21569_v27 = vld [vmem:[#allocation71_spill] sm:$0xff]  ;;  %v21571_v26 = vld [vmem:[#allocation76_spill] sm:$0xff]  ;;  %v21573_v53 = vld [vmem:[#allocation77_spill] sm:$0xff] }
 0x256   :  { %v15758_v56 = vsub.f32 %v15237_v13, %v21558_v59  ;;  %v15763_v63 = vsub.f32 %v15242_v30, %v21560_v24  ;;  %v3410_v13 = vsub.f32 %v15253_v15, %v21563_v62  ;;  %v21564_v30 = vld [vmem:[#allocation69_spill] sm:$0xff]  ;;  %12696 = vmatprep.subr.bf16.mxu1 %v21567_v22  ;;  %v15786_v59 = vand.u32 4294901760, %v15737_v11  ;;  %12870 = vmatpush1.bf16.msra.mxu0 %v12869_v14  ;;  %v21580_v14 = vld [vmem:[#allocation92_spill] sm:$0xff] }
 0x257   :  { %21557 = vst [vmem:[#allocation142_spill] sm:$0xff] %v15753_v9  ;;  %v21565_v24 = vand.u32 4294901760, %v21564_v30  ;;  %v21570_v62 = vand.u32 4294901760, %v21569_v27  ;;  %v12871_v22 = vpack.c.bf16 %v3399_v2, %v3387_v44  ;;  %v3422_v36 = vsub.f32 %v15280_v37, %v20794_v54  ;;  %3199 = vmatmul.mubr.f32.gmra.mrb[34].mxu0 %v21580_v14  ;;  %v21581_v44 = vld [vmem:[#allocation50_spill] sm:$0xff] }
 0x258   :  { %21559 = vst [vmem:[#allocation143_spill] sm:$0xff] %v15758_v56  ;;  %21561 = vst [vmem:[#allocation144_spill] sm:$0xff] %v15763_v63  ;;  %v21574_v25 = vand.u32 4294901760, %v21573_v53  ;;  %v21576_v49 = vand.u32 4294901760, %v21575_v23  ;;  %1741 = vmatmul.mubr.f32.gmra.mrb[10].mxu1 %v15781_v16  ;;  %v21582_v2 = vand.u32 4294901760, %v15661_v6  ;;  %3204 = vmatprep.mubr.f32.mxu0 %v21369_v21  ;;  %v1761_v14 = vsub.f32 %v15737_v11, %v15786_v59 }
 0x259   :  { %v15777_v32 = vsub.f32 %v21564_v30, %v21565_v24  ;;  %21568 = vst [vmem:[#allocation69_spill] sm:$0xff] %v15786_v59  ;;  %v15791_v41 = vsub.f32 %v21569_v27, %v21570_v62  ;;  %v21572_v30 = vand.u32 4294901760, %v21571_v26  ;;  %v21578_v62 = vld [vmem:[#allocation90_spill] sm:$0xff]  ;;  %12698 = vmatpush1.bf16.msra.mxu1 %v21581_v44  ;;  %1746 = vmatprep.mubr.f32.mxu1 %v21369_v21  ;;  %v21589_v44 = vand.u32 4294901760, %v15392_v0 }
 0x25a   :  { %v15804_v58 = vsub.f32 %v21573_v53, %v21574_v25  ;;  %v15809_v27 = vsub.f32 %v21575_v23, %v21576_v49  ;;  %v21579_v1 = vand.u32 4294901760, %v21578_v62  ;;  %v12873_v25 = vpack.c.bf16 %v3405_v12, %v3393_v60  ;;  %12872 = vmatprep.subr.bf16.mxu0 %v12871_v22  ;;  %v21588_v59 = vld [vmem:[#allocation102_spill] sm:$0xff]  ;;  %v21595_v60 = vld [vmem:[#allocation53_spill] sm:$0xff]  ;;  %v21596_v22 = vld [vmem:[#allocation56_spill] sm:$0xff] }
 0x25b   :  { %21566 = vst [vmem:[#allocation46_spill] sm:$0xff] %v15777_v32  ;;  %v15796_v24 = vsub.f32 %v21571_v26, %v21572_v30  ;;  %v3411_v53 = vand.u32 4294901760, %v3410_v13  ;;  %v3416_v49 = vsub.f32 %v15661_v6, %v21582_v2  ;;  %v21583_v23 = vand.u32 4294901760, %v15666_v10  ;;  %3210 = vmatmul.mubr.f32.gmra.mrb[36].mxu0 %v21588_v59 }
 0x25c   :  { %21577 = vst [vmem:[#allocation49_spill] sm:$0xff] %v15809_v27  ;;  %v15814_v26 = vsub.f32 %v21578_v62, %v21579_v1  ;;  %v21584_v1 = vld [vmem:[#allocation54_spill] sm:$0xff]  ;;  %v15828_v62 = vand.u32 4294901760, %v1750_v45  ;;  %v20799_v12 = vand.u32 4294901760, %v15712_v46  ;;  %v3423_v13 = vand.u32 4294901760, %v3422_v36  ;;  %3215 = vmatprep.mubr.f32.mxu0 %v21369_v21  ;;  %12874 = vmatpush1.bf16.msra.mxu0 %v12873_v25 }
 0x25d   :  { %v3428_v30 = vsub.f32 %v15666_v10, %v21583_v23  ;;  %12700 = vmatprep.subr.bf16.mxu1 %v21584_v1  ;;  %v21585_v1 = vld [vmem:[#allocation91_spill] sm:$0xff]  ;;  %v15850_v2 = vsub.f32 %v15392_v0, %v21589_v44  ;;  %v21591_v23 = vand.u32 4294901760, %v15418_v28  ;;  %v3417_v36 = vand.u32 4294901760, %v3416_v49 }
 0x25e   :  { %v21586_v54 = vand.u32 4294901760, %v21585_v1  ;;  %1752 = vmatmul.mubr.f32.gmra.mrb[12].mxu1 %v15828_v62  ;;  %v15866_v0 = vand.u32 4294901760, %v1761_v14 }
 0x25f   :  { %21590 = vst [vmem:[#allocation76_spill] sm:$0xff] %v15850_v2  ;;  %12702 = vmatpush1.bf16.msra.mxu1 %v21595_v60  ;;  %1757 = vmatprep.mubr.f32.mxu1 %v21369_v21  ;;  %v3429_v44 = vand.u32 4294901760, %v3428_v30  ;;  %v12875_v60 = vpack.c.bf16 %v3423_v13, %v3411_v53  ;;  %v21600_v30 = vand.u32 4294901760, %v15753_v9  ;;  %v21602_v53 = vand.u32 4294901760, %v15763_v63 }
 0x260   :  { %v15840_v45 = vsub.f32 %v21585_v1, %v21586_v54  ;;  %v15855_v54 = vsub.f32 %v15418_v28, %v21591_v23  ;;  %v21593_v1 = vand.u32 4294901760, %v15531_v17  ;;  %12704 = vmatprep.subr.bf16.mxu1 %v21596_v22  ;;  %v21597_v28 = vand.u32 4294901760, %v15707_v4  ;;  %3221 = vmatmul.mubr.f32.gmra.mrb[38].mxu0 %v15496_v50  ;;  %v21606_v50 = vld [vmem:[#allocation55_spill] sm:$0xff] }
 0x261   :  { %v21599_v22 = vand.u32 4294901760, %v15727_v3  ;;  %v3458_v11 = vsub.f32 %v15753_v9, %v21600_v30  ;;  %v3464_v13 = vsub.f32 %v15763_v63, %v21602_v53  ;;  %v21604_v30 = vand.u32 4294901760, %v15536_v57  ;;  %3226 = vmatprep.mubr.f32.mxu0 %v21369_v21  ;;  %12876 = vmatprep.subr.bf16.mxu0 %v12875_v60 }
 0x262   :  { %21587 = vst [vmem:[#allocation71_spill] sm:$0xff] %v15840_v45  ;;  %21592 = vst [vmem:[#allocation77_spill] sm:$0xff] %v15855_v54  ;;  %v15860_v59 = vsub.f32 %v15531_v17, %v21593_v1  ;;  %v3434_v23 = vsub.f32 %v15707_v4, %v21597_v28  ;;  %v3446_v17 = vsub.f32 %v15712_v46, %v20799_v12  ;;  %v21598_v1 = vand.u32 4294901760, %v15722_v33  ;;  %v21609_v12 = vld [vmem:[#allocation4_spill] sm:$0xff] }
 0x263   :  { %v3452_v14 = vsub.f32 %v15727_v3, %v21599_v22  ;;  %1763 = vmatmul.mubr.f32.gmra.mrb[14].mxu1 %v15866_v0  ;;  %v21601_v28 = vand.u32 4294901760, %v15758_v56  ;;  %v15898_v31 = vsub.f32 %v15536_v57, %v21604_v30  ;;  %v21607_v63 = vand.u32 4294901760, %v15577_v35  ;;  %v21612_v57 = vld [vmem:[#allocation5_spill] sm:$0xff]  ;;  %v21613_v30 = vld [vmem:[#allocation6_spill] sm:$0xff]  ;;  %v21616_v46 = vld [vmem:[#allocation12_spill] sm:$0xff] }
 0x264   :  { %21594 = vst [vmem:[#allocation78_spill] sm:$0xff] %v15860_v59  ;;  %v3440_v49 = vsub.f32 %v15722_v33, %v21598_v1  ;;  %v21603_v1 = vand.u32 4294901760, %v15777_v32  ;;  %12706 = vmatpush1.bf16.msra.mxu1 %v21606_v50  ;;  %1993 = vmatprep.mubr.f32.mxu1 %v21369_v21  ;;  %v12711_v50 = vpack.c.bf16 %v21613_v30, %v21612_v57  ;;  %v3435_v9 = vand.u32 4294901760, %v3434_v23  ;;  %v21617_v30 = vld [vmem:[#allocation9_spill] sm:$0xff] }
 0x265   :  { %v3470_v25 = vsub.f32 %v15758_v56, %v21601_v28  ;;  %21605 = vst [vmem:[#allocation90_spill] sm:$0xff] %v15898_v31  ;;  %v3447_v28 = vand.u32 4294901760, %v3446_v17  ;;  %v12877_v7 = vpack.c.bf16 %v3429_v44, %v3417_v36  ;;  %v3453_v53 = vand.u32 4294901760, %v3452_v14  ;;  %3232 = vmatmul.mubr.f32.gmra.mrb[40].mxu0 %v15544_v52 }
 0x266   :  { %v3476_v22 = vsub.f32 %v15777_v32, %v21603_v1  ;;  %v15908_v1 = vsub.f32 %v15577_v35, %v21607_v63  ;;  %v21610_v32 = vld [vmem:[#allocation3_spill] sm:$0xff]  ;;  %v3441_v3 = vand.u32 4294901760, %v3440_v49  ;;  %v3459_v33 = vand.u32 4294901760, %v3458_v11  ;;  %3237 = vmatprep.mubr.f32.mxu0 %v21369_v21 }
 0x267   :  { %v21611_v56 = vpack.c.bf16 %v21609_v12, %v21610_v32  ;;  %1995 = vmatmul.mubr.f32.vlgmr.msra.gmra.mrb[16].mxu1 %v21614_v29  ;;  %v3471_v63 = vand.u32 4294901760, %v3470_v25  ;;  %v3465_v35 = vand.u32 4294901760, %v3464_v13  ;;  %v21618_v23 = vpack.c.bf16 %v21616_v46, %v21617_v30  ;;  %12878 = vmatpush1.bf16.msra.mxu0 %v12877_v7  ;;  %v21626_v46 = vld [vmem:[#allocation60_spill] sm:$0xff]  ;;  %v21630_v13 = vld [vmem:[#allocation14_spill] sm:$0xff] }
 0x268   :  { %21608 = vst [vmem:[#allocation92_spill] sm:$0xff] %v15908_v1  ;;  %v3477_v12 = vand.u32 4294901760, %v3476_v22  ;;  %2000 = vmatprep.mubr.f32.mxu1 %v21369_v21  ;;  %v21619_v36 = vand.u32 4294901760, %v15796_v24  ;;  %v21620_v44 = vand.u32 4294901760, %v15804_v58  ;;  %v21621_v17 = vand.u32 4294901760, %v15809_v27 }
 0x269   :  { %12708 = vmatprep.subr.bf16.mxu1 %v21611_v56  ;;  %v21615_v56 = vand.u32 4294901760, %v15791_v41  ;;  %v21622_v49 = vand.u32 4294901760, %v15599_v19  ;;  %v12879_v25 = vpack.c.bf16 %v3447_v28, %v3435_v9  ;;  %3243 = vmatmul.mubr.f32.gmra.mrb[42].mxu0 %v15589_v55  ;;  %v12883_v28 = vpack.c.bf16 %v3471_v63, %v3459_v33  ;;  %v21639_v63 = vld [vmem:[#allocation17_spill] sm:$0xff] }
 0x26a   :  { %12710 = vmatpush1.bf16.msra.mxu1 %v21618_v23  ;;  %v3494_v11 = vsub.f32 %v15796_v24, %v21619_v36  ;;  %v3488_v52 = vsub.f32 %v15804_v58, %v21620_v44  ;;  %v3500_v60 = vsub.f32 %v15809_v27, %v21621_v17  ;;  %v21625_v23 = vld [vmem:[#allocation10_spill] sm:$0xff]  ;;  %v12881_v44 = vpack.c.bf16 %v3453_v53, %v3441_v3  ;;  %v21629_v17 = vld [vmem:[#allocation15_spill] sm:$0xff] }
 0x26b   :  { %v3482_v32 = vsub.f32 %v15791_v41, %v21615_v56  ;;  %v15937_v14 = vsub.f32 %v15599_v19, %v21622_v49  ;;  %12712 = vmatprep.subr.bf16.mxu1 %v12711_v50  ;;  %v21624_v56 = vld [vmem:[#allocation7_spill] sm:$0xff]  ;;  %2002 = vmatmul.mubr.f32.gmra.mrb[18].mxu1 %v21626_v46  ;;  %v21628_v50 = vld [vmem:[#allocation96_spill] sm:$0xff]  ;;  %v12885_v49 = vpack.c.bf16 %v3477_v12, %v3465_v35  ;;  %v21632_v55 = vand.u32 4294901760, %v15814_v26 }
 0x26c   :  { %v12715_v36 = vpack.c.bf16 %v21625_v23, %v21624_v56  ;;  %v21627_v19 = vld [vmem:[#allocation95_spill] sm:$0xff]  ;;  %2007 = vmatprep.mubr.f32.mxu1 %v21369_v21  ;;  %3248 = vmatprep.mubr.f32.mxu0 %v21369_v21  ;;  %v3495_v7 = vand.u32 4294901760, %v3494_v11  ;;  %v3489_v3 = vand.u32 4294901760, %v3488_v52  ;;  %v3501_v53 = vand.u32 4294901760, %v3500_v60 }
 0x26d   :  { %21623 = vst [vmem:[#allocation50_spill] sm:$0xff] %v15937_v14  ;;  %v12719_v9 = vpack.c.bf16 %v21628_v50, %v21627_v19  ;;  %v3483_v22 = vand.u32 4294901760, %v3482_v32  ;;  %v21631_v57 = vpack.c.bf16 %v21629_v17, %v21630_v13  ;;  %12880 = vmatprep.subr.bf16.mxu0 %v12879_v25  ;;  %v3506_v23 = vsub.f32 %v15814_v26, %v21632_v55  ;;  %v21636_v55 = vld [vmem:[#allocation73_spill] sm:$0xff]  ;;  %v21638_v32 = vld [vmem:[#allocation18_spill] sm:$0xff] }
 0x26e   :  { %v21633_v33 = vand.u32 4294901760, %v15840_v45  ;;  %12882 = vmatpush1.bf16.msra.mxu0 %v12881_v44  ;;  %v21634_v35 = vand.u32 4294901760, %v15850_v2  ;;  %v21641_v50 = vand.u32 4294901760, %v15860_v59  ;;  %v21642_v19 = vand.u32 4294901760, %v15898_v31 }
 0x26f   :  { %12714 = vmatpush1.bf16.msra.mxu1 %v21631_v57  ;;  %v21635_v57 = vand.u32 4294901760, %v15855_v54  ;;  %3254 = vmatmul.mubr.f32.gmra.mrb[44].mxu0 %v15634_v61  ;;  %v3507_v60 = vand.u32 4294901760, %v3506_v23 }
 0x270   :  { %v3518_v12 = vsub.f32 %v15840_v45, %v21633_v33  ;;  %12716 = vmatprep.subr.bf16.mxu1 %v12715_v36  ;;  %v3512_v11 = vsub.f32 %v15850_v2, %v21634_v35  ;;  %2009 = vmatmul.mubr.f32.gmra.mrb[20].mxu1 %v21636_v55  ;;  %v21637_v36 = vld [vmem:[#allocation107_spill] sm:$0xff]  ;;  %v12887_v33 = vpack.c.bf16 %v3495_v7, %v3483_v22  ;;  %v21643_v7 = vand.u32 4294901760, %v15908_v1 }
 0x271   :  { %v3524_v52 = vsub.f32 %v15855_v54, %v21635_v57  ;;  %2014 = vmatprep.mubr.f32.mxu1 %v21369_v21  ;;  %3259 = vmatprep.mubr.f32.mxu0 %v21369_v21  ;;  %v12723_v44 = vpack.c.bf16 %v21637_v36, %v15467_v42  ;;  %v12889_v35 = vpack.c.bf16 %v3501_v53, %v3489_v3  ;;  %v21645_v53 = vld [vmem:[#allocation70_spill] sm:$0xff]  ;;  %v21651_v42 = vld [vmem:[#allocation24_spill] sm:$0xff] }
 0x272   :  { %v21640_v57 = vpack.c.bf16 %v21638_v32, %v21639_v63  ;;  %12884 = vmatprep.subr.bf16.mxu0 %v12883_v28  ;;  %v3519_v25 = vand.u32 4294901760, %v3518_v12  ;;  %v3530_v61 = vsub.f32 %v15860_v59, %v21641_v50  ;;  %v3542_v56 = vsub.f32 %v15898_v31, %v21642_v19  ;;  %v21646_v19 = vld [vmem:[#allocation21_spill] sm:$0xff]  ;;  %v21647_v50 = vld [vmem:[#allocation20_spill] sm:$0xff] }
 0x273   :  { %12886 = vmatpush1.bf16.msra.mxu0 %v12885_v49  ;;  %v3513_v36 = vand.u32 4294901760, %v3512_v11  ;;  %v3525_v22 = vand.u32 4294901760, %v3524_v52  ;;  %v3536_v3 = vsub.f32 %v15908_v1, %v21643_v7  ;;  %v21644_v28 = vand.u32 4294901760, %v15937_v14 }
 0x274   :  { %12718 = vmatpush1.bf16.msra.mxu1 %v21640_v57  ;;  %3265 = vmatmul.mubr.f32.gmra.mrb[46].mxu0 %v15682_v40  ;;  %v12891_v49 = vpack.c.bf16 %v3519_v25, %v3507_v60  ;;  %v3531_v12 = vand.u32 4294901760, %v3530_v61  ;;  %v3543_v11 = vand.u32 4294901760, %v3542_v56  ;;  %v21650_v40 = vld [vmem:[#allocation120_spill] sm:$0xff]  ;;  %v21654_v56 = vld [vmem:[#allocation45_spill] sm:$0xff]  ;;  %v21659_v61 = vld [vmem:[#allocation35_spill] sm:$0xff] }
 0x275   :  { %12720 = vmatprep.subr.bf16.mxu1 %v12719_v9  ;;  %v3548_v23 = vsub.f32 %v15937_v14, %v21644_v28  ;;  %2016 = vmatmul.mubr.f32.gmra.mrb[22].mxu1 %v21645_v53  ;;  %v21648_v9 = vpack.c.bf16 %v21646_v19, %v21647_v50  ;;  %v12893_v52 = vpack.c.bf16 %v3525_v22, %v3513_v36  ;;  %v3537_v57 = vand.u32 4294901760, %v3536_v3  ;;  %v21649_v28 = vld [vmem:[#allocation81_spill] sm:$0xff]  ;;  %v21652_v19 = vld [vmem:[#allocation23_spill] sm:$0xff]  ;;  %v21655_v25 = vld [vmem:[#allocation44_spill] sm:$0xff] }
 0x276   :  { %2021 = vmatprep.mubr.f32.mxu1 %v21369_v21  ;;  %3270 = vmatprep.mubr.f32.mxu0 %v21369_v21  ;;  %v12895_v60 = vpack.c.bf16 %v3543_v11, %v3531_v12  ;;  %v21661_v3 = vld [vmem:[#allocation48_spill] sm:$0xff]  ;;  %v21664_v12 = vld [vmem:[#allocation98_spill] sm:$0xff]  ;;  %v21666_v11 = vld [vmem:[#allocation37_spill] sm:$0xff] }
 0x277   :  { %12888 = vmatprep.subr.bf16.mxu0 %v12887_v33  ;;  %v3549_v7 = vand.u32 4294901760, %v3548_v23  ;;  %v21657_v33 = vld [vmem:[#allocation86_spill] sm:$0xff]  ;;  %v21662_v23 = vld [vmem:[#allocation47_spill] sm:$0xff] }
 0x278   :  { %12722 = vmatpush1.bf16.msra.mxu1 %v21648_v9  ;;  %12890 = vmatpush1.bf16.msra.mxu0 %v12889_v35  ;;  %v21653_v9 = vpack.c.bf16 %v21651_v42, %v21652_v19  ;;  %v21658_v35 = vld [vmem:[#allocation36_spill] sm:$0xff] }
 0x279   :  { %12724 = vmatprep.subr.bf16.mxu1 %v12723_v44  ;;  %2023 = vmatmul.mubr.f32.gmra.mrb[24].mxu1 %v21649_v28  ;;  %v21656_v44 = vpack.c.bf16 %v21654_v56, %v21655_v25  ;;  %v12897_v36 = vpack.c.bf16 %v3549_v7, %v3537_v57  ;;  %v21660_v22 = vpack.c.bf16 %v21658_v35, %v21659_v61  ;;  %v21668_v57 = vld [vmem:[#allocation43_spill] sm:$0xff]  ;;  %v21669_v7 = vld [vmem:[#allocation42_spill] sm:$0xff] }
 0x27a   :  { %3276 = vmatmul.mubr.f32.gmra.mrb[48].mxu0 %v21650_v40  ;;  %2028 = vmatprep.mubr.f32.mxu1 %v21369_v21  ;;  %v21670_v40 = vpack.c.bf16 %v21668_v57, %v21669_v7 }
 0x27b   :  { %3281 = vmatprep.mubr.f32.mxu0 %v21369_v21  ;;  %12892 = vmatprep.subr.bf16.mxu0 %v12891_v49  ;;  %v21663_v49 = vpack.c.bf16 %v21661_v3, %v21662_v23 }
 0x27c   :  { %12726 = vmatpush1.bf16.msra.mxu1 %v21653_v9  ;;  %12894 = vmatpush1.bf16.msra.mxu0 %v12893_v52  ;;  %v21671_v9 = vld [vmem:[#allocation52_spill] sm:$0xff] }
 0x27d   :  { %12728 = vmatprep.subr.bf16.mxu1 %v21656_v44  ;;  %2030 = vmatmul.mubr.f32.gmra.mrb[26].mxu1 %v21657_v33 }
 0x27e   :  { %3287 = vmatmul.mubr.f32.gmra.mrb[50].mxu0 %v15606_v48  ;;  %2035 = vmatprep.mubr.f32.mxu1 %v21369_v21  ;;  %v21665_v48 = vld [vmem:[#allocation38_spill] sm:$0xff] }
 0x27f   :  { %3292 = vmatprep.mubr.f32.mxu0 %v21369_v21  ;;  %12896 = vmatprep.subr.bf16.mxu0 %v12895_v60  ;;  %v21667_v52 = vpack.c.bf16 %v21665_v48, %v21666_v11  ;;  %v21672_v60 = vld [vmem:[#allocation51_spill] sm:$0xff]  ;;  %v21679_v48 = vld [vmem:[#allocation101_spill] sm:$0xff] }
 0x280   :  { %12730 = vmatpush1.bf16.msra.mxu1 %v21660_v22  ;;  %12898 = vmatpush1.bf16.msra.mxu0 %v12897_v36  ;;  %v21673_v44 = vpack.c.bf16 %v21671_v9, %v21672_v60  ;;  %v21674_v36 = vld [vmem:[#allocation105_spill] sm:$0xff]  ;;  %v21676_v22 = vld [vmem:[#allocation40_spill] sm:$0xff] }
 0x281   :  { %12732 = vmatprep.subr.bf16.mxu1 %v21663_v49  ;;  %2037 = vmatmul.mubr.f32.gmra.mrb[28].mxu1 %v21664_v12 }
 0x282   :  { %3298 = vmatmul.mubr.f32.gmra.mrb[52].mxu0 %v15642_v20  ;;  %2042 = vmatprep.mubr.f32.mxu1 %v21369_v21  ;;  %v21675_v20 = vld [vmem:[#allocation41_spill] sm:$0xff] }
 0x283   :  { %3303 = vmatprep.mubr.f32.mxu0 %v21369_v21  ;;  %12900 = vmatprep.subr.bf16.mxu0 %v21670_v40  ;;  %v21677_v49 = vpack.c.bf16 %v21675_v20, %v21676_v22  ;;  %v21680_v40 = vld [vmem:[#allocation99_spill] sm:$0xff] }
 0x284   :  { %12734 = vmatpush1.bf16.msra.mxu1 %v21667_v52  ;;  %v21678_v52 = vld [vmem:[#allocation8_spill] sm:$0xff] }
 0x285   :  { %12736 = vmatprep.subr.bf16.mxu1 %v21673_v44  ;;  %2044 = vmatmul.mubr.f32.gmra.mrb[30].mxu1 %v21674_v36  ;;  %v12903_v44 = vpack.c.bf16 %v15202_v51, %v15191_v38 }
 0x286   :  { %3309 = vmatmul.mubr.f32.gmra.mrb[54].mxu0 %v15690_v47  ;;  %2049 = vmatprep.mubr.f32.mxu1 %v21369_v21  ;;  %v21681_v47 = vld [vmem:[#allocation111_spill] sm:$0xff] }
 0x287   :  { %3314 = vmatprep.mubr.f32.mxu0 %v21369_v21 }
 0x288   :  { %12738 = vmatpush1.bf16.msra.mxu1 %v21677_v49  ;;  %v21683_v49 = vld [vmem:[#allocation119_spill] sm:$0xff] }
 0x289   :  { %12740 = vmatprep.subr.bf16.mxu1 %v21678_v52  ;;  %2051 = vmatmul.mubr.f32.gmra.mrb[0].mxu1 %v21679_v48 }
 0x28a   :  { %3320 = vmatmul.mubr.f32.gmra.mrb[56].mxu0 %v15740_v18  ;;  %2056 = vmatprep.mubr.f32.mxu1 %v21369_v21  ;;  %v21682_v18 = vld [vmem:[#allocation109_spill] sm:$0xff] }
 0x28b   :  { %3325 = vmatprep.mubr.f32.mxu0 %v21369_v21 }
 0x28d   :  { %2058 = vmatmul.mubr.f32.gmra.mrb[2].mxu1 %v21680_v40 }
 0x28e   :  { %3331 = vmatmul.mubr.f32.gmra.mrb[58].mxu0 %v15781_v16  ;;  %2063 = vmatprep.mubr.f32.mxu1 %v21369_v21  ;;  %v12901_v16 = vpack.c.bf16 %v15189_v39, %v15187_v8 }
 0x28f   :  { %3336 = vmatprep.mubr.f32.mxu0 %v21369_v21 }
 0x291   :  { %2065 = vmatmul.mubr.f32.gmra.mrb[4].mxu1 %v21681_v47 }
 0x292   :  { %3342 = vmatmul.mubr.f32.gmra.mrb[60].mxu0 %v15828_v62  ;;  %2070 = vmatprep.mubr.f32.mxu1 %v21369_v21  ;;  %v12905_v62 = vpack.c.bf16 %v15220_v34, %v15204_v43  ;;  %v21689_v43 = vld [vmem:[#allocation143_spill] sm:$0xff] }
 0x293   :  { %3347 = vmatprep.mubr.f32.mxu0 %v21369_v21 }
 0x295   :  { %2072 = vmatmul.mubr.f32.gmra.mrb[6].mxu1 %v21682_v18 }
 0x296   :  { %3353 = vmatmul.mubr.f32.gmra.mrb[62].mxu0 %v15866_v0  ;;  %2077 = vmatprep.mubr.f32.mxu1 %v21369_v21  ;;  %v12907_v0 = vpack.c.bf16 %v15280_v37, %v15253_v15  ;;  %v21687_v37 = vld [vmem:[#allocation139_spill] sm:$0xff] }
 0x297   :  { %3583 = vmatprep.mubr.f32.mxu0 %v21369_v21 }
 0x299   :  { %2079 = vmatmul.mubr.f32.gmra.mrb[8].mxu1 %v21683_v49 }
 0x29a   :  { %3585 = vmatmul.mubr.f32.vlgmr.msra.gmra.mrb[32].mxu0 %v21614_v29  ;;  %2084 = vmatprep.mubr.f32.mxu1 %v21369_v21  ;;  %v12909_v29 = vpack.c.bf16 %v15666_v10, %v15661_v6 }
 0x29b   :  { %3590 = vmatprep.mubr.f32.mxu0 %v21369_v21  ;;  %12902 = vmatpush1.bf16.msra.mxu0 %v12901_v16  ;;  %v21684_v16 = vld [vmem:[#allocation137_spill] sm:$0xff] }
 0x29c   :  { %12904 = vmatprep.subr.bf16.mxu0 %v12903_v44  ;;  %v12911_v34 = vpack.c.bf16 %v21684_v16, %v15707_v4  ;;  %v21685_v44 = vld [vmem:[#allocation129_spill] sm:$0xff]  ;;  %v21692_v16 = vld [vmem:[#allocation46_spill] sm:$0xff]  ;;  %v21693_v4 = vld [vmem:[#allocation67_spill] sm:$0xff] }
 0x29d   :  { %2086 = vmatmul.mubr.f32.gmra.mrb[10].mxu1 %v15585_v5 }
 0x29e   :  { %3592 = vmatmul.mubr.f32.gmra.mrb[34].mxu0 %v21626_v46  ;;  %2091 = vmatprep.mubr.f32.mxu1 %v21369_v21  ;;  %v21686_v46 = vld [vmem:[#allocation138_spill] sm:$0xff] }
 0x29f   :  { %3597 = vmatprep.mubr.f32.mxu0 %v21369_v21  ;;  %12906 = vmatpush1.bf16.msra.mxu0 %v12905_v62  ;;  %v12913_v15 = vpack.c.bf16 %v21687_v37, %v21686_v46  ;;  %v21688_v62 = vld [vmem:[#allocation142_spill] sm:$0xff] }
 0x2a0   :  { %12908 = vmatprep.subr.bf16.mxu0 %v12907_v0  ;;  %v12915_v10 = vpack.c.bf16 %v21689_v43, %v21688_v62  ;;  %v21690_v0 = vld [vmem:[#allocation133_spill] sm:$0xff]  ;;  %v12919_v43 = vpack.c.bf16 %v15796_v24, %v15791_v41 }
 0x2a1   :  { %2093 = vmatmul.mubr.f32.gmra.mrb[12].mxu1 %v21685_v44 }
 0x2a2   :  { %3599 = vmatmul.mubr.f32.gmra.mrb[36].mxu0 %v21636_v55  ;;  %2098 = vmatprep.mubr.f32.mxu1 %v21369_v21  ;;  %v21691_v55 = vld [vmem:[#allocation144_spill] sm:$0xff] }
 0x2a3   :  { %3604 = vmatprep.mubr.f32.mxu0 %v21369_v21  ;;  %12910 = vmatpush1.bf16.msra.mxu0 %v12909_v29  ;;  %v12917_v29 = vpack.c.bf16 %v21692_v16, %v21691_v55 }
 0x2a4   :  { %12912 = vmatprep.subr.bf16.mxu0 %v12911_v34  ;;  %v21694_v34 = vld [vmem:[#allocation11_spill] sm:$0xff] }
 0x2a5   :  { %2100 = vmatmul.mubr.f32.gmra.mrb[14].mxu1 %v21690_v0 }
 0x2a6   :  { %3606 = vmatmul.mubr.f32.gmra.mrb[38].mxu0 %v21645_v53  ;;  %2234 = vmatprep.mubr.f32.mxu1 %v21369_v21  ;;  %v21695_v53 = vld [vmem:[#allocation13_spill] sm:$0xff] }
 0x2a7   :  { %3611 = vmatprep.mubr.f32.mxu0 %v21369_v21  ;;  %12914 = vmatpush1.bf16.msra.mxu0 %v12913_v15  ;;  %v12921_v15 = vpack.c.bf16 %v15809_v27, %v15804_v58  ;;  %v21699_v27 = vld [vmem:[#allocation79_spill] sm:$0xff] }
 0x2a8   :  { %12916 = vmatprep.subr.bf16.mxu0 %v12915_v10  ;;  %v21696_v10 = vld [vmem:[#allocation66_spill] sm:$0xff] }
 0x2a9   :  { %2237 = vmatmul.mubr.f32.vlgmr.msra.gmra.mrb[16].mxu1 %v21693_v4 }
 0x2aa   :  { %3613 = vmatmul.mubr.f32.gmra.mrb[40].mxu0 %v21649_v28  ;;  %12742 = vmatpush1.bf16.msra.mxu1 %v21694_v34  ;;  %v21697_v28 = vld [vmem:[#allocation16_spill] sm:$0xff]  ;;  %v21698_v34 = vld [vmem:[#allocation19_spill] sm:$0xff] }
 0x2ab   :  { %2242 = vmatprep.mubr.f32.mxu1 %v21369_v21  ;;  %3618 = vmatprep.mubr.f32.mxu0 %v21369_v21 }
 0x2ac   :  { %12744 = vmatprep.subr.bf16.mxu1 %v21695_v53  ;;  %12918 = vmatpush1.bf16.msra.mxu0 %v12917_v29  ;;  %v12923_v53 = vpack.c.bf16 %v15840_v45, %v15814_v26  ;;  %v12925_v29 = vpack.c.bf16 %v15855_v54, %v15850_v2  ;;  %v21701_v45 = vld [vmem:[#allocation25_spill] sm:$0xff]  ;;  %v21702_v54 = vld [vmem:[#allocation80_spill] sm:$0xff] }
 0x2ad   :  { %2245 = vmatmul.mubr.f32.gmra.mrb[18].mxu1 %v21696_v10  ;;  %12920 = vmatprep.subr.bf16.mxu0 %v12919_v43  ;;  %v12927_v43 = vpack.c.bf16 %v15898_v31, %v15860_v59  ;;  %v21705_v31 = vld [vmem:[#allocation87_spill] sm:$0xff]  ;;  %v21744_v2 = vld [vmem:[#allocation72_spill] sm:$0xff] }
 0x2ae   :  { %3620 = vmatmul.mubr.f32.gmra.mrb[42].mxu0 %v21657_v33  ;;  %2250 = vmatprep.mubr.f32.mxu1 %v21369_v21  ;;  %v21700_v33 = vld [vmem:[#allocation22_spill] sm:$0xff] }
 0x2af   :  { %3625 = vmatprep.mubr.f32.mxu0 %v21369_v21  ;;  %12746 = vmatpush1.bf16.msra.mxu1 %v21697_v28 }
 0x2b0   :  { %12748 = vmatprep.subr.bf16.mxu1 %v21698_v34  ;;  %12922 = vmatpush1.bf16.msra.mxu0 %v12921_v15  ;;  %v12929_v15 = vpack.c.bf16 %v15937_v14, %v15908_v1  ;;  %v21708_v14 = vld [vmem:[#allocation29_spill] sm:$0xff] }
 0x2b1   :  { %2253 = vmatmul.mubr.f32.gmra.mrb[20].mxu1 %v21699_v27  ;;  %12924 = vmatprep.subr.bf16.mxu0 %v12923_v53  ;;  %v21704_v53 = vld [vmem:[#allocation27_spill] sm:$0xff]  ;;  %v21709_v1 = vld [vmem:[#allocation97_spill] sm:$0xff] }
 0x2b2   :  { %3627 = vmatmul.mubr.f32.gmra.mrb[44].mxu0 %v21664_v12  ;;  %2258 = vmatprep.mubr.f32.mxu1 %v21369_v21  ;;  %v21703_v12 = vld [vmem:[#allocation26_spill] sm:$0xff] }
 0x2b3   :  { %3632 = vmatprep.mubr.f32.mxu0 %v21369_v21  ;;  %12750 = vmatpush1.bf16.msra.mxu1 %v21700_v33  ;;  %v21742_v33 = vld [vmem:[#allocation84_spill] sm:$0xff] }
 0x2b4   :  { %12752 = vmatprep.subr.bf16.mxu1 %v21701_v45  ;;  %12926 = vmatpush1.bf16.msra.mxu0 %v12925_v29  ;;  %v21706_v29 = vld [vmem:[#allocation28_spill] sm:$0xff] }
 0x2b5   :  { %2261 = vmatmul.mubr.f32.gmra.mrb[22].mxu1 %v21702_v54  ;;  %12928 = vmatprep.subr.bf16.mxu0 %v12927_v43  ;;  %v21710_v43 = vld [vmem:[#allocation30_spill] sm:$0xff] }
 0x2b6   :  { %3634 = vmatmul.mubr.f32.gmra.mrb[46].mxu0 %v21674_v36  ;;  %2266 = vmatprep.mubr.f32.mxu1 %v21369_v21  ;;  %v21707_v36 = vld [vmem:[#allocation39_spill] sm:$0xff] }
 0x2b7   :  { %3639 = vmatprep.mubr.f32.mxu0 %v21369_v21  ;;  %12754 = vmatpush1.bf16.msra.mxu1 %v21703_v12 }
 0x2b8   :  { %12756 = vmatprep.subr.bf16.mxu1 %v21704_v53  ;;  %12930 = vmatpush1.bf16.msra.mxu0 %v12929_v15  ;;  %v21711_v15 = vld [vmem:[#allocation31_spill] sm:$0xff]  ;;  %v21717_v53 = vld [vmem:[#allocation4_spill] sm:$0xff] }
 0x2b9   :  { %2269 = vmatmul.mubr.f32.gmra.mrb[24].mxu1 %v21705_v31  ;;  %12932 = vmatprep.subr.bf16.mxu0 %v21707_v36  ;;  %v21714_v36 = vld [vmem:[#allocation33_spill] sm:$0xff]  ;;  %v21718_v12 = vand.u32 4294901760, %v21717_v53 }
 0x2ba   :  { %3641 = vmatmul.mubr.f32.gmra.mrb[48].mxu0 %v21679_v48  ;;  %2274 = vmatprep.mubr.f32.mxu1 %v21369_v21  ;;  %v21712_v48 = vld [vmem:[#allocation108_spill] sm:$0xff]  ;;  %v21725_v53 = vld [vmem:[#allocation125_spill] sm:$0xff] }
 0x2bb   :  { %3646 = vmatprep.mubr.f32.mxu0 %v21369_v21  ;;  %12758 = vmatpush1.bf16.msra.mxu1 %v21706_v29 }
 0x2bc   :  { %12760 = vmatprep.subr.bf16.mxu1 %v21708_v14  ;;  %v21713_v14 = vld [vmem:[#allocation32_spill] sm:$0xff] }
 0x2bd   :  { %2277 = vmatmul.mubr.f32.gmra.mrb[26].mxu1 %v21709_v1 }
 0x2be   :  { %3648 = vmatmul.mubr.f32.gmra.mrb[50].mxu0 %v21680_v40  ;;  %2282 = vmatprep.mubr.f32.mxu1 %v21369_v21  ;;  %v21715_v40 = vld [vmem:[#allocation3_spill] sm:$0xff] }
 0x2bf   :  { %3653 = vmatprep.mubr.f32.mxu0 %v21369_v21  ;;  %12762 = vmatpush1.bf16.msra.mxu1 %v21710_v43  ;;  %v21716_v29 = vand.u32 4294901760, %v21715_v40  ;;  %v21719_v43 = vld [vmem:[#allocation115_spill] sm:$0xff]  ;;  %v21723_v40 = vld [vmem:[#allocation116_spill] sm:$0xff] }
 0x2c0   :  { %12764 = vmatprep.subr.bf16.mxu1 %v21711_v15  ;;  %v21721_v15 = vld [vmem:[#allocation106_spill] sm:$0xff] }
 0x2c1   :  { %2285 = vmatmul.mubr.f32.gmra.mrb[28].mxu1 %v21712_v48  ;;  %v12771_v45 = vpack.c.bf16 %v21718_v12, %v21716_v29  ;;  %v21722_v12 = vld [vmem:[#allocation103_spill] sm:$0xff]  ;;  %v21726_v29 = vld [vmem:[#allocation57_spill] sm:$0xff] }
 0x2c2   :  { %3655 = vmatmul.mubr.f32.gmra.mrb[52].mxu0 %v21681_v47  ;;  %2290 = vmatprep.mubr.f32.mxu1 %v21369_v21  ;;  %v21720_v47 = vld [vmem:[#allocation34_spill] sm:$0xff] }
 0x2c3   :  { %3660 = vmatprep.mubr.f32.mxu0 %v21369_v21  ;;  %12766 = vmatpush1.bf16.msra.mxu1 %v21713_v14  ;;  %v21740_v14 = vld [vmem:[#allocation6_spill] sm:$0xff] }
 0x2c4   :  { %12768 = vmatprep.subr.bf16.mxu1 %v21714_v36  ;;  %v21741_v59 = vand.u32 4294901760, %v21740_v14 }
 0x2c5   :  { %2293 = vmatmul.mubr.f32.gmra.mrb[30].mxu1 %v21719_v43 }
 0x2c6   :  { %3662 = vmatmul.mubr.f32.gmra.mrb[54].mxu0 %v21682_v18  ;;  %2298 = vmatprep.mubr.f32.mxu1 %v21369_v21 }
 0x2c7   :  { %3667 = vmatprep.mubr.f32.mxu0 %v21369_v21  ;;  %12770 = vmatpush1.bf16.msra.mxu1 %v21720_v47  ;;  %v21738_v47 = vld [vmem:[#allocation5_spill] sm:$0xff] }
 0x2c8   :  { %12772 = vmatprep.subr.bf16.mxu1 %v12771_v45  ;;  %v21724_v45 = vld [vmem:[#allocation117_spill] sm:$0xff]  ;;  %v21739_v36 = vand.u32 4294901760, %v21738_v47  ;;  %v21749_v47 = vld [vmem:[#allocation10_spill] sm:$0xff] }
 0x2c9   :  { %2301 = vmatmul.mubr.f32.gmra.mrb[0].mxu1 %v21721_v15 }
 0x2ca   :  { %3669 = vmatmul.mubr.f32.gmra.mrb[56].mxu0 %v21683_v49  ;;  %2306 = vmatprep.mubr.f32.mxu1 %v21369_v21  ;;  %v21730_v49 = vld [vmem:[#allocation62_spill] sm:$0xff] }
 0x2cb   :  { %3674 = vmatprep.mubr.f32.mxu0 %v21369_v21 }
 0x2cd   :  { %2309 = vmatmul.mubr.f32.gmra.mrb[2].mxu1 %v21722_v12 }
 0x2ce   :  { %3676 = vmatmul.mubr.f32.gmra.mrb[58].mxu0 %v15585_v5  ;;  %2314 = vmatprep.mubr.f32.mxu1 %v21369_v21  ;;  %v21728_v5 = vld [vmem:[#allocation128_spill] sm:$0xff] }
 0x2cf   :  { %3681 = vmatprep.mubr.f32.mxu0 %v21369_v21 }
 0x2d1   :  { %2317 = vmatmul.mubr.f32.gmra.mrb[4].mxu1 %v21723_v40 }
 0x2d2   :  { %3683 = vmatmul.mubr.f32.gmra.mrb[60].mxu0 %v21685_v44  ;;  %2322 = vmatprep.mubr.f32.mxu1 %v21369_v21  ;;  %v21727_v44 = vld [vmem:[#allocation58_spill] sm:$0xff] }
 0x2d3   :  { %3688 = vmatprep.mubr.f32.mxu0 %v21369_v21 }
 0x2d5   :  { %2325 = vmatmul.mubr.f32.gmra.mrb[6].mxu1 %v21724_v45 }
 0x2d6   :  { %3690 = vmatmul.mubr.f32.gmra.mrb[62].mxu0 %v21690_v0  ;;  %2330 = vmatprep.mubr.f32.mxu1 %v21369_v21  ;;  %v21729_v0 = vld [vmem:[#allocation59_spill] sm:$0xff] }
 0x2d7   :  { %3824 = vmatprep.mubr.f32.mxu0 %v21369_v21 }
 0x2d9   :  { %2333 = vmatmul.mubr.f32.gmra.mrb[8].mxu1 %v21725_v53 }
 0x2da   :  { %3827 = vmatmul.mubr.f32.vlgmr.msra.gmra.mrb[32].mxu0 %v21693_v4  ;;  %2338 = vmatprep.mubr.f32.mxu1 %v21369_v21  ;;  %v21731_v4 = vld [vmem:[#allocation134_spill] sm:$0xff] }
 0x2db   :  { %3832 = vmatprep.mubr.f32.mxu0 %v21369_v21  ;;  %12934 = vmatpush1.bf16.msra.mxu0 %v21726_v29  ;;  %v21733_v29 = vld [vmem:[#allocation83_spill] sm:$0xff] }
 0x2dc   :  { %12936 = vmatprep.subr.bf16.mxu0 %v21727_v44  ;;  %v21732_v44 = vld [vmem:[#allocation65_spill] sm:$0xff] }
 0x2dd   :  { %2341 = vmatmul.mubr.f32.gmra.mrb[10].mxu1 %v21728_v5 }
 0x2de   :  { %3835 = vmatmul.mubr.f32.gmra.mrb[34].mxu0 %v21696_v10  ;;  %2346 = vmatprep.mubr.f32.mxu1 %v21369_v21  ;;  %v21734_v10 = vld [vmem:[#allocation140_spill] sm:$0xff] }
 0x2df   :  { %3840 = vmatprep.mubr.f32.mxu0 %v21369_v21  ;;  %12938 = vmatpush1.bf16.msra.mxu0 %v21729_v0  ;;  %v21736_v0 = vld [vmem:[#allocation12_spill] sm:$0xff] }
 0x2e0   :  { %12940 = vmatprep.subr.bf16.mxu0 %v21730_v49  ;;  %v21735_v49 = vand.u32 4294901760, %v21617_v30  ;;  %v21746_v30 = vand.u32 4294901760, %v21629_v17 }
 0x2e1   :  { %2349 = vmatmul.mubr.f32.gmra.mrb[12].mxu1 %v21731_v4 }
 0x2e2   :  { %3843 = vmatmul.mubr.f32.gmra.mrb[36].mxu0 %v21699_v27  ;;  %2354 = vmatprep.mubr.f32.mxu1 %v21369_v21  ;;  %v21737_v27 = vand.u32 4294901760, %v21736_v0 }
 0x2e3   :  { %3848 = vmatprep.mubr.f32.mxu0 %v21369_v21  ;;  %12942 = vmatpush1.bf16.msra.mxu0 %v21732_v44  ;;  %v12775_v44 = vpack.c.bf16 %v21741_v59, %v21739_v36  ;;  %v21747_v59 = vld [vmem:[#allocation7_spill] sm:$0xff] }
 0x2e4   :  { %12944 = vmatprep.subr.bf16.mxu0 %v21733_v29  ;;  %v12773_v18 = vpack.c.bf16 %v21737_v27, %v21735_v49  ;;  %v21743_v29 = vld [vmem:[#allocation85_spill] sm:$0xff]  ;;  %v21748_v36 = vand.u32 4294901760, %v21747_v59  ;;  %v21750_v49 = vand.u32 4294901760, %v21749_v47  ;;  %v21751_v27 = vld [vmem:[#allocation88_spill] sm:$0xff]  ;;  %v21760_v47 = vld [vmem:[#allocation94_spill] sm:$0xff] }
 0x2e5   :  { %2357 = vmatmul.mubr.f32.gmra.mrb[14].mxu1 %v21734_v10 }
 0x2e6   :  { %3851 = vmatmul.mubr.f32.gmra.mrb[38].mxu0 %v21702_v54  ;;  %2459 = vmatprep.mubr.f32.mxu1 %v21369_v21  ;;  %v21745_v54 = vand.u32 4294901760, %v21630_v13  ;;  %v12779_v0 = vpack.c.bf16 %v21750_v49, %v21748_v36  ;;  %v21754_v13 = vand.u32 4294901760, %v21638_v32  ;;  %v21763_v32 = vld [vmem:[#allocation21_spill] sm:$0xff] }
 0x2e7   :  { %3856 = vmatprep.mubr.f32.mxu0 %v21369_v21  ;;  %12946 = vmatpush1.bf16.msra.mxu0 %v21742_v33 }
 0x2e8   :  { %12948 = vmatprep.subr.bf16.mxu0 %v21743_v29  ;;  %v12777_v14 = vpack.c.bf16 %v21746_v30, %v21745_v54  ;;  %v21752_v29 = vld [vmem:[#allocation74_spill] sm:$0xff]  ;;  %v21758_v30 = vld [vmem:[#allocation96_spill] sm:$0xff] }
 0x2e9   :  { %2463 = vmatmul.mubr.f32.vlgmr.msra.gmra.mrb[16].mxu1 %v21744_v2  ;;  %v21759_v59 = vand.u32 4294901760, %v21758_v30 }
 0x2ea   :  { %3859 = vmatmul.mubr.f32.gmra.mrb[40].mxu0 %v21705_v31  ;;  %12774 = vmatpush1.bf16.msra.mxu1 %v12773_v18  ;;  %v21753_v31 = vand.u32 4294901760, %v21639_v63  ;;  %v21755_v18 = vld [vmem:[#allocation89_spill] sm:$0xff]  ;;  %v21762_v63 = vand.u32 4294901760, %v21647_v50  ;;  %v21772_v50 = vand.u32 4294901760, %v21652_v19  ;;  %v21782_v19 = vand.u32 4294901760, %v21658_v35  ;;  %v21787_v35 = vld [vmem:[#allocation38_spill] sm:$0xff] }
 0x2eb   :  { %2468 = vmatprep.mubr.f32.mxu1 %v21369_v21  ;;  %3864 = vmatprep.mubr.f32.mxu0 %v21369_v21 }
 0x2ec   :  { %12776 = vmatprep.subr.bf16.mxu1 %v12775_v44  ;;  %12950 = vmatpush1.bf16.msra.mxu0 %v21751_v27  ;;  %v12781_v17 = vpack.c.bf16 %v21754_v13, %v21753_v31  ;;  %v21756_v44 = vld [vmem:[#allocation95_spill] sm:$0xff]  ;;  %v21766_v31 = vld [vmem:[#allocation104_spill] sm:$0xff] }
 0x2ed   :  { %2472 = vmatmul.mubr.f32.gmra.mrb[18].mxu1 %v21752_v29  ;;  %12952 = vmatprep.subr.bf16.mxu0 %v21755_v18  ;;  %v21757_v54 = vand.u32 4294901760, %v21756_v44  ;;  %v21767_v13 = vand.u32 4294901760, %v21766_v31  ;;  %v21768_v44 = vld [vmem:[#allocation107_spill] sm:$0xff] }
 0x2ee   :  { %3867 = vmatmul.mubr.f32.gmra.mrb[42].mxu0 %v21709_v1  ;;  %2477 = vmatprep.mubr.f32.mxu1 %v21369_v21  ;;  %v21761_v1 = vld [vmem:[#allocation82_spill] sm:$0xff] }
 0x2ef   :  { %3872 = vmatprep.mubr.f32.mxu0 %v21369_v21  ;;  %12778 = vmatpush1.bf16.msra.mxu1 %v12777_v14  ;;  %v12783_v36 = vpack.c.bf16 %v21759_v59, %v21757_v54  ;;  %v21764_v14 = vand.u32 4294901760, %v21763_v32  ;;  %v21769_v54 = vand.u32 4294901760, %v21768_v44  ;;  %v21770_v59 = vld [vmem:[#allocation122_spill] sm:$0xff]  ;;  %v21775_v32 = vand.u32 4294901760, %v21669_v7 }
 0x2f0   :  { %12780 = vmatprep.subr.bf16.mxu1 %v12779_v0  ;;  %12954 = vmatpush1.bf16.msra.mxu0 %v21760_v47  ;;  %v21765_v0 = vld [vmem:[#allocation114_spill] sm:$0xff] }
 0x2f1   :  { %2481 = vmatmul.mubr.f32.gmra.mrb[20].mxu1 %v21761_v1  ;;  %v12785_v49 = vpack.c.bf16 %v21764_v14, %v21762_v63  ;;  %12956 = vmatprep.subr.bf16.mxu0 %v21765_v0  ;;  %v12787_v30 = vpack.c.bf16 %v21769_v54, %v21767_v13  ;;  %v21774_v63 = vld [vmem:[#allocation127_spill] sm:$0xff]  ;;  %v21776_v14 = vand.u32 4294901760, %v21668_v57  ;;  %v21778_v13 = vand.u32 4294901760, %v21654_v56  ;;  %v21779_v54 = vld [vmem:[#allocation132_spill] sm:$0xff] }
 0x2f2   :  { %3875 = vmatmul.mubr.f32.gmra.mrb[44].mxu0 %v21712_v48  ;;  %2486 = vmatprep.mubr.f32.mxu1 %v21369_v21  ;;  %v21771_v48 = vld [vmem:[#allocation93_spill] sm:$0xff]  ;;  %v21783_v56 = vand.u32 4294901760, %v21662_v23  ;;  %v21789_v23 = vand.u32 4294901760, %v21672_v60 }
 0x2f3   :  { %3880 = vmatprep.mubr.f32.mxu0 %v21369_v21  ;;  %12782 = vmatpush1.bf16.msra.mxu1 %v12781_v17  ;;  %v21773_v17 = vand.u32 4294901760, %v21651_v42  ;;  %v12963_v31 = vpack.c.bf16 %v21776_v14, %v21775_v32  ;;  %v21781_v42 = vand.u32 4294901760, %v21659_v61  ;;  %v21786_v61 = vand.u32 4294901760, %v21666_v11  ;;  %v21794_v14 = vld [vmem:[#allocation124_spill] sm:$0xff] }
 0x2f4   :  { %12784 = vmatprep.subr.bf16.mxu1 %v12783_v36  ;;  %12958 = vmatpush1.bf16.msra.mxu0 %v21770_v59  ;;  %v21792_v11 = vand.u32 4294901760, %v21676_v22  ;;  %v21798_v22 = vld [vmem:[#allocation113_spill] sm:$0xff] }
 0x2f5   :  { %2490 = vmatmul.mubr.f32.gmra.mrb[22].mxu1 %v21771_v48  ;;  %v12789_v36 = vpack.c.bf16 %v21773_v17, %v21772_v50  ;;  %12960 = vmatprep.subr.bf16.mxu0 %v21774_v63  ;;  %v12793_v57 = vpack.c.bf16 %v21782_v19, %v21781_v42  ;;  %v21808_v42 = vand.u32 4294901760, %v15191_v38  ;;  %v21809_v19 = vand.u32 4294901760, %v15202_v51  ;;  %v21817_v51 = vld [vmem:[#allocation68_spill] sm:$0xff] }
 0x2f6   :  { %3883 = vmatmul.mubr.f32.gmra.mrb[46].mxu0 %v21719_v43  ;;  %2495 = vmatprep.mubr.f32.mxu1 %v21369_v21  ;;  %v21777_v43 = vand.u32 4294901760, %v21655_v25  ;;  %v21784_v25 = vand.u32 4294901760, %v21661_v3  ;;  %v21790_v3 = vand.u32 4294901760, %v21671_v9  ;;  %v21795_v9 = vld [vmem:[#allocation112_spill] sm:$0xff] }
 0x2f7   :  { %3888 = vmatprep.mubr.f32.mxu0 %v21369_v21  ;;  %12786 = vmatpush1.bf16.msra.mxu1 %v12785_v49  ;;  %v21780_v49 = vld [vmem:[#allocation100_spill] sm:$0xff] }
 0x2f8   :  { %12788 = vmatprep.subr.bf16.mxu1 %v12787_v30  ;;  %v12791_v44 = vpack.c.bf16 %v21778_v13, %v21777_v43  ;;  %12962 = vmatpush1.bf16.msra.mxu0 %v21779_v54  ;;  %v12795_v7 = vpack.c.bf16 %v21784_v25, %v21783_v56  ;;  %v21785_v30 = vld [vmem:[#allocation110_spill] sm:$0xff]  ;;  %v12799_v17 = vpack.c.bf16 %v21790_v3, %v21789_v23  ;;  %v21805_v43 = vand.u32 4294901760, %v15187_v8  ;;  %v21812_v8 = vld [vmem:[#allocation61_spill] sm:$0xff] }
 0x2f9   :  { %2499 = vmatmul.mubr.f32.gmra.mrb[24].mxu1 %v21780_v49  ;;  %12964 = vmatprep.subr.bf16.mxu0 %v12963_v31  ;;  %v21811_v25 = vld [vmem:[#allocation130_spill] sm:$0xff] }
 0x2fa   :  { %3891 = vmatmul.mubr.f32.gmra.mrb[48].mxu0 %v21721_v15  ;;  %2504 = vmatprep.mubr.f32.mxu1 %v21369_v21  ;;  %v21788_v15 = vand.u32 4294901760, %v21787_v35  ;;  %v21818_v35 = vand.u32 4294901760, %v21817_v51  ;;  %v21837_v51 = vld [vmem:[#allocation143_spill] sm:$0xff] }
 0x2fb   :  { %3896 = vmatprep.mubr.f32.mxu0 %v21369_v21  ;;  %12790 = vmatpush1.bf16.msra.mxu1 %v12789_v36  ;;  %v21791_v36 = vld [vmem:[#allocation118_spill] sm:$0xff] }
 0x2fc   :  { %12792 = vmatprep.subr.bf16.mxu1 %v12791_v44  ;;  %v12797_v50 = vpack.c.bf16 %v21788_v15, %v21786_v61  ;;  %v21819_v15 = vld [vmem:[#allocation75_spill] sm:$0xff] }
 0x2fd   :  { %2508 = vmatmul.mubr.f32.gmra.mrb[26].mxu1 %v21785_v30 }
 0x2fe   :  { %3899 = vmatmul.mubr.f32.gmra.mrb[50].mxu0 %v21722_v12  ;;  %2513 = vmatprep.mubr.f32.mxu1 %v21369_v21  ;;  %v21793_v12 = vand.u32 4294901760, %v21675_v20 }
 0x2ff   :  { %3904 = vmatprep.mubr.f32.mxu0 %v21369_v21  ;;  %12794 = vmatpush1.bf16.msra.mxu1 %v12793_v57  ;;  %v12967_v57 = vpack.c.bf16 %v21809_v19, %v21808_v42  ;;  %v21829_v42 = vld [vmem:[#allocation137_spill] sm:$0xff] }
 0x300   :  { %12796 = vmatprep.subr.bf16.mxu1 %v12795_v7  ;;  %v12801_v32 = vpack.c.bf16 %v21793_v12, %v21792_v11  ;;  %v21824_v11 = vld [vmem:[#allocation131_spill] sm:$0xff]  ;;  %v21830_v19 = vand.u32 4294901760, %v21829_v42 }
 0x301   :  { %2517 = vmatmul.mubr.f32.gmra.mrb[28].mxu1 %v21791_v36  ;;  %v21825_v12 = vand.u32 4294901760, %v21824_v11  ;;  %v21845_v11 = vld [vmem:[#allocation63_spill] sm:$0xff] }
 0x302   :  { %3907 = vmatmul.mubr.f32.gmra.mrb[52].mxu0 %v21723_v40  ;;  %2522 = vmatprep.mubr.f32.mxu1 %v21369_v21 }
 0x303   :  { %3912 = vmatprep.mubr.f32.mxu0 %v21369_v21  ;;  %12798 = vmatpush1.bf16.msra.mxu1 %v12797_v50  ;;  %v16302_v60 = vpop.f32.mrb[16].mxu0  ;;  %v21820_v50 = vand.u32 4294901760, %v21819_v15 }
 0x304   :  { %12800 = vmatprep.subr.bf16.mxu1 %v12799_v17  ;;  %21796 = vst [vmem:[#allocation54_spill] sm:$0xff] %v16302_v60  ;;  %v16304_v20 = vpop.f32.mrb[17].mxu0  ;;  %v21823_v17 = vand.u32 4294901760, %v15661_v6  ;;  %v21833_v6 = vand.u32 4294901760, %v21686_v46  ;;  %v21842_v46 = vand.u32 4294901760, %v21691_v55  ;;  %v21849_v55 = vand.u32 4294901760, %v15796_v24 }
 0x305   :  { %2526 = vmatmul.mubr.f32.gmra.mrb[30].mxu1 %v21794_v14  ;;  %21797 = vst [vmem:[#allocation91_spill] sm:$0xff] %v16304_v20  ;;  %v12971_v23 = vpack.c.bf16 %v21820_v50, %v21818_v35  ;;  %v21838_v35 = vand.u32 4294901760, %v21837_v51  ;;  %v21855_v24 = vld [vmem:[#allocation71_spill] sm:$0xff]  ;;  %v21861_v51 = vld [vmem:[#allocation73_spill] sm:$0xff] }
 0x306   :  { %3915 = vmatmul.mubr.f32.gmra.mrb[54].mxu0 %v21724_v45  ;;  %2531 = vmatprep.mubr.f32.mxu1 %v21369_v21  ;;  %v21801_v45 = vld [vmem:[#allocation121_spill] sm:$0xff] }
 0x307   :  { %3920 = vmatprep.mubr.f32.mxu0 %v21369_v21  ;;  %12802 = vmatpush1.bf16.msra.mxu1 %v12801_v32  ;;  %v12973_v32 = vpack.c.bf16 %v21825_v12, %v21823_v17  ;;  %v21847_v12 = vld [vmem:[#allocation13_spill] sm:$0xff] }
 0x308   :  { %12804 = vmatprep.subr.bf16.mxu1 %v21678_v52  ;;  %v16310_v52 = vpop.f32.mrb[18].mxu0 }
 0x309   :  { %2535 = vmatmul.mubr.f32.gmra.mrb[0].mxu1 %v21795_v9  ;;  %21799 = vst [vmem:[#allocation102_spill] sm:$0xff] %v16310_v52  ;;  %v16312_v40 = vpop.f32.mrb[19].mxu0  ;;  %v21911_v52 = vld [vmem:[#allocation129_spill] sm:$0xff] }
 0x30a   :  { %3923 = vmatmul.mubr.f32.gmra.mrb[56].mxu0 %v21725_v53  ;;  %2540 = vmatprep.mubr.f32.mxu1 %v21369_v21  ;;  %21800 = vst [vmem:[#allocation53_spill] sm:$0xff] %v16312_v40 }
 0x30b   :  { %3928 = vmatprep.mubr.f32.mxu0 %v21369_v21  ;;  %v16318_v53 = vpop.f32.mrb[20].mxu0 }
 0x30c   :  { %21802 = vst [vmem:[#allocation56_spill] sm:$0xff] %v16318_v53  ;;  %v16320_v31 = vpop.f32.mrb[21].mxu0 }
 0x30d   :  { %2544 = vmatmul.mubr.f32.gmra.mrb[2].mxu1 %v21798_v22  ;;  %21803 = vst [vmem:[#allocation55_spill] sm:$0xff] %v16320_v31  ;;  %v16659_v31 = vld [vmem:[%s20487_s5 + $0x40] sm:$0xff] }
 0x30e   :  { %3931 = vmatmul.mubr.f32.gmra.mrb[58].mxu0 %v21728_v5  ;;  %2549 = vmatprep.mubr.f32.mxu1 %v21369_v21  ;;  %v21804_v5 = vld [vmem:[#allocation126_spill] sm:$0xff] }
 0x30f   :  { %3936 = vmatprep.mubr.f32.mxu0 %v21369_v21  ;;  %v16330_v44 = vpop.f32.mrb[22].mxu0 }
 0x310   :  { %21807 = vst [vmem:[#allocation9_spill] sm:$0xff] %v16330_v44  ;;  %v16336_v56 = vpop.f32.mrb[23].mxu0 }
 0x311   :  { %2553 = vmatmul.mubr.f32.gmra.mrb[4].mxu1 %v21801_v45  ;;  %21810 = vst [vmem:[#allocation15_spill] sm:$0xff] %v16336_v56 }
 0x312   :  { %3939 = vmatmul.mubr.f32.gmra.mrb[60].mxu0 %v21731_v4  ;;  %2558 = vmatprep.mubr.f32.mxu1 %v21369_v21  ;;  %v21806_v4 = vand.u32 4294901760, %v15189_v39  ;;  %v21813_v39 = vand.u32 4294901760, %v21812_v8 }
 0x313   :  { %3944 = vmatprep.mubr.f32.mxu0 %v21369_v21  ;;  %v16346_v38 = vpop.f32.mrb[24].mxu0 }
 0x314   :  { %v12965_v13 = vpack.c.bf16 %v21806_v4, %v21805_v43  ;;  %21816 = vst [vmem:[#allocation14_spill] sm:$0xff] %v16346_v38  ;;  %v16352_v3 = vpop.f32.mrb[25].mxu0  ;;  %v21827_v4 = vld [vmem:[#allocation136_spill] sm:$0xff] }
 0x315   :  { %2562 = vmatmul.mubr.f32.gmra.mrb[6].mxu1 %v21804_v5  ;;  %21821 = vst [vmem:[#allocation18_spill] sm:$0xff] %v16352_v3 }
 0x316   :  { %3947 = vmatmul.mubr.f32.gmra.mrb[62].mxu0 %v21734_v10  ;;  %2567 = vmatprep.mubr.f32.mxu1 %v21369_v21  ;;  %v21814_v10 = vld [vmem:[#allocation64_spill] sm:$0xff] }
 0x317   :  { %4049 = vmatprep.mubr.f32.mxu0 %v21369_v21  ;;  %v21815_v7 = vand.u32 4294901760, %v21814_v10 }
 0x318   :  { %v16362_v43 = vpop.f32.mrb[26].mxu0 }
 0x319   :  { %2571 = vmatmul.mubr.f32.gmra.mrb[8].mxu1 %v21811_v25  ;;  %v12969_v61 = vpack.c.bf16 %v21815_v7, %v21813_v39  ;;  %21826 = vst [vmem:[#allocation17_spill] sm:$0xff] %v16362_v43  ;;  %v16368_v8 = vpop.f32.mrb[27].mxu0  ;;  %v21834_v39 = vand.u32 4294901760, %v21687_v37  ;;  %v21900_v43 = vld [vmem:[#allocation59_spill] sm:$0xff] }
 0x31a   :  { %4053 = vmatmul.mubr.f32.vlgmr.msra.gmra.mrb[32].mxu0 %v21744_v2  ;;  %2576 = vmatprep.mubr.f32.mxu1 %v21369_v21  ;;  %v21822_v2 = vld [vmem:[#allocation135_spill] sm:$0xff]  ;;  %21831 = vst [vmem:[#allocation20_spill] sm:$0xff] %v16368_v8 }
 0x31b   :  { %4058 = vmatprep.mubr.f32.mxu0 %v21369_v21  ;;  %12966 = vmatpush1.bf16.msra.mxu0 %v12965_v13  ;;  %v21828_v13 = vand.u32 4294901760, %v21827_v4  ;;  %v12977_v10 = vpack.c.bf16 %v21834_v39, %v21833_v6  ;;  %v21850_v4 = vand.u32 4294901760, %v15804_v58  ;;  %v21857_v58 = vld [vmem:[#allocation76_spill] sm:$0xff] }
 0x31c   :  { %12968 = vmatprep.subr.bf16.mxu0 %v12967_v57  ;;  %v16378_v7 = vpop.f32.mrb[28].mxu0  ;;  %v21858_v39 = vand.u32 4294901760, %v21857_v58  ;;  %v21884_v58 = vld [vmem:[#allocation33_spill] sm:$0xff] }
 0x31d   :  { %2580 = vmatmul.mubr.f32.gmra.mrb[10].mxu1 %v21822_v2  ;;  %v12975_v57 = vpack.c.bf16 %v21830_v19, %v21828_v13  ;;  %21835 = vst [vmem:[#allocation120_spill] sm:$0xff] %v16378_v7  ;;  %v16384_v50 = vpop.f32.mrb[29].mxu0  ;;  %v21851_v13 = vld [vmem:[#allocation49_spill] sm:$0xff]  ;;  %v16633_v7 = vld [vmem:[%s20487_s5 + $0xc0] sm:$0xff] }
 0x31e   :  { %4062 = vmatmul.mubr.f32.gmra.mrb[34].mxu0 %v21752_v29  ;;  %2585 = vmatprep.mubr.f32.mxu1 %v21369_v21  ;;  %v21832_v29 = vld [vmem:[#allocation141_spill] sm:$0xff]  ;;  %21839 = vst [vmem:[#allocation24_spill] sm:$0xff] %v16384_v50  ;;  %v21852_v42 = vand.u32 4294901760, %v21851_v13  ;;  %v4877_v20 = vand.u32 4294901760, %v16633_v7 }
 0x31f   :  { %4067 = vmatprep.mubr.f32.mxu0 %v21369_v21  ;;  %12970 = vmatpush1.bf16.msra.mxu0 %v12969_v61  ;;  %v21836_v61 = vand.u32 4294901760, %v21688_v62  ;;  %v21843_v62 = vand.u32 4294901760, %v21692_v16  ;;  %v21875_v13 = vld [vmem:[#allocation81_spill] sm:$0xff] }
 0x320   :  { %12972 = vmatprep.subr.bf16.mxu0 %v12971_v23  ;;  %v12985_v19 = vpack.c.bf16 %v21852_v42, %v21850_v4  ;;  %v21874_v4 = vld [vmem:[#allocation27_spill] sm:$0xff]  ;;  %v21876_v42 = vld [vmem:[#allocation28_spill] sm:$0xff] }
 0x321   :  { %2589 = vmatmul.mubr.f32.gmra.mrb[12].mxu1 %v21832_v29  ;;  %v12979_v15 = vpack.c.bf16 %v21838_v35, %v21836_v61  ;;  %v16390_v37 = vpop.f32.mrb[30].mxu0  ;;  %v12981_v23 = vpack.c.bf16 %v21843_v62, %v21842_v46  ;;  %v21867_v62 = vld [vmem:[#allocation25_spill] sm:$0xff] }
 0x322   :  { %4071 = vmatmul.mubr.f32.gmra.mrb[36].mxu0 %v21761_v1  ;;  %2594 = vmatprep.mubr.f32.mxu1 %v21369_v21  ;;  %v21840_v1 = vld [vmem:[#allocation69_spill] sm:$0xff]  ;;  %21841 = vst [vmem:[#allocation23_spill] sm:$0xff] %v16390_v37  ;;  %v16396_v17 = vpop.f32.mrb[31].mxu0 }
 0x323   :  { %4076 = vmatprep.mubr.f32.mxu0 %v21369_v21  ;;  %12974 = vmatpush1.bf16.msra.mxu0 %v12973_v32  ;;  %21844 = vst [vmem:[#allocation45_spill] sm:$0xff] %v16396_v17  ;;  %v21848_v32 = vand.u32 4294901760, %v15791_v41  ;;  %v21854_v41 = vand.u32 4294901760, %v15814_v26  ;;  %v21862_v26 = vld [vmem:[#allocation22_spill] sm:$0xff]  ;;  %v21896_v17 = vld [vmem:[#allocation123_spill] sm:$0xff] }
 0x324   :  { %12976 = vmatprep.subr.bf16.mxu0 %v12975_v57  ;;  %v21856_v57 = vand.u32 4294901760, %v21855_v24  ;;  %v21880_v24 = vld [vmem:[#allocation30_spill] sm:$0xff] }
 0x325   :  { %2598 = vmatmul.mubr.f32.gmra.mrb[14].mxu1 %v21840_v1  ;;  %v12983_v16 = vpack.c.bf16 %v21849_v55, %v21848_v32  ;;  %v21872_v55 = vld [vmem:[#allocation70_spill] sm:$0xff] }
 0x326   :  { %4080 = vmatmul.mubr.f32.gmra.mrb[38].mxu0 %v21771_v48  ;;  %2764 = vmatprep.mubr.f32.mxu1 %v21369_v21  ;;  %v21846_v48 = vld [vmem:[#allocation11_spill] sm:$0xff]  ;;  %v12987_v6 = vpack.c.bf16 %v21856_v57, %v21854_v41  ;;  %v21879_v41 = vld [vmem:[#allocation86_spill] sm:$0xff] }
 0x327   :  { %4085 = vmatprep.mubr.f32.mxu0 %v21369_v21  ;;  %12978 = vmatpush1.bf16.msra.mxu0 %v12977_v10  ;;  %v21859_v10 = vld [vmem:[#allocation77_spill] sm:$0xff]  ;;  %v21882_v57 = vld [vmem:[#allocation98_spill] sm:$0xff] }
 0x328   :  { %12980 = vmatprep.subr.bf16.mxu0 %v12979_v15  ;;  %v21860_v61 = vand.u32 4294901760, %v21859_v10  ;;  %v21887_v10 = vld [vmem:[#allocation101_spill] sm:$0xff] }
 0x329   :  { %2766 = vmatmul.mubr.f32.vlgmr.msra.gmra.mrb[16].mxu1 %v21845_v11 }
 0x32a   :  { %4089 = vmatmul.mubr.f32.gmra.mrb[40].mxu0 %v21780_v49  ;;  %12806 = vmatpush1.bf16.msra.mxu1 %v21846_v48  ;;  %v21853_v49 = vld [vmem:[#allocation60_spill] sm:$0xff] }
 0x32b   :  { %2771 = vmatprep.mubr.f32.mxu1 %v21369_v21  ;;  %4094 = vmatprep.mubr.f32.mxu0 %v21369_v21 }
 0x32c   :  { %12808 = vmatprep.subr.bf16.mxu1 %v21847_v12  ;;  %12982 = vmatpush1.bf16.msra.mxu0 %v12981_v23  ;;  %v21868_v23 = vld [vmem:[#allocation92_spill] sm:$0xff]  ;;  %v21870_v12 = vld [vmem:[#allocation50_spill] sm:$0xff] }
 0x32d   :  { %2773 = vmatmul.mubr.f32.gmra.mrb[18].mxu1 %v21853_v49  ;;  %12984 = vmatprep.subr.bf16.mxu0 %v12983_v16  ;;  %v21869_v48 = vand.u32 4294901760, %v21868_v23  ;;  %v21871_v32 = vand.u32 4294901760, %v21870_v12  ;;  %v21873_v16 = vld [vmem:[#allocation26_spill] sm:$0xff]  ;;  %v16523_v23 = vld [vmem:[%s20487_s5 + $0x18] sm:$0xff]  ;;  %v21891_v12 = vld [vmem:[#allocation119_spill] sm:$0xff] }
 0x32e   :  { %4098 = vmatmul.mubr.f32.gmra.mrb[42].mxu0 %v21785_v30  ;;  %2778 = vmatprep.mubr.f32.mxu1 %v21369_v21  ;;  %v12989_v30 = vpack.c.bf16 %v21860_v61, %v21858_v39  ;;  %v21886_v39 = vld [vmem:[#allocation34_spill] sm:$0xff] }
 0x32f   :  { %4103 = vmatprep.mubr.f32.mxu0 %v21369_v21  ;;  %12810 = vmatpush1.bf16.msra.mxu1 %v21697_v28  ;;  %v21863_v28 = vld [vmem:[#allocation78_spill] sm:$0xff] }
 0x330   :  { %12812 = vmatprep.subr.bf16.mxu1 %v21698_v34  ;;  %12986 = vmatpush1.bf16.msra.mxu0 %v12985_v19  ;;  %v21864_v35 = vand.u32 4294901760, %v21863_v28  ;;  %v21865_v34 = vld [vmem:[#allocation90_spill] sm:$0xff]  ;;  %v21878_v19 = vld [vmem:[#allocation29_spill] sm:$0xff]  ;;  %v16505_v28 = vld [vmem:[%s20487_s5 + $0x90] sm:$0xff] }
 0x331   :  { %2780 = vmatmul.mubr.f32.gmra.mrb[20].mxu1 %v21861_v51  ;;  %12988 = vmatprep.subr.bf16.mxu0 %v12987_v6  ;;  %v21866_v15 = vand.u32 4294901760, %v21865_v34  ;;  %v21883_v6 = vld [vmem:[#allocation32_spill] sm:$0xff]  ;;  %v16495_v61 = vld [vmem:[%s20487_s5] sm:$0xff] }
 0x332   :  { %4107 = vmatmul.mubr.f32.gmra.mrb[44].mxu0 %v21791_v36  ;;  %2785 = vmatprep.mubr.f32.mxu1 %v21369_v21  ;;  %v12993_v36 = vpack.c.bf16 %v21871_v32, %v21869_v48  ;;  %v20853_v34 = vand.u32 4294901760, %v16495_v61  ;;  %v16528_v48 = vld [vmem:[%s20487_s5 + $0xa0] sm:$0xff] }
 0x333   :  { %4112 = vmatprep.mubr.f32.mxu0 %v21369_v21  ;;  %12814 = vmatpush1.bf16.msra.mxu1 %v21862_v26  ;;  %v12991_v46 = vpack.c.bf16 %v21866_v15, %v21864_v35  ;;  %v16510_v35 = vld [vmem:[%s20487_s5 + $0x98] sm:$0xff]  ;;  %v21897_v37 = vand.u32 4294901760, %v16528_v48 }
 0x334   :  { %12816 = vmatprep.subr.bf16.mxu1 %v21867_v62  ;;  %12990 = vmatpush1.bf16.msra.mxu0 %v12989_v30  ;;  %v16518_v62 = vld [vmem:[%s20487_s5 + $0x10] sm:$0xff] }
 0x335   :  { %2787 = vmatmul.mubr.f32.gmra.mrb[22].mxu1 %v21872_v55  ;;  %12992 = vmatprep.subr.bf16.mxu0 %v12991_v46  ;;  %v20854_v46 = vand.u32 4294901760, %v16505_v28 }
 0x336   :  { %4116 = vmatmul.mubr.f32.gmra.mrb[46].mxu0 %v21794_v14  ;;  %2792 = vmatprep.mubr.f32.mxu1 %v21369_v21  ;;  %v21877_v14 = vld [vmem:[#allocation39_spill] sm:$0xff] }
 0x337   :  { %4121 = vmatprep.mubr.f32.mxu0 %v21369_v21  ;;  %12818 = vmatpush1.bf16.msra.mxu1 %v21873_v16 }
 0x338   :  { %12820 = vmatprep.subr.bf16.mxu1 %v21874_v4  ;;  %12994 = vmatpush1.bf16.msra.mxu0 %v12993_v36  ;;  %v20855_v4 = vand.u32 4294901760, %v16510_v35 }
 0x339   :  { %2794 = vmatmul.mubr.f32.gmra.mrb[24].mxu1 %v21875_v13  ;;  %12996 = vmatprep.subr.bf16.mxu0 %v21877_v14  ;;  %v16549_v14 = vsub.f32 %v16495_v61, %v20853_v34  ;;  %v21895_v34 = vld [vmem:[#allocation58_spill] sm:$0xff] }
 0x33a   :  { %4125 = vmatmul.mubr.f32.gmra.mrb[48].mxu0 %v21795_v9  ;;  %2799 = vmatprep.mubr.f32.mxu1 %v21369_v21  ;;  %v21881_v9 = vld [vmem:[#allocation31_spill] sm:$0xff] }
 0x33b   :  { %4130 = vmatprep.mubr.f32.mxu0 %v21369_v21  ;;  %12822 = vmatpush1.bf16.msra.mxu1 %v21876_v42  ;;  %v16542_v42 = vld [vmem:[%s20487_s5 + $0xa8] sm:$0xff] }
 0x33c   :  { %12824 = vmatprep.subr.bf16.mxu1 %v21878_v19 }
 0x33d   :  { %2801 = vmatmul.mubr.f32.gmra.mrb[26].mxu1 %v21879_v41 }
 0x33e   :  { %4134 = vmatmul.mubr.f32.gmra.mrb[50].mxu0 %v21798_v22  ;;  %2806 = vmatprep.mubr.f32.mxu1 %v21369_v21  ;;  %v21885_v22 = vld [vmem:[#allocation105_spill] sm:$0xff] }
 0x33f   :  { %4139 = vmatprep.mubr.f32.mxu0 %v21369_v21  ;;  %12826 = vmatpush1.bf16.msra.mxu1 %v21880_v24  ;;  %v20856_v24 = vand.u32 4294901760, %v16518_v62 }
 0x340   :  { %12828 = vmatprep.subr.bf16.mxu1 %v21881_v9  ;;  %v20857_v9 = vand.u32 4294901760, %v16523_v23 }
 0x341   :  { %2808 = vmatmul.mubr.f32.gmra.mrb[28].mxu1 %v21882_v57 }
 0x342   :  { %4143 = vmatmul.mubr.f32.gmra.mrb[52].mxu0 %v21801_v45  ;;  %2813 = vmatprep.mubr.f32.mxu1 %v21369_v21  ;;  %v21888_v45 = vld [vmem:[#allocation99_spill] sm:$0xff] }
 0x343   :  { %4148 = vmatprep.mubr.f32.mxu0 %v21369_v21  ;;  %12830 = vmatpush1.bf16.msra.mxu1 %v21883_v6  ;;  %v16561_v6 = vld [vmem:[%s20487_s5 + $0x20] sm:$0xff] }
 0x344   :  { %12832 = vmatprep.subr.bf16.mxu1 %v21884_v58  ;;  %v16566_v58 = vld [vmem:[%s20487_s5 + $0x28] sm:$0xff]  ;;  %v21901_v3 = vand.u32 4294901760, %v16561_v6 }
 0x345   :  { %2815 = vmatmul.mubr.f32.gmra.mrb[30].mxu1 %v21885_v22  ;;  %v21903_v38 = vand.u32 4294901760, %v16566_v58 }
 0x346   :  { %4152 = vmatmul.mubr.f32.gmra.mrb[54].mxu0 %v21804_v5  ;;  %2820 = vmatprep.mubr.f32.mxu1 %v21369_v21  ;;  %v21889_v5 = vld [vmem:[#allocation111_spill] sm:$0xff] }
 0x347   :  { %4157 = vmatprep.mubr.f32.mxu0 %v21369_v21  ;;  %12834 = vmatpush1.bf16.msra.mxu1 %v21886_v39  ;;  %v16571_v39 = vld [vmem:[%s20487_s5 + $0xb0] sm:$0xff]  ;;  %v16649_v50 = vsub.f32 %v16566_v58, %v21903_v38 }
 0x348   :  { %v21905_v56 = vand.u32 4294901760, %v16571_v39 }
 0x349   :  { %2822 = vmatmul.mubr.f32.gmra.mrb[0].mxu1 %v21887_v10  ;;  %21904 = vst [vmem:[#allocation37_spill] sm:$0xff] %v16649_v50 }
 0x34a   :  { %4161 = vmatmul.mubr.f32.gmra.mrb[56].mxu0 %v21811_v25  ;;  %2827 = vmatprep.mubr.f32.mxu1 %v21369_v21  ;;  %v21890_v25 = vld [vmem:[#allocation109_spill] sm:$0xff]  ;;  %v16654_v44 = vsub.f32 %v16571_v39, %v21905_v56 }
 0x34b   :  { %4166 = vmatprep.mubr.f32.mxu0 %v21369_v21 }
 0x34c   :  { %21906 = vst [vmem:[#allocation43_spill] sm:$0xff] %v16654_v44 }
 0x34d   :  { %2829 = vmatmul.mubr.f32.gmra.mrb[2].mxu1 %v21888_v45 }
 0x34e   :  { %4170 = vmatmul.mubr.f32.gmra.mrb[58].mxu0 %v21822_v2  ;;  %2834 = vmatprep.mubr.f32.mxu1 %v21369_v21  ;;  %v4756_v2 = vld [vmem:[%s20487_s5 + $0x80] sm:$0xff] }
 0x34f   :  { %4175 = vmatprep.mubr.f32.mxu0 %v21369_v21  ;;  %v4853_v30 = vand.u32 4294901760, %v4756_v2 }
 0x351   :  { %2836 = vmatmul.mubr.f32.gmra.mrb[4].mxu1 %v21889_v5  ;;  %v16534_v36 = vsub.f32 %v4756_v2, %v4853_v30  ;;  %v21892_v2 = vld [vmem:[#allocation57_spill] sm:$0xff] }
 0x352   :  { %4179 = vmatmul.mubr.f32.gmra.mrb[60].mxu0 %v21832_v29  ;;  %2841 = vmatprep.mubr.f32.mxu1 %v21369_v21  ;;  %v4757_v29 = vld [vmem:[%s20487_s5 + $0x88] sm:$0xff] }
 0x353   :  { %4184 = vmatprep.mubr.f32.mxu0 %v21369_v21  ;;  %v4856_v26 = vand.u32 4294901760, %v4757_v29 }
 0x355   :  { %2843 = vmatmul.mubr.f32.gmra.mrb[6].mxu1 %v21890_v25  ;;  %v16532_v32 = vpack.c.bf16 %v4856_v26, %v4853_v30  ;;  %v16536_v16 = vsub.f32 %v4757_v29, %v4856_v26  ;;  %v16578_v29 = vsub.f32 %v16505_v28, %v20854_v46  ;;  %v16583_v30 = vsub.f32 %v16510_v35, %v20855_v4 }
 0x356   :  { %4188 = vmatmul.mubr.f32.gmra.mrb[62].mxu0 %v21840_v1  ;;  %2848 = vmatprep.mubr.f32.mxu1 %v21369_v21  ;;  %v16500_v1 = vld [vmem:[%s20487_s5 + $0x8] sm:$0xff]  ;;  %v16600_v46 = vsub.f32 %v16518_v62, %v20856_v24  ;;  %v16605_v4 = vsub.f32 %v16523_v23, %v20857_v9  ;;  %v4868_v26 = vand.u32 4294901760, %v16542_v42  ;;  %v16621_v9 = vld [vmem:[%s20487_s5 + $0x38] sm:$0xff] }
 0x357   :  { %4354 = vmatprep.mubr.f32.mxu0 %v21369_v21  ;;  %v20852_v15 = vand.u32 4294901760, %v16500_v1  ;;  %13028 = vmatprep.subr.bf16.mxu1 %v16532_v32  ;;  %21893 = vst [vmem:[#allocation44_spill] sm:$0xff] %v16578_v29  ;;  %21894 = vst [vmem:[#allocation36_spill] sm:$0xff] %v16583_v30  ;;  %v16638_v24 = vld [vmem:[%s20487_s5 + $0xc8] sm:$0xff]  ;;  %v4826_v53 = vand.u32 4294901760, %v16621_v9  ;;  %v21913_v30 = vld [vmem:[#allocation65_spill] sm:$0xff]  ;;  %v16689_v29 = vsub.f32 %v16633_v7, %v4877_v20 }
 0x358   :  { %v16626_v8 = vsub.f32 %v16542_v42, %v4868_v26  ;;  %v16644_v42 = vsub.f32 %v16561_v6, %v21901_v3  ;;  %v16664_v3 = vld [vmem:[%s20487_s5 + $0x48] sm:$0xff]  ;;  %v4880_v60 = vand.u32 4294901760, %v16638_v24  ;;  %v21920_v7 = vld [vmem:[#allocation85_spill] sm:$0xff] }
 0x359   :  { %2850 = vmatmul.mubr.f32.gmra.mrb[8].mxu1 %v21891_v12  ;;  %v16554_v19 = vsub.f32 %v16500_v1, %v20852_v15  ;;  %v16589_v15 = vld [vmem:[%s20487_s5 + $0xb8] sm:$0xff]  ;;  %21914 = vst [vmem:[#allocation41_spill] sm:$0xff] %v16689_v29 }
 0x35a   :  { %4356 = vmatmul.mubr.f32.vlgmr.msra.gmra.mrb[32].mxu0 %v21845_v11  ;;  %2855 = vmatprep.mubr.f32.mxu1 %v21369_v21  ;;  %21899 = vst [vmem:[#allocation48_spill] sm:$0xff] %v16626_v8  ;;  %21902 = vst [vmem:[#allocation47_spill] sm:$0xff] %v16644_v42 }
 0x35b   :  { %4361 = vmatprep.mubr.f32.mxu0 %v21369_v21  ;;  %12998 = vmatpush1.bf16.msra.mxu0 %v21892_v2  ;;  %v16594_v2 = vld [vmem:[%s20487_s5 + $0x30] sm:$0xff] }
 0x35c   :  { %13000 = vmatprep.subr.bf16.mxu0 %v21895_v34  ;;  %v16613_v34 = vsub.f32 %v16528_v48, %v21897_v37  ;;  %v4874_v37 = vand.u32 4294901760, %v16589_v15  ;;  %v21909_v56 = vand.u32 4294901760, %v16594_v2 }
 0x35d   :  { %2857 = vmatmul.mubr.f32.gmra.mrb[10].mxu1 %v21896_v17 }
 0x35e   :  { %4363 = vmatmul.mubr.f32.gmra.mrb[34].mxu0 %v21853_v49  ;;  %21898 = vst [vmem:[#allocation35_spill] sm:$0xff] %v16613_v34  ;;  %2862 = vmatprep.mubr.f32.mxu1 %v21369_v21  ;;  %v16668_v38 = vsub.f32 %v16589_v15, %v4874_v37  ;;  %v16674_v40 = vsub.f32 %v16594_v2, %v21909_v56  ;;  %v4832_v56 = vand.u32 4294901760, %v16664_v3 }
 0x35f   :  { %4368 = vmatprep.mubr.f32.mxu0 %v21369_v21  ;;  %13002 = vmatpush1.bf16.msra.mxu0 %v21900_v43  ;;  %v21907_v43 = vld [vmem:[#allocation62_spill] sm:$0xff]  ;;  %v16683_v15 = vsub.f32 %v16621_v9, %v4826_v53 }
 0x360   :  { %13004 = vmatprep.subr.bf16.mxu0 %v21907_v43  ;;  %21908 = vst [vmem:[#allocation42_spill] sm:$0xff] %v16668_v38  ;;  %21910 = vst [vmem:[#allocation52_spill] sm:$0xff] %v16674_v40  ;;  %v4829_v43 = vand.u32 4294901760, %v16659_v31  ;;  %v16692_v40 = vsub.f32 %v16638_v24, %v4880_v60  ;;  %v21916_v38 = vld [vmem:[#allocation83_spill] sm:$0xff]  ;;  %v16699_v9 = vsub.f32 %v16664_v3, %v4832_v56  ;;  %v21922_v24 = vand.u32 4294901760, %v16500_v1 }
 0x361   :  { %2864 = vmatmul.mubr.f32.gmra.mrb[12].mxu1 %v21911_v52  ;;  %21912 = vst [vmem:[#allocation51_spill] sm:$0xff] %v16683_v15  ;;  %v21919_v15 = vld [vmem:[#allocation133_spill] sm:$0xff]  ;;  %v21923_v3 = vand.u32 4294901760, %v16505_v28  ;;  %v21926_v1 = vand.u32 4294901760, %v16523_v23 }
 0x362   :  { %4370 = vmatmul.mubr.f32.gmra.mrb[36].mxu0 %v21861_v51  ;;  %2869 = vmatprep.mubr.f32.mxu1 %v21369_v21  ;;  %21915 = vst [vmem:[#allocation40_spill] sm:$0xff] %v16692_v40  ;;  %v16696_v44 = vsub.f32 %v16659_v31, %v4829_v43  ;;  %21918 = vst [vmem:[#allocation138_spill] sm:$0xff] %v16699_v9  ;;  %v21921_v31 = vand.u32 4294901760, %v16495_v61  ;;  %v21925_v61 = vand.u32 4294901760, %v16518_v62  ;;  %v21929_v62 = vand.u32 4294901760, %v16566_v58 }
 0x363   :  { %4375 = vmatprep.mubr.f32.mxu0 %v21369_v21  ;;  %13006 = vmatpush1.bf16.msra.mxu0 %v21913_v30  ;;  %v16771_v58 = vpack.c.bf16 %v4880_v60, %v4877_v20 }
 0x364   :  { %13008 = vmatprep.subr.bf16.mxu0 %v21916_v38  ;;  %21917 = vst [vmem:[#allocation8_spill] sm:$0xff] %v16696_v44  ;;  %v16713_v30 = vpack.c.bf16 %v21922_v24, %v21921_v31  ;;  %v16733_v28 = vpack.c.bf16 %v21926_v1, %v21925_v61  ;;  %v4755_v61 = vld [vmem:[%s20487_s5 + $0x78] sm:$0xff] }
 0x365   :  { %2871 = vmatmul.mubr.f32.gmra.mrb[14].mxu1 %v21919_v15 }
 0x366   :  { %4377 = vmatmul.mubr.f32.gmra.mrb[38].mxu0 %v21872_v55  ;;  %2973 = vmatprep.mubr.f32.mxu1 %v21369_v21 }
 0x367   :  { %4382 = vmatprep.mubr.f32.mxu0 %v21369_v21  ;;  %13010 = vmatpush1.bf16.msra.mxu0 %v21742_v33  ;;  %v21924_v33 = vand.u32 4294901760, %v16510_v35 }
 0x368   :  { %13012 = vmatprep.subr.bf16.mxu0 %v21920_v7  ;;  %v4754_v7 = vld [vmem:[%s20487_s5 + $0x70] sm:$0xff] }
 0x369   :  { %2975 = vmatmul.mubr.f32.vlgmr.msra.gmra.mrb[16].mxu1 %v21845_v11  ;;  %v16721_v38 = vpack.c.bf16 %v21924_v33, %v21923_v3 }
 0x36a   :  { %4384 = vmatmul.mubr.f32.gmra.mrb[40].mxu0 %v21875_v13  ;;  %2980 = vmatprep.mubr.f32.mxu1 %v21369_v21 }
 0x36b   :  { %4389 = vmatprep.mubr.f32.mxu0 %v21369_v21  ;;  %13014 = vmatpush1.bf16.msra.mxu0 %v21751_v27  ;;  %v21927_v27 = vand.u32 4294901760, %v16528_v48 }
 0x36c   :  { %13030 = vmatpush3.bf16.msra.mxu1 %v16713_v30  ;;  %13016 = vmatprep.subr.bf16.mxu0 %v21755_v18  ;;  %v21928_v18 = vand.u32 4294901760, %v16561_v6 }
 0x36d   :  { %13032 = vmatprep.subr.bf16.mxu1 %v16721_v38  ;;  %2982 = vmatmul.mubr.f32.gmra.mrb[18].mxu1 %v21853_v49  ;;  %v16739_v35 = vpack.c.bf16 %v4868_v26, %v21927_v27 }
 0x36e   :  { %4391 = vmatmul.mubr.f32.gmra.mrb[42].mxu0 %v21879_v41  ;;  %2987 = vmatprep.mubr.f32.mxu1 %v21369_v21  ;;  %v16751_v23 = vpack.c.bf16 %v21929_v62, %v21928_v18 }
 0x36f   :  { %4396 = vmatprep.mubr.f32.mxu0 %v21369_v21  ;;  %13018 = vmatpush1.bf16.msra.mxu0 %v21760_v47  ;;  %v21930_v47 = vand.u32 4294901760, %v16571_v39 }
 0x370   :  { %13034 = vmatpush3.bf16.msra.mxu1 %v16733_v28  ;;  %13020 = vmatprep.subr.bf16.mxu0 %v21765_v0  ;;  %v21931_v0 = vand.u32 4294901760, %v16594_v2 }
 0x371   :  { %13036 = vmatprep.subr.bf16.mxu1 %v16739_v35  ;;  %2989 = vmatmul.mubr.f32.gmra.mrb[20].mxu1 %v21861_v51  ;;  %v16757_v48 = vpack.c.bf16 %v4874_v37, %v21930_v47  ;;  %v4770_v37 = vld [vmem:[%s20487_s5 + $0xf0] sm:$0xff] }
 0x372   :  { %4398 = vmatmul.mubr.f32.gmra.mrb[44].mxu0 %v21882_v57  ;;  %2994 = vmatprep.mubr.f32.mxu1 %v21369_v21  ;;  %v16767_v6 = vpack.c.bf16 %v4826_v53, %v21931_v0  ;;  %v4750_v53 = vld [vmem:[%s20487_s5 + $0x50] sm:$0xff] }
 0x373   :  { %4403 = vmatprep.mubr.f32.mxu0 %v21369_v21  ;;  %13022 = vmatpush1.bf16.msra.mxu0 %v21770_v59  ;;  %v16779_v59 = vpack.c.bf16 %v4832_v56, %v4829_v43  ;;  %v4771_v43 = vld [vmem:[%s20487_s5 + $0xf8] sm:$0xff]  ;;  %v4895_v56 = vand.u32 4294901760, %v4770_v37 }
 0x374   :  { %13038 = vmatpush3.bf16.msra.mxu1 %v16751_v23  ;;  %13024 = vmatprep.subr.bf16.mxu0 %v21774_v63  ;;  %v4766_v63 = vld [vmem:[%s20487_s5 + $0xd0] sm:$0xff] }
 0x375   :  { %13040 = vmatprep.subr.bf16.mxu1 %v16757_v48  ;;  %2996 = vmatmul.mubr.f32.gmra.mrb[22].mxu1 %v21872_v55  ;;  %v4883_v60 = vand.u32 4294901760, %v4766_v63  ;;  %v16926_v0 = vsub.f32 %v4770_v37, %v4895_v56  ;;  %v20866_v37 = vand.u32 4294901760, %v16600_v46 }
 0x376   :  { %4405 = vmatmul.mubr.f32.gmra.mrb[46].mxu0 %v21885_v22  ;;  %3001 = vmatprep.mubr.f32.mxu1 %v21369_v21 }
 0x377   :  { %4410 = vmatprep.mubr.f32.mxu0 %v21369_v21  ;;  %13026 = vmatpush1.bf16.msra.mxu0 %v21779_v54  ;;  %v4767_v54 = vld [vmem:[%s20487_s5 + $0xd8] sm:$0xff]  ;;  %v16901_v31 = vsub.f32 %v4766_v63, %v4883_v60  ;;  %21945 = vst [vmem:[#allocation3_spill] sm:$0xff] %v16926_v0 }
 0x378   :  { %13042 = vmatpush3.bf16.msra.mxu1 %v16767_v6  ;;  %13124 = vmatprep.subr.bf16.mxu0 %v16532_v32  ;;  %v4886_v20 = vand.u32 4294901760, %v4767_v54 }
 0x379   :  { %13044 = vmatprep.subr.bf16.mxu1 %v16771_v58  ;;  %3003 = vmatmul.mubr.f32.gmra.mrb[24].mxu1 %v21875_v13  ;;  %21936 = vst [vmem:[#allocation67_spill] sm:$0xff] %v16901_v31 }
 0x37a   :  { %4412 = vmatmul.mubr.f32.gmra.mrb[48].mxu0 %v21887_v10  ;;  %3008 = vmatprep.mubr.f32.mxu1 %v21369_v21  ;;  %v16903_v24 = vsub.f32 %v4767_v54, %v4886_v20  ;;  %v4847_v54 = vand.u32 4294901760, %v4754_v7 }
 0x37b   :  { %4417 = vmatprep.mubr.f32.mxu0 %v21369_v21 }
 0x37c   :  { %13046 = vmatpush3.bf16.msra.mxu1 %v16779_v59  ;;  %21937 = vst [vmem:[#allocation66_spill] sm:$0xff] %v16903_v24 }
 0x37d   :  { %3010 = vmatmul.mubr.f32.gmra.mrb[26].mxu1 %v21879_v41 }
 0x37e   :  { %4419 = vmatmul.mubr.f32.gmra.mrb[50].mxu0 %v21888_v45  ;;  %3015 = vmatprep.mubr.f32.mxu1 %v21369_v21 }
 0x37f   :  { %4424 = vmatprep.mubr.f32.mxu0 %v21369_v21 }
 0x381   :  { %3017 = vmatmul.mubr.f32.gmra.mrb[28].mxu1 %v21882_v57 }
 0x382   :  { %4426 = vmatmul.mubr.f32.gmra.mrb[52].mxu0 %v21889_v5  ;;  %3022 = vmatprep.mubr.f32.mxu1 %v21369_v21 }
 0x383   :  { %4431 = vmatprep.mubr.f32.mxu0 %v21369_v21 }
 0x385   :  { %3024 = vmatmul.mubr.f32.gmra.mrb[30].mxu1 %v21885_v22 }
 0x386   :  { %4433 = vmatmul.mubr.f32.gmra.mrb[54].mxu0 %v21890_v25  ;;  %3029 = vmatprep.mubr.f32.mxu1 %v21369_v21 }
 0x387   :  { %4438 = vmatprep.mubr.f32.mxu0 %v21369_v21 }
 0x389   :  { %3031 = vmatmul.mubr.f32.gmra.mrb[0].mxu1 %v21887_v10 }
 0x38a   :  { %4440 = vmatmul.mubr.f32.gmra.mrb[56].mxu0 %v21891_v12  ;;  %3036 = vmatprep.mubr.f32.mxu1 %v21369_v21 }
 0x38b   :  { %4445 = vmatprep.mubr.f32.mxu0 %v21369_v21 }
 0x38d   :  { %3038 = vmatmul.mubr.f32.gmra.mrb[2].mxu1 %v21888_v45 }
 0x38e   :  { %4447 = vmatmul.mubr.f32.gmra.mrb[58].mxu0 %v21896_v17  ;;  %3043 = vmatprep.mubr.f32.mxu1 %v21369_v21 }
 0x38f   :  { %4452 = vmatprep.mubr.f32.mxu0 %v21369_v21 }
 0x391   :  { %3045 = vmatmul.mubr.f32.gmra.mrb[4].mxu1 %v21889_v5 }
 0x392   :  { %4454 = vmatmul.mubr.f32.gmra.mrb[60].mxu0 %v21911_v52  ;;  %3050 = vmatprep.mubr.f32.mxu1 %v21369_v21 }
 0x393   :  { %4459 = vmatprep.mubr.f32.mxu0 %v21369_v21 }
 0x395   :  { %3052 = vmatmul.mubr.f32.gmra.mrb[6].mxu1 %v21890_v25 }
 0x396   :  { %4461 = vmatmul.mubr.f32.gmra.mrb[62].mxu0 %v21919_v15  ;;  %3057 = vmatprep.mubr.f32.mxu1 %v21369_v21 }
 0x397   :  { %4563 = vmatprep.mubr.f32.mxu0 %v21369_v21 }
 0x399   :  { %3059 = vmatmul.mubr.f32.gmra.mrb[8].mxu1 %v21891_v12 }
 0x39a   :  { %4565 = vmatmul.mubr.f32.vlgmr.msra.gmra.mrb[32].mxu0 %v21845_v11  ;;  %3064 = vmatprep.mubr.f32.mxu1 %v21369_v21  ;;  %v4751_v11 = vld [vmem:[%s20487_s5 + $0x58] sm:$0xff] }
 0x39b   :  { %4570 = vmatprep.mubr.f32.mxu0 %v21369_v21  ;;  %13126 = vmatpush3.bf16.msra.mxu0 %v16713_v30 }
 0x39c   :  { %13128 = vmatprep.subr.bf16.mxu0 %v16721_v38 }
 0x39d   :  { %3066 = vmatmul.mubr.f32.gmra.mrb[10].mxu1 %v21896_v17 }
 0x39e   :  { %4572 = vmatmul.mubr.f32.gmra.mrb[34].mxu0 %v21853_v49  ;;  %3071 = vmatprep.mubr.f32.mxu1 %v21369_v21  ;;  %v4835_v49 = vand.u32 4294901760, %v4750_v53 }
 0x39f   :  { %4577 = vmatprep.mubr.f32.mxu0 %v21369_v21  ;;  %13130 = vmatpush3.bf16.msra.mxu0 %v16733_v28 }
 0x3a0   :  { %13132 = vmatprep.subr.bf16.mxu0 %v16739_v35  ;;  %v16905_v3 = vsub.f32 %v4750_v53, %v4835_v49 }
 0x3a1   :  { %3073 = vmatmul.mubr.f32.gmra.mrb[12].mxu1 %v21911_v52 }
 0x3a2   :  { %4579 = vmatmul.mubr.f32.gmra.mrb[36].mxu0 %v21861_v51  ;;  %3078 = vmatprep.mubr.f32.mxu1 %v21369_v21  ;;  %v4838_v51 = vand.u32 4294901760, %v4751_v11  ;;  %21938 = vst [vmem:[#allocation16_spill] sm:$0xff] %v16905_v3 }
 0x3a3   :  { %4584 = vmatprep.mubr.f32.mxu0 %v21369_v21  ;;  %13134 = vmatpush3.bf16.msra.mxu0 %v16751_v23 }
 0x3a4   :  { %13136 = vmatprep.subr.bf16.mxu0 %v16757_v48  ;;  %v16907_v33 = vsub.f32 %v4751_v11, %v4838_v51  ;;  %v20874_v11 = vand.u32 4294901760, %v16534_v36 }
 0x3a5   :  { %3080 = vmatmul.mubr.f32.gmra.mrb[14].mxu1 %v21919_v15 }
 0x3a6   :  { %4586 = vmatmul.mubr.f32.gmra.mrb[38].mxu0 %v21872_v55  ;;  %v16863_v55 = vpack.c.bf16 %v4886_v20, %v4883_v60  ;;  %21939 = vst [vmem:[#allocation19_spill] sm:$0xff] %v16907_v33  ;;  %v16931_v60 = vsub.f32 %v4754_v7, %v4847_v54 }
 0x3a7   :  { %4591 = vmatprep.mubr.f32.mxu0 %v21369_v21  ;;  %13138 = vmatpush3.bf16.msra.mxu0 %v16767_v6 }
 0x3a8   :  { %13140 = vmatprep.subr.bf16.mxu0 %v16771_v58  ;;  %21932 = vst [vmem:[#allocation139_spill] sm:$0xff] %v16863_v55  ;;  %13048 = vmatprep.subr.bf16.mxu1 %v16863_v55  ;;  %21947 = vst [vmem:[#allocation115_spill] sm:$0xff] %v16931_v60 }
 0x3aa   :  { %4593 = vmatmul.mubr.f32.gmra.mrb[40].mxu0 %v21875_v13  ;;  %v16866_v13 = vpack.c.bf16 %v4838_v51, %v4835_v49  ;;  %v20870_v49 = vand.u32 4294901760, %v16536_v16  ;;  %v20868_v51 = vand.u32 4294901760, %v16554_v19 }
 0x3ab   :  { %4598 = vmatprep.mubr.f32.mxu0 %v21369_v21  ;;  %13142 = vmatpush3.bf16.msra.mxu0 %v16779_v59 }
 0x3ac   :  { %21933 = vst [vmem:[#allocation142_spill] sm:$0xff] %v16866_v13  ;;  %13144 = vmatprep.subr.bf16.mxu0 %v16863_v55  ;;  %13050 = vmatpush3.bf16.msra.mxu1 %v16866_v13 }
 0x3ae   :  { %4600 = vmatmul.mubr.f32.gmra.mrb[42].mxu0 %v21879_v41  ;;  %v4768_v41 = vld [vmem:[%s20487_s5 + $0xe0] sm:$0xff] }
 0x3af   :  { %4605 = vmatprep.mubr.f32.mxu0 %v21369_v21  ;;  %13146 = vmatpush3.bf16.msra.mxu0 %v16866_v13 }
 0x3b2   :  { %4607 = vmatmul.mubr.f32.gmra.mrb[44].mxu0 %v21882_v57  ;;  %v4769_v57 = vld [vmem:[%s20487_s5 + $0xe8] sm:$0xff] }
 0x3b3   :  { %4612 = vmatprep.mubr.f32.mxu0 %v21369_v21 }
 0x3b6   :  { %4614 = vmatmul.mubr.f32.gmra.mrb[46].mxu0 %v21885_v22  ;;  %v4889_v22 = vand.u32 4294901760, %v4768_v41 }
 0x3b7   :  { %4619 = vmatprep.mubr.f32.mxu0 %v21369_v21 }
 0x3b8   :  { %v16914_v1 = vsub.f32 %v4768_v41, %v4889_v22  ;;  %v5257_v41 = vsub.f32 %v16534_v36, %v20874_v11 }
 0x3ba   :  { %4621 = vmatmul.mubr.f32.gmra.mrb[48].mxu0 %v21887_v10  ;;  %v4892_v10 = vand.u32 4294901760, %v4769_v57  ;;  %21940 = vst [vmem:[#allocation79_spill] sm:$0xff] %v16914_v1 }
 0x3bb   :  { %4626 = vmatprep.mubr.f32.mxu0 %v21369_v21 }
 0x3bc   :  { %v16885_v26 = vpack.c.bf16 %v4892_v10, %v4889_v22  ;;  %v16916_v27 = vsub.f32 %v4769_v57, %v4892_v10  ;;  %v5264_v57 = vsub.f32 %v16536_v16, %v20870_v49  ;;  %v5258_v22 = vand.u32 4294901760, %v5257_v41  ;;  %v21953_v49 = vld [vmem:[#allocation51_spill] sm:$0xff] }
 0x3bd   :  { %v20867_v41 = vand.u32 4294901760, %v16626_v8 }
 0x3be   :  { %4628 = vmatmul.mubr.f32.gmra.mrb[50].mxu0 %v21888_v45  ;;  %v4752_v45 = vld [vmem:[%s20487_s5 + $0x60] sm:$0xff]  ;;  %21934 = vst [vmem:[#allocation144_spill] sm:$0xff] %v16885_v26  ;;  %13052 = vmatprep.subr.bf16.mxu1 %v16885_v26  ;;  %21941 = vst [vmem:[#allocation80_spill] sm:$0xff] %v16916_v27  ;;  %v5265_v10 = vand.u32 4294901760, %v5264_v57  ;;  %v20871_v57 = vand.u32 4294901760, %v16644_v42 }
 0x3bf   :  { %4633 = vmatprep.mubr.f32.mxu0 %v21369_v21  ;;  %13148 = vmatprep.subr.bf16.mxu0 %v16885_v26 }
 0x3c2   :  { %4635 = vmatmul.mubr.f32.gmra.mrb[52].mxu0 %v21889_v5  ;;  %v4753_v5 = vld [vmem:[%s20487_s5 + $0x68] sm:$0xff] }
 0x3c3   :  { %4640 = vmatprep.mubr.f32.mxu0 %v21369_v21  ;;  %v4844_v39 = vand.u32 4294901760, %v4753_v5 }
 0x3c5   :  { %v16920_v62 = vsub.f32 %v4753_v5, %v4844_v39 }
 0x3c6   :  { %4642 = vmatmul.mubr.f32.gmra.mrb[54].mxu0 %v21890_v25  ;;  %v4841_v25 = vand.u32 4294901760, %v4752_v45 }
 0x3c7   :  { %4647 = vmatprep.mubr.f32.mxu0 %v21369_v21  ;;  %21943 = vst [vmem:[#allocation97_spill] sm:$0xff] %v16920_v62  ;;  %v20895_v26 = vand.u32 4294901760, %v16920_v62 }
 0x3c8   :  { %v16888_v2 = vpack.c.bf16 %v4844_v39, %v4841_v25  ;;  %v16918_v18 = vsub.f32 %v4752_v45, %v4841_v25  ;;  %v13059_v25 = vpack.c.bf16 %v5265_v10, %v5258_v22  ;;  %v5292_v22 = vsub.f32 %v16626_v8, %v20867_v41  ;;  %v22006_v8 = vld [vmem:[#allocation24_spill] sm:$0xff] }
 0x3c9   :  { %v5173_v10 = vsub.f32 %v16644_v42, %v20871_v57  ;;  %v20878_v57 = vand.u32 4294901760, %v21953_v49  ;;  %v21997_v42 = vld [vmem:[#allocation20_spill] sm:$0xff] }
 0x3ca   :  { %4649 = vmatmul.mubr.f32.gmra.mrb[56].mxu0 %v21891_v12  ;;  %21935 = vst [vmem:[#allocation46_spill] sm:$0xff] %v16888_v2  ;;  %v4898_v12 = vand.u32 4294901760, %v4771_v43  ;;  %13054 = vmatpush3.bf16.msra.mxu1 %v16888_v2  ;;  %21942 = vst [vmem:[#allocation87_spill] sm:$0xff] %v16918_v18 }
 0x3cb   :  { %4654 = vmatprep.mubr.f32.mxu0 %v21369_v21  ;;  %13150 = vmatpush3.bf16.msra.mxu0 %v16888_v2  ;;  %v20896_v2 = vand.u32 4294901760, %v16918_v18 }
 0x3cc   :  { %v16924_v47 = vpack.c.bf16 %v4898_v12, %v4895_v56  ;;  %v16928_v63 = vsub.f32 %v4771_v43, %v4898_v12  ;;  %v20865_v43 = vand.u32 4294901760, %v16605_v4  ;;  %v5159_v56 = vsub.f32 %v16600_v46, %v20866_v37  ;;  %v21951_v37 = vld [vmem:[#allocation42_spill] sm:$0xff] }
 0x3cd   :  { %v20876_v41 = vand.u32 4294901760, %v21951_v37 }
 0x3ce   :  { %4656 = vmatmul.mubr.f32.gmra.mrb[58].mxu0 %v21896_v17  ;;  %21944 = vst [vmem:[#allocation108_spill] sm:$0xff] %v16924_v47  ;;  %21946 = vst [vmem:[#allocation4_spill] sm:$0xff] %v16928_v63  ;;  %v4850_v17 = vand.u32 4294901760, %v4755_v61  ;;  %13056 = vmatprep.subr.bf16.mxu1 %v16924_v47  ;;  %v5166_v12 = vsub.f32 %v16605_v4, %v20865_v43  ;;  %v5160_v7 = vand.u32 4294901760, %v5159_v56  ;;  %v5174_v56 = vand.u32 4294901760, %v5173_v10 }
 0x3cf   :  { %4661 = vmatprep.mubr.f32.mxu0 %v21369_v21  ;;  %13152 = vmatprep.subr.bf16.mxu0 %v16924_v47  ;;  %v5194_v10 = vsub.f32 %v21953_v49, %v20878_v57 }
 0x3d0   :  { %v16935_v20 = vpack.c.bf16 %v4850_v17, %v4847_v54  ;;  %v16937_v53 = vsub.f32 %v4755_v61, %v4850_v17  ;;  %v5167_v61 = vand.u32 4294901760, %v5166_v12  ;;  %v20864_v17 = vand.u32 4294901760, %v16613_v34 }
 0x3d2   :  { %4663 = vmatmul.mubr.f32.gmra.mrb[60].mxu0 %v21911_v52  ;;  %21948 = vst [vmem:[#allocation106_spill] sm:$0xff] %v16935_v20  ;;  %21949 = vst [vmem:[#allocation103_spill] sm:$0xff] %v16937_v53  ;;  %13058 = vmatpush3.bf16.msra.mxu1 %v16935_v20  ;;  %v20869_v52 = vand.u32 4294901760, %v16549_v14  ;;  %v16970_v54 = vpack.c.bf16 %v5167_v61, %v5160_v7 }
 0x3d3   :  { %4668 = vmatprep.mubr.f32.mxu0 %v21369_v21  ;;  %13154 = vmatpush3.bf16.msra.mxu0 %v16935_v20  ;;  %v20888_v20 = vand.u32 4294901760, %v16905_v3 }
 0x3d4   :  { %13188 = vmatprep.subr.bf16.mxu0 %v16532_v32  ;;  %v5145_v32 = vsub.f32 %v16549_v14, %v20869_v52  ;;  %13060 = vmatprep.subr.bf16.mxu1 %v13059_v25  ;;  %v5293_v25 = vand.u32 4294901760, %v5292_v22 }
 0x3d6   :  { %4670 = vmatmul.mubr.f32.gmra.mrb[62].mxu0 %v21919_v15  ;;  %v5152_v15 = vsub.f32 %v16554_v19, %v20868_v51  ;;  %v5146_v45 = vand.u32 4294901760, %v5145_v32  ;;  %v20872_v32 = vand.u32 4294901760, %v16649_v50  ;;  %v21952_v51 = vld [vmem:[#allocation52_spill] sm:$0xff] }
 0x3d7   :  { %v20877_v52 = vand.u32 4294901760, %v21952_v51 }
 0x3d8   :  { %v5153_v5 = vand.u32 4294901760, %v5152_v15  ;;  %v5285_v15 = vsub.f32 %v16613_v34, %v20864_v17  ;;  %v21950_v17 = vld [vmem:[#allocation43_spill] sm:$0xff] }
 0x3d9   :  { %v20873_v43 = vand.u32 4294901760, %v21950_v17  ;;  %v5187_v22 = vsub.f32 %v21952_v51, %v20877_v52  ;;  %v20884_v52 = vand.u32 4294901760, %v16699_v9 }
 0x3da   :  { %v16960_v39 = vpack.c.bf16 %v5153_v5, %v5146_v45  ;;  %v5180_v45 = vsub.f32 %v16649_v50, %v20872_v32  ;;  %v5286_v5 = vand.u32 4294901760, %v5285_v15  ;;  %v5306_v15 = vsub.f32 %v21951_v37, %v20876_v41 }
 0x3db   :  { %v5299_v32 = vsub.f32 %v21950_v17, %v20873_v43  ;;  %v20881_v43 = vand.u32 4294901760, %v16692_v40  ;;  %v20883_v41 = vand.u32 4294901760, %v16696_v44 }
 0x3dc   :  { %v5181_v12 = vand.u32 4294901760, %v5180_v45  ;;  %v16988_v7 = vpack.c.bf16 %v5293_v25, %v5286_v5  ;;  %v5307_v5 = vand.u32 4294901760, %v5306_v15  ;;  %v5188_v25 = vand.u32 4294901760, %v5187_v22 }
 0x3dd   :  { %v5300_v45 = vand.u32 4294901760, %v5299_v32  ;;  %v5320_v32 = vsub.f32 %v16692_v40, %v20881_v43  ;;  %v5201_v15 = vsub.f32 %v16696_v44, %v20883_v41  ;;  %v5208_v22 = vsub.f32 %v16699_v9, %v20884_v52  ;;  %v21968_v40 = vld [vmem:[#allocation56_spill] sm:$0xff] }
 0x3de   :  { %v16990_v61 = vpack.c.bf16 %v5181_v12, %v5174_v56  ;;  %v5195_v56 = vand.u32 4294901760, %v5194_v10  ;;  %v20879_v12 = vand.u32 4294901760, %v16689_v29  ;;  %v20891_v43 = vand.u32 4294901760, %v16907_v33 }
 0x3df   :  { %v17010_v11 = vpack.c.bf16 %v5307_v5, %v5300_v45  ;;  %v5321_v45 = vand.u32 4294901760, %v5320_v32  ;;  %v20885_v5 = vand.u32 4294901760, %v16901_v31  ;;  %v20892_v32 = vand.u32 4294901760, %v16914_v1 }
 0x3e0   :  { %v17012_v21 = vpack.c.bf16 %v5195_v56, %v5188_v25  ;;  %v5313_v57 = vsub.f32 %v16689_v29, %v20879_v12  ;;  %v20886_v25 = vand.u32 4294901760, %v16903_v24  ;;  %v5202_v56 = vand.u32 4294901760, %v5201_v15 }
 0x3e1   :  { %v5209_v12 = vand.u32 4294901760, %v5208_v22  ;;  %v5327_v41 = vsub.f32 %v16901_v31, %v20885_v5  ;;  %v5215_v15 = vsub.f32 %v16905_v3, %v20888_v20  ;;  %v5222_v22 = vsub.f32 %v16907_v33, %v20891_v43 }
 0x3e2   :  { %v5314_v10 = vand.u32 4294901760, %v5313_v57  ;;  %v5334_v57 = vsub.f32 %v16903_v24, %v20886_v25  ;;  %v5341_v25 = vsub.f32 %v16914_v1, %v20892_v32 }
 0x3e3   :  { %v17041_v52 = vpack.c.bf16 %v5209_v12, %v5202_v56  ;;  %v5216_v12 = vand.u32 4294901760, %v5215_v15  ;;  %v5223_v56 = vand.u32 4294901760, %v5222_v22  ;;  %v5236_v15 = vsub.f32 %v16920_v62, %v20895_v26 }
 0x3e4   :  { %v17032_v47 = vpack.c.bf16 %v5321_v45, %v5314_v10  ;;  %v20893_v10 = vand.u32 4294901760, %v16916_v27  ;;  %v5328_v45 = vand.u32 4294901760, %v5327_v41  ;;  %v5335_v5 = vand.u32 4294901760, %v5334_v57 }
 0x3e5   :  { %21954 = vst [vmem:[#allocation116_spill] sm:$0xff] %v17041_v52  ;;  %v5342_v43 = vand.u32 4294901760, %v5341_v25  ;;  %v5229_v41 = vsub.f32 %v16918_v18, %v20896_v2  ;;  %v17063_v57 = vpack.c.bf16 %v5223_v56, %v5216_v12  ;;  %v20904_v2 = vand.u32 4294901760, %v16926_v0  ;;  %v21958_v56 = vld [vmem:[#allocation91_spill] sm:$0xff]  ;;  %v17106_v12 = vld [vmem:[%s20487_s5 + $0x180] sm:$0xff] }
 0x3e6   :  { %v5348_v20 = vsub.f32 %v16916_v27, %v20893_v10  ;;  %v17058_v13 = vpack.c.bf16 %v5335_v5, %v5328_v45  ;;  %v5237_v10 = vand.u32 4294901760, %v5236_v15  ;;  %v21957_v45 = vld [vmem:[#allocation54_spill] sm:$0xff]  ;;  %21959 = vst [vmem:[#allocation117_spill] sm:$0xff] %v17106_v12  ;;  %v17122_v5 = vld [vmem:[%s20487_s5 + $0x188] sm:$0xff]  ;;  %v21994_v27 = vld [vmem:[#allocation17_spill] sm:$0xff] }
 0x3e7   :  { %v5230_v22 = vand.u32 4294901760, %v5229_v41  ;;  %v21955_v41 = vld [vmem:[#allocation44_spill] sm:$0xff]  ;;  %21962 = vst [vmem:[#allocation125_spill] sm:$0xff] %v17122_v5 }
 0x3e8   :  { %v5349_v32 = vand.u32 4294901760, %v5348_v20  ;;  %v20899_v15 = vand.u32 4294901760, %v21955_v41 }
 0x3e9   :  { %v17070_v55 = vpack.c.bf16 %v5237_v10, %v5230_v22  ;;  %v21956_v22 = vld [vmem:[#allocation36_spill] sm:$0xff] }
 0x3ea   :  { %v17068_v52 = vpack.c.bf16 %v5349_v32, %v5342_v43  ;;  %v20909_v32 = vand.u32 4294901760, %v16931_v60  ;;  %v5271_v26 = vsub.f32 %v21955_v41, %v20899_v15 }
 0x43c   :  { %v2976_v20 = vpop.f32.mrb[16].mxu1 }
 0x43d   :  { %v13443_v25 = vadd.f32 %v2976_v20, %v21957_v45  ;;  %v2978_v10 = vpop.f32.mrb[17].mxu1  ;;  %v21960_v45 = vand.u32 4294901760, %v21956_v22 }
 0x43e   :  { %v13444_v44 = vadd.f32 %v2978_v10, %v21958_v56  ;;  %v5355_v10 = vsub.f32 %v16926_v0, %v20904_v2  ;;  %v21961_v56 = vand.u32 4294901760, %v16928_v63  ;;  %v21964_v2 = vand.u32 4294901760, %v16937_v53 }
 0x43f   :  { %13967 = vtanh.f32 %v13443_v25  ;;  %v5278_v20 = vsub.f32 %v21956_v22, %v21960_v45  ;;  %v5243_v25 = vsub.f32 %v16931_v60, %v20909_v32  ;;  %v21963_v45 = vld [vmem:[#allocation102_spill] sm:$0xff]  ;;  %v21967_v32 = vld [vmem:[#allocation53_spill] sm:$0xff] }
 0x440   :  { %v5362_v15 = vsub.f32 %v16928_v63, %v21961_v56  ;;  %13969 = vtanh.f32 %v13444_v44  ;;  %v2983_v43 = vpop.f32.mrb[18].mxu1  ;;  %v5250_v0 = vsub.f32 %v16937_v53, %v21964_v2  ;;  %v17135_v63 = vld [vmem:[%s20487_s5 + $0x100] sm:$0xff]  ;;  %v17140_v44 = vld [vmem:[%s20487_s5 + $0x108] sm:$0xff]  ;;  %v5356_v2 = vand.u32 4294901760, %v5355_v10 }
 0x441   :  { %v13445_v3 = vadd.f32 %v2983_v43, %v21963_v45  ;;  %v2985_v33 = vpop.f32.mrb[19].mxu1  ;;  %21965 = vst [vmem:[#allocation128_spill] sm:$0xff] %v17135_v63  ;;  %21966 = vst [vmem:[#allocation134_spill] sm:$0xff] %v17140_v44  ;;  %v5272_v43 = vand.u32 4294901760, %v5271_v26  ;;  %v20929_v45 = vand.u32 4294901760, %v17122_v5  ;;  %v5279_v31 = vand.u32 4294901760, %v5278_v20 }
 0x442   :  { %v13446_v60 = vadd.f32 %v2985_v33, %v21967_v32  ;;  %v5363_v53 = vand.u32 4294901760, %v5362_v15  ;;  %v5244_v24 = vand.u32 4294901760, %v5243_v25  ;;  %v20928_v9 = vand.u32 4294901760, %v17135_v63  ;;  %v21971_v32 = vld [vmem:[#allocation55_spill] sm:$0xff] }
 0x443   :  { %13971 = vtanh.f32 %v13445_v3  ;;  %v20927_v29 = vand.u32 4294901760, %v17140_v44  ;;  %v5251_v17 = vand.u32 4294901760, %v5250_v0  ;;  %v21969_v33 = vand.u32 4294901760, %v17106_v12 }
 0x444   :  { %v2990_v56 = vpop.f32.mrb[20].mxu1  ;;  %13973 = vtanh.f32 %v13446_v60  ;;  %v17158_v60 = vsub.f32 %v17122_v5, %v20929_v45  ;;  %v17162_v20 = vpack.c.bf16 %v5279_v31, %v5272_v43  ;;  %v17167_v10 = vsub.f32 %v17135_v63, %v20928_v9  ;;  %v17182_v31 = vld [vmem:[%s20487_s5 + $0x198] sm:$0xff]  ;;  %v21983_v63 = vld [vmem:[#allocation14_spill] sm:$0xff] }
 0x445   :  { %v13447_v51 = vadd.f32 %v2990_v56, %v21968_v40  ;;  %v2992_v49 = vpop.f32.mrb[21].mxu1  ;;  %v17150_v26 = vsub.f32 %v17106_v12, %v21969_v33  ;;  %21976 = vst [vmem:[#allocation72_spill] sm:$0xff] %v17182_v31  ;;  %v21977_v56 = vld [vmem:[#allocation9_spill] sm:$0xff]  ;;  %v21979_v40 = vld [vmem:[#allocation15_spill] sm:$0xff] }
 0x446   :  { %v13448_v15 = vadd.f32 %v2992_v49, %v21971_v32  ;;  %21972 = vst [vmem:[#allocation12_spill] sm:$0xff] %v17158_v60  ;;  %21973 = vst [vmem:[#allocation5_spill] sm:$0xff] %v17167_v10  ;;  %v17172_v49 = vsub.f32 %v17140_v44, %v20927_v29  ;;  %v17185_v32 = vpack.c.bf16 %v5363_v53, %v5356_v2 }
 0x447   :  { %21970 = vst [vmem:[#allocation140_spill] sm:$0xff] %v17150_v26  ;;  %13975 = vtanh.f32 %v13447_v51  ;;  %v17177_v51 = vld [vmem:[%s20487_s5 + $0x190] sm:$0xff] }
 0x448   :  { %v2997_v0 = vpop.f32.mrb[22].mxu1  ;;  %13977 = vtanh.f32 %v13448_v15  ;;  %21974 = vst [vmem:[#allocation6_spill] sm:$0xff] %v17172_v49  ;;  %21975 = vst [vmem:[#allocation84_spill] sm:$0xff] %v17177_v51  ;;  %v17187_v15 = vpack.c.bf16 %v5251_v17, %v5244_v24 }
 0x449   :  { %v13968_v25 = vpop.eup %13967  ;;  %v13449_v43 = vadd.f32 %v2997_v0, %v21977_v56  ;;  %v2999_v33 = vpop.f32.mrb[23].mxu1  ;;  %v17199_v0 = vld [vmem:[%s20487_s5 + $0x110] sm:$0xff] }
 0x44a   :  { %v13970_v9 = vpop.eup %13969  ;;  %v17190_v45 = vand.u32 4294901760, %v13968_v25  ;;  %v13450_v3 = vadd.f32 %v2999_v33, %v21979_v40  ;;  %21980 = vst [vmem:[#allocation10_spill] sm:$0xff] %v17199_v0 }
 0x44b   :  { %v17201_v53 = vand.u32 4294901760, %v13970_v9  ;;  %13979 = vtanh.f32 %v13449_v43  ;;  %v21985_v43 = vand.u32 4294901760, %v17150_v26 }
 0x44c   :  { %21978 = vst [vmem:[#allocation7_spill] sm:$0xff] %v17190_v45  ;;  %v17206_v2 = vsub.f32 %v13968_v25, %v17190_v45  ;;  %v3004_v40 = vpop.f32.mrb[24].mxu1  ;;  %13981 = vtanh.f32 %v13450_v3  ;;  %v21986_v3 = vld [vmem:[#allocation18_spill] sm:$0xff] }
 0x44d   :  { %21981 = vst [vmem:[#allocation88_spill] sm:$0xff] %v17201_v53  ;;  %v13972_v44 = vpop.eup %13971  ;;  %v13451_v29 = vadd.f32 %v3004_v40, %v21983_v63  ;;  %v3006_v5 = vpop.f32.mrb[25].mxu1  ;;  %v17212_v12 = vsub.f32 %v13970_v9, %v17201_v53  ;;  %v17217_v17 = vsub.f32 %v17150_v26, %v21985_v43  ;;  %v21988_v63 = vand.u32 4294901760, %v17158_v60 }
 0x44e   :  { %21982 = vst [vmem:[#allocation74_spill] sm:$0xff] %v17206_v2  ;;  %v13974_v24 = vpop.eup %13973  ;;  %v13452_v18 = vadd.f32 %v3006_v5, %v21986_v3  ;;  %v4908_v56 = vand.u32 4294901760, %v17206_v2  ;;  %v17222_v33 = vand.u32 4294901760, %v13972_v44  ;;  %v21990_v43 = vand.u32 4294901760, %v17177_v51 }
 0x44f   :  { %21984 = vst [vmem:[#allocation89_spill] sm:$0xff] %v17212_v12  ;;  %v17227_v40 = vsub.f32 %v17158_v60, %v21988_v63  ;;  %v4902_v9 = vand.u32 4294901760, %v17212_v12  ;;  %v17230_v62 = vand.u32 4294901760, %v13974_v24  ;;  %13983 = vtanh.f32 %v13451_v29 }
 0x450   :  { %21987 = vst [vmem:[#allocation95_spill] sm:$0xff] %v17222_v33  ;;  %v17235_v25 = vsub.f32 %v17177_v51, %v21990_v43  ;;  %v3011_v5 = vpop.f32.mrb[26].mxu1  ;;  %v4909_v3 = vsub.f32 %v17206_v2, %v4908_v56  ;;  %v17239_v26 = vsub.f32 %v13972_v44, %v17222_v33  ;;  %13985 = vtanh.f32 %v13452_v18 }
 0x451   :  { %21989 = vst [vmem:[#allocation96_spill] sm:$0xff] %v17230_v62  ;;  %v21993_v63 = vand.u32 4294901760, %v17167_v10  ;;  %v13976_v1 = vpop.eup %13975  ;;  %v13453_v29 = vadd.f32 %v3011_v5, %v21994_v27  ;;  %v3013_v37 = vpop.f32.mrb[27].mxu1  ;;  %5850 = vmatprep.mubr.f32.mxu0 %v4902_v9  ;;  %v4903_v43 = vsub.f32 %v17212_v12, %v4902_v9  ;;  %v17249_v51 = vsub.f32 %v13974_v24, %v17230_v62  ;;  %v17268_v24 = vld [vmem:[%s20487_s5 + $0x118] sm:$0xff] }
 0x452   :  { %21991 = vst [vmem:[#allocation94_spill] sm:$0xff] %v17235_v25  ;;  %21992 = vst [vmem:[#allocation82_spill] sm:$0xff] %v17239_v26  ;;  %v21996_v2 = vand.u32 4294901760, %v17172_v49  ;;  %v13978_v18 = vpop.eup %13977  ;;  %v13454_v50 = vadd.f32 %v3013_v37, %v21997_v42  ;;  %5854 = vmatmul.mubr.f32.vlgmr.msra.gmra.mrb[64].mxu0 %v4908_v56  ;;  %v21999_v27 = vand.u32 4294901760, %v17182_v31  ;;  %v4910_v37 = vand.u32 4294901760, %v4909_v3 }
 0x453   :  { %v17244_v60 = vsub.f32 %v17167_v10, %v21993_v63  ;;  %21995 = vst [vmem:[#allocation21_spill] sm:$0xff] %v17249_v51  ;;  %v4923_v63 = vand.u32 4294901760, %v17239_v26  ;;  %v17258_v10 = vand.u32 4294901760, %v13976_v1  ;;  %22001 = vst [vmem:[#allocation107_spill] sm:$0xff] %v17268_v24  ;;  %v4917_v5 = vand.u32 4294901760, %v17249_v51  ;;  %13190 = vmatpush3.bf16.msra.mxu0 %v16713_v30 }
 0x454   :  { %v17254_v44 = vsub.f32 %v17172_v49, %v21996_v2  ;;  %v17263_v9 = vsub.f32 %v17182_v31, %v21999_v27  ;;  %v4904_v2 = vand.u32 4294901760, %v4903_v43  ;;  %v17271_v49 = vand.u32 4294901760, %v13978_v18  ;;  %v3018_v42 = vpop.f32.mrb[28].mxu1  ;;  %13192 = vmatprep.subr.bf16.mxu0 %v16721_v38  ;;  %v22004_v31 = vld [vmem:[#allocation120_spill] sm:$0xff] }
 0x455   :  { %21998 = vst [vmem:[#allocation114_spill] sm:$0xff] %v17258_v10  ;;  %13987 = vtanh.f32 %v13453_v29  ;;  %v4924_v56 = vsub.f32 %v17239_v26, %v4923_v63  ;;  %v17276_v27 = vsub.f32 %v13976_v1, %v17258_v10  ;;  %v13980_v12 = vpop.eup %13979  ;;  %v13455_v43 = vadd.f32 %v3018_v42, %v22004_v31  ;;  %v3020_v34 = vpop.f32.mrb[29].mxu1  ;;  %5861 = vmatprep.mubr.f32.mxu0 %v4917_v5 }
 0x456   :  { %22000 = vst [vmem:[#allocation104_spill] sm:$0xff] %v17263_v9  ;;  %22002 = vst [vmem:[#allocation122_spill] sm:$0xff] %v17271_v49  ;;  %13989 = vtanh.f32 %v13454_v50  ;;  %4905 = vmatprep.mubr.f32.mxu1 %v4904_v2  ;;  %v4918_v29 = vsub.f32 %v17249_v51, %v4917_v5  ;;  %v17282_v30 = vsub.f32 %v13978_v18, %v17271_v49  ;;  %v13982_v26 = vpop.eup %13981  ;;  %5865 = vmatmul.mubr.f32.gmra.mrb[66].mxu0 %v4923_v63 }
 0x457   :  { %22003 = vst [vmem:[#allocation93_spill] sm:$0xff] %v17276_v27  ;;  %v13456_v1 = vadd.f32 %v3020_v34, %v22006_v8  ;;  %4911 = vmatmul.mubr.f32.vlgmr.msra.gmra.mrb[32].mxu1 %v4910_v37  ;;  %v4938_v50 = vand.u32 4294901760, %v17276_v27  ;;  %v17287_v38 = vand.u32 4294901760, %v13980_v12  ;;  %v22008_v31 = vand.u32 4294901760, %v17199_v0  ;;  %13194 = vmatpush3.bf16.msra.mxu0 %v16733_v28 }
 0x458   :  { %22005 = vst [vmem:[#allocation127_spill] sm:$0xff] %v17282_v30  ;;  %13062 = vmatpush3.bf16.msra.mxu1 %v16960_v39  ;;  %v4919_v18 = vand.u32 4294901760, %v4918_v29  ;;  %v4932_v5 = vand.u32 4294901760, %v17282_v30  ;;  %v17296_v42 = vand.u32 4294901760, %v13982_v26  ;;  %13991 = vtanh.f32 %v13455_v43  ;;  %v3025_v8 = vpop.f32.mrb[30].mxu1  ;;  %13196 = vmatprep.subr.bf16.mxu0 %v16739_v35  ;;  %v22012_v29 = vld [vmem:[#allocation23_spill] sm:$0xff] }
 0x459   :  { %22007 = vst [vmem:[#allocation132_spill] sm:$0xff] %v17287_v38  ;;  %v17292_v2 = vsub.f32 %v17199_v0, %v22008_v31  ;;  %v4925_v34 = vand.u32 4294901760, %v4924_v56  ;;  %13064 = vmatprep.subr.bf16.mxu1 %v17162_v20  ;;  %v4939_v63 = vsub.f32 %v17276_v27, %v4938_v50  ;;  %v17302_v37 = vsub.f32 %v13980_v12, %v17287_v38  ;;  %v13984_v39 = vpop.eup %13983  ;;  %v3027_v3 = vpop.f32.mrb[31].mxu1  ;;  %v22014_v27 = vld [vmem:[#allocation45_spill] sm:$0xff] }
 0x45a   :  { %22010 = vst [vmem:[#allocation110_spill] sm:$0xff] %v17296_v42  ;;  %13993 = vtanh.f32 %v13456_v1  ;;  %v13457_v31 = vadd.f32 %v3025_v8, %v22012_v29  ;;  %4920 = vmatprep.mubr.f32.mxu1 %v4919_v18  ;;  %5872 = vmatprep.mubr.f32.mxu0 %v4932_v5  ;;  %v4933_v28 = vsub.f32 %v17282_v30, %v4932_v5  ;;  %v6960_v20 = vand.u32 4294901760, %v17217_v17  ;;  %v13986_v43 = vpop.eup %13985 }
 0x45b   :  { %22009 = vst [vmem:[#allocation100_spill] sm:$0xff] %v17292_v2  ;;  %22011 = vst [vmem:[#allocation38_spill] sm:$0xff] %v17302_v37  ;;  %v17308_v56 = vsub.f32 %v13982_v26, %v17296_v42  ;;  %v13458_v12 = vadd.f32 %v3027_v3, %v22014_v27  ;;  %4926 = vmatmul.mubr.f32.gmra.mrb[34].mxu1 %v4925_v34  ;;  %5876 = vmatmul.mubr.f32.gmra.mrb[68].mxu0 %v4938_v50  ;;  %v4953_v35 = vand.u32 4294901760, %v17302_v37 }
 0x45c   :  { %v17313_v1 = vand.u32 4294901760, %v13984_v39  ;;  %v6967_v8 = vand.u32 4294901760, %v17227_v40  ;;  %v4934_v18 = vand.u32 4294901760, %v4933_v28  ;;  %13066 = vmatpush3.bf16.msra.mxu1 %v16970_v54  ;;  %v17318_v26 = vand.u32 4294901760, %v13986_v43  ;;  %13198 = vmatpush3.bf16.msra.mxu0 %v16751_v23  ;;  %v3032_v5 = vpop.f32.mrb[0].mxu1 }
 0x45d   :  { %22013 = vst [vmem:[#allocation118_spill] sm:$0xff] %v17308_v56  ;;  %v4947_v29 = vand.u32 4294901760, %v17308_v56  ;;  %13995 = vtanh.f32 %v13457_v31  ;;  %v4940_v27 = vand.u32 4294901760, %v4939_v63  ;;  %v4954_v3 = vsub.f32 %v17302_v37, %v4953_v35  ;;  %13068 = vmatprep.subr.bf16.mxu1 %v16988_v7  ;;  %13200 = vmatprep.subr.bf16.mxu0 %v16757_v48  ;;  %v3034_v34 = vpop.f32.mrb[1].mxu1 }
 0x45e   :  { %22015 = vst [vmem:[#allocation124_spill] sm:$0xff] %v17313_v1  ;;  %22016 = vst [vmem:[#allocation112_spill] sm:$0xff] %v17318_v26  ;;  %v17323_v50 = vsub.f32 %v13984_v39, %v17313_v1  ;;  %13997 = vtanh.f32 %v13458_v12  ;;  %4935 = vmatprep.mubr.f32.mxu1 %v4934_v18  ;;  %v17329_v23 = vsub.f32 %v13986_v43, %v17318_v26  ;;  %v22020_v48 = vand.u32 4294901760, %v17268_v24 }
 0x45f   :  { %v13988_v40 = vpop.eup %13987  ;;  %5883 = vmatprep.mubr.f32.mxu0 %v4947_v29  ;;  %v4948_v54 = vsub.f32 %v17308_v56, %v4947_v29  ;;  %13999 = vtanh.f32 %v3032_v5  ;;  %4941 = vmatmul.mubr.f32.gmra.mrb[36].mxu1 %v4940_v27  ;;  %v4955_v5 = vand.u32 4294901760, %v4954_v3  ;;  %v22070_v0 = vpack.c.bf16 %v16536_v16, %v16534_v36 }
 0x460   :  { %22017 = vst [vmem:[#allocation113_spill] sm:$0xff] %v17323_v50  ;;  %22018 = vst [vmem:[#allocation121_spill] sm:$0xff] %v17329_v23  ;;  %v13990_v31 = vpop.eup %13989  ;;  %5887 = vmatmul.mubr.f32.gmra.mrb[70].mxu0 %v4953_v35  ;;  %v4968_v7 = vand.u32 4294901760, %v17323_v50  ;;  %v17333_v39 = vand.u32 4294901760, %v13988_v40  ;;  %14001 = vtanh.f32 %v3034_v34  ;;  %v17338_v28 = vsub.f32 %v17268_v24, %v22020_v48  ;;  %13070 = vmatpush3.bf16.msra.mxu1 %v16990_v61  ;;  %v3039_v29 = vpop.f32.mrb[2].mxu1 }
 0x461   :  { %v4949_v12 = vand.u32 4294901760, %v4948_v54  ;;  %v4962_v43 = vand.u32 4294901760, %v17329_v23  ;;  %v17341_v18 = vand.u32 4294901760, %v13990_v31  ;;  %13202 = vmatpush3.bf16.msra.mxu0 %v16767_v6  ;;  %v6848_v35 = vand.u32 4294901760, %v17244_v60  ;;  %13072 = vmatprep.subr.bf16.mxu1 %v17010_v11  ;;  %v3041_v61 = vpop.f32.mrb[3].mxu1 }
 0x462   :  { %22019 = vst [vmem:[#allocation126_spill] sm:$0xff] %v17333_v39  ;;  %22021 = vst [vmem:[#allocation130_spill] sm:$0xff] %v17338_v28  ;;  %v4969_v27 = vsub.f32 %v17323_v50, %v4968_v7  ;;  %v17348_v34 = vsub.f32 %v13988_v40, %v17333_v39  ;;  %13204 = vmatprep.subr.bf16.mxu0 %v16771_v58  ;;  %v6855_v54 = vand.u32 4294901760, %v17254_v44  ;;  %v13992_v48 = vpop.eup %13991  ;;  %14003 = vtanh.f32 %v3039_v29 }
 0x463   :  { %22022 = vst [vmem:[#allocation61_spill] sm:$0xff] %v17341_v18  ;;  %4950 = vmatprep.mubr.f32.mxu1 %v4949_v12  ;;  %5894 = vmatprep.mubr.f32.mxu0 %v4962_v43  ;;  %v4963_v6 = vsub.f32 %v17329_v23, %v4962_v43  ;;  %v17355_v60 = vsub.f32 %v13990_v31, %v17341_v18  ;;  %14005 = vtanh.f32 %v3041_v61  ;;  %v17359_v11 = vand.u32 4294901760, %v13992_v48 }
 0x464   :  { %22023 = vst [vmem:[#allocation64_spill] sm:$0xff] %v17348_v34  ;;  %v13994_v40 = vpop.eup %13993  ;;  %4956 = vmatmul.mubr.f32.gmra.mrb[38].mxu1 %v4955_v5  ;;  %5898 = vmatmul.mubr.f32.gmra.mrb[72].mxu0 %v4968_v7  ;;  %v4983_v58 = vand.u32 4294901760, %v17348_v34  ;;  %v17369_v31 = vpack.c.bf16 %v6967_v8, %v6960_v20  ;;  %v17374_v7 = vld [vmem:[%s20487_s5 + $0x1a0] sm:$0xff]  ;;  %v3046_v43 = vpop.f32.mrb[4].mxu1  ;;  %v4970_v5 = vand.u32 4294901760, %v4969_v27 }
 0x465   :  { %22024 = vst [vmem:[#allocation68_spill] sm:$0xff] %v17355_v60  ;;  %22025 = vst [vmem:[#allocation75_spill] sm:$0xff] %v17359_v11  ;;  %v4964_v29 = vand.u32 4294901760, %v4963_v6  ;;  %v4977_v12 = vand.u32 4294901760, %v17355_v60  ;;  %v17363_v63 = vand.u32 4294901760, %v13994_v40  ;;  %13074 = vmatpush3.bf16.msra.mxu1 %v17012_v21  ;;  %13206 = vmatpush3.bf16.msra.mxu0 %v16779_v59  ;;  %v17378_v6 = vsub.f32 %v13992_v48, %v17359_v11  ;;  %v22029_v21 = vld [vmem:[#allocation139_spill] sm:$0xff] }
 0x466   :  { %22027 = vst [vmem:[#allocation131_spill] sm:$0xff] %v17374_v7  ;;  %v4984_v61 = vsub.f32 %v17348_v34, %v4983_v58  ;;  %13076 = vmatprep.subr.bf16.mxu1 %v17032_v47  ;;  %13208 = vmatprep.subr.bf16.mxu0 %v22029_v21  ;;  %v22030_v59 = vand.u32 4294901760, %v17235_v25  ;;  %14007 = vtanh.f32 %v3046_v43  ;;  %v3048_v8 = vpop.f32.mrb[5].mxu1  ;;  %v22035_v34 = vld [vmem:[#allocation142_spill] sm:$0xff]  ;;  %v17401_v48 = vpack.c.bf16 %v6855_v54, %v6848_v35 }
 0x467   :  { %22026 = vst [vmem:[#allocation135_spill] sm:$0xff] %v17363_v63  ;;  %22028 = vst [vmem:[#allocation136_spill] sm:$0xff] %v17378_v6  ;;  %v13996_v20 = vpop.eup %13995  ;;  %4965 = vmatprep.mubr.f32.mxu1 %v4964_v29  ;;  %5905 = vmatprep.mubr.f32.mxu0 %v4977_v12  ;;  %v4978_v27 = vsub.f32 %v17355_v60, %v4977_v12  ;;  %v17389_v44 = vsub.f32 %v13994_v40, %v17363_v63  ;;  %14009 = vtanh.f32 %v3048_v8  ;;  %v22034_v40 = vld [vmem:[#allocation116_spill] sm:$0xff] }
 0x468   :  { %v17385_v17 = vsub.f32 %v17235_v25, %v22030_v59  ;;  %v13998_v47 = vpop.eup %13997  ;;  %4971 = vmatmul.mubr.f32.gmra.mrb[40].mxu1 %v4970_v5  ;;  %5909 = vmatmul.mubr.f32.gmra.mrb[74].mxu0 %v4983_v58  ;;  %v4998_v21 = vand.u32 4294901760, %v17378_v6  ;;  %v17393_v59 = vand.u32 4294901760, %v13996_v20  ;;  %v3053_v58 = vpop.f32.mrb[6].mxu1  ;;  %v4985_v8 = vand.u32 4294901760, %v4984_v61 }
 0x469   :  { %22031 = vst [vmem:[#allocation137_spill] sm:$0xff] %v17389_v44  ;;  %v14000_v3 = vpop.eup %13999  ;;  %v4979_v29 = vand.u32 4294901760, %v4978_v27  ;;  %v4992_v25 = vand.u32 4294901760, %v17389_v44  ;;  %v17397_v12 = vand.u32 4294901760, %v13998_v47  ;;  %13078 = vmatpush3.bf16.msra.mxu1 %v22034_v40  ;;  %13210 = vmatpush3.bf16.msra.mxu0 %v22035_v34  ;;  %v22038_v27 = vld [vmem:[#allocation144_spill] sm:$0xff]  ;;  %14011 = vtanh.f32 %v3053_v58  ;;  %v3055_v40 = vpop.f32.mrb[7].mxu1 }
 0x46a   :  { %22032 = vst [vmem:[#allocation141_spill] sm:$0xff] %v17393_v59  ;;  %v14002_v5 = vpop.eup %14001  ;;  %v4999_v60 = vsub.f32 %v17378_v6, %v4998_v21  ;;  %v17405_v50 = vsub.f32 %v13996_v20, %v17393_v59  ;;  %v17407_v43 = vand.u32 4294901760, %v14000_v3  ;;  %13080 = vmatprep.subr.bf16.mxu1 %v17058_v13  ;;  %13212 = vmatprep.subr.bf16.mxu0 %v22038_v27  ;;  %14013 = vtanh.f32 %v3055_v40  ;;  %v17440_v40 = vld [vmem:[%s20487_s5 + $0x1a8] sm:$0xff] }
 0x46b   :  { %22033 = vst [vmem:[#allocation143_spill] sm:$0xff] %v17397_v12  ;;  %4980 = vmatprep.mubr.f32.mxu1 %v4979_v29  ;;  %5916 = vmatprep.mubr.f32.mxu0 %v4992_v25  ;;  %v4993_v35 = vsub.f32 %v17389_v44, %v4992_v25  ;;  %v17413_v34 = vsub.f32 %v13998_v47, %v17397_v12  ;;  %v17415_v54 = vand.u32 4294901760, %v14002_v5  ;;  %v22042_v20 = vand.u32 4294901760, %v17263_v9 }
 0x46c   :  { %22036 = vst [vmem:[#allocation69_spill] sm:$0xff] %v17405_v50  ;;  %22037 = vst [vmem:[#allocation63_spill] sm:$0xff] %v17407_v43  ;;  %4986 = vmatmul.mubr.f32.gmra.mrb[42].mxu1 %v4985_v8  ;;  %5920 = vmatmul.mubr.f32.gmra.mrb[76].mxu0 %v4998_v21  ;;  %v5013_v61 = vand.u32 4294901760, %v17405_v50  ;;  %v17419_v13 = vsub.f32 %v14000_v3, %v17407_v43  ;;  %v14004_v58 = vpop.eup %14003  ;;  %v22044_v21 = vld [vmem:[#allocation46_spill] sm:$0xff]  ;;  %v22045_v8 = vand.u32 4294901760, %v17292_v2  ;;  %v5000_v6 = vand.u32 4294901760, %v4999_v60 }
 0x46d   :  { %22039 = vst [vmem:[#allocation11_spill] sm:$0xff] %v17413_v34  ;;  %22040 = vst [vmem:[#allocation13_spill] sm:$0xff] %v17415_v54  ;;  %v17424_v29 = vsub.f32 %v17263_v9, %v22042_v20  ;;  %v4994_v25 = vand.u32 4294901760, %v4993_v35  ;;  %v5007_v47 = vand.u32 4294901760, %v17413_v34  ;;  %v17428_v27 = vsub.f32 %v14002_v5, %v17415_v54  ;;  %13082 = vmatpush3.bf16.msra.mxu1 %v17063_v57  ;;  %v14006_v35 = vpop.eup %14005  ;;  %v3060_v9 = vpop.f32.mrb[8].mxu1 }
 0x46e   :  { %22041 = vst [vmem:[#allocation49_spill] sm:$0xff] %v17419_v13  ;;  %13214 = vmatpush3.bf16.msra.mxu0 %v22044_v21  ;;  %v17435_v3 = vsub.f32 %v17292_v2, %v22045_v8  ;;  %22046 = vst [vmem:[#allocation71_spill] sm:$0xff] %v17440_v40  ;;  %v17442_v20 = vand.u32 4294901760, %v14004_v58  ;;  %v17444_v5 = vpop.f32.mrb[32].mxu0  ;;  %v5014_v57 = vsub.f32 %v17405_v50, %v5013_v61  ;;  %v5028_v21 = vand.u32 4294901760, %v17419_v13  ;;  %v22049_v8 = vld [vmem:[#allocation108_spill] sm:$0xff] }
 0x46f   :  { %22043 = vst [vmem:[#allocation60_spill] sm:$0xff] %v17428_v27  ;;  %22048 = vst [vmem:[#allocation77_spill] sm:$0xff] %v17444_v5  ;;  %13084 = vmatprep.subr.bf16.mxu1 %v17068_v52  ;;  %13216 = vmatprep.subr.bf16.mxu0 %v22049_v8  ;;  %v17450_v2 = vand.u32 4294901760, %v14006_v35  ;;  %14015 = vtanh.f32 %v3060_v9  ;;  %v3062_v44 = vpop.f32.mrb[9].mxu1  ;;  %v17452_v23 = vpop.f32.mrb[33].mxu0  ;;  %v5022_v37 = vand.u32 4294901760, %v17428_v27  ;;  %v5008_v60 = vsub.f32 %v17413_v34, %v5007_v47 }
 0x470   :  { %22047 = vst [vmem:[#allocation76_spill] sm:$0xff] %v17442_v20  ;;  %22051 = vst [vmem:[#allocation22_spill] sm:$0xff] %v17452_v23  ;;  %4995 = vmatprep.mubr.f32.mxu1 %v4994_v25  ;;  %5927 = vmatprep.mubr.f32.mxu0 %v5007_v47  ;;  %v17457_v50 = vsub.f32 %v14004_v58, %v17442_v20  ;;  %v22053_v8 = vand.u32 4294901760, %v17338_v28  ;;  %v14008_v25 = vpop.eup %14007  ;;  %14017 = vtanh.f32 %v3062_v44  ;;  %v3067_v52 = vpop.f32.mrb[10].mxu1 }
 0x471   :  { %22050 = vst [vmem:[#allocation73_spill] sm:$0xff] %v17450_v2  ;;  %5001 = vmatmul.mubr.f32.gmra.mrb[44].mxu1 %v5000_v6  ;;  %5931 = vmatmul.mubr.f32.gmra.mrb[78].mxu0 %v5013_v61  ;;  %v5009_v30 = vand.u32 4294901760, %v5008_v60  ;;  %v5023_v47 = vsub.f32 %v17428_v27, %v5022_v37  ;;  %v17468_v6 = vsub.f32 %v14006_v35, %v17450_v2  ;;  %v14010_v61 = vpop.eup %14009  ;;  %v17471_v58 = vand.u32 4294901760, %v14008_v25  ;;  %v17473_v34 = vpop.f32.mrb[34].mxu0  ;;  %v22057_v60 = vld [vmem:[#allocation106_spill] sm:$0xff] }
 0x472   :  { %22052 = vst [vmem:[#allocation78_spill] sm:$0xff] %v17457_v50  ;;  %v17463_v9 = vsub.f32 %v17338_v28, %v22053_v8  ;;  %5938 = vmatprep.mubr.f32.mxu0 %v5022_v37  ;;  %13086 = vmatpush3.bf16.msra.mxu1 %v17070_v55  ;;  %22056 = vst [vmem:[#allocation92_spill] sm:$0xff] %v17473_v34  ;;  %v5015_v8 = vand.u32 4294901760, %v5014_v57  ;;  %v5029_v56 = vsub.f32 %v17419_v13, %v5028_v21  ;;  %v17482_v37 = vld [vmem:[%s20487_s5 + $0x120] sm:$0xff]  ;;  %v3069_v35 = vpop.f32.mrb[11].mxu1  ;;  %v17486_v28 = vpop.f32.mrb[35].mxu0 }
 0x473   :  { %22054 = vst [vmem:[#allocation90_spill] sm:$0xff] %v17468_v6  ;;  %22055 = vst [vmem:[#allocation25_spill] sm:$0xff] %v17471_v58  ;;  %v5043_v44 = vand.u32 4294901760, %v17457_v50  ;;  %13088 = vmatprep.subr.bf16.mxu1 %v17185_v32  ;;  %13218 = vmatpush3.bf16.msra.mxu0 %v22057_v60  ;;  %v17484_v55 = vand.u32 4294901760, %v14010_v61  ;;  %14019 = vtanh.f32 %v3067_v52  ;;  %v5024_v57 = vand.u32 4294901760, %v5023_v47 }
 0x474   :  { %22058 = vst [vmem:[#allocation50_spill] sm:$0xff] %v17482_v37  ;;  %22060 = vst [vmem:[#allocation26_spill] sm:$0xff] %v17486_v28  ;;  %5010 = vmatprep.mubr.f32.mxu1 %v5009_v30  ;;  %v5037_v13 = vand.u32 4294901760, %v17468_v6  ;;  %13252 = vmatprep.subr.bf16.mxu0 %v17369_v31  ;;  %v17491_v32 = vsub.f32 %v14008_v25, %v17471_v58  ;;  %v6981_v60 = vand.u32 4294901760, %v17424_v29  ;;  %v22062_v52 = vand.u32 4294901760, %v17374_v7  ;;  %v14012_v30 = vpop.eup %14011  ;;  %v17507_v29 = vld [vmem:[%s20487_s5 + $0x128] sm:$0xff] }
 0x475   :  { %22059 = vst [vmem:[#allocation70_spill] sm:$0xff] %v17484_v55  ;;  %5016 = vmatmul.mubr.f32.gmra.mrb[46].mxu1 %v5015_v8  ;;  %5942 = vmatmul.mubr.f32.gmra.mrb[80].mxu0 %v5028_v21  ;;  %14021 = vtanh.f32 %v3069_v35  ;;  %v17502_v21 = vsub.f32 %v14010_v61, %v17484_v55  ;;  %22065 = vst [vmem:[#allocation39_spill] sm:$0xff] %v17507_v29  ;;  %v14014_v47 = vpop.eup %14013  ;;  %v17510_v8 = vand.u32 4294901760, %v14012_v30  ;;  %v17512_v27 = vpop.f32.mrb[36].mxu0  ;;  %v5030_v35 = vand.u32 4294901760, %v5029_v56 }
 0x476   :  { %22061 = vst [vmem:[#allocation27_spill] sm:$0xff] %v17491_v32  ;;  %v17498_v51 = vsub.f32 %v17374_v7, %v22062_v52  ;;  %5025 = vmatprep.mubr.f32.mxu1 %v5024_v57  ;;  %5949 = vmatprep.mubr.f32.mxu0 %v5037_v13  ;;  %v5038_v31 = vsub.f32 %v17468_v6, %v5037_v13  ;;  %v3074_v52 = vpop.f32.mrb[12].mxu1  ;;  %22067 = vst [vmem:[#allocation86_spill] sm:$0xff] %v17512_v27  ;;  %v5058_v13 = vand.u32 4294901760, %v17491_v32  ;;  %v17519_v7 = vpop.f32.mrb[37].mxu0 }
 0x477   :  { %22064 = vst [vmem:[#allocation28_spill] sm:$0xff] %v17502_v21  ;;  %22066 = vst [vmem:[#allocation29_spill] sm:$0xff] %v17510_v8  ;;  %v5044_v57 = vsub.f32 %v17457_v50, %v5043_v44  ;;  %13090 = vmatpush3.bf16.msra.mxu1 %v17187_v15  ;;  %v17517_v61 = vand.u32 4294901760, %v14014_v47  ;;  %14023 = vtanh.f32 %v3074_v52  ;;  %v3076_v6 = vpop.f32.mrb[13].mxu1  ;;  %v5052_v24 = vand.u32 4294901760, %v17502_v21 }
 0x478   :  { %22063 = vst [vmem:[#allocation81_spill] sm:$0xff] %v17498_v51  ;;  %22069 = vst [vmem:[#allocation31_spill] sm:$0xff] %v17519_v7  ;;  %v5039_v25 = vand.u32 4294901760, %v5038_v31  ;;  %13092 = vmatprep.subr.bf16.mxu1 %v22070_v0  ;;  %v17526_v56 = vsub.f32 %v14012_v30, %v17510_v8  ;;  %14025 = vtanh.f32 %v3076_v6  ;;  %v22073_v0 = vand.u32 4294901760, %v17440_v40 }
 0x479   :  { %22068 = vst [vmem:[#allocation30_spill] sm:$0xff] %v17517_v61  ;;  %5031 = vmatmul.mubr.f32.gmra.mrb[48].mxu1 %v5030_v35  ;;  %5953 = vmatmul.mubr.f32.gmra.mrb[82].mxu0 %v5043_v44  ;;  %v14016_v27 = vpop.eup %14015  ;;  %v5053_v31 = vsub.f32 %v17502_v21, %v5052_v24  ;;  %v17533_v7 = vsub.f32 %v14014_v47, %v17517_v61  ;;  %v3081_v35 = vpop.f32.mrb[14].mxu1  ;;  %v5045_v50 = vand.u32 4294901760, %v5044_v57  ;;  %v22082_v28 = vand.u32 4294901760, %v17482_v37 }
 0x47a   :  { %22071 = vst [vmem:[#allocation98_spill] sm:$0xff] %v17526_v56  ;;  %5040 = vmatprep.mubr.f32.mxu1 %v5039_v25  ;;  %5960 = vmatprep.mubr.f32.mxu0 %v5052_v24  ;;  %v17538_v44 = vsub.f32 %v17440_v40, %v22073_v0  ;;  %v17540_v30 = vand.u32 4294901760, %v14016_v27  ;;  %v17542_v15 = vpop.f32.mrb[38].mxu0  ;;  %v5059_v6 = vsub.f32 %v17491_v32, %v5058_v13  ;;  %v5073_v25 = vand.u32 4294901760, %v17526_v56  ;;  %v17549_v24 = vld [vmem:[%s20487_s5 + $0x1b0] sm:$0xff]  ;;  %v14018_v47 = vpop.eup %14017 }
 0x47b   :  { %22072 = vst [vmem:[#allocation32_spill] sm:$0xff] %v17533_v7  ;;  %22076 = vst [vmem:[#allocation34_spill] sm:$0xff] %v17542_v15  ;;  %14027 = vtanh.f32 %v3081_v35  ;;  %v3083_v52 = vpop.f32.mrb[15].mxu1  ;;  %v17551_v0 = vpop.f32.mrb[39].mxu0  ;;  %v5054_v21 = vand.u32 4294901760, %v5053_v31  ;;  %v5067_v40 = vand.u32 4294901760, %v17533_v7  ;;  %v17566_v35 = vsub.f32 %v17482_v37, %v22082_v28 }
 0x47c   :  { %22074 = vst [vmem:[#allocation33_spill] sm:$0xff] %v17538_v44  ;;  %22075 = vst [vmem:[#allocation105_spill] sm:$0xff] %v17540_v30  ;;  %v22079_v15 = vand.u32 4294901760, %v17385_v17  ;;  %v17558_v32 = vand.u32 4294901760, %v14018_v47  ;;  %v17561_v34 = vsub.f32 %v14016_v27, %v17540_v30  ;;  %v22084_v31 = vand.u32 4294901760, %v17507_v29  ;;  %v17576_v17 = vld [vmem:[%s20487_s5 + $0x1b8] sm:$0xff] }
 0x47d   :  { %22077 = vst [vmem:[#allocation101_spill] sm:$0xff] %v17549_v24  ;;  %22078 = vst [vmem:[#allocation99_spill] sm:$0xff] %v17551_v0  ;;  %5046 = vmatmul.mubr.f32.gmra.mrb[50].mxu1 %v5045_v50  ;;  %5964 = vmatmul.mubr.f32.gmra.mrb[84].mxu0 %v5058_v13  ;;  %v14020_v50 = vpop.eup %14019  ;;  %14029 = vtanh.f32 %v3083_v52  ;;  %v5068_v27 = vsub.f32 %v17533_v7, %v5067_v40  ;;  %v22090_v37 = vand.u32 4294901760, %v17498_v51  ;;  %v17613_v7 = vld [vmem:[%s20487_s5 + $0x138] sm:$0xff] }
 0x47e   :  { %v17556_v57 = vpack.c.bf16 %v6981_v60, %v22079_v15  ;;  %22080 = vst [vmem:[#allocation111_spill] sm:$0xff] %v17558_v32  ;;  %22081 = vst [vmem:[#allocation109_spill] sm:$0xff] %v17561_v34  ;;  %v17571_v0 = vsub.f32 %v17507_v29, %v22084_v31  ;;  %5055 = vmatprep.mubr.f32.mxu1 %v5054_v21  ;;  %5971 = vmatprep.mubr.f32.mxu0 %v5067_v40  ;;  %v17581_v13 = vand.u32 4294901760, %v14020_v50  ;;  %v17583_v15 = vpop.f32.mrb[40].mxu0 }
 0x47f   :  { %22083 = vst [vmem:[#allocation119_spill] sm:$0xff] %v17566_v35  ;;  %22086 = vst [vmem:[#allocation58_spill] sm:$0xff] %v17576_v17  ;;  %v5074_v60 = vsub.f32 %v17526_v56, %v5073_v25  ;;  %v5060_v31 = vand.u32 4294901760, %v5059_v6  ;;  %v17586_v29 = vsub.f32 %v14018_v47, %v17558_v32  ;;  %v17591_v52 = vsub.f32 %v17498_v51, %v22090_v37  ;;  %v14022_v21 = vpop.eup %14021  ;;  %v17593_v5 = vpop.f32.mrb[41].mxu0 }
 0x480   :  { %22085 = vst [vmem:[#allocation57_spill] sm:$0xff] %v17571_v0  ;;  %22087 = vst [vmem:[#allocation123_spill] sm:$0xff] %v17581_v13  ;;  %v5069_v40 = vand.u32 4294901760, %v5068_v27  ;;  %v5088_v56 = vand.u32 4294901760, %v17561_v34  ;;  %v17602_v47 = vsub.f32 %v14020_v50, %v17581_v13  ;;  %v17608_v27 = vld [vmem:[%s20487_s5 + $0x130] sm:$0xff]  ;;  %v22096_v51 = vand.u32 4294901760, %v17549_v24 }
 0x481   :  { %22088 = vst [vmem:[#allocation59_spill] sm:$0xff] %v17583_v15  ;;  %22089 = vst [vmem:[#allocation62_spill] sm:$0xff] %v17586_v29  ;;  %v17598_v15 = vand.u32 4294901760, %v14022_v21  ;;  %5061 = vmatmul.mubr.f32.gmra.mrb[52].mxu1 %v5060_v31  ;;  %5975 = vmatmul.mubr.f32.gmra.mrb[86].mxu0 %v5073_v25  ;;  %v5082_v6 = vand.u32 4294901760, %v17586_v29  ;;  %v14024_v28 = vpop.eup %14023  ;;  %v5075_v25 = vand.u32 4294901760, %v5074_v60  ;;  %v17624_v13 = vpop.f32.mrb[42].mxu0 }
 0x482   :  { %22091 = vst [vmem:[#allocation129_spill] sm:$0xff] %v17593_v5  ;;  %22093 = vst [vmem:[#allocation83_spill] sm:$0xff] %v17602_v47  ;;  %5070 = vmatprep.mubr.f32.mxu1 %v5069_v40  ;;  %v5089_v31 = vsub.f32 %v17561_v34, %v5088_v56  ;;  %v17620_v37 = vsub.f32 %v17549_v24, %v22096_v51  ;;  %v17622_v5 = vand.u32 4294901760, %v14024_v28  ;;  %v5103_v60 = vand.u32 4294901760, %v17602_v47  ;;  %v14026_v40 = vpop.eup %14025  ;;  %v17631_v34 = vpop.f32.mrb[43].mxu0 }
 0x483   :  { %22092 = vst [vmem:[#allocation65_spill] sm:$0xff] %v17598_v15  ;;  %22094 = vst [vmem:[#allocation133_spill] sm:$0xff] %v17608_v27  ;;  %5982 = vmatprep.mubr.f32.mxu0 %v5082_v6  ;;  %v5083_v30 = vsub.f32 %v17586_v29, %v5082_v6  ;;  %v17628_v23 = vsub.f32 %v14022_v21, %v17598_v15  ;;  %v22102_v51 = vand.u32 4294901760, %v17538_v44  ;;  %v17641_v6 = vand.u32 4294901760, %v14026_v40 }
 0x484   :  { %22095 = vst [vmem:[#allocation85_spill] sm:$0xff] %v17613_v7  ;;  %22097 = vst [vmem:[#allocation44_spill] sm:$0xff] %v17620_v37 }
 0x485   :  { %22098 = vst [vmem:[#allocation36_spill] sm:$0xff] %v17622_v5  ;;  %22099 = vst [vmem:[#allocation54_spill] sm:$0xff] %v17624_v13  ;;  %v17637_v24 = vsub.f32 %v17538_v44, %v22102_v51  ;;  %5076 = vmatmul.mubr.f32.gmra.mrb[54].mxu1 %v5075_v25  ;;  %5986 = vmatmul.mubr.f32.gmra.mrb[88].mxu0 %v5088_v56  ;;  %v5084_v21 = vand.u32 4294901760, %v5083_v30  ;;  %v5097_v29 = vand.u32 4294901760, %v17628_v23  ;;  %v17652_v51 = vld [vmem:[%s20487_s5 + $0x1c0] sm:$0xff]  ;;  %v14028_v32 = vpop.eup %14027  ;;  %v5090_v44 = vand.u32 4294901760, %v5089_v31 }
 0x486   :  { %22100 = vst [vmem:[#allocation91_spill] sm:$0xff] %v17628_v23  ;;  %22101 = vst [vmem:[#allocation102_spill] sm:$0xff] %v17631_v34  ;;  %v22104_v34 = vand.u32 4294901760, %v17576_v17  ;;  %v17655_v13 = vsub.f32 %v14024_v28, %v17622_v5  ;;  %v22108_v56 = vand.u32 4294901760, %v17566_v35  ;;  %v17663_v15 = vand.u32 4294901760, %v14028_v32  ;;  %v17680_v25 = vld [vmem:[%s20487_s5 + $0x140] sm:$0xff] }
 0x487   :  { %22103 = vst [vmem:[#allocation53_spill] sm:$0xff] %v17641_v6  ;;  %22106 = vst [vmem:[#allocation55_spill] sm:$0xff] %v17652_v51  ;;  %5085 = vmatprep.mubr.f32.mxu1 %v5084_v21  ;;  %5993 = vmatprep.mubr.f32.mxu0 %v5097_v29  ;;  %v17669_v31 = vsub.f32 %v14026_v40, %v17641_v6  ;;  %v5104_v28 = vsub.f32 %v17602_v47, %v5103_v60  ;;  %v17685_v21 = vld [vmem:[%s20487_s5 + $0x148] sm:$0xff]  ;;  %v22116_v47 = vand.u32 4294901760, %v17608_v27 }
 0x488   :  { %v17647_v50 = vsub.f32 %v17576_v17, %v22104_v34  ;;  %22107 = vst [vmem:[#allocation9_spill] sm:$0xff] %v17655_v13  ;;  %v17660_v30 = vsub.f32 %v17566_v35, %v22108_v56  ;;  %22109 = vst [vmem:[#allocation15_spill] sm:$0xff] %v17663_v15  ;;  %v17665_v34 = vpop.f32.mrb[44].mxu0  ;;  %v5098_v17 = vsub.f32 %v17628_v23, %v5097_v29  ;;  %v17675_v56 = vld [vmem:[%s20487_s5 + $0x1c8] sm:$0xff]  ;;  %v14030_v29 = vpop.eup %14029  ;;  %v5118_v35 = vand.u32 4294901760, %v17655_v13 }
 0x489   :  { %22110 = vst [vmem:[#allocation14_spill] sm:$0xff] %v17665_v34  ;;  %22111 = vst [vmem:[#allocation18_spill] sm:$0xff] %v17669_v31  ;;  %v17687_v40 = vpop.f32.mrb[45].mxu0  ;;  %v17693_v23 = vsub.f32 %v17608_v27, %v22116_v47  ;;  %v22118_v34 = vand.u32 4294901760, %v17613_v7  ;;  %v17701_v8 = vand.u32 4294901760, %v14030_v29  ;;  %5091 = vmatmul.mubr.f32.gmra.mrb[56].mxu1 %v5090_v44  ;;  %5997 = vmatmul.mubr.f32.gmra.mrb[90].mxu0 %v5103_v60  ;;  %v5105_v44 = vand.u32 4294901760, %v5104_v28 }
 0x48a   :  { %22105 = vst [vmem:[#allocation56_spill] sm:$0xff] %v17647_v50  ;;  %22112 = vst [vmem:[#allocation17_spill] sm:$0xff] %v17675_v56  ;;  %v5099_v61 = vand.u32 4294901760, %v5098_v17  ;;  %v17706_v55 = vsub.f32 %v14028_v32, %v17663_v15  ;;  %v17711_v6 = vpop.f32.mrb[46].mxu0  ;;  %v5119_v58 = vsub.f32 %v17655_v13, %v5118_v35  ;;  %v22127_v13 = vand.u32 4294901760, %v17571_v0 }
 0x48b   :  { %22113 = vst [vmem:[#allocation20_spill] sm:$0xff] %v17680_v25  ;;  %22114 = vst [vmem:[#allocation120_spill] sm:$0xff] %v17685_v21  ;;  %v17698_v5 = vsub.f32 %v17613_v7, %v22118_v34  ;;  %v17715_v60 = vsub.f32 %v14030_v29, %v17701_v8  ;;  %v17718_v32 = vpop.f32.mrb[47].mxu0  ;;  %v6876_v27 = vand.u32 4294901760, %v17660_v30  ;;  %v22128_v34 = vand.u32 4294901760, %v17620_v37  ;;  %v17757_v30 = vld [vmem:[%s20487_s5 + $0x1d8] sm:$0xff] }
 0x48c   :  { %22115 = vst [vmem:[#allocation24_spill] sm:$0xff] %v17687_v40  ;;  %22117 = vst [vmem:[#allocation23_spill] sm:$0xff] %v17693_v23  ;;  %v5112_v40 = vand.u32 4294901760, %v17669_v31  ;;  %5100 = vmatprep.mubr.f32.mxu1 %v5099_v61  ;;  %v5133_v47 = vand.u32 4294901760, %v17706_v55  ;;  %v22125_v61 = vand.u32 4294901760, %v17652_v51 }
 0x48d   :  { %22119 = vst [vmem:[#allocation45_spill] sm:$0xff] %v17698_v5  ;;  %22120 = vst [vmem:[#allocation139_spill] sm:$0xff] %v17701_v8  ;;  %5106 = vmatmul.mubr.f32.gmra.mrb[58].mxu1 %v5105_v44  ;;  %v5127_v29 = vand.u32 4294901760, %v17715_v60  ;;  %v17737_v7 = vsub.f32 %v17620_v37, %v22128_v34  ;;  %v22131_v44 = vand.u32 4294901760, %v17680_v25  ;;  %v17762_v34 = vld [vmem:[%s20487_s5 + $0x150] sm:$0xff] }
 0x48e   :  { %22121 = vst [vmem:[#allocation116_spill] sm:$0xff] %v17706_v55  ;;  %6004 = vmatprep.mubr.f32.mxu0 %v5112_v40  ;;  %22122 = vst [vmem:[#allocation142_spill] sm:$0xff] %v17711_v6  ;;  %v5113_v17 = vsub.f32 %v17669_v31, %v5112_v40  ;;  %v17726_v6 = vsub.f32 %v17652_v51, %v22125_v61  ;;  %v6995_v40 = vand.u32 4294901760, %v17637_v24  ;;  %v22129_v61 = vand.u32 4294901760, %v17675_v56 }
 0x48f   :  { %22123 = vst [vmem:[#allocation144_spill] sm:$0xff] %v17715_v60  ;;  %22124 = vst [vmem:[#allocation46_spill] sm:$0xff] %v17718_v32  ;;  %6008 = vmatmul.mubr.f32.gmra.mrb[92].mxu0 %v5118_v35  ;;  %v6882_v31 = vsub.f32 %v17571_v0, %v22127_v13  ;;  %v17747_v24 = vsub.f32 %v17680_v25, %v22131_v44  ;;  %v17752_v13 = vld [vmem:[%s20487_s5 + $0x1d0] sm:$0xff]  ;;  %v5128_v44 = vsub.f32 %v17715_v60, %v5127_v29 }
 0x490   :  { %22126 = vst [vmem:[#allocation108_spill] sm:$0xff] %v17726_v6  ;;  %v5114_v28 = vand.u32 4294901760, %v5113_v17  ;;  %v17742_v35 = vsub.f32 %v17675_v56, %v22129_v61  ;;  %22133 = vst [vmem:[#allocation146_spill] sm:$0xff] %v17752_v13  ;;  %6015 = vmatprep.mubr.f32.mxu0 %v5127_v29  ;;  %v17764_v17 = vpop.f32.mrb[48].mxu0  ;;  %v5120_v61 = vand.u32 4294901760, %v5119_v58  ;;  %v5134_v37 = vsub.f32 %v17706_v55, %v5133_v47  ;;  %v17776_v56 = vld [vmem:[%s20487_s5 + $0x158] sm:$0xff] }
 0x491   :  { %22132 = vst [vmem:[#allocation145_spill] sm:$0xff] %v17747_v24  ;;  %22134 = vst [vmem:[#allocation147_spill] sm:$0xff] %v17757_v30  ;;  %v22137_v0 = vand.u32 4294901760, %v17685_v21  ;;  %v17778_v51 = vpop.f32.mrb[49].mxu0  ;;  %v22142_v29 = vand.u32 4294901760, %v17693_v23  ;;  %v22143_v60 = vand.u32 4294901760, %v17698_v5 }
 0x492   :  { %22130 = vst [vmem:[#allocation106_spill] sm:$0xff] %v17742_v35  ;;  %22135 = vst [vmem:[#allocation148_spill] sm:$0xff] %v17762_v34  ;;  %5115 = vmatprep.mubr.f32.mxu1 %v5114_v28  ;;  %v22141_v28 = vand.u32 4294901760, %v17647_v50  ;;  %v22148_v32 = vand.u32 4294901760, %v17752_v13 }
 0x493   :  { %22136 = vst [vmem:[#allocation149_spill] sm:$0xff] %v17764_v17  ;;  %v17771_v25 = vsub.f32 %v17685_v21, %v22137_v0  ;;  %22139 = vst [vmem:[#allocation151_spill] sm:$0xff] %v17776_v56  ;;  %v6889_v55 = vsub.f32 %v17693_v23, %v22142_v29  ;;  %v6896_v0 = vsub.f32 %v17698_v5, %v22143_v60  ;;  %5121 = vmatmul.mubr.f32.gmra.mrb[60].mxu1 %v5120_v61  ;;  %v17797_v17 = vpop.f32.mrb[50].mxu0 }
 0x494   :  { %22140 = vst [vmem:[#allocation152_spill] sm:$0xff] %v17778_v51  ;;  %v7008_v58 = vsub.f32 %v17647_v50, %v22141_v28  ;;  %6019 = vmatmul.mubr.f32.gmra.mrb[94].mxu0 %v5133_v47  ;;  %v5129_v21 = vand.u32 4294901760, %v5128_v44  ;;  %v6883_v28 = vand.u32 4294901760, %v6882_v31  ;;  %v7002_v29 = vand.u32 4294901760, %v17737_v7  ;;  %22144 = vst [vmem:[#allocation153_spill] sm:$0xff] %v17797_v17  ;;  %v17808_v7 = vld [vmem:[%s20487_s5 + $0x1e0] sm:$0xff] }
 0x495   :  { %22138 = vst [vmem:[#allocation150_spill] sm:$0xff] %v17771_v25  ;;  %6394 = vmatprep.mubr.f32.mxu0 %v17201_v53  ;;  %v5135_v47 = vand.u32 4294901760, %v5134_v37  ;;  %v22145_v61 = vand.u32 4294901760, %v17435_v3  ;;  %v22146_v44 = vand.u32 4294901760, %v17463_v9  ;;  %v17813_v31 = vld [vmem:[%s20487_s5 + $0x1e8] sm:$0xff]  ;;  %v17815_v37 = vpop.f32.mrb[51].mxu0  ;;  %v17826_v15 = vsub.f32 %v17752_v13, %v22148_v32 }
 0x496   :  { %5130 = vmatprep.mubr.f32.mxu1 %v5129_v21  ;;  %v7009_v3 = vand.u32 4294901760, %v7008_v58  ;;  %v6890_v21 = vand.u32 4294901760, %v6889_v55  ;;  %v6897_v9 = vand.u32 4294901760, %v6896_v0  ;;  %v22150_v60 = vand.u32 4294901760, %v17757_v30  ;;  %v17841_v0 = vld [vmem:[%s20487_s5 + $0x160] sm:$0xff]  ;;  %v17846_v32 = vld [vmem:[%s20487_s5 + $0x168] sm:$0xff] }
 0x497   :  { %v13257_v51 = vpack.c.bf16 %v22146_v44, %v22145_v61  ;;  %v22147_v61 = vand.u32 4294901760, %v17726_v6  ;;  %5136 = vmatmul.mubr.f32.gmra.mrb[62].mxu1 %v5135_v47  ;;  %22149 = vst [vmem:[#allocation154_spill] sm:$0xff] %v17826_v15  ;;  %v22152_v55 = vand.u32 4294901760, %v17762_v34  ;;  %v17860_v50 = vpop.f32.mrb[52].mxu0  ;;  %v22182_v13 = vld [vmem:[#allocation35_spill] sm:$0xff] }
 0x498   :  { %6396 = vmatmul.mubr.f32.vlgmr.msra.gmra.mrb[96].mxu0 %v17190_v45  ;;  %v17831_v23 = vsub.f32 %v17757_v30, %v22150_v60  ;;  %5366 = vmatprep.mubr.f32.mxu1 %v17201_v53  ;;  %v22154_v60 = vand.u32 4294901760, %v17742_v35  ;;  %22157 = vst [vmem:[#allocation158_spill] sm:$0xff] %v17860_v50  ;;  %v22158_v53 = vand.u32 4294901760, %v17591_v52  ;;  %v22159_v30 = vand.u32 4294901760, %v17747_v24  ;;  %v17883_v52 = vld [vmem:[%s20487_s5 + $0x1f0] sm:$0xff] }
 0x499   :  { %v17820_v44 = vsub.f32 %v17726_v6, %v22147_v61  ;;  %v17836_v58 = vsub.f32 %v17762_v34, %v22152_v55  ;;  %6401 = vmatprep.mubr.f32.mxu0 %v17230_v62  ;;  %v22155_v61 = vand.u32 4294901760, %v17776_v56  ;;  %13254 = vmatpush3.bf16.msra.mxu0 %v17401_v48  ;;  %v13261_v34 = vpack.c.bf16 %v6883_v28, %v6876_v27  ;;  %v17888_v27 = vld [vmem:[%s20487_s5 + $0x1f8] sm:$0xff]  ;;  %v17899_v28 = vld [vmem:[%s20487_s5 + $0x170] sm:$0xff] }
 0x49a   :  { %22151 = vst [vmem:[#allocation155_spill] sm:$0xff] %v17831_v23  ;;  %v7022_v47 = vsub.f32 %v17742_v35, %v22154_v60  ;;  %v13259_v17 = vpack.c.bf16 %v6995_v40, %v22158_v53  ;;  %v6903_v60 = vsub.f32 %v17747_v24, %v22159_v30  ;;  %v22160_v35 = vand.u32 4294901760, %v17771_v25  ;;  %13256 = vmatprep.subr.bf16.mxu0 %v17556_v57 }
 0x49b   :  { %22153 = vst [vmem:[#allocation156_spill] sm:$0xff] %v17836_v58  ;;  %v17856_v55 = vsub.f32 %v17776_v56, %v22155_v61  ;;  %v17871_v56 = vpop.f32.mrb[53].mxu0  ;;  %v17874_v5 = vpack.c.bf16 %v7009_v3, %v7002_v29  ;;  %v17876_v6 = vpack.c.bf16 %v6897_v9, %v6890_v21  ;;  %5368 = vmatmul.mubr.f32.vlgmr.msra.gmra.mrb[64].mxu1 %v17190_v45  ;;  %v7016_v57 = vand.u32 4294901760, %v17820_v44  ;;  %v17904_v29 = vld [vmem:[%s20487_s5 + $0x178] sm:$0xff] }
 0x49c   :  { %v6910_v61 = vsub.f32 %v17771_v25, %v22160_v35  ;;  %22161 = vst [vmem:[#allocation159_spill] sm:$0xff] %v17871_v56  ;;  %6403 = vmatmul.mubr.f32.gmra.mrb[98].mxu0 %v17222_v33  ;;  %v22162_v3 = vpack.c.bf16 %v16554_v19, %v16549_v14  ;;  %5373 = vmatprep.mubr.f32.mxu1 %v17230_v62  ;;  %v7023_v21 = vand.u32 4294901760, %v7022_v47  ;;  %v22163_v44 = vand.u32 4294901760, %v17808_v7  ;;  %v17922_v53 = vpop.f32.mrb[54].mxu0 }
 0x49d   :  { %22156 = vst [vmem:[#allocation157_spill] sm:$0xff] %v17856_v55  ;;  %v22165_v35 = vand.u32 4294901760, %v17813_v31  ;;  %6408 = vmatprep.mubr.f32.mxu0 %v17271_v49  ;;  %22167 = vst [vmem:[#allocation162_spill] sm:$0xff] %v17922_v53  ;;  %v6904_v47 = vand.u32 4294901760, %v6903_v60  ;;  %v6597_v48 = vand.u32 4294901760, %v17883_v52  ;;  %v17929_v25 = vpop.f32.mrb[55].mxu0  ;;  %13258 = vmatpush3.bf16.msra.mxu0 %v13257_v51 }
 0x49e   :  { %13094 = vmatpush3.bf16.msra.mxu1 %v22162_v3  ;;  %v17914_v30 = vsub.f32 %v17808_v7, %v22163_v44  ;;  %v22168_v3 = vpack.c.bf16 %v21956_v22, %v21955_v41  ;;  %v6911_v9 = vand.u32 4294901760, %v6910_v61  ;;  %v6600_v44 = vand.u32 4294901760, %v17888_v27  ;;  %22169 = vst [vmem:[#allocation163_spill] sm:$0xff] %v17929_v25  ;;  %13260 = vmatprep.subr.bf16.mxu0 %v13259_v17 }
 0x49f   :  { %v17919_v40 = vsub.f32 %v17813_v31, %v22165_v35  ;;  %v22170_v35 = vand.u32 4294901760, %v17841_v0  ;;  %v22172_v62 = vand.u32 4294901760, %v17846_v32  ;;  %v6549_v60 = vand.u32 4294901760, %v17899_v28  ;;  %5375 = vmatmul.mubr.f32.gmra.mrb[66].mxu1 %v17222_v33 }
 0x4a0   :  { %22164 = vst [vmem:[#allocation160_spill] sm:$0xff] %v17914_v30  ;;  %13096 = vmatprep.subr.bf16.mxu1 %v22168_v3  ;;  %v6552_v61 = vand.u32 4294901760, %v17904_v29  ;;  %6410 = vmatmul.mubr.f32.gmra.mrb[100].mxu0 %v17258_v10  ;;  %v22174_v51 = vand.u32 4294901760, %v17826_v15  ;;  %v22176_v25 = vand.u32 4294901760, %v17836_v58  ;;  %v13267_v50 = vpack.c.bf16 %v7023_v21, %v7016_v57 }
 0x4a1   :  { %22166 = vst [vmem:[#allocation161_spill] sm:$0xff] %v17919_v40  ;;  %v17934_v24 = vsub.f32 %v17841_v0, %v22170_v35  ;;  %v17939_v45 = vsub.f32 %v17846_v32, %v22172_v62  ;;  %v22175_v35 = vand.u32 4294901760, %v17831_v23  ;;  %5380 = vmatprep.mubr.f32.mxu1 %v17271_v49  ;;  %6415 = vmatprep.mubr.f32.mxu0 %v17296_v42  ;;  %v22177_v33 = vand.u32 4294901760, %v17856_v55 }
 0x4a2   :  { %v7029_v3 = vsub.f32 %v17826_v15, %v22174_v51  ;;  %v6917_v62 = vsub.f32 %v17836_v58, %v22176_v25  ;;  %v17961_v15 = vpop.f32.mrb[56].mxu0  ;;  %v13269_v25 = vpack.c.bf16 %v6911_v9, %v6904_v47  ;;  %v17967_v58 = vsub.f32 %v17883_v52, %v6597_v48  ;;  %13262 = vmatpush3.bf16.msra.mxu0 %v13261_v34 }
 0x4a3   :  { %22171 = vst [vmem:[#allocation164_spill] sm:$0xff] %v17934_v24  ;;  %22173 = vst [vmem:[#allocation165_spill] sm:$0xff] %v17939_v45  ;;  %v7036_v53 = vsub.f32 %v17831_v23, %v22175_v35  ;;  %v6924_v56 = vsub.f32 %v17856_v55, %v22177_v33  ;;  %v22178_v35 = vpack.c.bf16 %v16605_v4, %v16600_v46  ;;  %v17972_v21 = vpop.f32.mrb[57].mxu0  ;;  %v22181_v33 = vld [vmem:[#allocation48_spill] sm:$0xff]  ;;  %5382 = vmatmul.mubr.f32.gmra.mrb[68].mxu1 %v17258_v10 }
 0x4a4   :  { %22179 = vst [vmem:[#allocation166_spill] sm:$0xff] %v17967_v58  ;;  %v17970_v57 = vsub.f32 %v17888_v27, %v6600_v44  ;;  %v22183_v55 = vpack.c.bf16 %v22181_v33, %v22182_v13  ;;  %v17980_v17 = vsub.f32 %v17899_v28, %v6549_v60  ;;  %v17983_v52 = vsub.f32 %v17904_v29, %v6552_v61 }
 0x4a5   :  { %13098 = vmatpush3.bf16.msra.mxu1 %v22178_v35  ;;  %6417 = vmatmul.mubr.f32.gmra.mrb[102].mxu0 %v17287_v38  ;;  %v7030_v27 = vand.u32 4294901760, %v7029_v3  ;;  %v7037_v9 = vand.u32 4294901760, %v7036_v53  ;;  %v6918_v47 = vand.u32 4294901760, %v6917_v62  ;;  %v22187_v34 = vand.u32 4294901760, %v17813_v31  ;;  %v18007_v62 = vpop.f32.mrb[58].mxu0 }
 0x4a6   :  { %22180 = vst [vmem:[#allocation167_spill] sm:$0xff] %v17970_v57  ;;  %13100 = vmatprep.subr.bf16.mxu1 %v22183_v55  ;;  %22184 = vst [vmem:[#allocation48_spill] sm:$0xff] %v17980_v17  ;;  %v22186_v55 = vand.u32 4294901760, %v17808_v7  ;;  %5387 = vmatprep.mubr.f32.mxu1 %v17296_v42  ;;  %v6925_v28 = vand.u32 4294901760, %v6924_v56  ;;  %v22189_v29 = vand.u32 4294901760, %v17914_v30  ;;  %v22190_v51 = vand.u32 4294901760, %v17919_v40 }
 0x4a7   :  { %22185 = vst [vmem:[#allocation35_spill] sm:$0xff] %v17983_v52  ;;  %6422 = vmatprep.mubr.f32.mxu0 %v17318_v26  ;;  %v22191_v3 = vand.u32 4294901760, %v17841_v0  ;;  %v22192_v7 = vand.u32 4294901760, %v17846_v32  ;;  %13264 = vmatprep.subr.bf16.mxu0 %v17874_v5  ;;  %v18019_v0 = vpop.f32.mrb[59].mxu0  ;;  %v22199_v32 = vld [vmem:[#allocation42_spill] sm:$0xff]  ;;  %v22203_v56 = vand.u32 4294901760, %v17939_v45 }
 0x4a8   :  { %v17991_v35 = vpack.c.bf16 %v22187_v34, %v22186_v55  ;;  %v7043_v23 = vsub.f32 %v17914_v30, %v22189_v29  ;;  %v7050_v53 = vsub.f32 %v17919_v40, %v22190_v51  ;;  %v22194_v55 = vld [vmem:[#allocation37_spill] sm:$0xff]  ;;  %v22195_v34 = vld [vmem:[#allocation47_spill] sm:$0xff]  ;;  %v18015_v30 = vpack.c.bf16 %v6600_v44, %v6597_v48  ;;  %13266 = vmatpush3.bf16.msra.mxu0 %v17876_v6 }
 0x4a9   :  { %v18005_v31 = vpack.c.bf16 %v22192_v7, %v22191_v3  ;;  %v22196_v42 = vpack.c.bf16 %v22194_v55, %v22195_v34  ;;  %v18017_v51 = vpack.c.bf16 %v6552_v61, %v6549_v60  ;;  %v22200_v3 = vld [vmem:[#allocation43_spill] sm:$0xff]  ;;  %v6938_v29 = vsub.f32 %v17939_v45, %v22203_v56  ;;  %5389 = vmatmul.mubr.f32.gmra.mrb[70].mxu1 %v17287_v38  ;;  %v18037_v61 = vpop.f32.mrb[60].mxu0 }
 0x4aa   :  { %22188 = vst [vmem:[#allocation168_spill] sm:$0xff] %v17991_v35  ;;  %22197 = vst [vmem:[#allocation37_spill] sm:$0xff] %v18015_v30  ;;  %v22201_v7 = vpack.c.bf16 %v22199_v32, %v22200_v3  ;;  %6424 = vmatmul.mubr.f32.gmra.mrb[104].mxu0 %v17313_v1  ;;  %5394 = vmatprep.mubr.f32.mxu1 %v17318_v26  ;;  %v13271_v6 = vpack.c.bf16 %v7037_v9, %v7030_v27  ;;  %v7044_v56 = vand.u32 4294901760, %v7043_v23  ;;  %v18048_v38 = vpop.f32.mrb[61].mxu0  ;;  %v22209_v27 = vld [vmem:[#allocation40_spill] sm:$0xff]  ;;  %v22210_v9 = vld [vmem:[#allocation41_spill] sm:$0xff] }
 0x4ab   :  { %22193 = vst [vmem:[#allocation169_spill] sm:$0xff] %v18005_v31  ;;  %13102 = vmatpush3.bf16.msra.mxu1 %v22196_v42  ;;  %22198 = vst [vmem:[#allocation47_spill] sm:$0xff] %v18017_v51  ;;  %v22202_v42 = vand.u32 4294901760, %v17934_v24  ;;  %6429 = vmatprep.mubr.f32.mxu0 %v17341_v18  ;;  %v13273_v60 = vpack.c.bf16 %v6925_v28, %v6918_v47  ;;  %v7051_v48 = vand.u32 4294901760, %v7050_v53  ;;  %v22207_v44 = vand.u32 4294901760, %v17967_v58 }
 0x4ac   :  { %13104 = vmatprep.subr.bf16.mxu1 %v22201_v7  ;;  %v22204_v7 = vld [vmem:[#allocation51_spill] sm:$0xff]  ;;  %13268 = vmatprep.subr.bf16.mxu0 %v13267_v50  ;;  %v22208_v40 = vand.u32 4294901760, %v17970_v57  ;;  %v22211_v47 = vpack.c.bf16 %v22209_v27, %v22210_v9  ;;  %v22212_v23 = vand.u32 4294901760, %v17980_v17  ;;  %v22213_v53 = vand.u32 4294901760, %v17983_v52 }
 0x4ad   :  { %v6931_v5 = vsub.f32 %v17934_v24, %v22202_v42  ;;  %v22205_v42 = vld [vmem:[#allocation52_spill] sm:$0xff]  ;;  %v7057_v45 = vsub.f32 %v17967_v58, %v22207_v44  ;;  %13270 = vmatpush3.bf16.msra.mxu0 %v13269_v25  ;;  %5396 = vmatmul.mubr.f32.gmra.mrb[72].mxu1 %v17313_v1  ;;  %v22214_v25 = vld [vmem:[#allocation138_spill] sm:$0xff] }
 0x4ae   :  { %v22206_v24 = vpack.c.bf16 %v22204_v7, %v22205_v42  ;;  %v7064_v26 = vsub.f32 %v17970_v57, %v22208_v40  ;;  %v6945_v50 = vsub.f32 %v17980_v17, %v22212_v23  ;;  %v6952_v44 = vsub.f32 %v17983_v52, %v22213_v53  ;;  %6431 = vmatmul.mubr.f32.gmra.mrb[106].mxu0 %v17333_v39  ;;  %v18063_v40 = vpop.f32.mrb[62].mxu0  ;;  %v22217_v53 = vld [vmem:[#allocation66_spill] sm:$0xff]  ;;  %v22218_v52 = vld [vmem:[#allocation67_spill] sm:$0xff] }
 0x4af   :  { %v6932_v28 = vand.u32 4294901760, %v6931_v5  ;;  %5401 = vmatprep.mubr.f32.mxu1 %v17341_v18  ;;  %6436 = vmatprep.mubr.f32.mxu0 %v17363_v63  ;;  %v7058_v23 = vand.u32 4294901760, %v7057_v45  ;;  %v18068_v57 = vpop.f32.mrb[63].mxu0  ;;  %v22219_v58 = vpack.c.bf16 %v22217_v53, %v22218_v52  ;;  %v22220_v45 = vld [vmem:[#allocation19_spill] sm:$0xff] }
 0x4b0   :  { %13106 = vmatpush3.bf16.msra.mxu1 %v22206_v24  ;;  %v6939_v24 = vand.u32 4294901760, %v6938_v29  ;;  %v22215_v29 = vld [vmem:[#allocation8_spill] sm:$0xff]  ;;  %13272 = vmatprep.subr.bf16.mxu0 %v13271_v6  ;;  %v7065_v17 = vand.u32 4294901760, %v7064_v26  ;;  %v6946_v1 = vand.u32 4294901760, %v6945_v50  ;;  %v6953_v10 = vand.u32 4294901760, %v6952_v44 }
 0x4b1   :  { %13108 = vmatprep.subr.bf16.mxu1 %v22211_v47  ;;  %v22216_v5 = vpack.c.bf16 %v22214_v25, %v22215_v29  ;;  %v13275_v47 = vpack.c.bf16 %v7051_v48, %v7044_v56  ;;  %13274 = vmatpush3.bf16.msra.mxu0 %v13273_v60  ;;  %v22221_v26 = vld [vmem:[#allocation16_spill] sm:$0xff] }
 0x4b2   :  { %v13277_v18 = vpack.c.bf16 %v6939_v24, %v6932_v28  ;;  %5403 = vmatmul.mubr.f32.gmra.mrb[74].mxu1 %v17333_v39  ;;  %6438 = vmatmul.mubr.f32.gmra.mrb[108].mxu0 %v17359_v11  ;;  %v22222_v48 = vpack.c.bf16 %v22220_v45, %v22221_v26  ;;  %v13279_v6 = vpack.c.bf16 %v7065_v17, %v7058_v23  ;;  %v22223_v56 = vld [vmem:[#allocation80_spill] sm:$0xff]  ;;  %v22226_v28 = vld [vmem:[#allocation3_spill] sm:$0xff]  ;;  %v22235_v39 = vld [vmem:[#allocation125_spill] sm:$0xff] }
 0x4b3   :  { %5408 = vmatprep.mubr.f32.mxu1 %v17363_v63  ;;  %6443 = vmatprep.mubr.f32.mxu0 %v17397_v12  ;;  %v22227_v24 = vld [vmem:[#allocation4_spill] sm:$0xff]  ;;  %v13281_v44 = vpack.c.bf16 %v6953_v10, %v6946_v1  ;;  %v22231_v23 = vld [vmem:[#allocation115_spill] sm:$0xff]  ;;  %v22236_v10 = vand.u32 4294901760, %v22235_v39  ;;  %v22243_v39 = vld [vmem:[#allocation29_spill] sm:$0xff] }
 0x4b4   :  { %13110 = vmatpush3.bf16.msra.mxu1 %v22216_v5  ;;  %13276 = vmatprep.subr.bf16.mxu0 %v13275_v47  ;;  %v13119_v50 = vpack.c.bf16 %v22227_v24, %v22226_v28  ;;  %v22228_v5 = vld [vmem:[#allocation97_spill] sm:$0xff]  ;;  %v22229_v47 = vld [vmem:[#allocation87_spill] sm:$0xff] }
 0x4b5   :  { %13112 = vmatprep.subr.bf16.mxu1 %v22219_v58  ;;  %v22224_v58 = vld [vmem:[#allocation79_spill] sm:$0xff]  ;;  %13278 = vmatpush3.bf16.msra.mxu0 %v13277_v18  ;;  %v22230_v17 = vpack.c.bf16 %v22228_v5, %v22229_v47  ;;  %v22233_v18 = vld [vmem:[#allocation117_spill] sm:$0xff] }
 0x4b6   :  { %v22225_v60 = vpack.c.bf16 %v22223_v56, %v22224_v58  ;;  %5410 = vmatmul.mubr.f32.gmra.mrb[76].mxu1 %v17359_v11  ;;  %6445 = vmatmul.mubr.f32.gmra.mrb[110].mxu0 %v17393_v59  ;;  %v22234_v63 = vand.u32 4294901760, %v22233_v18  ;;  %v22239_v11 = vand.u32 4294901760, %v16536_v16  ;;  %v22241_v16 = vld [vmem:[#allocation25_spill] sm:$0xff] }
 0x4b7   :  { %5415 = vmatprep.mubr.f32.mxu1 %v17397_v12  ;;  %6450 = vmatprep.mubr.f32.mxu0 %v17415_v54  ;;  %v22238_v12 = vand.u32 4294901760, %v16534_v36  ;;  %v22240_v36 = vld [vmem:[#allocation70_spill] sm:$0xff]  ;;  %v22252_v18 = vld [vmem:[#allocation53_spill] sm:$0xff] }
 0x4b8   :  { %13114 = vmatpush3.bf16.msra.mxu1 %v22222_v48  ;;  %v22232_v48 = vld [vmem:[#allocation103_spill] sm:$0xff]  ;;  %13280 = vmatprep.subr.bf16.mxu0 %v13279_v6  ;;  %v18098_v1 = vpack.c.bf16 %v22236_v10, %v22234_v63  ;;  %v22242_v63 = vld [vmem:[#allocation30_spill] sm:$0xff]  ;;  %v22247_v6 = vld [vmem:[#allocation77_spill] sm:$0xff] }
 0x4b9   :  { %13116 = vmatprep.subr.bf16.mxu1 %v22225_v60  ;;  %v13121_v60 = vpack.c.bf16 %v22232_v48, %v22231_v23  ;;  %13282 = vmatpush3.bf16.msra.mxu0 %v13281_v44  ;;  %v13155_v49 = vpack.c.bf16 %v22239_v11, %v22238_v12  ;;  %v22245_v11 = vld [vmem:[#allocation22_spill] sm:$0xff]  ;;  %v22246_v12 = vld [vmem:[#allocation105_spill] sm:$0xff]  ;;  %v22253_v10 = vld [vmem:[#allocation31_spill] sm:$0xff] }
 0x4ba   :  { %22237 = vst [vmem:[#allocation42_spill] sm:$0xff] %v18098_v1  ;;  %5417 = vmatmul.mubr.f32.gmra.mrb[78].mxu1 %v17393_v59  ;;  %6452 = vmatmul.mubr.f32.gmra.mrb[112].mxu0 %v17407_v43  ;;  %14031 = vtanh.f32 %v22245_v11  ;;  %v22249_v44 = vld [vmem:[#allocation26_spill] sm:$0xff] }
 0x4bb   :  { %5422 = vmatprep.mubr.f32.mxu1 %v17415_v54  ;;  %6457 = vmatprep.mubr.f32.mxu0 %v17450_v2  ;;  %14033 = vtanh.f32 %v22247_v6  ;;  %v22254_v6 = vld [vmem:[#allocation36_spill] sm:$0xff] }
 0x4bc   :  { %13118 = vmatpush3.bf16.msra.mxu1 %v22230_v17  ;;  %13316 = vmatprep.subr.bf16.mxu0 %v18098_v1  ;;  %14035 = vtanh.f32 %v22249_v44  ;;  %v22250_v17 = vld [vmem:[#allocation123_spill] sm:$0xff] }
 0x4bd   :  { %13120 = vmatprep.subr.bf16.mxu1 %v13119_v50  ;;  %v22248_v50 = vld [vmem:[#allocation65_spill] sm:$0xff]  ;;  %v22256_v44 = vld [vmem:[#allocation99_spill] sm:$0xff] }
 0x4be   :  { %5424 = vmatmul.mubr.f32.gmra.mrb[80].mxu1 %v17407_v43  ;;  %6459 = vmatmul.mubr.f32.gmra.mrb[114].mxu0 %v17442_v20 }
 0x4bf   :  { %5429 = vmatprep.mubr.f32.mxu1 %v17450_v2  ;;  %6464 = vmatprep.mubr.f32.mxu0 %v22240_v36  ;;  %v22271_v2 = vld [vmem:[#allocation72_spill] sm:$0xff] }
 0x4c0   :  { %13122 = vmatpush3.bf16.msra.mxu1 %v13121_v60  ;;  %v22251_v60 = vld [vmem:[#allocation92_spill] sm:$0xff]  ;;  %v22272_v43 = vand.u32 4294901760, %v22271_v2  ;;  %v22279_v2 = vld [vmem:[#allocation102_spill] sm:$0xff] }
 0x4c1   :  { %13156 = vmatprep.subr.bf16.mxu1 %v13155_v49  ;;  %v22244_v49 = vld [vmem:[#allocation111_spill] sm:$0xff]  ;;  %14037 = vtanh.f32 %v22251_v60 }
 0x4c2   :  { %5431 = vmatmul.mubr.f32.gmra.mrb[82].mxu1 %v17442_v20  ;;  %6466 = vmatmul.mubr.f32.gmra.mrb[116].mxu0 %v22241_v16  ;;  %14039 = vtanh.f32 %v22253_v10 }
 0x4c3   :  { %5436 = vmatprep.mubr.f32.mxu1 %v22240_v36  ;;  %6471 = vmatprep.mubr.f32.mxu0 %v22242_v63 }
 0x4c4   :  { %v18134_v11 = vpop.eup %14031 }
 0x4c5   :  { %v18142_v60 = vpop.eup %14033 }
 0x4c6   :  { %5438 = vmatmul.mubr.f32.gmra.mrb[84].mxu1 %v22241_v16  ;;  %6473 = vmatmul.mubr.f32.gmra.mrb[118].mxu0 %v22243_v39  ;;  %v18147_v10 = vpop.eup %14035 }
 0x4c7   :  { %5443 = vmatprep.mubr.f32.mxu1 %v22242_v63  ;;  %6478 = vmatprep.mubr.f32.mxu0 %v22244_v49  ;;  %v22264_v63 = vld [vmem:[#allocation134_spill] sm:$0xff]  ;;  %v18167_v20 = vand.u32 4294901760, %v18147_v10 }
 0x4c8   :  { %v22265_v16 = vand.u32 4294901760, %v22264_v63  ;;  %v22275_v63 = vld [vmem:[#allocation59_spill] sm:$0xff] }
 0x4c9   :  { %22268 = vst [vmem:[#allocation41_spill] sm:$0xff] %v18167_v20 }
 0x4ca   :  { %5445 = vmatmul.mubr.f32.gmra.mrb[86].mxu1 %v22243_v39  ;;  %6480 = vmatmul.mubr.f32.gmra.mrb[120].mxu0 %v22246_v12 }
 0x4cb   :  { %5450 = vmatprep.mubr.f32.mxu1 %v22244_v49  ;;  %6485 = vmatprep.mubr.f32.mxu0 %v22248_v50  ;;  %v22255_v49 = vld [vmem:[#allocation86_spill] sm:$0xff] }
 0x4cc   :  { %14041 = vtanh.f32 %v22255_v49  ;;  %v18155_v49 = vand.u32 4294901760, %v18142_v60 }
 0x4cd   :  { %14043 = vtanh.f32 %v22256_v44  ;;  %v22261_v44 = vld [vmem:[#allocation129_spill] sm:$0xff] }
 0x4ce   :  { %5452 = vmatmul.mubr.f32.gmra.mrb[88].mxu1 %v22246_v12  ;;  %6487 = vmatmul.mubr.f32.gmra.mrb[122].mxu0 %v22250_v17  ;;  %v22259_v12 = vld [vmem:[#allocation34_spill] sm:$0xff]  ;;  %22260 = vst [vmem:[#allocation51_spill] sm:$0xff] %v18155_v49 }
 0x4cf   :  { %5457 = vmatprep.mubr.f32.mxu1 %v22248_v50  ;;  %6492 = vmatprep.mubr.f32.mxu0 %v22252_v18  ;;  %v18145_v50 = vand.u32 4294901760, %v18134_v11  ;;  %14045 = vtanh.f32 %v22259_v12  ;;  %v22269_v12 = vld [vmem:[#allocation84_spill] sm:$0xff] }
 0x4d0   :  { %14047 = vtanh.f32 %v22261_v44  ;;  %v22278_v44 = vand.u32 4294901760, %v16554_v19  ;;  %v22286_v19 = vld [vmem:[#allocation107_spill] sm:$0xff] }
 0x4d1   :  { %22257 = vst [vmem:[#allocation43_spill] sm:$0xff] %v18145_v50  ;;  %14049 = vtanh.f32 %v22275_v63 }
 0x4d2   :  { %5459 = vmatmul.mubr.f32.gmra.mrb[90].mxu1 %v22250_v17  ;;  %6494 = vmatmul.mubr.f32.gmra.mrb[124].mxu0 %v22254_v6  ;;  %v22258_v17 = vld [vmem:[#allocation15_spill] sm:$0xff]  ;;  %14051 = vtanh.f32 %v22279_v2 }
 0x4d3   :  { %5464 = vmatprep.mubr.f32.mxu1 %v22252_v18  ;;  %6499 = vmatprep.mubr.f32.mxu0 %v17701_v8  ;;  %v22262_v18 = vld [vmem:[#allocation128_spill] sm:$0xff] }
 0x4d4   :  { %v22263_v39 = vand.u32 4294901760, %v22262_v18 }
 0x4d6   :  { %5466 = vmatmul.mubr.f32.gmra.mrb[92].mxu1 %v22254_v6  ;;  %6501 = vmatmul.mubr.f32.gmra.mrb[126].mxu0 %v22258_v17  ;;  %v18162_v36 = vpack.c.bf16 %v22265_v16, %v22263_v39  ;;  %v18164_v6 = vpop.eup %14037  ;;  %v22276_v16 = vld [vmem:[#allocation89_spill] sm:$0xff]  ;;  %v22277_v39 = vand.u32 4294901760, %v16549_v14  ;;  %v22284_v14 = vld [vmem:[#allocation10_spill] sm:$0xff] }
 0x4d7   :  { %5471 = vmatprep.mubr.f32.mxu1 %v17701_v8  ;;  %7068 = vmatprep.mubr.f32.mxu0 %v18145_v50  ;;  %22267 = vst [vmem:[#allocation40_spill] sm:$0xff] %v18164_v6  ;;  %v22270_v8 = vand.u32 4294901760, %v22269_v12  ;;  %v18177_v18 = vpop.eup %14039 }
 0x4d8   :  { %22266 = vst [vmem:[#allocation52_spill] sm:$0xff] %v18162_v36  ;;  %22274 = vst [vmem:[#allocation8_spill] sm:$0xff] %v18177_v18  ;;  %v13157_v12 = vpack.c.bf16 %v22278_v44, %v22277_v39  ;;  %v18195_v63 = vpop.eup %14041  ;;  %v22287_v39 = vand.u32 4294901760, %v22286_v19 }
 0x4d9   :  { %v18173_v54 = vpack.c.bf16 %v22272_v43, %v22270_v8  ;;  %v18188_v43 = vand.u32 4294901760, %v18164_v6  ;;  %v22281_v8 = vand.u32 4294901760, %v21955_v41  ;;  %22283 = vst [vmem:[#allocation67_spill] sm:$0xff] %v18195_v63  ;;  %v18204_v2 = vpop.eup %14043  ;;  %v22289_v6 = vld [vmem:[#allocation74_spill] sm:$0xff]  ;;  %v18209_v41 = vand.u32 4294901760, %v18177_v18 }
 0x4da   :  { %5473 = vmatmul.mubr.f32.gmra.mrb[94].mxu1 %v22258_v17  ;;  %7070 = vmatmul.mubr.f32.vlgmr.msra.gmra.mrb[128].mxu0 %v18155_v49  ;;  %v22282_v17 = vand.u32 4294901760, %v21956_v22  ;;  %v22291_v22 = vld [vmem:[#allocation54_spill] sm:$0xff] }
 0x4db   :  { %22273 = vst [vmem:[#allocation138_spill] sm:$0xff] %v18173_v54  ;;  %5608 = vmatprep.mubr.f32.mxu1 %v22276_v16  ;;  %7075 = vmatprep.mubr.f32.mxu0 %v18167_v20  ;;  %22280 = vst [vmem:[#allocation66_spill] sm:$0xff] %v18188_v43  ;;  %v22285_v16 = vand.u32 4294901760, %v22284_v14  ;;  %14053 = vtanh.f32 %v22291_v22  ;;  %v18216_v14 = vand.u32 4294901760, %v18195_v63  ;;  %v22303_v63 = vand.u32 4294901760, %v22182_v13  ;;  %v22312_v13 = vld [vmem:[#allocation127_spill] sm:$0xff] }
 0x4dc   :  { %v13159_v59 = vpack.c.bf16 %v22282_v17, %v22281_v8  ;;  %13318 = vmatpush3.bf16.msra.mxu0 %v18162_v36  ;;  %22290 = vst [vmem:[#allocation16_spill] sm:$0xff] %v18209_v41  ;;  %v22292_v17 = vld [vmem:[#allocation21_spill] sm:$0xff]  ;;  %v22293_v8 = vld [vmem:[#allocation24_spill] sm:$0xff]  ;;  %v22299_v36 = vld [vmem:[#allocation71_spill] sm:$0xff] }
 0x4dd   :  { %13320 = vmatprep.subr.bf16.mxu0 %v18173_v54  ;;  %v18202_v44 = vpack.c.bf16 %v22287_v39, %v22285_v16  ;;  %14055 = vtanh.f32 %v22293_v8  ;;  %22294 = vst [vmem:[#allocation80_spill] sm:$0xff] %v18216_v14  ;;  %v22296_v16 = vand.u32 4294901760, %v16605_v4  ;;  %v22297_v39 = vld [vmem:[#allocation131_spill] sm:$0xff]  ;;  %v22300_v22 = vand.u32 4294901760, %v22299_v36  ;;  %v22310_v36 = vld [vmem:[#allocation82_spill] sm:$0xff] }
 0x4de   :  { %5611 = vmatmul.mubr.f32.vlgmr.msra.gmra.mrb[96].mxu1 %v22289_v6  ;;  %7077 = vmatmul.mubr.f32.gmra.mrb[130].mxu0 %v18188_v43  ;;  %v22295_v6 = vand.u32 4294901760, %v16600_v46  ;;  %v22298_v54 = vand.u32 4294901760, %v22297_v39  ;;  %v18231_v8 = vand.u32 4294901760, %v18204_v2  ;;  %v22305_v46 = vld [vmem:[#allocation50_spill] sm:$0xff] }
 0x4df   :  { %22288 = vst [vmem:[#allocation19_spill] sm:$0xff] %v18202_v44  ;;  %13158 = vmatpush3.bf16.msra.mxu1 %v13157_v12  ;;  %5617 = vmatprep.mubr.f32.mxu1 %v22292_v17  ;;  %v18228_v17 = vpop.eup %14045  ;;  %v22306_v4 = vand.u32 4294901760, %v22305_v46  ;;  %v22316_v46 = vand.u32 4294901760, %v22194_v55 }
 0x4e0   :  { %7082 = vmatprep.mubr.f32.mxu0 %v18209_v41  ;;  %13160 = vmatprep.subr.bf16.mxu1 %v13159_v59  ;;  %v13161_v19 = vpack.c.bf16 %v22296_v16, %v22295_v6  ;;  %v18226_v12 = vpack.c.bf16 %v22300_v22, %v22298_v54  ;;  %22302 = vst [vmem:[#allocation3_spill] sm:$0xff] %v18231_v8  ;;  %v22304_v59 = vand.u32 4294901760, %v22181_v33  ;;  %v22307_v6 = vld [vmem:[#allocation39_spill] sm:$0xff]  ;;  %v18244_v54 = vpop.eup %14047  ;;  %v22311_v22 = vld [vmem:[#allocation14_spill] sm:$0xff] }
 0x4e1   :  { %13322 = vmatpush3.bf16.msra.mxu0 %v18202_v44  ;;  %v22308_v16 = vand.u32 4294901760, %v22307_v6  ;;  %14057 = vtanh.f32 %v22311_v22  ;;  %v22313_v33 = vld [vmem:[#allocation46_spill] sm:$0xff]  ;;  %v22317_v6 = vld [vmem:[#allocation101_spill] sm:$0xff]  ;;  %v18266_v44 = vpop.eup %14049 }
 0x4e2   :  { %22301 = vst [vmem:[#allocation79_spill] sm:$0xff] %v18226_v12  ;;  %v13163_v18 = vpack.c.bf16 %v22304_v59, %v22303_v63  ;;  %5620 = vmatmul.mubr.f32.gmra.mrb[98].mxu1 %v22310_v36  ;;  %7084 = vmatmul.mubr.f32.gmra.mrb[132].mxu0 %v18216_v14  ;;  %14059 = vtanh.f32 %v22313_v33  ;;  %v18253_v63 = vand.u32 4294901760, %v18228_v17  ;;  %v22315_v59 = vand.u32 4294901760, %v22195_v34  ;;  %v22319_v36 = vld [vmem:[#allocation58_spill] sm:$0xff] }
 0x4e3   :  { %v18242_v39 = vpack.c.bf16 %v22308_v16, %v22306_v4  ;;  %5626 = vmatprep.mubr.f32.mxu1 %v22312_v13  ;;  %7089 = vmatprep.mubr.f32.mxu0 %v18231_v8  ;;  %v22318_v16 = vand.u32 4294901760, %v22317_v6  ;;  %v22320_v22 = vand.u32 4294901760, %v22319_v36  ;;  %v22323_v33 = vand.u32 4294901760, %v22200_v3  ;;  %v22327_v6 = vld [vmem:[#allocation85_spill] sm:$0xff]  ;;  %v22332_v3 = vld [vmem:[#allocation118_spill] sm:$0xff] }
 0x4e4   :  { %13162 = vmatpush3.bf16.msra.mxu1 %v13161_v19  ;;  %22314 = vst [vmem:[#allocation97_spill] sm:$0xff] %v18253_v63  ;;  %v13165_v4 = vpack.c.bf16 %v22316_v46, %v22315_v59  ;;  %13324 = vmatprep.subr.bf16.mxu0 %v18226_v12  ;;  %v18269_v19 = vand.u32 4294901760, %v18244_v54  ;;  %v22324_v34 = vand.u32 4294901760, %v22199_v32  ;;  %v22325_v59 = vld [vmem:[#allocation133_spill] sm:$0xff]  ;;  %v22328_v12 = vand.u32 4294901760, %v22327_v6  ;;  %v22333_v32 = vld [vmem:[#allocation152_spill] sm:$0xff] }
 0x4e5   :  { %22309 = vst [vmem:[#allocation4_spill] sm:$0xff] %v18242_v39  ;;  %v18264_v13 = vpack.c.bf16 %v22320_v22, %v22318_v16  ;;  %13164 = vmatprep.subr.bf16.mxu1 %v13163_v18  ;;  %13326 = vmatpush3.bf16.msra.mxu0 %v18242_v39  ;;  %v22326_v46 = vand.u32 4294901760, %v22325_v59  ;;  %v18282_v16 = vpop.eup %14051  ;;  %v22330_v22 = vld [vmem:[#allocation93_spill] sm:$0xff]  ;;  %v22331_v18 = vld [vmem:[#allocation142_spill] sm:$0xff] }
 0x4e6   :  { %22322 = vst [vmem:[#allocation115_spill] sm:$0xff] %v18269_v19  ;;  %v13167_v55 = vpack.c.bf16 %v22324_v34, %v22323_v33  ;;  %5629 = vmatmul.mubr.f32.gmra.mrb[100].mxu1 %v22330_v22  ;;  %7091 = vmatmul.mubr.f32.gmra.mrb[134].mxu0 %v18253_v63  ;;  %14061 = vtanh.f32 %v22331_v18  ;;  %v18291_v33 = vand.u32 4294901760, %v18266_v44  ;;  %v22336_v34 = vand.u32 4294901760, %v22204_v7  ;;  %v22339_v22 = vld [vmem:[#allocation17_spill] sm:$0xff]  ;;  %v18304_v39 = vpop.eup %14053 }
 0x4e7   :  { %22321 = vst [vmem:[#allocation87_spill] sm:$0xff] %v18264_v13  ;;  %v18280_v36 = vpack.c.bf16 %v22328_v12, %v22326_v46  ;;  %5635 = vmatprep.mubr.f32.mxu1 %v22332_v3  ;;  %7096 = vmatprep.mubr.f32.mxu0 %v18269_v19  ;;  %14063 = vtanh.f32 %v22333_v32  ;;  %v22335_v12 = vand.u32 4294901760, %v22205_v42  ;;  %v22337_v46 = vld [vmem:[#allocation55_spill] sm:$0xff]  ;;  %v22340_v18 = vand.u32 4294901760, %v22339_v22  ;;  %22342 = vst [vmem:[#allocation22_spill] sm:$0xff] %v18304_v39 }
 0x4e8   :  { %22334 = vst [vmem:[#allocation117_spill] sm:$0xff] %v18291_v33  ;;  %13166 = vmatpush3.bf16.msra.mxu1 %v13165_v4  ;;  %13328 = vmatprep.subr.bf16.mxu0 %v18264_v13  ;;  %v22338_v6 = vand.u32 4294901760, %v22337_v46  ;;  %v18307_v32 = vand.u32 4294901760, %v18282_v16  ;;  %v22344_v4 = vand.u32 4294901760, %v22210_v9  ;;  %v22345_v42 = vand.u32 4294901760, %v22209_v27  ;;  %v22348_v46 = vld [vmem:[#allocation120_spill] sm:$0xff] }
 0x4e9   :  { %22329 = vst [vmem:[#allocation103_spill] sm:$0xff] %v18280_v36  ;;  %v13169_v59 = vpack.c.bf16 %v22336_v34, %v22335_v12  ;;  %13168 = vmatprep.subr.bf16.mxu1 %v13167_v55  ;;  %13330 = vmatpush3.bf16.msra.mxu0 %v18280_v36  ;;  %v22346_v12 = vld [vmem:[#allocation20_spill] sm:$0xff]  ;;  %v22349_v13 = vand.u32 4294901760, %v22348_v46  ;;  %v22351_v55 = vld [vmem:[#allocation149_spill] sm:$0xff]  ;;  %v22352_v9 = vld [vmem:[#allocation38_spill] sm:$0xff] }
 0x4ea   :  { %v18302_v3 = vpack.c.bf16 %v22340_v18, %v22338_v6  ;;  %22343 = vst [vmem:[#allocation77_spill] sm:$0xff] %v18307_v32  ;;  %v13171_v7 = vpack.c.bf16 %v22345_v42, %v22344_v4  ;;  %v22347_v34 = vand.u32 4294901760, %v22346_v12  ;;  %v8208_v6 = vld [vmem:[%s20488_s2] sm:$0xff]  ;;  %v18323_v18 = vpop.eup %14055  ;;  %14065 = vtanh.f32 %v22351_v55  ;;  %5638 = vmatmul.mubr.f32.gmra.mrb[102].mxu1 %v22352_v9  ;;  %7098 = vmatmul.mubr.f32.gmra.mrb[136].mxu0 %v18291_v33  ;;  %v22353_v27 = vld [vmem:[#allocation121_spill] sm:$0xff]  ;;  %v22359_v55 = vld [vmem:[#allocation147_spill] sm:$0xff] }
 0x4eb   :  { %14067 = vtanh.f32 %v17815_v37  ;;  %5644 = vmatprep.mubr.f32.mxu1 %v22353_v27  ;;  %7103 = vmatprep.mubr.f32.mxu0 %v18307_v32  ;;  %v22355_v4 = vand.u32 4294901760, %v22215_v29  ;;  %v22356_v42 = vand.u32 4294901760, %v22214_v25  ;;  %v22360_v9 = vand.u32 4294901760, %v22359_v55  ;;  %v18345_v36 = vpop.eup %14057 }
 0x4ec   :  { %22341 = vst [vmem:[#allocation125_spill] sm:$0xff] %v18302_v3  ;;  %v18318_v22 = vpack.c.bf16 %v22349_v13, %v22347_v34  ;;  %v18332_v13 = vand.u32 4294901760, %v18304_v39  ;;  %13170 = vmatpush3.bf16.msra.mxu1 %v13169_v59  ;;  %13332 = vmatprep.subr.bf16.mxu0 %v18302_v3  ;;  %v22357_v34 = vld [vmem:[#allocation146_spill] sm:$0xff]  ;;  %v8210_v27 = vrot.slane %v8208_v6, 4  ;;  %v18348_v39 = vand.u32 4294901760, %v18323_v18  ;;  %v22370_v3 = vld [vmem:[#allocation113_spill] sm:$0xff] }
 0x4ed   :  { %v13173_v12 = vpack.c.bf16 %v22356_v42, %v22355_v4  ;;  %v22358_v46 = vand.u32 4294901760, %v22357_v34  ;;  %13172 = vmatprep.subr.bf16.mxu1 %v13171_v7  ;;  %v22363_v29 = vand.u32 4294901760, %v22218_v52  ;;  %v22364_v25 = vand.u32 4294901760, %v22217_v53  ;;  %v22365_v4 = vld [vmem:[#allocation148_spill] sm:$0xff]  ;;  %v22367_v34 = vld [vmem:[#allocation151_spill] sm:$0xff]  ;;  %v22371_v7 = vld [vmem:[#allocation153_spill] sm:$0xff] }
 0x4ee   :  { %22350 = vst [vmem:[#allocation26_spill] sm:$0xff] %v18318_v22  ;;  %22354 = vst [vmem:[#allocation92_spill] sm:$0xff] %v18332_v13  ;;  %13334 = vmatpush3.bf16.msra.mxu0 %v18318_v22  ;;  %v22366_v42 = vand.u32 4294901760, %v22365_v4  ;;  %v22368_v55 = vand.u32 4294901760, %v22367_v34  ;;  %5647 = vmatmul.mubr.f32.gmra.mrb[104].mxu1 %v22370_v3  ;;  %14069 = vtanh.f32 %v22371_v7  ;;  %v22372_v52 = vld [vmem:[#allocation68_spill] sm:$0xff]  ;;  %v22373_v53 = vld [vmem:[#allocation2_spill] sm:$0xff]  ;;  %vm8211_vm1 = vcmp.ne.s32.totalorder %v8208_v6, %v8210_v27 }
 0x4ef   :  { %v18343_v37 = vpack.c.bf16 %v22360_v9, %v22358_v46  ;;  %22362 = vst [vmem:[#allocation86_spill] sm:$0xff] %v18348_v39  ;;  %v13175_v59 = vpack.c.bf16 %v22364_v25, %v22363_v29  ;;  %v18361_v9 = vpop.eup %14059  ;;  %7105 = vmatmul.mubr.f32.gmra.mrb[138].mxu0 %v18332_v13  ;;  %5653 = vmatprep.mubr.f32.mxu1 %v22372_v52  ;;  %v8209_v29 = vcvt.s32.f32 %v22373_v53  ;;  %v22374_v25 = vld [vmem:[#allocation159_spill] sm:$0xff]  ;;  %v18371_v4 = vand.u32 4294901760, %v18345_v36  ;;  %v22383_v27 = vld [vmem:[#allocation137_spill] sm:$0xff] }
 0x4f0   :  { %v18359_v46 = vpack.c.bf16 %v22368_v55, %v22366_v42  ;;  %7110 = vmatprep.mubr.f32.mxu0 %v18348_v39  ;;  %14071 = vtanh.f32 %v22374_v25  ;;  %13174 = vmatpush3.bf16.msra.mxu1 %v13173_v12  ;;  %v22376_v42 = vand.u32 4294901760, %v22221_v26  ;;  %v22377_v3 = vand.u32 4294901760, %v22220_v45  ;;  %v18378_v55 = vpop.eup %14061  ;;  %v22381_v45 = vld [vmem:[#allocation64_spill] sm:$0xff]  ;;  %v22382_v12 = vld [vmem:[#allocation158_spill] sm:$0xff] }
 0x4f1   :  { %22361 = vst [vmem:[#allocation31_spill] sm:$0xff] %v18343_v37  ;;  %22375 = vst [vmem:[#allocation34_spill] sm:$0xff] %v18371_v4  ;;  %13336 = vmatprep.subr.bf16.mxu0 %v18343_v37  ;;  %v18381_v7 = vand.u32 4294901760, %v18361_v9  ;;  %13176 = vmatprep.subr.bf16.mxu1 %v13175_v59  ;;  %v22379_v52 = vand.u32 4294901760, %v22224_v58  ;;  %v22380_v25 = vand.u32 4294901760, %v22223_v56  ;;  %v18388_v26 = vpop.eup %14063  ;;  %14073 = vtanh.f32 %v22382_v12  ;;  %v22384_v56 = vld [vmem:[#allocation163_spill] sm:$0xff] }
 0x4f2   :  { %22369 = vst [vmem:[#allocation99_spill] sm:$0xff] %v18359_v46  ;;  %v13177_v34 = vpack.c.bf16 %v22377_v3, %v22376_v42  ;;  %13338 = vmatpush3.bf16.msra.mxu0 %v18359_v46  ;;  %5656 = vmatmul.mubr.f32.gmra.mrb[106].mxu1 %v22381_v45  ;;  %v8212_v59 = vsel %vm8211_vm1, %v8209_v29, 16.0  ;;  %vm8219_vm2 = vcmp.eq.s32.totalorder %v8208_v6, 2  ;;  %14075 = vtanh.f32 %v22384_v56  ;;  %v22391_v56 = vld [vmem:[#allocation136_spill] sm:$0xff] }
 0x4f3   :  { %22378 = vst [vmem:[#allocation129_spill] sm:$0xff] %v18381_v7  ;;  %v13179_v53 = vpack.c.bf16 %v22380_v25, %v22379_v52  ;;  %7112 = vmatmul.mubr.f32.gmra.mrb[140].mxu0 %v18371_v4  ;;  %5662 = vmatprep.mubr.f32.mxu1 %v22383_v27  ;;  %v18399_v42 = vand.u32 4294901760, %v18378_v55  ;;  %v22386_v3 = vand.u32 4294901760, %v22229_v47  ;;  %v22387_v52 = vand.u32 4294901760, %v22228_v5 }
 0x4f4   :  { %7117 = vmatprep.mubr.f32.mxu0 %v18381_v7  ;;  %v18395_v58 = vpop.eup %14065  ;;  %13178 = vmatpush3.bf16.msra.mxu1 %v13177_v34  ;;  %v18409_v12 = vand.u32 4294901760, %v18388_v26  ;;  %v22389_v6 = vand.u32 4294901760, %v22226_v28  ;;  %v22390_v27 = vand.u32 4294901760, %v22227_v24  ;;  %v8213_v5 = vsub.f32 0.0, %v8212_v59 }
 0x4f5   :  { %22385 = vst [vmem:[#allocation128_spill] sm:$0xff] %v18399_v42  ;;  %v13181_v25 = vpack.c.bf16 %v22387_v52, %v22386_v3  ;;  %13340 = vmatprep.subr.bf16.mxu0 %v17991_v35  ;;  %v18406_v45 = vpop.eup %14067  ;;  %13180 = vmatprep.subr.bf16.mxu1 %v13179_v53  ;;  %v8220_v47 = vsel %vm8219_vm2, %v8209_v29, 16.0  ;;  %v22392_v3 = vld [vmem:[#allocation162_spill] sm:$0xff]  ;;  %v22393_v52 = vld [vmem:[#allocation11_spill] sm:$0xff]  ;;  %v18423_v28 = vand.u32 4294901760, %v18395_v58  ;;  %v22395_v24 = vand.u32 4294901760, %v22231_v23 }
 0x4f6   :  { %22388 = vst [vmem:[#allocation134_spill] sm:$0xff] %v18409_v12  ;;  %13342 = vmatpush3.bf16.msra.mxu0 %v18005_v31  ;;  %v13183_v34 = vpack.c.bf16 %v22390_v27, %v22389_v6  ;;  %5665 = vmatmul.mubr.f32.gmra.mrb[108].mxu1 %v22391_v56  ;;  %14077 = vtanh.f32 %v22392_v3  ;;  %v22396_v53 = vand.u32 4294901760, %v22232_v48  ;;  %v18433_v59 = vand.u32 4294901760, %v18406_v45  ;;  %v22398_v56 = vld [vmem:[#allocation69_spill] sm:$0xff]  ;;  %v22399_v48 = vld [vmem:[#allocation60_spill] sm:$0xff] }
 0x4f7   :  { %7119 = vmatmul.mubr.f32.gmra.mrb[142].mxu0 %v18399_v42  ;;  %5671 = vmatprep.mubr.f32.mxu1 %v22393_v52  ;;  %14079 = vtanh.f32 %v17972_v21  ;;  %22394 = vst [vmem:[#allocation84_spill] sm:$0xff] %v18423_v28  ;;  %v8221_v21 = vsub.f32 0.0, %v8220_v47  ;;  %v8215_v23 = vsel %vm8214_vm3, %v8213_v5, -inf  ;;  %v22402_v3 = vld [vmem:[#allocation49_spill] sm:$0xff]  ;;  %v22403_v52 = vld [vmem:[#allocation90_spill] sm:$0xff] }
 0x4f8   :  { %7124 = vmatprep.mubr.f32.mxu0 %v18409_v12  ;;  %13182 = vmatpush3.bf16.msra.mxu1 %v13181_v25  ;;  %v13185_v6 = vpack.c.bf16 %v22396_v53, %v22395_v24  ;;  %v18430_v29 = vpop.eup %14069  ;;  %22397 = vst [vmem:[#allocation72_spill] sm:$0xff] %v18433_v59  ;;  %14081 = vtanh.f32 %v17961_v15 }
 0x4f9   :  { %13344 = vmatprep.subr.bf16.mxu0 %v18015_v30  ;;  %13184 = vmatprep.subr.bf16.mxu1 %v13183_v34  ;;  %14083 = vtanh.f32 %v18019_v0  ;;  %v18446_v25 = vand.u32 4294901760, %v18430_v29  ;;  %v8227_v15 = vsel %vm8226_vm4, %v8221_v21, -inf  ;;  %v8222_v0 = vsel %vm8214_vm3, %v8221_v21, -inf  ;;  %v22406_v21 = vld [vmem:[#allocation78_spill] sm:$0xff] }
 0x4fa   :  { %13346 = vmatpush3.bf16.msra.mxu0 %v18017_v51  ;;  %v18436_v27 = vpop.eup %14071  ;;  %5674 = vmatmul.mubr.f32.gmra.mrb[110].mxu1 %v22398_v56  ;;  %14085 = vtanh.f32 %v18007_v62  ;;  %v22407_v62 = vld [vmem:[#allocation28_spill] sm:$0xff] }
 0x4fb   :  { %7126 = vmatmul.mubr.f32.gmra.mrb[144].mxu0 %v18423_v28  ;;  %5680 = vmatprep.mubr.f32.mxu1 %v22399_v48  ;;  %22400 = vst [vmem:[#allocation59_spill] sm:$0xff] %v18446_v25  ;;  %v18449_v34 = vpop.eup %14073  ;;  %v18452_v47 = vand.u32 4294901760, %v18436_v27  ;;  %14087 = vtanh.f32 %v18048_v38 }
 0x4fc   :  { %7131 = vmatprep.mubr.f32.mxu0 %v18433_v59  ;;  %13186 = vmatpush3.bf16.msra.mxu1 %v13185_v6  ;;  %v18455_v5 = vpop.eup %14075  ;;  %v18465_v24 = vand.u32 4294901760, %v18449_v34  ;;  %14089 = vtanh.f32 %v18037_v61  ;;  %v22413_v61 = vld [vmem:[#allocation32_spill] sm:$0xff] }
 0x4fd   :  { %13380 = vmatprep.subr.bf16.mxu0 %v18098_v1  ;;  %22401 = vst [vmem:[#allocation89_spill] sm:$0xff] %v18452_v47  ;;  %13220 = vmatprep.subr.bf16.mxu1 %v18098_v1  ;;  %v18470_v6 = vand.u32 4294901760, %v18455_v5  ;;  %14091 = vtanh.f32 %v18068_v57 }
 0x4fe   :  { %8216 = vmax.xlane.f32.xlu0 %v8215_v23  ;;  %5683 = vmatmul.mubr.f32.gmra.mrb[112].mxu1 %v22402_v3  ;;  %22404 = vst [vmem:[#allocation102_spill] sm:$0xff] %v18465_v24  ;;  %v22412_v3 = vld [vmem:[#allocation27_spill] sm:$0xff]  ;;  %14093 = vtanh.f32 %v18063_v40 }
 0x4ff   :  { %7133 = vmatmul.mubr.f32.gmra.mrb[146].mxu0 %v18446_v25  ;;  %5689 = vmatprep.mubr.f32.mxu1 %v22403_v52  ;;  %22405 = vst [vmem:[#allocation10_spill] sm:$0xff] %v18470_v6 }
 0x500   :  { %7138 = vmatprep.mubr.f32.mxu0 %v18452_v47  ;;  %8228 = vmax.xlane.f32.xlu1 %v8227_v15  ;;  %v18467_v53 = vpop.eup %14077 }
 0x501   :  { %v18472_v56 = vpop.eup %14079  ;;  %v18481_v38 = vand.u32 4294901760, %v18467_v53 }
 0x502   :  { %8223 = vmax.xlane.f32.xlu0 %v8222_v0  ;;  %5692 = vmatmul.mubr.f32.gmra.mrb[114].mxu1 %v22406_v21  ;;  %v18483_v23 = vpop.eup %14081  ;;  %v18486_v48 = vand.u32 4294901760, %v18472_v56 }
 0x503   :  { %7140 = vmatmul.mubr.f32.gmra.mrb[148].mxu0 %v18465_v24  ;;  %5698 = vmatprep.mubr.f32.mxu1 %v22407_v62  ;;  %22408 = vst [vmem:[#allocation107_spill] sm:$0xff] %v18481_v38  ;;  %22409 = vst [vmem:[#allocation74_spill] sm:$0xff] %v18483_v23  ;;  %v18488_v15 = vpop.eup %14083  ;;  %v18496_v57 = vand.u32 4294901760, %v18483_v23  ;;  %v22418_v62 = vld [vmem:[#allocation98_spill] sm:$0xff]  ;;  %v22424_v23 = vld [vmem:[#allocation109_spill] sm:$0xff] }
 0x504   :  { %7145 = vmatprep.mubr.f32.mxu0 %v18470_v6  ;;  %22410 = vst [vmem:[#allocation54_spill] sm:$0xff] %v18486_v48  ;;  %22411 = vst [vmem:[#allocation21_spill] sm:$0xff] %v18488_v15  ;;  %v18498_v0 = vpop.eup %14085  ;;  %v18501_v52 = vand.u32 4294901760, %v18488_v15 }
 0x505   :  { %22414 = vst [vmem:[#allocation24_spill] sm:$0xff] %v18496_v57  ;;  %22415 = vst [vmem:[#allocation131_spill] sm:$0xff] %v18498_v0  ;;  %v18503_v21 = vpop.eup %14087  ;;  %v18510_v40 = vand.u32 4294901760, %v18498_v0 }
 0x506   :  { %5701 = vmatmul.mubr.f32.gmra.mrb[116].mxu1 %v22412_v3  ;;  %22416 = vst [vmem:[#allocation71_spill] sm:$0xff] %v18501_v52  ;;  %22417 = vst [vmem:[#allocation50_spill] sm:$0xff] %v18503_v21  ;;  %v22419_v3 = vld [vmem:[#allocation62_spill] sm:$0xff]  ;;  %v18515_v1 = vand.u32 4294901760, %v18503_v21  ;;  %v18533_v21 = vsub.f32 %v18134_v11, %v18145_v50  ;;  %v18549_v11 = vsub.f32 %v18147_v10, %v18167_v20  ;;  %v22440_v10 = vld [vmem:[#allocation8_spill] sm:$0xff] }
 0x507   :  { %7147 = vmatmul.mubr.f32.gmra.mrb[150].mxu0 %v18481_v38  ;;  %5707 = vmatprep.mubr.f32.mxu1 %v22413_v61  ;;  %22420 = vst [vmem:[#allocation39_spill] sm:$0xff] %v18510_v40  ;;  %v18512_v61 = vpop.eup %14089  ;;  %v22445_v20 = vld [vmem:[#allocation52_spill] sm:$0xff] }
 0x508   :  { %7152 = vmatprep.mubr.f32.mxu0 %v18486_v48  ;;  %22421 = vst [vmem:[#allocation82_spill] sm:$0xff] %v18512_v61  ;;  %22422 = vst [vmem:[#allocation14_spill] sm:$0xff] %v18515_v1  ;;  %v18517_v15 = vpop.eup %14091 }
 0x509   :  { %22423 = vst [vmem:[#allocation127_spill] sm:$0xff] %v18517_v15  ;;  %v18526_v0 = vpop.eup %14093  ;;  %22429 = vst [vmem:[#allocation133_spill] sm:$0xff] %v18533_v21 }
 0x50a   :  { %5710 = vmatmul.mubr.f32.gmra.mrb[118].mxu1 %v22418_v62  ;;  %v22425_v62 = vld [vmem:[#allocation91_spill] sm:$0xff]  ;;  %22427 = vst [vmem:[#allocation101_spill] sm:$0xff] %v18526_v0  ;;  %22434 = vst [vmem:[#allocation142_spill] sm:$0xff] %v18549_v11 }
 0x50b   :  { %7154 = vmatmul.mubr.f32.gmra.mrb[152].mxu0 %v18496_v57  ;;  %5716 = vmatprep.mubr.f32.mxu1 %v22419_v3  ;;  %v18524_v3 = vand.u32 4294901760, %v18512_v61  ;;  %v22430_v57 = vld [vmem:[#allocation83_spill] sm:$0xff]  ;;  %v18544_v61 = vand.u32 4294901760, %v18526_v0  ;;  %v21165_v0 = vand.u32 4294901760, %v18549_v11 }
 0x50c   :  { %7159 = vmatprep.mubr.f32.mxu0 %v18501_v52  ;;  %v18529_v52 = vand.u32 4294901760, %v18517_v15  ;;  %v21159_v15 = vand.u32 4294901760, %v18533_v21 }
 0x50d   :  { %22426 = vst [vmem:[#allocation46_spill] sm:$0xff] %v18524_v3  ;;  %22433 = vst [vmem:[#allocation93_spill] sm:$0xff] %v18544_v61 }
 0x50e   :  { %5719 = vmatmul.mubr.f32.gmra.mrb[120].mxu1 %v22424_v23  ;;  %22428 = vst [vmem:[#allocation58_spill] sm:$0xff] %v18529_v52  ;;  %v22431_v23 = vld [vmem:[#allocation18_spill] sm:$0xff] }
 0x50f   :  { %7161 = vmatmul.mubr.f32.gmra.mrb[154].mxu0 %v18510_v40  ;;  %5725 = vmatprep.mubr.f32.mxu1 %v22425_v62  ;;  %v18541_v62 = vsub.f32 %v18142_v60, %v18155_v49  ;;  %v22437_v49 = vld [vmem:[#allocation40_spill] sm:$0xff] }
 0x510   :  { %7166 = vmatprep.mubr.f32.mxu0 %v18515_v1  ;;  %v18559_v50 = vsub.f32 %v22437_v49, %v18188_v43  ;;  %v22443_v49 = vld [vmem:[#allocation67_spill] sm:$0xff] }
 0x511   :  { %22432 = vst [vmem:[#allocation85_spill] sm:$0xff] %v18541_v62  ;;  %v21164_v60 = vand.u32 4294901760, %v18541_v62  ;;  %v18575_v43 = vsub.f32 %v22443_v49, %v18216_v14 }
 0x512   :  { %5728 = vmatmul.mubr.f32.gmra.mrb[122].mxu1 %v22430_v57  ;;  %v22435_v57 = vld [vmem:[#allocation9_spill] sm:$0xff]  ;;  %22438 = vst [vmem:[#allocation118_spill] sm:$0xff] %v18559_v50 }
 0x513   :  { %7168 = vmatmul.mubr.f32.gmra.mrb[156].mxu0 %v18524_v3  ;;  %5734 = vmatprep.mubr.f32.mxu1 %v22431_v23  ;;  %v22436_v23 = vld [vmem:[#allocation144_spill] sm:$0xff]  ;;  %22444 = vst [vmem:[#allocation55_spill] sm:$0xff] %v18575_v43  ;;  %v21170_v49 = vand.u32 4294901760, %v18575_v43 }
 0x514   :  { %7173 = vmatprep.mubr.f32.mxu0 %v18529_v52  ;;  %v22439_v52 = vld [vmem:[#allocation116_spill] sm:$0xff] }
 0x516   :  { %5737 = vmatmul.mubr.f32.gmra.mrb[124].mxu1 %v22435_v57  ;;  %v18567_v57 = vsub.f32 %v22440_v10, %v18209_v41  ;;  %v22448_v10 = vld [vmem:[#allocation7_spill] sm:$0xff] }
 0x517   :  { %7175 = vmatmul.mubr.f32.gmra.mrb[158].mxu0 %v18544_v61  ;;  %5743 = vmatprep.mubr.f32.mxu1 %v22436_v23  ;;  %v22442_v23 = vld [vmem:[#allocation88_spill] sm:$0xff] }
 0x518   :  { %7552 = vmatprep.mubr.f32.mxu0 %v21159_v15  ;;  %22441 = vst [vmem:[#allocation152_spill] sm:$0xff] %v18567_v57  ;;  %v21166_v15 = vand.u32 4294901760, %v18559_v50 }
 0x51a   :  { %5746 = vmatmul.mubr.f32.gmra.mrb[126].mxu1 %v22439_v52  ;;  %v18580_v52 = vsub.f32 %v18204_v2, %v18231_v8  ;;  %v18595_v2 = vsub.f32 %v18228_v17, %v18253_v63 }
 0x51b   :  { %7556 = vmatmul.mubr.f32.vlgmr.msra.gmra.mrb[160].mxu0 %v21164_v60  ;;  %6185 = vmatprep.mubr.f32.mxu1 %v22442_v23  ;;  %v22447_v60 = vld [vmem:[#allocation138_spill] sm:$0xff]  ;;  %v21168_v23 = vand.u32 4294901760, %v18567_v57 }
 0x51c   :  { %7563 = vmatprep.mubr.f32.mxu0 %v21165_v0  ;;  %13382 = vmatpush3.bf16.msra.mxu0 %v22445_v20  ;;  %22446 = vst [vmem:[#allocation17_spill] sm:$0xff] %v18580_v52  ;;  %v22449_v0 = vld [vmem:[#allocation96_spill] sm:$0xff]  ;;  %22450 = vst [vmem:[#allocation20_spill] sm:$0xff] %v18595_v2  ;;  %v21176_v17 = vand.u32 4294901760, %v18595_v2 }
 0x51d   :  { %13384 = vmatprep.subr.bf16.mxu0 %v22447_v60 }
 0x51e   :  { %6187 = vmatmul.mubr.f32.vlgmr.msra.gmra.mrb[128].mxu1 %v22448_v10  ;;  %v21171_v10 = vand.u32 4294901760, %v18580_v52 }
 0x51f   :  { %7567 = vmatmul.mubr.f32.gmra.mrb[162].mxu0 %v21166_v15  ;;  %13222 = vmatpush3.bf16.msra.mxu1 %v22445_v20  ;;  %v18600_v15 = vsub.f32 %v18244_v54, %v18269_v19  ;;  %v22452_v20 = vld [vmem:[#allocation19_spill] sm:$0xff]  ;;  %v18613_v54 = vsub.f32 %v18266_v44, %v18291_v33 }
 0x520   :  { %6192 = vmatprep.mubr.f32.mxu1 %v22449_v0  ;;  %7574 = vmatprep.mubr.f32.mxu0 %v21168_v23  ;;  %v22453_v0 = vld [vmem:[#allocation95_spill] sm:$0xff]  ;;  %v22454_v23 = vld [vmem:[#allocation122_spill] sm:$0xff] }
 0x521   :  { %13224 = vmatprep.subr.bf16.mxu1 %v22447_v60  ;;  %22451 = vst [vmem:[#allocation120_spill] sm:$0xff] %v18600_v15  ;;  %13386 = vmatpush3.bf16.msra.mxu0 %v22452_v20  ;;  %22455 = vst [vmem:[#allocation149_spill] sm:$0xff] %v18613_v54  ;;  %v22456_v60 = vld [vmem:[#allocation79_spill] sm:$0xff]  ;;  %v21182_v44 = vand.u32 4294901760, %v18613_v54 }
 0x522   :  { %6194 = vmatmul.mubr.f32.gmra.mrb[130].mxu1 %v22453_v0  ;;  %13388 = vmatprep.subr.bf16.mxu0 %v22456_v60  ;;  %v21177_v0 = vand.u32 4294901760, %v18600_v15 }
 0x523   :  { %7578 = vmatmul.mubr.f32.gmra.mrb[164].mxu0 %v21170_v49  ;;  %6199 = vmatprep.mubr.f32.mxu1 %v22454_v23  ;;  %v18619_v49 = vsub.f32 %v18282_v16, %v18307_v32  ;;  %v22458_v23 = vld [vmem:[#allocation4_spill] sm:$0xff]  ;;  %v22461_v16 = vld [vmem:[#allocation22_spill] sm:$0xff] }
 0x524   :  { %7585 = vmatprep.mubr.f32.mxu0 %v21171_v10  ;;  %13226 = vmatpush3.bf16.msra.mxu1 %v22452_v20  ;;  %v22459_v10 = vld [vmem:[#allocation114_spill] sm:$0xff]  ;;  %v18633_v32 = vsub.f32 %v22461_v16, %v18332_v13 }
 0x525   :  { %22457 = vst [vmem:[#allocation38_spill] sm:$0xff] %v18619_v49  ;;  %13228 = vmatprep.subr.bf16.mxu1 %v22456_v60  ;;  %13390 = vmatpush3.bf16.msra.mxu0 %v22458_v23  ;;  %v22460_v20 = vld [vmem:[#allocation110_spill] sm:$0xff]  ;;  %v22463_v60 = vld [vmem:[#allocation87_spill] sm:$0xff] }
 0x526   :  { %6201 = vmatmul.mubr.f32.gmra.mrb[132].mxu1 %v22459_v10  ;;  %22462 = vst [vmem:[#allocation121_spill] sm:$0xff] %v18633_v32  ;;  %13392 = vmatprep.subr.bf16.mxu0 %v22463_v60  ;;  %v21183_v10 = vand.u32 4294901760, %v18619_v49  ;;  %v21189_v16 = vand.u32 4294901760, %v18633_v32 }
 0x527   :  { %7589 = vmatmul.mubr.f32.gmra.mrb[166].mxu0 %v21176_v17  ;;  %6206 = vmatprep.mubr.f32.mxu1 %v22460_v20  ;;  %v18639_v17 = vsub.f32 %v18323_v18, %v18348_v39  ;;  %v22465_v20 = vld [vmem:[#allocation103_spill] sm:$0xff]  ;;  %v18652_v18 = vsub.f32 %v18345_v36, %v18371_v4  ;;  %v11301_v39 = vpop.f32.mrb[64].mxu0 }
 0x528   :  { %7596 = vmatprep.mubr.f32.mxu0 %v21177_v0  ;;  %13230 = vmatpush3.bf16.msra.mxu1 %v22458_v23  ;;  %v22466_v0 = vld [vmem:[#allocation132_spill] sm:$0xff] }
 0x529   :  { %22464 = vst [vmem:[#allocation146_spill] sm:$0xff] %v18639_v17  ;;  %13232 = vmatprep.subr.bf16.mxu1 %v22463_v60  ;;  %13394 = vmatpush3.bf16.msra.mxu0 %v22465_v20  ;;  %v22467_v23 = vld [vmem:[#allocation112_spill] sm:$0xff]  ;;  %22468 = vst [vmem:[#allocation147_spill] sm:$0xff] %v18652_v18  ;;  %v22469_v60 = vld [vmem:[#allocation125_spill] sm:$0xff] }
 0x52a   :  { %6208 = vmatmul.mubr.f32.gmra.mrb[134].mxu1 %v22466_v0  ;;  %13396 = vmatprep.subr.bf16.mxu0 %v22469_v60  ;;  %v21188_v0 = vand.u32 4294901760, %v18639_v17 }
 0x52b   :  { %7600 = vmatmul.mubr.f32.gmra.mrb[168].mxu0 %v21182_v44  ;;  %6213 = vmatprep.mubr.f32.mxu1 %v22467_v23  ;;  %v18659_v44 = vsub.f32 %v18361_v9, %v18381_v7  ;;  %v11302_v23 = vpop.f32.mrb[65].mxu0  ;;  %v21192_v9 = vand.u32 4294901760, %v18652_v18 }
 0x52c   :  { %7607 = vmatprep.mubr.f32.mxu0 %v21183_v10  ;;  %13234 = vmatpush3.bf16.msra.mxu1 %v22465_v20  ;;  %v22471_v10 = vld [vmem:[#allocation124_spill] sm:$0xff]  ;;  %v18666_v36 = vadd.f32 %v11302_v23, %v11301_v39  ;;  %v22473_v20 = vld [vmem:[#allocation61_spill] sm:$0xff]  ;;  %v11304_v7 = vpop.f32.mrb[66].mxu0  ;;  %v22478_v39 = vld [vmem:[#allocation135_spill] sm:$0xff] }
 0x52d   :  { %22470 = vst [vmem:[#allocation148_spill] sm:$0xff] %v18659_v44  ;;  %13236 = vmatprep.subr.bf16.mxu1 %v22469_v60  ;;  %13398 = vmatpush3.bf16.msra.mxu0 %v18318_v22  ;;  %v18674_v60 = vsub.f32 %v18378_v55, %v18399_v42  ;;  %v22476_v55 = vld [vmem:[#allocation126_spill] sm:$0xff] }
 0x52e   :  { %6215 = vmatmul.mubr.f32.gmra.mrb[136].mxu1 %v22471_v10  ;;  %22472 = vst [vmem:[#allocation151_spill] sm:$0xff] %v18666_v36  ;;  %13400 = vmatprep.subr.bf16.mxu0 %v18343_v37  ;;  %v11061_v10 = vpop.f32.mrb[32].mxu1  ;;  %v18698_v36 = vsub.f32 %v18395_v58, %v18423_v28  ;;  %v22482_v58 = vld [vmem:[#allocation75_spill] sm:$0xff] }
 0x52f   :  { %7611 = vmatmul.mubr.f32.gmra.mrb[170].mxu0 %v21189_v16  ;;  %6220 = vmatprep.mubr.f32.mxu1 %v22473_v20  ;;  %22474 = vst [vmem:[#allocation113_spill] sm:$0xff] %v18674_v60  ;;  %v18681_v20 = vsub.f32 %v18388_v26, %v18409_v12  ;;  %v11062_v23 = vpop.f32.mrb[33].mxu1  ;;  %v22479_v26 = vand.u32 4294901760, %v18659_v44 }
 0x530   :  { %7618 = vmatprep.mubr.f32.mxu0 %v21188_v0  ;;  %13238 = vmatpush3.bf16.msra.mxu1 %v18318_v22  ;;  %v11305_v0 = vpop.f32.mrb[67].mxu0  ;;  %v18688_v16 = vadd.f32 %v11062_v23, %v11061_v10  ;;  %22480 = vst [vmem:[#allocation159_spill] sm:$0xff] %v18698_v36 }
 0x531   :  { %22475 = vst [vmem:[#allocation153_spill] sm:$0xff] %v18681_v20  ;;  %13240 = vmatprep.subr.bf16.mxu1 %v18343_v37  ;;  %13402 = vmatpush3.bf16.msra.mxu0 %v18359_v46  ;;  %v18690_v22 = vadd.f32 %v11305_v0, %v11304_v7  ;;  %v21195_v37 = vand.u32 4294901760, %v18674_v60  ;;  %v11307_v10 = vpop.f32.mrb[68].mxu0  ;;  %v18705_v0 = vsub.f32 %v18406_v45, %v18433_v59  ;;  %v22484_v7 = vld [vmem:[#allocation143_spill] sm:$0xff]  ;;  %v22485_v45 = vand.u32 4294901760, %v18681_v20 }
 0x532   :  { %6222 = vmatmul.mubr.f32.gmra.mrb[138].mxu1 %v22476_v55  ;;  %13404 = vmatprep.subr.bf16.mxu0 %v17991_v35  ;;  %v11064_v55 = vpop.f32.mrb[34].mxu1  ;;  %v11308_v23 = vpop.f32.mrb[69].mxu0 }
 0x533   :  { %7622 = vmatmul.mubr.f32.gmra.mrb[172].mxu0 %v21192_v9  ;;  %22477 = vst [vmem:[#allocation68_spill] sm:$0xff] %v18690_v22  ;;  %6227 = vmatprep.mubr.f32.mxu1 %v22478_v39  ;;  %22481 = vst [vmem:[#allocation64_spill] sm:$0xff] %v18705_v0  ;;  %v11065_v39 = vpop.f32.mrb[35].mxu1  ;;  %v18714_v9 = vadd.f32 %v11308_v23, %v11307_v10  ;;  %v22489_v23 = vld [vmem:[#allocation12_spill] sm:$0xff] }
 0x534   :  { %7629 = vmatprep.mubr.f32.mxu0 %v22479_v26  ;;  %13242 = vmatpush3.bf16.msra.mxu1 %v18359_v46  ;;  %v18712_v26 = vadd.f32 %v11065_v39, %v11064_v55  ;;  %v18722_v46 = vsub.f32 %v18430_v29, %v18446_v25  ;;  %v11310_v55 = vpop.f32.mrb[70].mxu0  ;;  %v22488_v39 = vld [vmem:[#allocation140_spill] sm:$0xff] }
 0x535   :  { %13244 = vmatprep.subr.bf16.mxu1 %v17991_v35  ;;  %13406 = vmatpush3.bf16.msra.mxu0 %v18005_v31  ;;  %22483 = vst [vmem:[#allocation158_spill] sm:$0xff] %v18714_v9  ;;  %v13283_v29 = vpack.c.bf16 %v22489_v23, %v22488_v39  ;;  %v22490_v35 = vld [vmem:[#allocation141_spill] sm:$0xff] }
 0x536   :  { %6229 = vmatmul.mubr.f32.gmra.mrb[140].mxu1 %v22482_v58  ;;  %22486 = vst [vmem:[#allocation137_spill] sm:$0xff] %v18722_v46  ;;  %13408 = vmatprep.subr.bf16.mxu0 %v18015_v30  ;;  %v11067_v58 = vpop.f32.mrb[36].mxu1  ;;  %v21204_v22 = vand.u32 4294901760, %v18722_v46 }
 0x537   :  { %7633 = vmatmul.mubr.f32.gmra.mrb[174].mxu0 %v21195_v37  ;;  %6234 = vmatprep.mubr.f32.mxu1 %v22484_v7  ;;  %v18729_v7 = vsub.f32 %v18436_v27, %v18452_v47  ;;  %v11311_v37 = vpop.f32.mrb[71].mxu0  ;;  %v22493_v27 = vld [vmem:[#allocation13_spill] sm:$0xff]  ;;  %v18748_v47 = vsub.f32 %v18449_v34, %v18465_v24 }
 0x538   :  { %7640 = vmatprep.mubr.f32.mxu0 %v22485_v45  ;;  %13246 = vmatpush3.bf16.msra.mxu1 %v18005_v31  ;;  %v11068_v45 = vpop.f32.mrb[37].mxu1  ;;  %v22491_v31 = vand.u32 4294901760, %v18698_v36  ;;  %v18740_v10 = vadd.f32 %v11311_v37, %v11310_v55  ;;  %v11313_v25 = vpop.f32.mrb[72].mxu0  ;;  %v18754_v37 = vsub.f32 %v18455_v5, %v18470_v6 }
 0x539   :  { %22487 = vst [vmem:[#allocation163_spill] sm:$0xff] %v18729_v7  ;;  %13248 = vmatprep.subr.bf16.mxu1 %v18015_v30  ;;  %13410 = vmatpush3.bf16.msra.mxu0 %v18017_v51  ;;  %v18738_v9 = vadd.f32 %v11068_v45, %v11067_v58  ;;  %v22494_v30 = vand.u32 4294901760, %v18705_v0  ;;  %22495 = vst [vmem:[#allocation162_spill] sm:$0xff] %v18748_v47  ;;  %v11314_v55 = vpop.f32.mrb[73].mxu0  ;;  %v21211_v5 = vand.u32 4294901760, %v18748_v47 }
 0x53a   :  { %6236 = vmatmul.mubr.f32.gmra.mrb[142].mxu1 %v22490_v35  ;;  %22492 = vst [vmem:[#allocation136_spill] sm:$0xff] %v18740_v10  ;;  %v11070_v35 = vpop.f32.mrb[38].mxu1  ;;  %22496 = vst [vmem:[#allocation11_spill] sm:$0xff] %v18754_v37  ;;  %v18761_v45 = vadd.f32 %v11314_v55, %v11313_v25  ;;  %v21212_v10 = vand.u32 4294901760, %v18754_v37  ;;  %v22502_v55 = vld [vmem:[#allocation76_spill] sm:$0xff] }
 0x53b   :  { %7644 = vmatmul.mubr.f32.gmra.mrb[176].mxu0 %v22491_v31  ;;  %6241 = vmatprep.mubr.f32.mxu1 %v22493_v27  ;;  %v21203_v31 = vand.u32 4294901760, %v18729_v7  ;;  %v11071_v58 = vpop.f32.mrb[39].mxu1  ;;  %v22499_v27 = vld [vmem:[#allocation73_spill] sm:$0xff] }
 0x53c   :  { %7651 = vmatprep.mubr.f32.mxu0 %v22494_v30  ;;  %13250 = vmatpush3.bf16.msra.mxu1 %v18017_v51  ;;  %v22497_v30 = vld [vmem:[#allocation63_spill] sm:$0xff]  ;;  %v18759_v34 = vadd.f32 %v11071_v58, %v11070_v35  ;;  %22498 = vst [vmem:[#allocation69_spill] sm:$0xff] %v18761_v45  ;;  %v11073_v51 = vpop.f32.mrb[40].mxu1  ;;  %v18774_v35 = vsub.f32 %v18472_v56, %v18486_v48  ;;  %v22506_v56 = vld [vmem:[#allocation24_spill] sm:$0xff]  ;;  %v22507_v45 = vld [vmem:[#allocation74_spill] sm:$0xff] }
 0x53d   :  { %13284 = vmatprep.subr.bf16.mxu1 %v13283_v29  ;;  %v18769_v29 = vsub.f32 %v18467_v53, %v18481_v38  ;;  %v11074_v25 = vpop.f32.mrb[41].mxu1  ;;  %v22505_v53 = vld [vmem:[#allocation70_spill] sm:$0xff]  ;;  %v18789_v48 = vsub.f32 %v22507_v45, %v22506_v56 }
 0x53e   :  { %6243 = vmatmul.mubr.f32.gmra.mrb[144].mxu1 %v22497_v30  ;;  %v11316_v30 = vpop.f32.mrb[74].mxu0  ;;  %22501 = vst [vmem:[#allocation49_spill] sm:$0xff] %v18774_v35  ;;  %v21215_v6 = vand.u32 4294901760, %v18774_v35  ;;  %v22515_v45 = vld [vmem:[#allocation30_spill] sm:$0xff] }
 0x53f   :  { %7655 = vmatmul.mubr.f32.gmra.mrb[178].mxu0 %v21204_v22  ;;  %6248 = vmatprep.mubr.f32.mxu1 %v22499_v27  ;;  %22500 = vst [vmem:[#allocation60_spill] sm:$0xff] %v18769_v29  ;;  %v11317_v58 = vpop.f32.mrb[75].mxu0  ;;  %v18779_v27 = vadd.f32 %v11074_v25, %v11073_v51  ;;  %v21216_v22 = vand.u32 4294901760, %v18769_v29  ;;  %22508 = vst [vmem:[#allocation28_spill] sm:$0xff] %v18789_v48  ;;  %v11076_v38 = vpop.f32.mrb[42].mxu1  ;;  %v22510_v51 = vld [vmem:[#allocation21_spill] sm:$0xff] }
 0x540   :  { %7662 = vmatprep.mubr.f32.mxu0 %v21203_v31  ;;  %v18781_v31 = vadd.f32 %v11317_v58, %v11316_v30  ;;  %v11077_v30 = vpop.f32.mrb[43].mxu1  ;;  %v21221_v56 = vand.u32 4294901760, %v18789_v48 }
 0x541   :  { %22503 = vst [vmem:[#allocation90_spill] sm:$0xff] %v18779_v27 }
 0x542   :  { %6250 = vmatmul.mubr.f32.gmra.mrb[146].mxu1 %v22502_v55  ;;  %22504 = vst [vmem:[#allocation78_spill] sm:$0xff] %v18781_v31  ;;  %v11319_v55 = vpop.f32.mrb[76].mxu0 }
 0x543   :  { %7666 = vmatmul.mubr.f32.gmra.mrb[180].mxu0 %v21211_v5  ;;  %6255 = vmatprep.mubr.f32.mxu1 %v22505_v53  ;;  %v22509_v5 = vld [vmem:[#allocation71_spill] sm:$0xff]  ;;  %v11320_v58 = vpop.f32.mrb[77].mxu0  ;;  %v22512_v53 = vld [vmem:[#allocation25_spill] sm:$0xff] }
 0x544   :  { %7673 = vmatprep.mubr.f32.mxu0 %v21212_v10  ;;  %v18794_v25 = vsub.f32 %v22510_v51, %v22509_v5  ;;  %v18799_v10 = vadd.f32 %v11077_v30, %v11076_v38  ;;  %v18801_v31 = vadd.f32 %v11320_v58, %v11319_v55  ;;  %v22516_v51 = vld [vmem:[#allocation131_spill] sm:$0xff]  ;;  %v11079_v27 = vpop.f32.mrb[44].mxu1  ;;  %v22518_v38 = vld [vmem:[#allocation50_spill] sm:$0xff] }
 0x545   :  { %v18809_v5 = vsub.f32 %v22516_v51, %v18510_v40  ;;  %v18814_v30 = vsub.f32 %v22518_v38, %v18515_v1  ;;  %v11080_v55 = vpop.f32.mrb[45].mxu1  ;;  %v22523_v51 = vld [vmem:[#allocation111_spill] sm:$0xff]  ;;  %v22524_v38 = vld [vmem:[#allocation82_spill] sm:$0xff] }
 0x546   :  { %22511 = vst [vmem:[#allocation27_spill] sm:$0xff] %v18794_v25  ;;  %6257 = vmatmul.mubr.f32.gmra.mrb[148].mxu1 %v22512_v53  ;;  %22513 = vst [vmem:[#allocation32_spill] sm:$0xff] %v18799_v10  ;;  %v11322_v53 = vpop.f32.mrb[78].mxu0  ;;  %v21222_v24 = vand.u32 4294901760, %v18794_v25  ;;  %v18829_v1 = vsub.f32 %v22524_v38, %v18524_v3  ;;  %v22532_v38 = vld [vmem:[#allocation65_spill] sm:$0xff] }
 0x547   :  { %7677 = vmatmul.mubr.f32.gmra.mrb[182].mxu0 %v21216_v22  ;;  %22514 = vst [vmem:[#allocation98_spill] sm:$0xff] %v18801_v31  ;;  %6262 = vmatprep.mubr.f32.mxu1 %v22515_v45  ;;  %22517 = vst [vmem:[#allocation62_spill] sm:$0xff] %v18809_v5  ;;  %v11323_v58 = vpop.f32.mrb[79].mxu0  ;;  %v22520_v45 = vld [vmem:[#allocation29_spill] sm:$0xff]  ;;  %v21227_v31 = vand.u32 4294901760, %v18809_v5  ;;  %v21228_v10 = vand.u32 4294901760, %v18814_v30 }
 0x548   :  { %7684 = vmatprep.mubr.f32.mxu0 %v21215_v6  ;;  %22519 = vst [vmem:[#allocation109_spill] sm:$0xff] %v18814_v30  ;;  %v18819_v6 = vadd.f32 %v11080_v55, %v11079_v27  ;;  %v18821_v22 = vadd.f32 %v11323_v58, %v11322_v53  ;;  %22525 = vst [vmem:[#allocation18_spill] sm:$0xff] %v18829_v1  ;;  %v11082_v40 = vpop.f32.mrb[46].mxu1  ;;  %v22527_v27 = vld [vmem:[#allocation127_spill] sm:$0xff]  ;;  %v21233_v3 = vand.u32 4294901760, %v18829_v1 }
 0x549   :  { %v11083_v53 = vpop.f32.mrb[47].mxu1 }
 0x54a   :  { %6264 = vmatmul.mubr.f32.gmra.mrb[150].mxu1 %v22520_v45  ;;  %22521 = vst [vmem:[#allocation91_spill] sm:$0xff] %v18819_v6  ;;  %22522 = vst [vmem:[#allocation83_spill] sm:$0xff] %v18821_v22  ;;  %v11325_v45 = vpop.f32.mrb[80].mxu0 }
 0x54b   :  { %7688 = vmatmul.mubr.f32.gmra.mrb[184].mxu0 %v21221_v56  ;;  %6269 = vmatprep.mubr.f32.mxu1 %v22523_v51  ;;  %v22526_v56 = vld [vmem:[#allocation58_spill] sm:$0xff]  ;;  %v11326_v58 = vpop.f32.mrb[81].mxu0  ;;  %v22529_v51 = vld [vmem:[#allocation105_spill] sm:$0xff] }
 0x54c   :  { %7695 = vmatprep.mubr.f32.mxu0 %v21222_v24  ;;  %v18834_v55 = vsub.f32 %v22527_v27, %v22526_v56  ;;  %v18839_v24 = vadd.f32 %v11083_v53, %v11082_v40  ;;  %v18841_v22 = vadd.f32 %v11326_v58, %v11325_v45  ;;  %v22533_v27 = vld [vmem:[#allocation101_spill] sm:$0xff]  ;;  %v11085_v6 = vpop.f32.mrb[48].mxu1  ;;  %v22535_v53 = vld [vmem:[#allocation123_spill] sm:$0xff] }
 0x54d   :  { %v18849_v56 = vsub.f32 %v22533_v27, %v18544_v61 }
 0x54e   :  { %22528 = vst [vmem:[#allocation9_spill] sm:$0xff] %v18834_v55  ;;  %6271 = vmatmul.mubr.f32.gmra.mrb[152].mxu1 %v22529_v51  ;;  %22530 = vst [vmem:[#allocation144_spill] sm:$0xff] %v18839_v24  ;;  %v11328_v51 = vpop.f32.mrb[82].mxu0  ;;  %v21234_v5 = vand.u32 4294901760, %v18834_v55 }
 0x54f   :  { %7699 = vmatmul.mubr.f32.gmra.mrb[186].mxu0 %v21227_v31  ;;  %22531 = vst [vmem:[#allocation40_spill] sm:$0xff] %v18841_v22  ;;  %6276 = vmatprep.mubr.f32.mxu1 %v22532_v38  ;;  %22534 = vst [vmem:[#allocation116_spill] sm:$0xff] %v18849_v56  ;;  %v11086_v31 = vpop.f32.mrb[49].mxu1  ;;  %v11329_v40 = vpop.f32.mrb[83].mxu0  ;;  %v22538_v38 = vld [vmem:[#allocation53_spill] sm:$0xff]  ;;  %v21236_v27 = vand.u32 4294901760, %v18849_v56 }
 0x550   :  { %7706 = vmatprep.mubr.f32.mxu0 %v21228_v10  ;;  %v18855_v45 = vadd.f32 %v11086_v31, %v11085_v6  ;;  %v18857_v58 = vadd.f32 %v11329_v40, %v11328_v51  ;;  %v11088_v10 = vpop.f32.mrb[50].mxu1  ;;  %v11331_v61 = vpop.f32.mrb[84].mxu0  ;;  %v22539_v22 = vand.u32 4294901760, %v18533_v21  ;;  %v22543_v51 = vld [vmem:[#allocation139_spill] sm:$0xff]  ;;  %v22556_v56 = vld [vmem:[#allocation104_spill] sm:$0xff] }
 0x551   :  { %v11089_v24 = vpop.f32.mrb[51].mxu1  ;;  %v11332_v1 = vpop.f32.mrb[85].mxu0  ;;  %v22544_v40 = vld [vmem:[#allocation43_spill] sm:$0xff] }
 0x552   :  { %6278 = vmatmul.mubr.f32.gmra.mrb[154].mxu1 %v22535_v53  ;;  %22536 = vst [vmem:[#allocation8_spill] sm:$0xff] %v18855_v45  ;;  %22537 = vst [vmem:[#allocation88_spill] sm:$0xff] %v18857_v58  ;;  %v6605_v53 = vsub.f32 %v18533_v21, %v22539_v22  ;;  %v18869_v6 = vadd.f32 %v11089_v24, %v11088_v10  ;;  %v18871_v31 = vadd.f32 %v11332_v1, %v11331_v61  ;;  %v22547_v10 = vld [vmem:[#allocation15_spill] sm:$0xff] }
 0x553   :  { %7710 = vmatmul.mubr.f32.gmra.mrb[188].mxu0 %v21233_v3  ;;  %6283 = vmatprep.mubr.f32.mxu1 %v22538_v38  ;;  %v22540_v3 = vld [vmem:[#allocation36_spill] sm:$0xff]  ;;  %v22545_v38 = vand.u32 4294901760, %v18541_v62  ;;  %v22548_v1 = vld [vmem:[#allocation51_spill] sm:$0xff] }
 0x554   :  { %7717 = vmatprep.mubr.f32.mxu0 %v21234_v5  ;;  %22541 = vst [vmem:[#allocation67_spill] sm:$0xff] %v18869_v6  ;;  %22542 = vst [vmem:[#allocation7_spill] sm:$0xff] %v18871_v31  ;;  %v11091_v22 = vpop.f32.mrb[52].mxu1  ;;  %v11334_v58 = vpop.f32.mrb[86].mxu0  ;;  %v6606_v21 = vand.u32 4294901760, %v6605_v53  ;;  %v22551_v31 = vld [vmem:[#allocation41_spill] sm:$0xff] }
 0x555   :  { %v6611_v5 = vsub.f32 %v18541_v62, %v22545_v38  ;;  %v11335_v24 = vpop.f32.mrb[87].mxu0  ;;  %v22552_v38 = vld [vmem:[#allocation5_spill] sm:$0xff]  ;;  %v22554_v6 = vand.u32 4294901760, %v18559_v50 }
 0x556   :  { %6285 = vmatmul.mubr.f32.gmra.mrb[156].mxu1 %v22540_v3  ;;  %v22546_v3 = vand.u32 4294901760, %v18549_v11 }
 0x557   :  { %7721 = vmatmul.mubr.f32.gmra.mrb[190].mxu0 %v21236_v27  ;;  %6290 = vmatprep.mubr.f32.mxu1 %v22543_v51  ;;  %v11092_v27 = vpop.f32.mrb[53].mxu1  ;;  %v18885_v51 = vadd.f32 %v11335_v24, %v11334_v58  ;;  %v6612_v62 = vand.u32 4294901760, %v6611_v5  ;;  %v22557_v58 = vand.u32 4294901760, %v18567_v57 }
 0x558   :  { %8096 = vmatprep.mubr.f32.mxu0 %v22544_v40  ;;  %v6620_v45 = vsub.f32 %v18549_v11, %v22546_v3  ;;  %v18883_v61 = vadd.f32 %v11092_v27, %v11091_v22  ;;  %v22553_v40 = vld [vmem:[#allocation6_spill] sm:$0xff]  ;;  %v6626_v3 = vsub.f32 %v18559_v50, %v22554_v6  ;;  %v11094_v55 = vpop.f32.mrb[54].mxu1 }
 0x559   :  { %22550 = vst [vmem:[#allocation95_spill] sm:$0xff] %v18885_v51  ;;  %v13285_v53 = vpack.c.bf16 %v22553_v40, %v22552_v38  ;;  %v22555_v11 = vld [vmem:[#allocation94_spill] sm:$0xff]  ;;  %v11095_v22 = vpop.f32.mrb[55].mxu1 }
 0x55a   :  { %6292 = vmatmul.mubr.f32.gmra.mrb[158].mxu1 %v22547_v10  ;;  %22549 = vst [vmem:[#allocation96_spill] sm:$0xff] %v18883_v61  ;;  %v13287_v10 = vpack.c.bf16 %v22556_v56, %v22555_v11  ;;  %v6621_v27 = vand.u32 4294901760, %v6620_v45  ;;  %v22558_v51 = vld [vmem:[#allocation66_spill] sm:$0xff]  ;;  %v18899_v5 = vadd.f32 %v11095_v22, %v11094_v55  ;;  %v6627_v6 = vand.u32 4294901760, %v6626_v3 }
 0x55b   :  { %8098 = vmatmul.mubr.f32.vlgmr.msra.gmra.mrb[192].mxu0 %v22548_v1  ;;  %6607 = vmatprep.mubr.f32.mxu1 %v6606_v21  ;;  %v11337_v1 = vpop.f32.mrb[88].mxu0  ;;  %v6635_v21 = vsub.f32 %v18567_v57, %v22557_v58  ;;  %v22561_v45 = vand.u32 4294901760, %v18575_v43  ;;  %v22562_v58 = vld [vmem:[#allocation100_spill] sm:$0xff]  ;;  %v22563_v57 = vld [vmem:[#allocation130_spill] sm:$0xff]  ;;  %v22564_v55 = vand.u32 4294901760, %v18580_v52 }
 0x55c   :  { %8103 = vmatprep.mubr.f32.mxu0 %v22551_v31  ;;  %v11338_v24 = vpop.f32.mrb[89].mxu0  ;;  %22559 = vst [vmem:[#allocation122_spill] sm:$0xff] %v18899_v5  ;;  %v13289_v61 = vpack.c.bf16 %v22563_v57, %v22562_v58 }
 0x55d   :  { %v18901_v31 = vadd.f32 %v11338_v24, %v11337_v1  ;;  %v6641_v50 = vsub.f32 %v18575_v43, %v22561_v45  ;;  %v11340_v56 = vpop.f32.mrb[90].mxu0  ;;  %v6650_v1 = vsub.f32 %v18580_v52, %v22564_v55  ;;  %v22571_v52 = vld [vmem:[#allocation57_spill] sm:$0xff] }
 0x55e   :  { %6613 = vmatmul.mubr.f32.vlgmr.msra.gmra.mrb[160].mxu1 %v6612_v62  ;;  %v11097_v62 = vpop.f32.mrb[56].mxu1  ;;  %v11341_v3 = vpop.f32.mrb[91].mxu0 }
 0x55f   :  { %8105 = vmatmul.mubr.f32.gmra.mrb[194].mxu0 %v22558_v51  ;;  %22560 = vst [vmem:[#allocation114_spill] sm:$0xff] %v18901_v31  ;;  %13286 = vmatpush3.bf16.msra.mxu1 %v13285_v53  ;;  %v6636_v51 = vand.u32 4294901760, %v6635_v21  ;;  %v22565_v53 = vld [vmem:[#allocation81_spill] sm:$0xff]  ;;  %v11098_v24 = vpop.f32.mrb[57].mxu1  ;;  %v18917_v45 = vadd.f32 %v11341_v3, %v11340_v56  ;;  %v6642_v21 = vand.u32 4294901760, %v6641_v50  ;;  %v22569_v31 = vand.u32 4294901760, %v18595_v2 }
 0x560   :  { %6622 = vmatprep.mubr.f32.mxu1 %v6621_v27  ;;  %8110 = vmatprep.mubr.f32.mxu0 %v18209_v41  ;;  %v22566_v27 = vld [vmem:[#allocation33_spill] sm:$0xff]  ;;  %v22570_v41 = vld [vmem:[#allocation119_spill] sm:$0xff]  ;;  %v11100_v5 = vpop.f32.mrb[58].mxu1 }
 0x561   :  { %13288 = vmatprep.subr.bf16.mxu1 %v13287_v10  ;;  %v13291_v22 = vpack.c.bf16 %v22566_v27, %v22565_v53  ;;  %v18915_v10 = vadd.f32 %v11098_v24, %v11097_v62  ;;  %22568 = vst [vmem:[#allocation22_spill] sm:$0xff] %v18917_v45  ;;  %v6656_v55 = vsub.f32 %v18595_v2, %v22569_v31  ;;  %v6651_v27 = vand.u32 4294901760, %v6650_v1  ;;  %v22574_v24 = vld [vmem:[#allocation56_spill] sm:$0xff]  ;;  %v11101_v50 = vpop.f32.mrb[59].mxu1 }
 0x562   :  { %6628 = vmatmul.mubr.f32.gmra.mrb[162].mxu1 %v6627_v6  ;;  %v13293_v43 = vpack.c.bf16 %v22571_v52, %v22570_v41  ;;  %v11343_v6 = vpop.f32.mrb[92].mxu0  ;;  %v22572_v62 = vand.u32 4294901760, %v18600_v15  ;;  %v18931_v31 = vadd.f32 %v11101_v50, %v11100_v5  ;;  %v22580_v5 = vand.u32 4294901760, %v18619_v49  ;;  %v22582_v50 = vld [vmem:[#allocation106_spill] sm:$0xff] }
 0x563   :  { %8112 = vmatmul.mubr.f32.gmra.mrb[196].mxu0 %v18216_v14  ;;  %22567 = vst [vmem:[#allocation110_spill] sm:$0xff] %v18915_v10  ;;  %6637 = vmatprep.mubr.f32.mxu1 %v6636_v51  ;;  %v22573_v51 = vld [vmem:[#allocation44_spill] sm:$0xff]  ;;  %v6657_v1 = vand.u32 4294901760, %v6656_v55  ;;  %v22579_v14 = vld [vmem:[#allocation45_spill] sm:$0xff] }
 0x564   :  { %8117 = vmatprep.mubr.f32.mxu0 %v18231_v8  ;;  %13290 = vmatpush3.bf16.msra.mxu1 %v13289_v61  ;;  %v6665_v56 = vsub.f32 %v18600_v15, %v22572_v62  ;;  %v13295_v3 = vpack.c.bf16 %v22574_v24, %v22573_v51  ;;  %v11344_v61 = vpop.f32.mrb[93].mxu0  ;;  %22575 = vst [vmem:[#allocation132_spill] sm:$0xff] %v18931_v31  ;;  %v22577_v8 = vand.u32 4294901760, %v18613_v54  ;;  %v22578_v62 = vld [vmem:[#allocation23_spill] sm:$0xff] }
 0x565   :  { %13292 = vmatprep.subr.bf16.mxu1 %v13291_v22  ;;  %v18933_v45 = vadd.f32 %v11344_v61, %v11343_v6  ;;  %v13297_v15 = vpack.c.bf16 %v22579_v14, %v22578_v62  ;;  %v6680_v6 = vsub.f32 %v18619_v49, %v22580_v5  ;;  %v22587_v5 = vld [vmem:[#allocation145_spill] sm:$0xff]  ;;  %v22588_v49 = vld [vmem:[#allocation150_spill] sm:$0xff] }
 0x566   :  { %6643 = vmatmul.mubr.f32.gmra.mrb[164].mxu1 %v6642_v21  ;;  %v6671_v22 = vsub.f32 %v18613_v54, %v22577_v8  ;;  %v11103_v2 = vpop.f32.mrb[60].mxu1  ;;  %v6666_v10 = vand.u32 4294901760, %v6665_v56  ;;  %v13301_v54 = vpack.c.bf16 %v22588_v49, %v22587_v5 }
 0x567   :  { %8119 = vmatmul.mubr.f32.gmra.mrb[198].mxu0 %v18253_v63  ;;  %22576 = vst [vmem:[#allocation112_spill] sm:$0xff] %v18933_v45  ;;  %6652 = vmatprep.mubr.f32.mxu1 %v6651_v27  ;;  %v11346_v21 = vpop.f32.mrb[94].mxu0  ;;  %v22581_v27 = vld [vmem:[#allocation108_spill] sm:$0xff]  ;;  %v11104_v55 = vpop.f32.mrb[61].mxu1  ;;  %v22586_v63 = vand.u32 4294901760, %v18633_v32 }
 0x568   :  { %8124 = vmatprep.mubr.f32.mxu0 %v18269_v19  ;;  %13294 = vmatpush3.bf16.msra.mxu1 %v13293_v43  ;;  %v13299_v61 = vpack.c.bf16 %v22582_v50, %v22581_v27  ;;  %v11347_v45 = vpop.f32.mrb[95].mxu0  ;;  %v18947_v43 = vadd.f32 %v11104_v55, %v11103_v2  ;;  %v22585_v19 = vld [vmem:[#allocation77_spill] sm:$0xff]  ;;  %v6672_v56 = vand.u32 4294901760, %v6671_v22  ;;  %v6681_v50 = vand.u32 4294901760, %v6680_v6 }
 0x569   :  { %13296 = vmatprep.subr.bf16.mxu1 %v13295_v3  ;;  %v18949_v8 = vadd.f32 %v11347_v45, %v11346_v21  ;;  %v6686_v3 = vsub.f32 %v18633_v32, %v22586_v63  ;;  %v22589_v2 = vand.u32 4294901760, %v18639_v17  ;;  %v22591_v21 = vld [vmem:[#allocation155_spill] sm:$0xff] }
 0x56a   :  { %6658 = vmatmul.mubr.f32.gmra.mrb[166].mxu1 %v6657_v1  ;;  %22583 = vst [vmem:[#allocation124_spill] sm:$0xff] %v18947_v43  ;;  %v11106_v31 = vpop.f32.mrb[62].mxu1 }
 0x56b   :  { %8126 = vmatmul.mubr.f32.gmra.mrb[200].mxu0 %v18291_v33  ;;  %22584 = vst [vmem:[#allocation61_spill] sm:$0xff] %v18949_v8  ;;  %6667 = vmatprep.mubr.f32.mxu1 %v6666_v10  ;;  %v11461_v1 = vpop.f32.mrb[96].mxu0  ;;  %v6695_v45 = vsub.f32 %v18639_v17, %v22589_v2  ;;  %v22590_v10 = vld [vmem:[#allocation154_spill] sm:$0xff]  ;;  %v11107_v22 = vpop.f32.mrb[63].mxu1  ;;  %v6687_v6 = vand.u32 4294901760, %v6686_v3  ;;  %v22595_v33 = vand.u32 4294901760, %v18652_v18 }
 0x56c   :  { %8131 = vmatprep.mubr.f32.mxu0 %v22585_v19  ;;  %13298 = vmatpush3.bf16.msra.mxu1 %v13297_v15  ;;  %v13303_v55 = vpack.c.bf16 %v22591_v21, %v22590_v10  ;;  %v11462_v8 = vpop.f32.mrb[97].mxu0  ;;  %v18963_v63 = vadd.f32 %v11107_v22, %v11106_v31  ;;  %v22594_v19 = vld [vmem:[#allocation86_spill] sm:$0xff]  ;;  %v22596_v2 = vld [vmem:[#allocation156_spill] sm:$0xff]  ;;  %v22597_v17 = vld [vmem:[#allocation157_spill] sm:$0xff]  ;;  %v22598_v31 = vand.u32 4294901760, %v18659_v44 }
 0x56d   :  { %13300 = vmatprep.subr.bf16.mxu1 %v13299_v61  ;;  %v18965_v15 = vadd.f32 %v11462_v8, %v11461_v1  ;;  %v6701_v61 = vsub.f32 %v18652_v18, %v22595_v33  ;;  %v13305_v32 = vpack.c.bf16 %v22597_v17, %v22596_v2  ;;  %v6696_v21 = vand.u32 4294901760, %v6695_v45  ;;  %v22600_v1 = vld [vmem:[#allocation161_spill] sm:$0xff] }
 0x56e   :  { %6673 = vmatmul.mubr.f32.gmra.mrb[168].mxu1 %v6672_v56  ;;  %22592 = vst [vmem:[#allocation126_spill] sm:$0xff] %v18963_v63  ;;  %v11141_v43 = vpop.f32.mrb[64].mxu1  ;;  %v6710_v8 = vsub.f32 %v18659_v44, %v22598_v31  ;;  %v22605_v44 = vld [vmem:[#allocation165_spill] sm:$0xff] }
 0x56f   :  { %8133 = vmatmul.mubr.f32.gmra.mrb[202].mxu0 %v18332_v13  ;;  %22593 = vst [vmem:[#allocation135_spill] sm:$0xff] %v18965_v15  ;;  %6682 = vmatprep.mubr.f32.mxu1 %v6681_v50  ;;  %v11464_v56 = vpop.f32.mrb[98].mxu0  ;;  %v22599_v50 = vld [vmem:[#allocation160_spill] sm:$0xff]  ;;  %v11142_v3 = vpop.f32.mrb[65].mxu1  ;;  %v6702_v45 = vand.u32 4294901760, %v6701_v61  ;;  %v22603_v13 = vand.u32 4294901760, %v18674_v60 }
 0x570   :  { %8138 = vmatprep.mubr.f32.mxu0 %v22594_v19  ;;  %13302 = vmatpush3.bf16.msra.mxu1 %v13301_v54  ;;  %v13307_v22 = vpack.c.bf16 %v22600_v1, %v22599_v50  ;;  %v11465_v15 = vpop.f32.mrb[99].mxu0  ;;  %v11143_v33 = vadd.f32 %v11142_v3, %v11141_v43  ;;  %v22602_v19 = vld [vmem:[#allocation129_spill] sm:$0xff]  ;;  %v6711_v43 = vand.u32 4294901760, %v6710_v8  ;;  %v22607_v61 = vld [vmem:[#allocation166_spill] sm:$0xff]  ;;  %v22610_v8 = vand.u32 4294901760, %v18698_v36 }
 0x571   :  { %13304 = vmatprep.subr.bf16.mxu1 %v13303_v55  ;;  %v18979_v54 = vadd.f32 %v11465_v15, %v11464_v56  ;;  %v6716_v31 = vsub.f32 %v18674_v60, %v22603_v13  ;;  %v22604_v55 = vld [vmem:[#allocation164_spill] sm:$0xff]  ;;  %v22606_v15 = vand.u32 4294901760, %v18681_v20  ;;  %v22608_v56 = vld [vmem:[#allocation167_spill] sm:$0xff] }
 0x572   :  { %6688 = vmatmul.mubr.f32.gmra.mrb[170].mxu1 %v6687_v6  ;;  %v13309_v18 = vpack.c.bf16 %v22605_v44, %v22604_v55  ;;  %v18988_v63 = vadd.f32 %v11143_v33, %v18688_v16  ;;  %v11144_v6 = vpop.f32.mrb[66].mxu1  ;;  %v13311_v3 = vpack.c.bf16 %v22608_v56, %v22607_v61  ;;  %v6731_v33 = vsub.f32 %v18698_v36, %v22610_v8 }
 0x573   :  { %8140 = vmatmul.mubr.f32.gmra.mrb[204].mxu0 %v18371_v4  ;;  %22601 = vst [vmem:[#allocation75_spill] sm:$0xff] %v18979_v54  ;;  %6697 = vmatprep.mubr.f32.mxu1 %v6696_v21  ;;  %v11467_v4 = vpop.f32.mrb[100].mxu0  ;;  %v6725_v21 = vsub.f32 %v18681_v20, %v22606_v15  ;;  %v11145_v54 = vpop.f32.mrb[67].mxu1  ;;  %v6717_v16 = vand.u32 4294901760, %v6716_v31  ;;  %v22612_v15 = vld [vmem:[#allocation35_spill] sm:$0xff]  ;;  %v22614_v31 = vand.u32 4294901760, %v22488_v39 }
 0x574   :  { %8145 = vmatprep.mubr.f32.mxu0 %v22602_v19  ;;  %13306 = vmatpush3.bf16.msra.mxu1 %v13305_v32  ;;  %v11468_v13 = vpop.f32.mrb[101].mxu0  ;;  %v11146_v32 = vadd.f32 %v11145_v54, %v11144_v6 }
 0x575   :  { %13308 = vmatprep.subr.bf16.mxu1 %v13307_v22  ;;  %v18996_v19 = vadd.f32 %v11468_v13, %v11467_v4  ;;  %v22611_v22 = vld [vmem:[#allocation48_spill] sm:$0xff]  ;;  %v6726_v54 = vand.u32 4294901760, %v6725_v21  ;;  %v22613_v4 = vand.u32 4294901760, %v18705_v0  ;;  %v6732_v21 = vand.u32 4294901760, %v6731_v33  ;;  %v22620_v33 = vld [vmem:[#allocation59_spill] sm:$0xff] }
 0x576   :  { %6703 = vmatmul.mubr.f32.gmra.mrb[172].mxu1 %v6702_v45  ;;  %v13313_v20 = vpack.c.bf16 %v22612_v15, %v22611_v22  ;;  %v19005_v60 = vadd.f32 %v11146_v32, %v18712_v26  ;;  %v11147_v45 = vpop.f32.mrb[68].mxu1 }
 0x577   :  { %8147 = vmatmul.mubr.f32.gmra.mrb[206].mxu0 %v18399_v42  ;;  %22609 = vst [vmem:[#allocation143_spill] sm:$0xff] %v18996_v19  ;;  %6712 = vmatprep.mubr.f32.mxu1 %v6711_v43  ;;  %v6740_v6 = vsub.f32 %v18705_v0, %v22613_v4  ;;  %v22615_v43 = vand.u32 4294901760, %v22489_v23  ;;  %v22617_v4 = vand.u32 4294901760, %v18722_v46  ;;  %v22631_v19 = vld [vmem:[#allocation62_spill] sm:$0xff] }
 0x578   :  { %8152 = vmatprep.mubr.f32.mxu0 %v18409_v12  ;;  %13310 = vmatpush3.bf16.msra.mxu1 %v13309_v18  ;;  %v11470_v42 = vpop.f32.mrb[102].mxu0  ;;  %v11148_v18 = vpop.f32.mrb[69].mxu1 }
 0x579   :  { %13312 = vmatprep.subr.bf16.mxu1 %v13311_v3  ;;  %v13347_v13 = vpack.c.bf16 %v22615_v43, %v22614_v31  ;;  %v11471_v8 = vpop.f32.mrb[103].mxu0  ;;  %v11149_v26 = vadd.f32 %v11148_v18, %v11147_v45  ;;  %v6746_v3 = vsub.f32 %v18722_v46, %v22617_v4  ;;  %v22619_v43 = vand.u32 4294901760, %v18729_v7  ;;  %v22624_v4 = vld [vmem:[#allocation89_spill] sm:$0xff] }
 0x57a   :  { %6718 = vmatmul.mubr.f32.gmra.mrb[174].mxu1 %v6717_v16  ;;  %v19015_v32 = vadd.f32 %v11471_v8, %v11470_v42  ;;  %v6741_v16 = vand.u32 4294901760, %v6740_v6  ;;  %v22621_v18 = vand.u32 4294901760, %v18748_v47 }
 0x57b   :  { %8154 = vmatmul.mubr.f32.gmra.mrb[208].mxu0 %v18423_v28  ;;  %6727 = vmatprep.mubr.f32.mxu1 %v6726_v54  ;;  %v19022_v39 = vadd.f32 %v11149_v26, %v18738_v9  ;;  %v6755_v42 = vsub.f32 %v18729_v7, %v22619_v43  ;;  %v22622_v9 = vand.u32 4294901760, %v18754_v37  ;;  %v6747_v43 = vand.u32 4294901760, %v6746_v3 }
 0x57c   :  { %22616 = vst [vmem:[#allocation140_spill] sm:$0xff] %v19015_v32  ;;  %8159 = vmatprep.mubr.f32.mxu0 %v18433_v59  ;;  %13314 = vmatpush3.bf16.msra.mxu1 %v13313_v20  ;;  %v11150_v23 = vpop.f32.mrb[70].mxu1  ;;  %v6761_v20 = vsub.f32 %v18748_v47, %v22621_v18  ;;  %v22626_v32 = vand.u32 4294901760, %v18774_v35  ;;  %v22627_v18 = vand.u32 4294901760, %v18789_v48 }
 0x57d   :  { %22618 = vst [vmem:[#allocation12_spill] sm:$0xff] %v19022_v39  ;;  %v11473_v31 = vpop.f32.mrb[104].mxu0  ;;  %13348 = vmatprep.subr.bf16.mxu1 %v13347_v13  ;;  %v11151_v45 = vpop.f32.mrb[71].mxu1  ;;  %v6770_v8 = vsub.f32 %v18754_v37, %v22622_v9  ;;  %v22625_v13 = vand.u32 4294901760, %v18769_v29  ;;  %v22661_v37 = vld [vmem:[#allocation39_spill] sm:$0xff] }
 0x57e   :  { %v11474_v54 = vpop.f32.mrb[105].mxu0  ;;  %6733 = vmatmul.mubr.f32.gmra.mrb[176].mxu1 %v6732_v21  ;;  %v11152_v26 = vadd.f32 %v11151_v45, %v11150_v23  ;;  %v19048_v9 = vsub.f32 %v18789_v48, %v22627_v18  ;;  %v6756_v45 = vand.u32 4294901760, %v6755_v42  ;;  %v22632_v18 = vand.u32 4294901760, %v22631_v19 }
 0x57f   :  { %8161 = vmatmul.mubr.f32.gmra.mrb[210].mxu0 %v22620_v33  ;;  %v19034_v6 = vadd.f32 %v11474_v54, %v11473_v31  ;;  %6742 = vmatprep.mubr.f32.mxu1 %v6741_v16  ;;  %v6776_v21 = vsub.f32 %v18769_v29, %v22625_v13  ;;  %v19043_v33 = vsub.f32 %v18774_v35, %v22626_v32  ;;  %v22629_v54 = vand.u32 4294901760, %v18794_v25  ;;  %v22630_v32 = vld [vmem:[#allocation102_spill] sm:$0xff] }
 0x580   :  { %8166 = vmatprep.mubr.f32.mxu0 %v22624_v4  ;;  %v19051_v23 = vadd.f32 %v11152_v26, %v18759_v34  ;;  %v11153_v31 = vpop.f32.mrb[72].mxu1  ;;  %v6762_v4 = vand.u32 4294901760, %v6761_v20  ;;  %v19062_v59 = vsub.f32 %v22631_v19, %v22632_v18  ;;  %v22633_v34 = vand.u32 4294901760, %v18814_v30  ;;  %v22637_v19 = vld [vmem:[#allocation18_spill] sm:$0xff] }
 0x581   :  { %22623 = vst [vmem:[#allocation141_spill] sm:$0xff] %v19034_v6  ;;  %v11476_v16 = vpop.f32.mrb[106].mxu0  ;;  %v19056_v3 = vsub.f32 %v18794_v25, %v22629_v54  ;;  %v11154_v13 = vpop.f32.mrb[73].mxu1  ;;  %v22634_v26 = vlaneseq  ;;  %v6771_v20 = vand.u32 4294901760, %v6770_v8  ;;  %v6786_v25 = vand.u32 4294901760, %v19043_v33  ;;  %v22643_v33 = vld [vmem:[#allocation2_spill] sm:$0xff] }
 0x582   :  { %22628 = vst [vmem:[#allocation13_spill] sm:$0xff] %v19051_v23  ;;  %v11477_v6 = vpop.f32.mrb[107].mxu0  ;;  %6748 = vmatmul.mubr.f32.gmra.mrb[178].mxu1 %v6747_v43  ;;  %v19067_v42 = vsub.f32 %v18814_v30, %v22633_v34  ;;  %v11155_v54 = vadd.f32 %v11154_v13, %v11153_v31  ;;  %v22636_v43 = vld [vmem:[#allocation10_spill] sm:$0xff]  ;;  %v6792_v18 = vand.u32 4294901760, %v19048_v9  ;;  %v22638_v48 = vand.u32 4294901760, %v22637_v19  ;;  %v22639_v30 = vld [vmem:[#allocation9_spill] sm:$0xff] }
 0x583   :  { %8168 = vmatmul.mubr.f32.gmra.mrb[212].mxu0 %v22630_v32  ;;  %v19070_v28 = vshrl.u32 %v22634_v26, 7  ;;  %v19072_v12 = vadd.f32 %v11477_v6, %v11476_v16  ;;  %6757 = vmatprep.mubr.f32.mxu1 %v6756_v45  ;;  %v6777_v32 = vand.u32 4294901760, %v6776_v21  ;;  %v22640_v26 = vand.u32 4294901760, %v22639_v30  ;;  %v22641_v6 = vld [vmem:[#allocation90_spill] sm:$0xff] }
 0x584   :  { %8173 = vmatprep.mubr.f32.mxu0 %v22636_v43  ;;  %v19080_v34 = vsub.f32 %v22637_v19, %v22638_v48  ;;  %v19088_v16 = vadd.f32 %v11155_v54, %v22641_v6  ;;  %v19092_v13 = vmul.u32 16, %v22643_v33  ;;  %v22645_v43 = vld [vmem:[#allocation107_spill] sm:$0xff]  ;;  %v22646_v6 = vld [vmem:[#allocation116_spill] sm:$0xff]  ;;  %v22650_v29 = vld [vmem:[#allocation54_spill] sm:$0xff]  ;;  %v22672_v23 = vand.u32 4294901760, %v22552_v38 }
 0x585   :  { %22635 = vst [vmem:[#allocation63_spill] sm:$0xff] %v19072_v12  ;;  %v19085_v31 = vsub.f32 %v22639_v30, %v22640_v26  ;;  %v11156_v45 = vpop.f32.mrb[74].mxu1  ;;  %v11479_v8 = vpop.f32.mrb[108].mxu0  ;;  %v19095_v9 = vadd.s32 8, %v19070_v28  ;;  %v22647_v30 = vand.u32 4294901760, %v22646_v6  ;;  %v19106_v21 = vcvt.s32.f32 %v19070_v28  ;;  %v22654_v26 = vld [vmem:[#allocation24_spill] sm:$0xff] }
 0x586   :  { %22642 = vst [vmem:[#allocation73_spill] sm:$0xff] %v19088_v16  ;;  %v11157_v48 = vpop.f32.mrb[75].mxu1  ;;  %v11480_v12 = vpop.f32.mrb[109].mxu0  ;;  %6763 = vmatmul.mubr.f32.gmra.mrb[180].mxu1 %v6762_v4  ;;  %vm8254_vm5 = vcmp.ge.s32.totalorder %v19070_v28, %v19092_v13  ;;  %v19114_v4 = vadd.s32 16, %v19092_v13  ;;  %v22664_v16 = vand.u32 4294901760, %v19056_v3  ;;  %v22674_v36 = vand.u32 4294901760, %v19062_v59 }
 0x587   :  { %22644 = vst [vmem:[#allocation76_spill] sm:$0xff] %v19095_v9  ;;  %8175 = vmatmul.mubr.f32.gmra.mrb[214].mxu0 %v22645_v43  ;;  %v19103_v19 = vsub.f32 %v22646_v6, %v22647_v30  ;;  %22648 = vst [vmem:[#allocation70_spill] sm:$0xff] %v19106_v21  ;;  %v11158_v33 = vadd.f32 %v11157_v48, %v11156_v45  ;;  %v19108_v35 = vadd.f32 %v11480_v12, %v11479_v8  ;;  %v22651_v45 = vld [vmem:[#allocation32_spill] sm:$0xff] }
 0x588   :  { %6772 = vmatprep.mubr.f32.mxu1 %v6771_v20  ;;  %8180 = vmatprep.mubr.f32.mxu0 %v22650_v29  ;;  %vm8255_vm7 = vcmp.ge.s32.totalorder %v19095_v9, %v19092_v13  ;;  %vm8263_vm8 = vcmp.lt.s32.totalorder %v19070_v28, %v19114_v4  ;;  %vm8264_vm9 = vcmp.lt.s32.totalorder %v19095_v9, %v19114_v4  ;;  %v19128_v48 = vadd.s32 16, %v19070_v28 }
 0x589   :  { %22649 = vst [vmem:[#allocation74_spill] sm:$0xff] %v19108_v35  ;;  %v19121_v12 = vadd.f32 %v11158_v33, %v22651_v45  ;;  %v11159_v20 = vpop.f32.mrb[76].mxu1  ;;  %v11482_v8 = vpop.f32.mrb[110].mxu0  ;;  %v19133_v33 = vmul.f32 16.0, %v19106_v21  ;;  %vm8271_vm11 = vmand %vm8254_vm5, %vm8263_vm8  ;;  %v19139_v45 = vadd.s32 24, %v19070_v28  ;;  %v22658_v35 = vmov 0.0  }
 0x58a   :  { %22653 = vst [vmem:[#allocation25_spill] sm:$0xff] %v19128_v48  ;;  %v11160_v54 = vpop.f32.mrb[77].mxu1  ;;  %v11483_v30 = vpop.f32.mrb[111].mxu0  ;;  %6778 = vmatmul.mubr.f32.gmra.mrb[182].mxu1 %v6777_v32  ;;  %v22657_v32 = vld [vmem:[#allocation71_spill] sm:$0xff]  ;;  %v19147_v6 = vsel %vm8271_vm11, 1.0, %v22658_v35  ;;  %vm8272_vm12 = vmand %vm8255_vm7, %vm8264_vm9  ;;  %vm8256_vm13 = vcmp.ge.s32.totalorder %v19128_v48, %v19092_v13  ;;  %vm8265_vm14 = vcmp.lt.s32.totalorder %v19128_v48, %v19114_v4 }
 0x58b   :  { %22652 = vst [vmem:[#allocation21_spill] sm:$0xff] %v19121_v12  ;;  %8182 = vmatmul.mubr.f32.gmra.mrb[216].mxu0 %v22654_v26  ;;  %22655 = vst [vmem:[#allocation30_spill] sm:$0xff] %v19139_v45  ;;  %v11161_v29 = vadd.f32 %v11160_v54, %v11159_v20  ;;  %v19141_v43 = vadd.f32 %v11483_v30, %v11482_v8  ;;  %6787 = vmatprep.mubr.f32.mxu1 %v6786_v25  ;;  %v19144_v26 = vpop.xlane.xlu0 %8216  ;;  %v8297_v25 = vsel %vm8295_vm6, %v19147_v6, 0  ;;  %v22659_v20 = vld [vmem:[#allocation91_spill] sm:$0xff] }
 0x58c   :  { %8187 = vmatprep.mubr.f32.mxu0 %v22657_v32  ;;  %v19161_v30 = vsel %vm8272_vm12, 1.0, %v22658_v35  ;;  %vm8273_vm15 = vmand %vm8256_vm13, %vm8265_vm14  ;;  %vm8257_vm0 = vcmp.ge.s32.totalorder %v19139_v45, %v19092_v13  ;;  %v22662_v48 = vsub.f32 0.0, %v19144_v26  ;;  %vm8266_vm1 = vcmp.lt.s32.totalorder %v19139_v45, %v19114_v4 }
 0x58d   :  { %22656 = vst [vmem:[#allocation131_spill] sm:$0xff] %v19141_v43  ;;  %v19166_v8 = vadd.f32 %v11161_v29, %v22659_v20  ;;  %v11162_v21 = vpop.f32.mrb[78].mxu1  ;;  %v11485_v9 = vpop.f32.mrb[112].mxu0  ;;  %v19168_v43 = vsub.f32 %v8297_v25, %v8297_v25  ;;  %v8300_v32 = vsel %vm8295_vm6, %v19161_v30, 0  ;;  %v19181_v25 = vsel %vm8273_vm15, 1.0, %v22658_v35  ;;  %vm19198_vm2 = vmand %vm8257_vm0, %vm8266_vm1 }
 0x58e   :  { %v11163_v54 = vpop.f32.mrb[79].mxu1  ;;  %v11486_v12 = vpop.f32.mrb[113].mxu0  ;;  %6793 = vmatmul.mubr.f32.gmra.mrb[184].mxu1 %v6792_v18  ;;  %v8244_v29 = vadd.f32 %v19133_v33, %v22662_v48  ;;  %v19178_v20 = vsub.f32 %v8300_v32, %v8300_v32  ;;  %v22665_v18 = vld [vmem:[#allocation14_spill] sm:$0xff]  ;;  %v8303_v32 = vsel %vm8295_vm6, %v19181_v25, 0  ;;  %v22673_v45 = vand.u32 4294901760, %v22553_v40 }
 0x58f   :  { %22660 = vst [vmem:[#allocation50_spill] sm:$0xff] %v19166_v8  ;;  %8189 = vmatmul.mubr.f32.gmra.mrb[218].mxu0 %v22661_v37  ;;  %v11164_v8 = vadd.f32 %v11163_v54, %v11162_v21  ;;  %v19185_v47 = vadd.f32 %v11486_v12, %v11485_v9  ;;  %6802 = vmatprep.mubr.f32.mxu1 %v22664_v16  ;;  %v8229_v37 = vpop.xlane.xlu1 %8228  ;;  %v8224_v7 = vpop.xlane.xlu0 %8223  ;;  %v19191_v48 = vand.u32 4294901760, %v19168_v43  ;;  %v22670_v54 = vld [vmem:[#allocation144_spill] sm:$0xff] }
 0x590   :  { %8194 = vmatprep.mubr.f32.mxu0 %v22665_v18  ;;  %v19203_v3 = vsel %vm8320_vm10, %v8244_v29, 0  ;;  %v8230_v16 = vsub.f32 0.0, %v8229_v37  ;;  %v8225_v9 = vsub.f32 0.0, %v8224_v7  ;;  %v19206_v12 = vand.u32 4294901760, %v19178_v20 }
 0x591   :  { %22663 = vst [vmem:[#allocation29_spill] sm:$0xff] %v19185_v47  ;;  %22668 = vst [vmem:[#allocation111_spill] sm:$0xff] %v19203_v3  ;;  %v19209_v47 = vadd.f32 %v11164_v8, %v22670_v54  ;;  %v11165_v18 = vpop.f32.mrb[80].mxu1  ;;  %v11488_v46 = vpop.f32.mrb[114].mxu0  ;;  %v19215_v0 = vpack.c.bf16 %v22673_v45, %v22672_v23  ;;  %v8393_v29 = vsub.f32 %v19168_v43, %v19191_v48  ;;  %v22675_v8 = vld [vmem:[#allocation46_spill] sm:$0xff]  ;;  %v22676_v54 = vand.u32 4294901760, %v22555_v11 }
 0x592   :  { %22669 = vst [vmem:[#allocation82_spill] sm:$0xff] %v19206_v12  ;;  %v19219_v3 = vsub.f32 %v8303_v32, %v8303_v32  ;;  %v11166_v7 = vpop.f32.mrb[81].mxu1  ;;  %v11489_v37 = vpop.f32.mrb[115].mxu0  ;;  %6808 = vmatmul.mubr.f32.gmra.mrb[186].mxu1 %v22674_v36  ;;  %v8232_v40 = vrot.slane %v8230_v16, 4  ;;  %v19233_v23 = vsel %vm19198_vm2, 1.0, %v22658_v35  ;;  %v19236_v45 = vadd.s32 32, %v19070_v28 }
 0x593   :  { %22671 = vst [vmem:[#allocation127_spill] sm:$0xff] %v19209_v47  ;;  %8196 = vmatmul.mubr.f32.gmra.mrb[220].mxu0 %v22675_v8  ;;  %v22677_v47 = vld [vmem:[#allocation104_spill] sm:$0xff]  ;;  %v11167_v32 = vadd.f32 %v11166_v7, %v11165_v18  ;;  %v19238_v59 = vadd.f32 %v11489_v37, %v11488_v46  ;;  %v22681_v36 = vand.u32 4294901760, %v19067_v42  ;;  %v22682_v11 = vand.u32 4294901760, %v22562_v58 }
 0x594   :  { %v22678_v38 = vand.u32 4294901760, %v22677_v47  ;;  %22679 = vst [vmem:[#allocation105_spill] sm:$0xff] %v19236_v45  ;;  %v22683_v47 = vand.u32 4294901760, %v22563_v57  ;;  %v19248_v16 = vand.u32 4294901760, %v8393_v29  ;;  %v8234_v21 = vmax.f32 %v8225_v9, %v8232_v40  ;;  %v22686_v42 = vld [vmem:[#allocation8_spill] sm:$0xff] }
 0x595   :  { %22680 = vst [vmem:[#allocation65_spill] sm:$0xff] %v19238_v59  ;;  %6817 = vmatprep.mubr.f32.mxu1 %v22681_v36  ;;  %v19253_v8 = vand.u32 4294901760, %v19219_v3  ;;  %v8306_v46 = vsel %vm8295_vm6, %v19233_v23, 0  ;;  %v19258_v18 = vadd.f32 %v11167_v32, %v22686_v42  ;;  %v11168_v58 = vpop.f32.mrb[82].mxu1  ;;  %v11491_v7 = vpop.f32.mrb[116].mxu0  ;;  %vm8258_vm3 = vcmp.ge.s32.totalorder %v19236_v45, %v19092_v13 }
 0x596   :  { %v19228_v39 = vpack.c.bf16 %v22678_v38, %v22676_v54  ;;  %v19246_v54 = vpack.c.bf16 %v22683_v47, %v22682_v11  ;;  %22684 = vst [vmem:[#allocation101_spill] sm:$0xff] %v19248_v16  ;;  %v8403_v38 = vsub.f32 %v19178_v20, %v19206_v12  ;;  %12429 = vmatprep.mubr.f32.mxu0 %v19248_v16  ;;  %v11169_v9 = vpop.f32.mrb[83].mxu1  ;;  %v11492_v29 = vpop.f32.mrb[117].mxu0  ;;  %v22688_v37 = vand.u32 4294901760, %v19080_v34 }
 0x597   :  { %22685 = vst [vmem:[#allocation123_spill] sm:$0xff] %v19253_v8  ;;  %22687 = vst [vmem:[#allocation53_spill] sm:$0xff] %v19258_v18  ;;  %v19261_v57 = vsub.f32 %v8306_v46, %v8306_v46  ;;  %vm8267_vm4 = vcmp.lt.s32.totalorder %v19236_v45, %v19114_v4  ;;  %v8235_v40 = vadd.f32 1.0, %v8234_v21  ;;  %v8413_v32 = vsub.f32 %v19219_v3, %v19253_v8 }
 0x598   :  { %6823 = vmatmul.mubr.f32.gmra.mrb[188].mxu1 %v22688_v37  ;;  %vm8275_vm5 = vmand %vm8258_vm3, %vm8267_vm4  ;;  %v19272_v36 = vadd.s32 40, %v19070_v28  ;;  %v19275_v11 = vadd.s32 48, %v19070_v28  ;;  %v11170_v47 = vadd.f32 %v11169_v9, %v11168_v58  ;;  %v19277_v46 = vadd.f32 %v11492_v29, %v11491_v7  ;;  %v22696_v7 = vld [vmem:[#allocation67_spill] sm:$0xff] }
 0x599   :  { %v22692_v42 = vand.u32 4294901760, %v19085_v31  ;;  %v19282_v34 = vand.u32 4294901760, %v19261_v57  ;;  %v19285_v21 = vsel %vm8275_vm5, 1.0, %v22658_v35  ;;  %v22694_v37 = vsub.f32 0.0, %v19144_v26  ;;  %v11171_v31 = vpop.f32.mrb[84].mxu1  ;;  %v11494_v29 = vpop.f32.mrb[118].mxu0 }
 0x59a   :  { %22689 = vst [vmem:[#allocation36_spill] sm:$0xff] %v19272_v36  ;;  %22690 = vst [vmem:[#allocation139_spill] sm:$0xff] %v19275_v11  ;;  %v8245_v16 = vadd.f32 %v19133_v33, %v8235_v40  ;;  %v19290_v59 = vand.u32 4294901760, %v8403_v38  ;;  %v8309_v58 = vsel %vm8295_vm6, %v19285_v21, 0  ;;  %v19295_v9 = vadd.f32 %v11170_v47, %v22696_v7  ;;  %v11172_v26 = vpop.f32.mrb[85].mxu1 }
 0x59b   :  { %22691 = vst [vmem:[#allocation15_spill] sm:$0xff] %v19277_v46  ;;  %6832 = vmatprep.mubr.f32.mxu1 %v22692_v42  ;;  %22693 = vst [vmem:[#allocation5_spill] sm:$0xff] %v19282_v34  ;;  %v8236_v45 = vsub.f32 %v8235_v40, %v22694_v37  ;;  %v19297_v42 = vand.u32 4294901760, %v8413_v32  ;;  %v19299_v46 = vsub.f32 %v8309_v58, %v8309_v58  ;;  %v11495_v37 = vpop.f32.mrb[119].mxu0  ;;  %v22699_v33 = vand.u32 4294901760, %v19103_v19  ;;  %v22701_v58 = vld [vmem:[#allocation133_spill] sm:$0xff] }
 0x59c   :  { %22695 = vst [vmem:[#allocation6_spill] sm:$0xff] %v19290_v59  ;;  %22697 = vst [vmem:[#allocation94_spill] sm:$0xff] %v19295_v9  ;;  %vm8259_vm7 = vcmp.ge.s32.totalorder %v19272_v36, %v19092_v13  ;;  %v9072_v40 = vsel %vm8320_vm10, %v8245_v16, 0  ;;  %vm8268_vm8 = vcmp.lt.s32.totalorder %v19272_v36, %v19114_v4  ;;  %vm8260_vm9 = vcmp.ge.s32.totalorder %v19275_v11, %v19092_v13 }
 0x59d   :  { %22698 = vst [vmem:[#allocation100_spill] sm:$0xff] %v19297_v42  ;;  %6838 = vmatmul.mubr.f32.gmra.mrb[190].mxu1 %v22699_v33  ;;  %v8237_v38 = vmax.f32 %v8236_v45, 1.0  ;;  %v11173_v32 = vadd.f32 %v11172_v26, %v11171_v31  ;;  %v19310_v47 = vadd.f32 %v11495_v37, %v11494_v29  ;;  %v19313_v7 = vand.u32 4294901760, %v9072_v40  ;;  %vm8276_vm11 = vmand %vm8259_vm7, %vm8268_vm8  ;;  %v22703_v31 = vld [vmem:[#allocation96_spill] sm:$0xff]  ;;  %v11174_v26 = vpop.f32.mrb[86].mxu1  ;;  %v11497_v37 = vpop.f32.mrb[120].mxu0 }
 0x59e   :  { %7310 = vmatprep.mubr.f32.mxu1 %v22701_v58  ;;  %v8423_v19 = vsub.f32 %v19261_v57, %v19282_v34  ;;  %v19318_v45 = vand.u32 4294901760, %v19299_v46  ;;  %v19321_v16 = vsel %vm8276_vm11, 1.0, %v22658_v35  ;;  %vm8269_vm12 = vcmp.lt.s32.totalorder %v19275_v11, %v19114_v4  ;;  %v11175_v36 = vpop.f32.mrb[87].mxu1 }
 0x59f   :  { %22700 = vst [vmem:[#allocation130_spill] sm:$0xff] %v19310_v47  ;;  %14095 = vrcp.f32 %v8237_v38  ;;  %v19326_v29 = vadd.f32 %v11173_v32, %v22703_v31  ;;  %v19329_v33 = vsub.f32 %v9072_v40, %v19313_v7  ;;  %12427 = vmatprep.subr.mxu0 %v19313_v7  ;;  %v8312_v38 = vsel %vm8295_vm6, %v19321_v16, 0  ;;  %vm8277_vm13 = vmand %vm8260_vm9, %vm8269_vm12  ;;  %v11498_v32 = vpop.f32.mrb[121].mxu0  ;;  %v22706_v31 = vld [vmem:[#allocation85_spill] sm:$0xff] }
 0x5a0   :  { %22702 = vst [vmem:[#allocation81_spill] sm:$0xff] %v19318_v45  ;;  %v19338_v58 = vadd.s32 56, %v19070_v28  ;;  %v22707_v47 = vand.u32 4294901760, %v22565_v53  ;;  %v22708_v40 = vld [vmem:[#allocation33_spill] sm:$0xff]  ;;  %12428 = vmatpush3.msra.mxu0 %v19313_v7  ;;  %v8433_v18 = vsub.f32 %v19299_v46, %v19318_v45  ;;  %v19348_v34 = vsub.f32 %v8312_v38, %v8312_v38 }
 0x5a1   :  { %22704 = vst [vmem:[#allocation119_spill] sm:$0xff] %v19326_v29  ;;  %7313 = vmatmul.mubr.f32.vlgmr.msra.gmra.mrb[192].mxu1 %v22706_v31  ;;  %v22709_v29 = vand.u32 4294901760, %v22708_v40  ;;  %v19351_v11 = vsel %vm8277_vm13, 1.0, %v22658_v35  ;;  %v11176_v28 = vadd.f32 %v11175_v36, %v11174_v26  ;;  %v19353_v8 = vadd.f32 %v11498_v32, %v11497_v37  ;;  %v22711_v31 = vld [vmem:[#allocation142_spill] sm:$0xff]  ;;  %12430 = vmatmul.mubr.f32.vlgmr.msra.gmra.mrb[222].mxu0 %v19290_v59  ;;  %v11177_v37 = vpop.f32.mrb[88].mxu1  ;;  %v11500_v38 = vpop.f32.mrb[122].mxu0 }
 0x5a2   :  { %22705 = vst [vmem:[#allocation57_spill] sm:$0xff] %v19338_v58  ;;  %13350 = vmatpush3.bf16.msra.mxu1 %v19215_v0  ;;  %7319 = vmatprep.mubr.f32.mxu1 %v22711_v31  ;;  %v8315_v53 = vsel %vm8295_vm6, %v19351_v11, 0  ;;  %vm8261_vm14 = vcmp.ge.s32.totalorder %v19338_v58, %v19092_v13  ;;  %v19366_v36 = vand.u32 4294901760, %v19348_v34  ;;  %vm8270_vm15 = vcmp.lt.s32.totalorder %v19338_v58, %v19114_v4  ;;  %v22714_v0 = vld [vmem:[#allocation122_spill] sm:$0xff]  ;;  %v11501_v32 = vpop.f32.mrb[123].mxu0 }
 0x5a3   :  { %v13355_v9 = vpack.c.bf16 %v22709_v29, %v22707_v47  ;;  %22710 = vst [vmem:[#allocation44_spill] sm:$0xff] %v19353_v8  ;;  %13352 = vmatprep.subr.bf16.mxu1 %v19228_v39  ;;  %v19363_v47 = vand.u32 4294901760, %v8423_v19  ;;  %v19368_v29 = vsub.f32 %v8315_v53, %v8315_v53  ;;  %v19373_v26 = vadd.f32 %v11176_v28, %v22714_v0  ;;  %vm8278_vm0 = vmand %vm8261_vm14, %vm8270_vm15  ;;  %v11178_v19 = vpop.f32.mrb[89].mxu1  ;;  %v22717_v40 = vld [vmem:[#allocation118_spill] sm:$0xff] }
 0x5a4   :  { %22713 = vst [vmem:[#allocation23_spill] sm:$0xff] %v19366_v36  ;;  %12432 = vmatprep.mubr.f32.mxu0 %v19297_v42  ;;  %v19376_v39 = vand.u32 4294901760, %v8433_v18  ;;  %v19379_v13 = vand.u32 4294901760, %v19329_v33  ;;  %v22718_v31 = vand.u32 4294901760, %v22570_v41  ;;  %v22719_v4 = vand.u32 4294901760, %v22571_v52  ;;  %v22722_v42 = vld [vmem:[#allocation152_spill] sm:$0xff] }
 0x5a5   :  { %22712 = vst [vmem:[#allocation56_spill] sm:$0xff] %v19363_v47  ;;  %22715 = vst [vmem:[#allocation45_spill] sm:$0xff] %v19373_v26  ;;  %7322 = vmatmul.mubr.f32.gmra.mrb[194].mxu1 %v22717_v40  ;;  %v8443_v53 = vsub.f32 %v19348_v34, %v19366_v36  ;;  %v19389_v0 = vand.u32 4294901760, %v19368_v29  ;;  %v19392_v18 = vsel %vm8278_vm0, 1.0, %v22658_v35  ;;  %v11179_v58 = vadd.f32 %v11178_v19, %v11177_v37 }
 0x5a6   :  { %22716 = vst [vmem:[#allocation108_spill] sm:$0xff] %v19376_v39  ;;  %v13357_v28 = vpack.c.bf16 %v22719_v4, %v22718_v31  ;;  %v19394_v8 = vadd.f32 %v11501_v32, %v11500_v38  ;;  %7328 = vmatprep.mubr.f32.mxu1 %v22722_v42  ;;  %13354 = vmatpush3.bf16.msra.mxu1 %v19246_v54  ;;  %v8318_v41 = vsel %vm8295_vm6, %v19392_v18, 0  ;;  %v22723_v40 = vand.u32 4294901760, %v22573_v51  ;;  %v22725_v38 = vld [vmem:[#allocation110_spill] sm:$0xff]  ;;  %v11180_v32 = vpop.f32.mrb[90].mxu1  ;;  %v11503_v4 = vpop.f32.mrb[124].mxu0 }
 0x5a7   :  { %22720 = vst [vmem:[#allocation145_spill] sm:$0xff] %v19389_v0  ;;  %v9224_v52 = vsub.f32 %v19329_v33, %v19379_v13  ;;  %13356 = vmatprep.subr.bf16.mxu1 %v13355_v9  ;;  %v22724_v31 = vand.u32 4294901760, %v22574_v24  ;;  %12433 = vmatmul.mubr.f32.gmra.mrb[224].mxu0 %v19363_v47  ;;  %v19407_v37 = vand.u32 4294901760, %v8443_v53  ;;  %v8453_v42 = vsub.f32 %v19368_v29, %v19389_v0  ;;  %v11181_v24 = vpop.f32.mrb[91].mxu1 }
 0x5a8   :  { %22721 = vst [vmem:[#allocation150_spill] sm:$0xff] %v19394_v8  ;;  %v19411_v54 = vsub.f32 %v8318_v41, %v8318_v41  ;;  %v19414_v19 = vadd.f32 %v11179_v58, %v22725_v38  ;;  %12435 = vmatprep.mubr.f32.mxu0 %v19376_v39  ;;  %v11182_v41 = vadd.f32 %v11181_v24, %v11180_v32  ;;  %v22729_v58 = vld [vmem:[#allocation17_spill] sm:$0xff]  ;;  %v22730_v38 = vand.u32 4294901760, %v22578_v62  ;;  %v22737_v24 = vld [vmem:[#allocation20_spill] sm:$0xff] }
 0x5a9   :  { %v13359_v35 = vpack.c.bf16 %v22724_v31, %v22723_v40  ;;  %v9225_v51 = vand.u32 4294901760, %v9224_v52  ;;  %v14096_v9 = vpop.eup %14095  ;;  %v11504_v40 = vpop.f32.mrb[125].mxu0  ;;  %v22727_v31 = vld [vmem:[#allocation55_spill] sm:$0xff]  ;;  %v19418_v53 = vand.u32 4294901760, %v8453_v42  ;;  %v22731_v52 = vand.u32 4294901760, %v22579_v14 }
 0x5aa   :  { %22726 = vst [vmem:[#allocation154_spill] sm:$0xff] %v19414_v19  ;;  %7331 = vmatmul.mubr.f32.gmra.mrb[196].mxu1 %v22727_v31  ;;  %v19421_v8 = vand.u32 4294901760, %v19411_v54  ;;  %v19423_v47 = vadd.f32 %v11504_v40, %v11503_v4  ;;  %v19431_v59 = vsel %vm8320_vm10, %v14096_v9, 0  ;;  %v22733_v42 = vand.u32 4294901760, %v22581_v27  ;;  %v22734_v31 = vld [vmem:[#allocation106_spill] sm:$0xff]  ;;  %v11183_v62 = vpop.f32.mrb[92].mxu1 }
 0x5ab   :  { %7337 = vmatprep.mubr.f32.mxu1 %v22729_v58  ;;  %13358 = vmatpush3.bf16.msra.mxu1 %v13357_v28  ;;  %v13361_v39 = vpack.c.bf16 %v22731_v52, %v22730_v38  ;;  %22732 = vst [vmem:[#allocation157_spill] sm:$0xff] %v19431_v59  ;;  %v22735_v19 = vand.u32 4294901760, %v22734_v31  ;;  %v22736_v28 = vld [vmem:[#allocation132_spill] sm:$0xff]  ;;  %v11506_v14 = vpop.f32.mrb[126].mxu0  ;;  %v11184_v9 = vpop.f32.mrb[93].mxu1  ;;  %v22740_v38 = vand.u32 4294901760, %v22588_v49 }
 0x5ac   :  { %22728 = vst [vmem:[#allocation156_spill] sm:$0xff] %v19421_v8  ;;  %13360 = vmatprep.subr.bf16.mxu1 %v13359_v35  ;;  %12436 = vmatmul.mubr.f32.gmra.mrb[226].mxu0 %v19407_v37  ;;  %v8463_v32 = vsub.f32 %v19411_v54, %v19421_v8  ;;  %v19441_v4 = vadd.f32 %v11182_v41, %v22736_v28  ;;  %v11507_v35 = vpop.f32.mrb[127].mxu0  ;;  %v22738_v58 = vld [vmem:[#allocation120_spill] sm:$0xff]  ;;  %v22739_v41 = vand.u32 4294901760, %v22587_v5  ;;  %v22742_v31 = vld [vmem:[#allocation155_spill] sm:$0xff]  ;;  %vm10706_vm13 = vcmask 7168  }
 0x5ad   :  { %v13363_v26 = vpack.c.bf16 %v22735_v19, %v22733_v42  ;;  %12438 = vmatprep.mubr.f32.mxu0 %v19418_v53  ;;  %12441 = vmatprep.subr.mxu0 %v9225_v51  ;;  %v11185_v19 = vadd.f32 %v11184_v9, %v11183_v62  ;;  %v19447_v40 = vadd.f32 %v11507_v35, %v11506_v14  ;;  %v22741_v42 = vand.u32 4294901760, %v22590_v10  ;;  %v11186_v62 = vpop.f32.mrb[94].mxu1  ;;  %v11621_v14 = vpop.f32.mrb[128].mxu0  ;;  %v22746_v9 = vld [vmem:[#allocation38_spill] sm:$0xff] }
 0x5ae   :  { %7340 = vmatmul.mubr.f32.gmra.mrb[198].mxu1 %v22737_v24  ;;  %v19445_v27 = vand.u32 4294901760, %v8463_v32  ;;  %12442 = vmatpush3.msra.mxu0 %v9225_v51  ;;  %v13365_v52 = vpack.c.bf16 %v22740_v38, %v22739_v41  ;;  %v22743_v28 = vand.u32 4294901760, %v22742_v31  ;;  %v22744_v51 = vld [vmem:[#allocation124_spill] sm:$0xff]  ;;  %v11187_v49 = vpop.f32.mrb[95].mxu1  ;;  %v11622_v5 = vpop.f32.mrb[129].mxu0  ;;  %v22747_v35 = vand.u32 4294901760, %v22596_v2 }
 0x5af   :  { %7346 = vmatprep.mubr.f32.mxu1 %v22738_v58  ;;  %13362 = vmatpush3.bf16.msra.mxu1 %v13361_v39  ;;  %v19460_v32 = vadd.f32 %v11185_v19, %v22744_v51  ;;  %v11188_v10 = vadd.f32 %v11187_v49, %v11186_v62  ;;  %v19466_v39 = vadd.f32 %v11622_v5, %v11621_v14  ;;  %v22748_v19 = vand.u32 4294901760, %v22597_v17  ;;  %v22751_v31 = vld [vmem:[#allocation126_spill] sm:$0xff] }
 0x5b0   :  { %13364 = vmatprep.subr.bf16.mxu1 %v13363_v26  ;;  %v13367_v24 = vpack.c.bf16 %v22743_v28, %v22741_v42  ;;  %12439 = vmatmul.mubr.f32.gmra.mrb[228].mxu0 %v19445_v27  ;;  %v22745_v26 = vld [vmem:[#allocation149_spill] sm:$0xff]  ;;  %v22749_v41 = vand.u32 4294901760, %v22599_v50  ;;  %v22750_v38 = vand.u32 4294901760, %v22600_v1  ;;  %v22754_v14 = vand.u32 4294901760, %v22604_v55 }
 0x5b1   :  { %12443 = vmatprep.mubr.msk.f32.mxu0 %vm8295_vm6, %v19147_v6  ;;  %12455 = vmatprep.subr.mxu0 %v19329_v33  ;;  %v13369_v58 = vpack.c.bf16 %v22748_v19, %v22747_v35  ;;  %v19480_v28 = vadd.f32 %v11188_v10, %v22751_v31  ;;  %v11221_v51 = vpop.f32.mrb[96].mxu1  ;;  %v11624_v62 = vpop.f32.mrb[130].mxu0  ;;  %v22755_v49 = vand.u32 4294901760, %v22605_v44  ;;  %v22758_v44 = vld [vmem:[#allocation147_spill] sm:$0xff]  ;;  %v22761_v31 = vld [vmem:[#allocation148_spill] sm:$0xff] }
 0x5b2   :  { %7349 = vmatmul.mubr.f32.gmra.mrb[200].mxu1 %v22745_v26  ;;  %v13371_v42 = vpack.c.bf16 %v22750_v38, %v22749_v41  ;;  %v11222_v17 = vpop.f32.mrb[97].mxu1  ;;  %v11625_v2 = vpop.f32.mrb[131].mxu0  ;;  %v22757_v26 = vand.u32 4294901760, %v22608_v56  ;;  %v22759_v41 = vand.u32 4294901760, %v22611_v22 }
 0x5b3   :  { %7355 = vmatprep.mubr.f32.mxu1 %v22746_v9  ;;  %13366 = vmatpush3.bf16.msra.mxu1 %v13365_v52  ;;  %v22752_v52 = vld [vmem:[#allocation121_spill] sm:$0xff]  ;;  %v11223_v50 = vadd.f32 %v11222_v17, %v11221_v51  ;;  %v19487_v1 = vadd.f32 %v11625_v2, %v11624_v62  ;;  %v13373_v5 = vpack.c.bf16 %v22755_v49, %v22754_v14  ;;  %v22765_v49 = vld [vmem:[#allocation68_spill] sm:$0xff] }
 0x5b4   :  { %13368 = vmatprep.subr.bf16.mxu1 %v13367_v24  ;;  %12444 = vmatmul.mubr.msk.f32.vlgmr.msra.gmra.mrb[222].mxu0 %vm8295_vm6, %v19161_v30  ;;  %v22753_v24 = vld [vmem:[#allocation146_spill] sm:$0xff]  ;;  %v22764_v14 = vld [vmem:[#allocation153_spill] sm:$0xff] }
 0x5b5   :  { %12446 = vmatprep.mubr.msk.f32.mxu0 %vm8295_vm6, %v19181_v25  ;;  %12456 = vmatpush3.msra.mxu0 %v19329_v33  ;;  %v22756_v33 = vand.u32 4294901760, %v22607_v61  ;;  %v5613_v9 = vadd.f32 %v11223_v50, %v18988_v63  ;;  %v11224_v35 = vpop.f32.mrb[98].mxu1  ;;  %v11627_v19 = vpop.f32.mrb[132].mxu0  ;;  %v22760_v61 = vand.u32 4294901760, %v22612_v15  ;;  %v22762_v63 = vld [vmem:[#allocation151_spill] sm:$0xff] }
 0x5b6   :  { %7358 = vmatmul.mubr.f32.gmra.mrb[202].mxu1 %v22752_v52  ;;  %12469 = vmatprep.subr.mxu0 %v19313_v7  ;;  %v11225_v55 = vpop.f32.mrb[99].mxu1  ;;  %v22763_v52 = vld [vmem:[#allocation113_spill] sm:$0xff] }
 0x5b7   :  { %7364 = vmatprep.mubr.f32.mxu1 %v22753_v24  ;;  %13370 = vmatpush3.bf16.msra.mxu1 %v13369_v58  ;;  %v13375_v10 = vpack.c.bf16 %v22757_v26, %v22756_v33  ;;  %v11628_v58 = vpop.f32.mrb[133].mxu0  ;;  %v13377_v56 = vpack.c.bf16 %v22760_v61, %v22759_v41  ;;  %v11226_v38 = vadd.f32 %v11225_v55, %v11224_v35  ;;  %v22766_v33 = vld [vmem:[#allocation42_spill] sm:$0xff]  ;;  %v22768_v55 = vld [vmem:[#allocation159_spill] sm:$0xff]  ;;  %v22769_v41 = vld [vmem:[#allocation64_spill] sm:$0xff] }
 0x5b8   :  { %13372 = vmatprep.subr.bf16.mxu1 %v13371_v42  ;;  %12447 = vmatmul.mubr.msk.f32.gmra.mrb[224].mxu0 %vm8295_vm6, %v19233_v23  ;;  %v19508_v42 = vadd.f32 %v11628_v58, %v11627_v19  ;;  %v19512_v51 = vadd.f32 %v22762_v63, %v5613_v9  ;;  %v22770_v61 = vld [vmem:[#allocation158_spill] sm:$0xff] }
 0x5b9   :  { %12449 = vmatprep.mubr.msk.f32.mxu0 %vm8295_vm6, %v19285_v21  ;;  %v5622_v62 = vadd.f32 %v11226_v38, %v19005_v60  ;;  %v11227_v17 = vpop.f32.mrb[100].mxu1  ;;  %v11630_v22 = vpop.f32.mrb[134].mxu0  ;;  %v22767_v60 = vld [vmem:[#allocation12_spill] sm:$0xff]  ;;  %v22771_v38 = vld [vmem:[#allocation13_spill] sm:$0xff] }
 0x5ba   :  { %7367 = vmatmul.mubr.f32.gmra.mrb[204].mxu1 %v22758_v44  ;;  %v11228_v15 = vpop.f32.mrb[101].mxu1  ;;  %v11631_v2 = vpop.f32.mrb[135].mxu0 }
 0x5bb   :  { %7373 = vmatprep.mubr.f32.mxu1 %v22761_v31  ;;  %13374 = vmatpush3.bf16.msra.mxu1 %v13373_v5  ;;  %v11229_v50 = vadd.f32 %v11228_v15, %v11227_v17  ;;  %v19520_v24 = vadd.f32 %v11631_v2, %v11630_v22  ;;  %v19524_v5 = vadd.f32 %v22765_v49, %v5622_v62  ;;  %v22772_v15 = vld [vmem:[#allocation137_spill] sm:$0xff] }
 0x5bc   :  { %13376 = vmatprep.subr.bf16.mxu1 %v13375_v10  ;;  %12450 = vmatmul.mubr.msk.f32.gmra.mrb[226].mxu0 %vm8295_vm6, %v19321_v16 }
 0x5bd   :  { %12452 = vmatprep.mubr.msk.f32.mxu0 %vm8295_vm6, %v19351_v11  ;;  %v5631_v26 = vadd.f32 %v11229_v50, %v22767_v60  ;;  %v11230_v10 = vpop.f32.mrb[102].mxu1  ;;  %v11633_v9 = vpop.f32.mrb[136].mxu0  ;;  %v22773_v50 = vld [vmem:[#allocation163_spill] sm:$0xff] }
 0x5be   :  { %7376 = vmatmul.mubr.f32.gmra.mrb[206].mxu1 %v22763_v52  ;;  %v11231_v35 = vpop.f32.mrb[103].mxu1  ;;  %v11634_v19 = vpop.f32.mrb[137].mxu0 }
 0x5bf   :  { %7382 = vmatprep.mubr.f32.mxu1 %v22764_v14  ;;  %13378 = vmatpush3.bf16.msra.mxu1 %v13377_v56  ;;  %v11232_v58 = vadd.f32 %v11231_v35, %v11230_v10  ;;  %v19532_v44 = vadd.f32 %v11634_v19, %v11633_v9  ;;  %v19536_v56 = vadd.f32 %v22770_v61, %v5631_v26  ;;  %v22774_v14 = vld [vmem:[#allocation136_spill] sm:$0xff]  ;;  %v22776_v19 = vld [vmem:[#allocation162_spill] sm:$0xff]  ;;  %v22779_v61 = vld [vmem:[#allocation69_spill] sm:$0xff] }
 0x5c0   :  { %13427 = vmatprep.subr.bf16.mxu1 %v22766_v33  ;;  %12453 = vmatmul.mubr.msk.f32.gmra.mrb[228].mxu0 %vm8295_vm6, %v19392_v18  ;;  %v22775_v33 = vld [vmem:[#allocation73_spill] sm:$0xff] }
 0x5c1   :  { %12457 = vmatprep.mubr.f32.mxu0 %v19168_v43  ;;  %v5640_v31 = vadd.f32 %v11232_v58, %v22771_v38  ;;  %v11233_v63 = vpop.f32.mrb[104].mxu1 }
 0x5c2   :  { %7385 = vmatmul.mubr.f32.gmra.mrb[208].mxu1 %v22768_v55  ;;  %v11636_v62 = vpop.f32.mrb[138].mxu0  ;;  %v11234_v17 = vpop.f32.mrb[105].mxu1 }
 0x5c3   :  { %7391 = vmatprep.mubr.f32.mxu1 %v22769_v41  ;;  %v11637_v22 = vpop.f32.mrb[139].mxu0  ;;  %v11235_v2 = vadd.f32 %v11234_v17, %v11233_v63  ;;  %v19548_v49 = vadd.f32 %v22774_v14, %v5640_v31  ;;  %v22778_v41 = vld [vmem:[#allocation11_spill] sm:$0xff]  ;;  %v22780_v31 = vld [vmem:[#allocation21_spill] sm:$0xff] }
 0x5c4   :  { %12458 = vmatmul.mubr.f32.vlgmr.msra.gmra.mrb[222].mxu0 %v19178_v20  ;;  %v19544_v52 = vadd.f32 %v11637_v22, %v11636_v62 }
 0x5c5   :  { %12460 = vmatprep.mubr.f32.mxu0 %v19219_v3  ;;  %12470 = vmatpush3.msra.mxu0 %v19313_v7  ;;  %v5649_v60 = vadd.f32 %v11235_v2, %v22775_v33  ;;  %v11236_v26 = vpop.f32.mrb[106].mxu1  ;;  %v22781_v2 = vld [vmem:[#allocation60_spill] sm:$0xff]  ;;  %v22783_v33 = vld [vmem:[#allocation49_spill] sm:$0xff] }
 0x5c6   :  { %7394 = vmatmul.mubr.f32.gmra.mrb[210].mxu1 %v22772_v15  ;;  %12483 = vmatprep.subr.mxu0 %v19379_v13  ;;  %v11639_v10 = vpop.f32.mrb[140].mxu0  ;;  %v11237_v9 = vpop.f32.mrb[107].mxu1 }
 0x5c7   :  { %7400 = vmatprep.mubr.f32.mxu1 %v22773_v50  ;;  %v11640_v35 = vpop.f32.mrb[141].mxu0  ;;  %v11238_v55 = vadd.f32 %v11237_v9, %v11236_v26  ;;  %v19558_v38 = vadd.f32 %v22779_v61, %v5649_v60  ;;  %v22784_v26 = vld [vmem:[#allocation78_spill] sm:$0xff]  ;;  %v22786_v61 = vld [vmem:[#allocation28_spill] sm:$0xff] }
 0x5c8   :  { %12461 = vmatmul.mubr.f32.gmra.mrb[224].mxu0 %v19261_v57  ;;  %v19554_v58 = vadd.f32 %v11640_v35, %v11639_v10  ;;  %v22785_v10 = vld [vmem:[#allocation50_spill] sm:$0xff] }
 0x5c9   :  { %12463 = vmatprep.mubr.f32.mxu0 %v19299_v46  ;;  %v5658_v63 = vadd.f32 %v11238_v55, %v22780_v31  ;;  %v11239_v62 = vpop.f32.mrb[108].mxu1 }
 0x5ca   :  { %7403 = vmatmul.mubr.f32.gmra.mrb[212].mxu1 %v22776_v19  ;;  %22777 = vst [vmem:[#allocation160_spill] sm:$0xff] %v19554_v58  ;;  %v11642_v17 = vpop.f32.mrb[142].mxu0  ;;  %v11240_v22 = vpop.f32.mrb[109].mxu1 }
 0x5cb   :  { %7409 = vmatprep.mubr.f32.mxu1 %v22778_v41  ;;  %v11643_v15 = vpop.f32.mrb[143].mxu0  ;;  %v11241_v50 = vadd.f32 %v11240_v22, %v11239_v62  ;;  %v19568_v60 = vadd.f32 %v22784_v26, %v5658_v63  ;;  %v22789_v22 = vld [vmem:[#allocation98_spill] sm:$0xff]  ;;  %v22791_v26 = vld [vmem:[#allocation123_spill] sm:$0xff] }
 0x5cc   :  { %12464 = vmatmul.mubr.f32.gmra.mrb[226].mxu0 %v19348_v34  ;;  %v19564_v14 = vadd.f32 %v11643_v15, %v11642_v17  ;;  %v22788_v17 = vld [vmem:[#allocation27_spill] sm:$0xff] }
 0x5cd   :  { %12466 = vmatprep.mubr.f32.mxu0 %v19368_v29  ;;  %v5667_v9 = vadd.f32 %v11241_v50, %v22785_v10  ;;  %v11242_v35 = vpop.f32.mrb[110].mxu1  ;;  %v22790_v15 = vld [vmem:[#allocation127_spill] sm:$0xff] }
 0x5ce   :  { %7412 = vmatmul.mubr.f32.gmra.mrb[214].mxu1 %v22781_v2  ;;  %22782 = vst [vmem:[#allocation161_spill] sm:$0xff] %v19564_v14  ;;  %v11645_v19 = vpop.f32.mrb[144].mxu0  ;;  %v11243_v55 = vpop.f32.mrb[111].mxu1  ;;  %v22798_v14 = vld [vmem:[#allocation18_spill] sm:$0xff] }
 0x5cf   :  { %7418 = vmatprep.mubr.f32.mxu1 %v22783_v33  ;;  %v11646_v41 = vpop.f32.mrb[145].mxu0  ;;  %v11244_v31 = vadd.f32 %v11243_v55, %v11242_v35  ;;  %v19578_v63 = vadd.f32 %v22789_v22, %v5667_v9  ;;  %v22792_v35 = vld [vmem:[#allocation62_spill] sm:$0xff]  ;;  %v22794_v9 = vld [vmem:[#allocation109_spill] sm:$0xff] }
 0x5d0   :  { %12467 = vmatmul.mubr.f32.gmra.mrb[228].mxu0 %v19411_v54  ;;  %v19574_v62 = vadd.f32 %v11646_v41, %v11645_v19  ;;  %v22795_v41 = vld [vmem:[#allocation83_spill] sm:$0xff]  ;;  %v22797_v22 = vld [vmem:[#allocation53_spill] sm:$0xff] }
 0x5d1   :  { %12471 = vmatprep.mubr.f32.mxu0 %v19191_v48  ;;  %v5676_v2 = vadd.f32 %v11244_v31, %v22790_v15  ;;  %v11245_v50 = vpop.f32.mrb[112].mxu1  ;;  %v22796_v31 = vld [vmem:[#allocation5_spill] sm:$0xff] }
 0x5d2   :  { %7421 = vmatmul.mubr.f32.gmra.mrb[216].mxu1 %v22786_v61  ;;  %22787 = vst [vmem:[#allocation164_spill] sm:$0xff] %v19574_v62  ;;  %v11648_v33 = vpop.f32.mrb[146].mxu0  ;;  %v11246_v10 = vpop.f32.mrb[113].mxu1 }
 0x5d3   :  { %7427 = vmatprep.mubr.f32.mxu1 %v22788_v17  ;;  %v11649_v61 = vpop.f32.mrb[147].mxu0  ;;  %v11247_v19 = vadd.f32 %v11246_v10, %v11245_v50  ;;  %v19590_v17 = vadd.f32 %v22795_v41, %v5676_v2  ;;  %v22800_v10 = vld [vmem:[#allocation9_spill] sm:$0xff] }
 0x5d4   :  { %12472 = vmatmul.mubr.f32.vlgmr.msra.gmra.mrb[222].mxu0 %v19206_v12  ;;  %v19586_v55 = vadd.f32 %v11649_v61, %v11648_v33  ;;  %v22801_v61 = vld [vmem:[#allocation40_spill] sm:$0xff] }
 0x5d5   :  { %12474 = vmatprep.mubr.f32.mxu0 %v22791_v26  ;;  %12484 = vmatpush3.msra.mxu0 %v19379_v13  ;;  %v5685_v15 = vadd.f32 %v11247_v19, %v22797_v22  ;;  %v11248_v59 = vpop.f32.mrb[114].mxu1 }
 0x5d6   :  { %7430 = vmatmul.mubr.f32.gmra.mrb[218].mxu1 %v22792_v35  ;;  %12497 = vmatprep.subr.mxu0 %v19313_v7  ;;  %22793 = vst [vmem:[#allocation165_spill] sm:$0xff] %v19586_v55  ;;  %v11651_v13 = vpop.f32.mrb[148].mxu0  ;;  %v11249_v62 = vpop.f32.mrb[115].mxu1 }
 0x5d7   :  { %7436 = vmatprep.mubr.f32.mxu1 %v22794_v9  ;;  %v11652_v35 = vpop.f32.mrb[149].mxu0  ;;  %v11250_v50 = vadd.f32 %v11249_v62, %v11248_v59  ;;  %v19600_v2 = vadd.f32 %v22801_v61, %v5685_v15  ;;  %v22802_v9 = vld [vmem:[#allocation94_spill] sm:$0xff]  ;;  %v22805_v62 = vld [vmem:[#allocation43_spill] sm:$0xff] }
 0x5d8   :  { %12475 = vmatmul.mubr.f32.gmra.mrb[224].mxu0 %v22796_v31  ;;  %v19596_v33 = vadd.f32 %v11652_v35, %v11651_v13  ;;  %v22803_v31 = vld [vmem:[#allocation116_spill] sm:$0xff]  ;;  %v22807_v35 = vld [vmem:[#allocation119_spill] sm:$0xff] }
 0x5d9   :  { %12477 = vmatprep.mubr.f32.mxu0 %v19318_v45  ;;  %v5694_v19 = vadd.f32 %v11250_v50, %v22802_v9  ;;  %v11251_v41 = vpop.f32.mrb[116].mxu1  ;;  %v22806_v13 = vld [vmem:[#allocation88_spill] sm:$0xff] }
 0x5da   :  { %7439 = vmatmul.mubr.f32.gmra.mrb[220].mxu1 %v22798_v14  ;;  %22799 = vst [vmem:[#allocation166_spill] sm:$0xff] %v19596_v33  ;;  %v11654_v22 = vpop.f32.mrb[150].mxu0  ;;  %v11252_v55 = vpop.f32.mrb[117].mxu1 }
 0x5db   :  { %7445 = vmatprep.mubr.f32.mxu1 %v22800_v10  ;;  %v11655_v45 = vpop.f32.mrb[151].mxu0  ;;  %v11253_v59 = vadd.f32 %v11252_v55, %v11251_v41  ;;  %v19610_v15 = vadd.f32 %v22806_v13, %v5694_v19  ;;  %v22810_v41 = vld [vmem:[#allocation52_spill] sm:$0xff]  ;;  %v22811_v19 = vld [vmem:[#allocation41_spill] sm:$0xff] }
 0x5dc   :  { %12478 = vmatmul.mubr.f32.gmra.mrb[226].mxu0 %v19366_v36  ;;  %v19606_v14 = vadd.f32 %v11655_v45, %v11654_v22  ;;  %v22812_v22 = vld [vmem:[#allocation7_spill] sm:$0xff]  ;;  %v22814_v13 = vld [vmem:[#allocation45_spill] sm:$0xff] }
 0x5dd   :  { %12480 = vmatprep.mubr.f32.mxu0 %v19389_v0  ;;  %v5703_v50 = vadd.f32 %v11253_v59, %v22807_v35  ;;  %v11254_v10 = vpop.f32.mrb[118].mxu1  ;;  %v22813_v59 = vld [vmem:[#allocation138_spill] sm:$0xff] }
 0x5de   :  { %7448 = vmatmul.mubr.f32.gmra.mrb[222].mxu1 %v22803_v31  ;;  %22804 = vst [vmem:[#allocation167_spill] sm:$0xff] %v19606_v14  ;;  %v11657_v61 = vpop.f32.mrb[152].mxu0  ;;  %v11255_v9 = vpop.f32.mrb[119].mxu1  ;;  %v22808_v31 = vld [vmem:[#allocation51_spill] sm:$0xff] }
 0x5df   :  { %7887 = vmatprep.mubr.f32.mxu1 %v22805_v62  ;;  %v11658_v33 = vpop.f32.mrb[153].mxu0  ;;  %v11256_v45 = vadd.f32 %v11255_v9, %v11254_v10  ;;  %v19622_v62 = vadd.f32 %v22812_v22, %v5703_v50  ;;  %v22820_v22 = vld [vmem:[#allocation79_spill] sm:$0xff] }
 0x5e0   :  { %12481 = vmatmul.mubr.f32.gmra.mrb[228].mxu0 %v19421_v8  ;;  %v19617_v55 = vadd.f32 %v11658_v33, %v11657_v61  ;;  %v22815_v61 = vld [vmem:[#allocation66_spill] sm:$0xff] }
 0x5e1   :  { %12485 = vmatprep.mubr.msk.f32.mxu0 %vm8295_vm6, %v19147_v6  ;;  %v5712_v35 = vadd.f32 %v11256_v45, %v22814_v13  ;;  %v11257_v14 = vpop.f32.mrb[120].mxu1 }
 0x5e2   :  { %7889 = vmatmul.mubr.f32.vlgmr.msra.gmra.mrb[224].mxu1 %v22808_v31  ;;  %22809 = vst [vmem:[#allocation48_spill] sm:$0xff] %v19617_v55  ;;  %v11660_v8 = vpop.f32.mrb[154].mxu0  ;;  %v11258_v33 = vpop.f32.mrb[121].mxu1  ;;  %v22817_v31 = vld [vmem:[#allocation16_spill] sm:$0xff] }
 0x5e3   :  { %13435 = vmatpush3.bf16.msra.mxu1 %v22810_v41  ;;  %7894 = vmatprep.mubr.f32.mxu1 %v22811_v19  ;;  %v11661_v10 = vpop.f32.mrb[155].mxu0  ;;  %v11259_v50 = vadd.f32 %v11258_v33, %v11257_v14  ;;  %v22818_v41 = vld [vmem:[#allocation19_spill] sm:$0xff]  ;;  %v22822_v33 = vld [vmem:[#allocation80_spill] sm:$0xff] }
 0x5e4   :  { %13428 = vmatprep.subr.bf16.mxu1 %v22813_v59  ;;  %12486 = vmatmul.mubr.msk.f32.vlgmr.msra.gmra.mrb[222].mxu0 %vm8295_vm6, %v19161_v30  ;;  %v19632_v9 = vadd.f32 %v11661_v10, %v11660_v8  ;;  %v22819_v19 = vld [vmem:[#allocation95_spill] sm:$0xff] }
 0x5e5   :  { %12498 = vmatpush3.msra.mxu0 %v19313_v7  ;;  %12488 = vmatprep.mubr.msk.f32.mxu0 %vm8295_vm6, %v19181_v25  ;;  %v19637_v45 = vadd.f32 %v22819_v19, %v5712_v35  ;;  %v22821_v7 = vld [vmem:[#allocation154_spill] sm:$0xff]  ;;  %v11260_v13 = vpop.f32.mrb[122].mxu1  ;;  %v22824_v35 = vld [vmem:[#allocation3_spill] sm:$0xff] }
 0x5e6   :  { %7896 = vmatmul.mubr.f32.gmra.mrb[226].mxu1 %v22815_v61  ;;  %22816 = vst [vmem:[#allocation35_spill] sm:$0xff] %v19632_v9  ;;  %v5721_v59 = vadd.f32 %v11259_v50, %v22821_v7  ;;  %v11663_v55 = vpop.f32.mrb[156].mxu0  ;;  %v11261_v8 = vpop.f32.mrb[123].mxu1  ;;  %v22827_v50 = vld [vmem:[#allocation87_spill] sm:$0xff] }
 0x5e7   :  { %7901 = vmatprep.mubr.f32.mxu1 %v22817_v31  ;;  %13436 = vmatpush3.bf16.msra.mxu1 %v22818_v41  ;;  %v11664_v14 = vpop.f32.mrb[157].mxu0  ;;  %v11262_v10 = vadd.f32 %v11261_v8, %v11260_v13  ;;  %v22825_v31 = vld [vmem:[#allocation4_spill] sm:$0xff]  ;;  %v22826_v41 = vld [vmem:[#allocation114_spill] sm:$0xff]  ;;  %v22828_v8 = vld [vmem:[#allocation97_spill] sm:$0xff] }
 0x5e8   :  { %13429 = vmatprep.subr.bf16.mxu1 %v22820_v22  ;;  %12489 = vmatmul.mubr.msk.f32.gmra.mrb[224].mxu0 %vm8295_vm6, %v19233_v23  ;;  %v19646_v61 = vadd.f32 %v11664_v14, %v11663_v55  ;;  %v19651_v19 = vadd.f32 %v22826_v41, %v5721_v59  ;;  %v22830_v59 = vld [vmem:[#allocation115_spill] sm:$0xff] }
 0x5e9   :  { %12491 = vmatprep.mubr.msk.f32.mxu0 %vm8295_vm6, %v19285_v21  ;;  %v5730_v22 = vadd.f32 %v11262_v10, %v19441_v4  ;;  %v11263_v7 = vpop.f32.mrb[124].mxu1  ;;  %v22833_v4 = vld [vmem:[#allocation125_spill] sm:$0xff] }
 0x5ea   :  { %7903 = vmatmul.mubr.f32.gmra.mrb[228].mxu1 %v22822_v33  ;;  %22823 = vst [vmem:[#allocation90_spill] sm:$0xff] %v19646_v61  ;;  %v11666_v9 = vpop.f32.mrb[158].mxu0  ;;  %v11264_v55 = vpop.f32.mrb[125].mxu1 }
 0x5eb   :  { %7908 = vmatprep.mubr.f32.mxu1 %v22824_v35  ;;  %13437 = vmatpush3.bf16.msra.mxu1 %v22825_v31  ;;  %v11667_v13 = vpop.f32.mrb[159].mxu0  ;;  %v11265_v14 = vadd.f32 %v11264_v55, %v11263_v7  ;;  %v22831_v35 = vld [vmem:[#allocation103_spill] sm:$0xff]  ;;  %v22832_v31 = vld [vmem:[#allocation22_spill] sm:$0xff]  ;;  %v22834_v55 = vld [vmem:[#allocation117_spill] sm:$0xff] }
 0x5ec   :  { %13430 = vmatprep.subr.bf16.mxu1 %v22827_v50  ;;  %12492 = vmatmul.mubr.msk.f32.gmra.mrb[226].mxu0 %vm8295_vm6, %v19321_v16  ;;  %v19660_v33 = vadd.f32 %v11667_v13, %v11666_v9  ;;  %v19665_v41 = vadd.f32 %v22832_v31, %v5730_v22  ;;  %v22836_v22 = vld [vmem:[#allocation77_spill] sm:$0xff] }
 0x5ed   :  { %12494 = vmatprep.mubr.msk.f32.mxu0 %vm8295_vm6, %v19351_v11  ;;  %v5739_v10 = vadd.f32 %v11265_v14, %v19460_v32  ;;  %v11266_v50 = vpop.f32.mrb[126].mxu1  ;;  %v22839_v32 = vld [vmem:[#allocation31_spill] sm:$0xff] }
 0x5ee   :  { %7910 = vmatmul.mubr.f32.gmra.mrb[230].mxu1 %v22828_v8  ;;  %22829 = vst [vmem:[#allocation32_spill] sm:$0xff] %v19660_v33  ;;  %v11781_v61 = vpop.f32.mrb[160].mxu0  ;;  %v11267_v9 = vpop.f32.mrb[127].mxu1 }
 0x5ef   :  { %7915 = vmatprep.mubr.f32.mxu1 %v22830_v59  ;;  %13438 = vmatpush3.bf16.msra.mxu1 %v22831_v35  ;;  %v11782_v7 = vpop.f32.mrb[161].mxu0  ;;  %v11268_v13 = vadd.f32 %v11267_v9, %v11266_v50  ;;  %v22837_v59 = vld [vmem:[#allocation26_spill] sm:$0xff]  ;;  %v22838_v35 = vld [vmem:[#allocation112_spill] sm:$0xff] }
 0x5f0   :  { %13431 = vmatprep.subr.bf16.mxu1 %v22833_v4  ;;  %12495 = vmatmul.mubr.msk.f32.gmra.mrb[228].mxu0 %vm8295_vm6, %v19392_v18  ;;  %v19674_v8 = vadd.f32 %v11782_v7, %v11781_v61  ;;  %v19679_v31 = vadd.f32 %v22838_v35, %v5739_v10  ;;  %v22840_v9 = vld [vmem:[#allocation92_spill] sm:$0xff]  ;;  %v22842_v10 = vld [vmem:[#allocation86_spill] sm:$0xff] }
 0x5f1   :  { %12499 = vmatprep.mubr.msk.f32.mxu0 %vm8295_vm6, %v19147_v6  ;;  %v5748_v14 = vadd.f32 %v11268_v13, %v19480_v28  ;;  %v11381_v4 = vpop.f32.mrb[128].mxu1  ;;  %v22845_v28 = vld [vmem:[#allocation168_spill] sm:$0xff] }
 0x5f2   :  { %7917 = vmatmul.mubr.f32.gmra.mrb[232].mxu1 %v22834_v55  ;;  %22835 = vst [vmem:[#allocation91_spill] sm:$0xff] %v19674_v8  ;;  %v11784_v33 = vpop.f32.mrb[162].mxu0  ;;  %v11382_v61 = vpop.f32.mrb[129].mxu1 }
 0x5f3   :  { %7922 = vmatprep.mubr.f32.mxu1 %v22836_v22  ;;  %13439 = vmatpush3.bf16.msra.mxu1 %v22837_v59  ;;  %v11785_v50 = vpop.f32.mrb[163].mxu0  ;;  %v11383_v7 = vadd.f32 %v11382_v61, %v11381_v4  ;;  %v22843_v22 = vld [vmem:[#allocation99_spill] sm:$0xff]  ;;  %v22844_v59 = vld [vmem:[#allocation61_spill] sm:$0xff]  ;;  %v22846_v61 = vld [vmem:[#allocation34_spill] sm:$0xff] }
 0x5f4   :  { %13432 = vmatprep.subr.bf16.mxu1 %v22839_v32  ;;  %12500 = vmatmul.mubr.msk.f32.vlgmr.msra.gmra.mrb[222].mxu0 %vm8295_vm6, %v19161_v30  ;;  %v19688_v55 = vadd.f32 %v11785_v50, %v11784_v33  ;;  %v19693_v35 = vadd.f32 %v22844_v59, %v5748_v14  ;;  %v22848_v14 = vld [vmem:[#allocation129_spill] sm:$0xff] }
 0x5f5   :  { %12502 = vmatprep.mubr.msk.f32.mxu0 %vm8295_vm6, %v19181_v25  ;;  %v6189_v13 = vadd.f32 %v11383_v7, %v19512_v51  ;;  %v11384_v32 = vpop.f32.mrb[130].mxu1  ;;  %v22851_v51 = vld [vmem:[#allocation37_spill] sm:$0xff] }
 0x5f6   :  { %7924 = vmatmul.mubr.f32.gmra.mrb[234].mxu1 %v22840_v9  ;;  %22841 = vst [vmem:[#allocation144_spill] sm:$0xff] %v19688_v55  ;;  %v11787_v8 = vpop.f32.mrb[164].mxu0  ;;  %v11385_v33 = vpop.f32.mrb[131].mxu1 }
 0x5f7   :  { %7929 = vmatprep.mubr.f32.mxu1 %v22842_v10  ;;  %13440 = vmatpush3.bf16.msra.mxu1 %v22843_v22  ;;  %v11788_v4 = vpop.f32.mrb[165].mxu0  ;;  %v11386_v50 = vadd.f32 %v11385_v33, %v11384_v32  ;;  %v22849_v10 = vld [vmem:[#allocation169_spill] sm:$0xff]  ;;  %v22850_v22 = vld [vmem:[#allocation135_spill] sm:$0xff] }
 0x5f8   :  { %13433 = vmatprep.subr.bf16.mxu1 %v22845_v28  ;;  %12503 = vmatmul.mubr.msk.f32.gmra.mrb[224].mxu0 %vm8295_vm6, %v19233_v23  ;;  %v19702_v9 = vadd.f32 %v11788_v4, %v11787_v8  ;;  %v19707_v59 = vadd.f32 %v22850_v22, %v6189_v13  ;;  %v22852_v8 = vld [vmem:[#allocation111_spill] sm:$0xff] }
 0x5f9   :  { %12505 = vmatprep.mubr.msk.f32.mxu0 %vm8295_vm6, %v19285_v21  ;;  %v6196_v7 = vadd.f32 %v11386_v50, %v19524_v5  ;;  %v11387_v28 = vpop.f32.mrb[132].mxu1  ;;  %v19716_v32 = vand.u32 4294901760, %v22852_v8  ;;  %v22856_v22 = vld [vmem:[#allocation47_spill] sm:$0xff] }
 0x5fa   :  { %7931 = vmatmul.mubr.f32.gmra.mrb[236].mxu1 %v22846_v61  ;;  %22847 = vst [vmem:[#allocation104_spill] sm:$0xff] %v19702_v9  ;;  %v11790_v55 = vpop.f32.mrb[166].mxu0  ;;  %v11388_v33 = vpop.f32.mrb[133].mxu1  ;;  %v22853_v61 = vld [vmem:[#allocation128_spill] sm:$0xff]  ;;  %v22857_v5 = vld [vmem:[#allocation75_spill] sm:$0xff] }
 0x5fb   :  { %7936 = vmatprep.mubr.f32.mxu1 %v22848_v14  ;;  %13441 = vmatpush3.bf16.msra.mxu1 %v22849_v10  ;;  %v11791_v4 = vpop.f32.mrb[167].mxu0  ;;  %v11389_v13 = vadd.f32 %v11388_v33, %v11387_v28  ;;  %v22855_v10 = vld [vmem:[#allocation134_spill] sm:$0xff]  ;;  %v19724_v50 = vadd.f32 %v22857_v5, %v6196_v7  ;;  %v22861_v7 = vld [vmem:[#allocation143_spill] sm:$0xff] }
 0x5fc   :  { %13434 = vmatprep.subr.bf16.mxu1 %v22851_v51  ;;  %12506 = vmatmul.mubr.msk.f32.gmra.mrb[226].mxu0 %vm8295_vm6, %v19321_v16  ;;  %v19719_v14 = vadd.f32 %v11791_v4, %v11790_v55  ;;  %v22858_v55 = vld [vmem:[#allocation84_spill] sm:$0xff] }
 0x5fd   :  { %12508 = vmatprep.mubr.msk.f32.mxu0 %vm8295_vm6, %v19351_v11  ;;  %v6203_v51 = vadd.f32 %v11389_v13, %v19536_v56  ;;  %v11390_v9 = vpop.f32.mrb[134].mxu1  ;;  %v22862_v13 = vld [vmem:[#allocation59_spill] sm:$0xff] }
 0x5fe   :  { %7938 = vmatmul.mubr.f32.gmra.mrb[238].mxu1 %v22853_v61  ;;  %22854 = vst [vmem:[#allocation8_spill] sm:$0xff] %v19719_v14  ;;  %v11793_v0 = vpop.f32.mrb[168].mxu0  ;;  %v11391_v61 = vpop.f32.mrb[135].mxu1 }
 0x5ff   :  { %7943 = vmatprep.mubr.f32.mxu1 %v22855_v10  ;;  %13442 = vmatpush3.bf16.msra.mxu1 %v22856_v22  ;;  %v11794_v28 = vpop.f32.mrb[169].mxu0  ;;  %v11392_v33 = vadd.f32 %v11391_v61, %v11390_v9  ;;  %v22860_v10 = vld [vmem:[#allocation72_spill] sm:$0xff]  ;;  %v19735_v22 = vadd.f32 %v22861_v7, %v6203_v51 }
 0x600   :  { %12343 = vmatprep.subr.mxu1 %v19716_v32  ;;  %12509 = vmatmul.mubr.msk.f32.gmra.mrb[228].mxu0 %vm8295_vm6, %v19392_v18  ;;  %v19731_v4 = vadd.f32 %v11794_v28, %v11793_v0  ;;  %v22865_v0 = vld [vmem:[#allocation140_spill] sm:$0xff] }
 0x601   :  { %v6210_v5 = vadd.f32 %v11392_v33, %v19548_v49  ;;  %v11393_v14 = vpop.f32.mrb[136].mxu1  ;;  %v22866_v33 = vld [vmem:[#allocation102_spill] sm:$0xff] }
 0x602   :  { %7945 = vmatmul.mubr.f32.gmra.mrb[240].mxu1 %v22858_v55  ;;  %22859 = vst [vmem:[#allocation67_spill] sm:$0xff] %v19731_v4  ;;  %v11796_v36 = vpop.f32.mrb[170].mxu0  ;;  %v11394_v26 = vpop.f32.mrb[137].mxu1  ;;  %v22864_v55 = vld [vmem:[#allocation89_spill] sm:$0xff] }
 0x603   :  { %7950 = vmatprep.mubr.f32.mxu1 %v22860_v10  ;;  %v11797_v56 = vpop.f32.mrb[171].mxu0  ;;  %v11395_v12 = vadd.f32 %v11394_v26, %v11393_v14  ;;  %v19743_v9 = vadd.f32 %v22865_v0, %v6210_v5 }
 0x604   :  { %v19739_v58 = vadd.f32 %v11797_v56, %v11796_v36  ;;  %v22869_v36 = vld [vmem:[#allocation141_spill] sm:$0xff] }
 0x605   :  { %v6217_v61 = vadd.f32 %v11395_v12, %v19558_v38  ;;  %v11396_v51 = vpop.f32.mrb[138].mxu1  ;;  %v22870_v38 = vld [vmem:[#allocation107_spill] sm:$0xff] }
 0x606   :  { %7952 = vmatmul.mubr.f32.gmra.mrb[242].mxu1 %v22862_v13  ;;  %22863 = vst [vmem:[#allocation133_spill] sm:$0xff] %v19739_v58  ;;  %v11799_v28 = vpop.f32.mrb[172].mxu0  ;;  %v11397_v10 = vpop.f32.mrb[139].mxu1  ;;  %v22868_v13 = vld [vmem:[#allocation10_spill] sm:$0xff] }
 0x607   :  { %7957 = vmatprep.mubr.f32.mxu1 %v22864_v55  ;;  %v11800_v49 = vpop.f32.mrb[173].mxu0  ;;  %v11398_v7 = vadd.f32 %v11397_v10, %v11396_v51  ;;  %v19751_v26 = vadd.f32 %v22869_v36, %v6217_v61  ;;  %v22873_v51 = vld [vmem:[#allocation63_spill] sm:$0xff] }
 0x608   :  { %v19747_v4 = vadd.f32 %v11800_v49, %v11799_v28 }
 0x609   :  { %v6224_v14 = vadd.f32 %v11398_v7, %v19568_v60  ;;  %v11399_v5 = vpop.f32.mrb[140].mxu1  ;;  %v22874_v7 = vld [vmem:[#allocation24_spill] sm:$0xff] }
 0x60a   :  { %7959 = vmatmul.mubr.f32.gmra.mrb[244].mxu1 %v22866_v33  ;;  %22867 = vst [vmem:[#allocation96_spill] sm:$0xff] %v19747_v4  ;;  %v11802_v56 = vpop.f32.mrb[174].mxu0  ;;  %v11400_v55 = vpop.f32.mrb[141].mxu1  ;;  %v22872_v33 = vld [vmem:[#allocation54_spill] sm:$0xff] }
 0x60b   :  { %7964 = vmatprep.mubr.f32.mxu1 %v22868_v13  ;;  %v11803_v12 = vpop.f32.mrb[175].mxu0  ;;  %v11401_v0 = vadd.f32 %v11400_v55, %v11399_v5  ;;  %v19759_v28 = vadd.f32 %v22873_v51, %v6224_v14  ;;  %v22877_v5 = vld [vmem:[#allocation74_spill] sm:$0xff]  ;;  %v19771_v14 = vsub.f32 %v22852_v8, %v19716_v32  ;;  %v22878_v51 = vld [vmem:[#allocation39_spill] sm:$0xff] }
 0x60c   :  { %v19755_v58 = vadd.f32 %v11803_v12, %v11802_v56 }
 0x60d   :  { %v6231_v10 = vadd.f32 %v11401_v0, %v19578_v63  ;;  %v11402_v61 = vpop.f32.mrb[142].mxu1 }
 0x60e   :  { %7966 = vmatmul.mubr.f32.gmra.mrb[246].mxu1 %v22870_v38  ;;  %22871 = vst [vmem:[#allocation85_spill] sm:$0xff] %v19755_v58  ;;  %v11805_v49 = vpop.f32.mrb[176].mxu0  ;;  %v11403_v13 = vpop.f32.mrb[143].mxu1  ;;  %v22876_v38 = vld [vmem:[#allocation71_spill] sm:$0xff]  ;;  %v22888_v58 = vld [vmem:[#allocation93_spill] sm:$0xff] }
 0x60f   :  { %7971 = vmatprep.mubr.f32.mxu1 %v22872_v33  ;;  %v11806_v60 = vpop.f32.mrb[177].mxu0  ;;  %v11404_v36 = vadd.f32 %v11403_v13, %v11402_v61  ;;  %v19767_v56 = vadd.f32 %v22877_v5, %v6231_v10  ;;  %v22880_v13 = vld [vmem:[#allocation14_spill] sm:$0xff] }
 0x610   :  { %v19763_v4 = vadd.f32 %v11806_v60, %v11805_v49  ;;  %v22881_v60 = vld [vmem:[#allocation131_spill] sm:$0xff] }
 0x611   :  { %v6238_v63 = vadd.f32 %v11404_v36, %v19590_v17  ;;  %v11405_v55 = vpop.f32.mrb[144].mxu1 }
 0x612   :  { %7973 = vmatmul.mubr.f32.gmra.mrb[248].mxu1 %v22874_v7  ;;  %22875 = vst [vmem:[#allocation33_spill] sm:$0xff] %v19763_v4  ;;  %v11808_v12 = vpop.f32.mrb[178].mxu0  ;;  %v11406_v0 = vpop.f32.mrb[145].mxu1  ;;  %v19782_v7 = vand.u32 4294901760, %v19771_v14  ;;  %v22883_v4 = vld [vmem:[#allocation46_spill] sm:$0xff] }
 0x613   :  { %7978 = vmatprep.mubr.f32.mxu1 %v22876_v38  ;;  %v11809_v33 = vpop.f32.mrb[179].mxu0  ;;  %v11407_v61 = vadd.f32 %v11406_v0, %v11405_v55  ;;  %v19779_v10 = vadd.f32 %v22881_v60, %v6238_v63  ;;  %v22886_v0 = vld [vmem:[#allocation29_spill] sm:$0xff] }
 0x614   :  { %v19775_v49 = vadd.f32 %v11809_v33, %v11808_v12  ;;  %v22885_v12 = vld [vmem:[#allocation58_spill] sm:$0xff]  ;;  %v8474_v63 = vsub.f32 %v19771_v14, %v19782_v7 }
 0x615   :  { %22882 = vst [vmem:[#allocation122_spill] sm:$0xff] %v19779_v10  ;;  %v6245_v8 = vadd.f32 %v11407_v61, %v19600_v2  ;;  %v11408_v17 = vpop.f32.mrb[146].mxu1 }
 0x616   :  { %7980 = vmatmul.mubr.f32.gmra.mrb[250].mxu1 %v22878_v51  ;;  %22879 = vst [vmem:[#allocation142_spill] sm:$0xff] %v19775_v49  ;;  %v11811_v36 = vpop.f32.mrb[180].mxu0  ;;  %v11409_v38 = vpop.f32.mrb[147].mxu1 }
 0x617   :  { %7985 = vmatprep.mubr.f32.mxu1 %v22880_v13  ;;  %v11812_v5 = vpop.f32.mrb[181].mxu0  ;;  %v11410_v51 = vadd.f32 %v11409_v38, %v11408_v17  ;;  %v19790_v33 = vadd.f32 %v22886_v0, %v6245_v8  ;;  %v8475_v8 = vand.u32 4294901760, %v8474_v63 }
 0x618   :  { %v19786_v55 = vadd.f32 %v11812_v5, %v11811_v36  ;;  %v22890_v36 = vld [vmem:[#allocation65_spill] sm:$0xff] }
 0x619   :  { %22887 = vst [vmem:[#allocation152_spill] sm:$0xff] %v19790_v33  ;;  %v6252_v13 = vadd.f32 %v11410_v51, %v19610_v15  ;;  %v11411_v2 = vpop.f32.mrb[148].mxu1 }
 0x61a   :  { %7987 = vmatmul.mubr.f32.gmra.mrb[252].mxu1 %v22883_v4  ;;  %22884 = vst [vmem:[#allocation118_spill] sm:$0xff] %v19786_v55  ;;  %v11814_v61 = vpop.f32.mrb[182].mxu0  ;;  %v11412_v60 = vpop.f32.mrb[149].mxu1 }
 0x61b   :  { %7992 = vmatprep.mubr.f32.mxu1 %v22885_v12  ;;  %v11815_v49 = vpop.f32.mrb[183].mxu0  ;;  %v11413_v4 = vadd.f32 %v11412_v60, %v11411_v2  ;;  %v19800_v38 = vadd.f32 %v22890_v36, %v6252_v13 }
 0x61c   :  { %v19796_v17 = vadd.f32 %v11815_v49, %v11814_v61  ;;  %v22892_v49 = vld [vmem:[#allocation101_spill] sm:$0xff] }
 0x61d   :  { %v6259_v5 = vadd.f32 %v11413_v4, %v19622_v62  ;;  %v11414_v0 = vpop.f32.mrb[150].mxu1  ;;  %v22894_v4 = vld [vmem:[#allocation6_spill] sm:$0xff] }
 0x61e   :  { %7994 = vmatmul.mubr.f32.gmra.mrb[254].mxu1 %v22888_v58  ;;  %22889 = vst [vmem:[#allocation110_spill] sm:$0xff] %v19796_v17  ;;  %v11817_v55 = vpop.f32.mrb[184].mxu0  ;;  %v11415_v15 = vpop.f32.mrb[151].mxu1 }
 0x61f   :  { %8201 = vmatprep.mubr.f32.mxu1 %v22885_v12  ;;  %v11818_v51 = vpop.f32.mrb[185].mxu0  ;;  %v11416_v33 = vadd.f32 %v11415_v15, %v11414_v0  ;;  %v22893_v12 = vld [vmem:[#allocation15_spill] sm:$0xff]  ;;  %v22897_v0 = vld [vmem:[#allocation130_spill] sm:$0xff] }
 0x620   :  { %v19804_v10 = vadd.f32 %v11818_v51, %v11817_v55  ;;  %v19809_v2 = vadd.f32 %v22893_v12, %v6259_v5  ;;  %v22896_v55 = vld [vmem:[#allocation100_spill] sm:$0xff] }
 0x621   :  { %v6266_v63 = vadd.f32 %v11416_v33, %v19637_v45  ;;  %v11417_v62 = vpop.f32.mrb[152].mxu1 }
 0x622   :  { %8203 = vmatmul.mubr.f32.vlgmr.msra.gmra.mrb[16].mxu1 %v22888_v58  ;;  %22891 = vst [vmem:[#allocation55_spill] sm:$0xff] %v19804_v10  ;;  %v11820_v13 = vpop.f32.mrb[186].mxu0  ;;  %v11418_v61 = vpop.f32.mrb[153].mxu1  ;;  %v22898_v10 = vld [vmem:[#allocation56_spill] sm:$0xff] }
 0x623   :  { %12344 = vmatpush3.msra.mxu1 %v19716_v32  ;;  %12345 = vmatprep.mubr.f32.mxu1 %v22892_v49  ;;  %v11821_v60 = vpop.f32.mrb[187].mxu0  ;;  %v11419_v58 = vadd.f32 %v11418_v61, %v11417_v62  ;;  %v19817_v15 = vadd.f32 %v22897_v0, %v6266_v63 }
 0x624   :  { %12357 = vmatprep.subr.mxu1 %v8475_v8  ;;  %v19813_v36 = vadd.f32 %v11821_v60, %v11820_v13  ;;  %v22900_v13 = vld [vmem:[#allocation108_spill] sm:$0xff] }
 0x625   :  { %v6273_v5 = vadd.f32 %v11419_v58, %v19651_v19  ;;  %v11420_v45 = vpop.f32.mrb[154].mxu1 }
 0x626   :  { %12346 = vmatmul.mubr.f32.vlgmr.msra.gmra.mrb[18].mxu1 %v22894_v4  ;;  %22895 = vst [vmem:[#allocation17_spill] sm:$0xff] %v19813_v36  ;;  %v11823_v33 = vpop.f32.mrb[188].mxu0  ;;  %v11421_v51 = vpop.f32.mrb[155].mxu1 }
 0x627   :  { %12358 = vmatpush3.msra.mxu1 %v8475_v8  ;;  %12348 = vmatprep.mubr.f32.mxu1 %v22896_v55  ;;  %v11824_v12 = vpop.f32.mrb[189].mxu0  ;;  %v11422_v17 = vadd.f32 %v11421_v51, %v11420_v45  ;;  %v22901_v8 = vld [vmem:[#allocation44_spill] sm:$0xff]  ;;  %v22902_v45 = vld [vmem:[#allocation150_spill] sm:$0xff] }
 0x628   :  { %12371 = vmatprep.subr.mxu1 %v19771_v14  ;;  %v19822_v62 = vadd.f32 %v11824_v12, %v11823_v33  ;;  %v19826_v61 = vadd.f32 %v22901_v8, %v6273_v5 }
 0x629   :  { %v6280_v63 = vadd.f32 %v11422_v17, %v19665_v41  ;;  %v11423_v60 = vpop.f32.mrb[156].mxu1 }
 0x62a   :  { %12349 = vmatmul.mubr.f32.gmra.mrb[20].mxu1 %v22898_v10  ;;  %22899 = vst [vmem:[#allocation106_spill] sm:$0xff] %v19822_v62  ;;  %v11826_v0 = vpop.f32.mrb[190].mxu0  ;;  %v11424_v36 = vpop.f32.mrb[157].mxu1 }
 0x62b   :  { %12351 = vmatprep.mubr.f32.mxu1 %v22900_v13  ;;  %v11827_v19 = vpop.f32.mrb[191].mxu0  ;;  %v11425_v58 = vadd.f32 %v11424_v36, %v11423_v60  ;;  %v19834_v33 = vadd.f32 %v22902_v45, %v6280_v63 }
 0x62c   :  { %v19830_v55 = vadd.f32 %v11827_v19, %v11826_v0 }
 0x62d   :  { %v6287_v51 = vadd.f32 %v11425_v58, %v19679_v31  ;;  %v11426_v5 = vpop.f32.mrb[158].mxu1 }
 0x62e   :  { %12352 = vmatmul.mubr.f32.gmra.mrb[22].mxu1 %v19407_v37  ;;  %v11941_v12 = vpop.f32.mrb[192].mxu0  ;;  %v11427_v8 = vpop.f32.mrb[159].mxu1 }
 0x62f   :  { %12354 = vmatprep.mubr.f32.mxu1 %v19418_v53  ;;  %v11942_v41 = vpop.f32.mrb[193].mxu0  ;;  %v11428_v17 = vadd.f32 %v11427_v8, %v11426_v5  ;;  %v19843_v36 = vadd.f32 %v19423_v47, %v6287_v51 }
 0x630   :  { %v19838_v62 = vadd.f32 %v11942_v41, %v11941_v12 }
 0x631   :  { %v6294_v63 = vadd.f32 %v11428_v17, %v19693_v35  ;;  %v11541_v60 = vpop.f32.mrb[160].mxu1 }
 0x632   :  { %12355 = vmatmul.mubr.f32.gmra.mrb[24].mxu1 %v19445_v27  ;;  %v11944_v0 = vpop.f32.mrb[194].mxu0  ;;  %v11542_v31 = vpop.f32.mrb[161].mxu1 }
 0x633   :  { %12359 = vmatprep.mubr.msk.f32.mxu1 %vm8295_vm6, %v19147_v6  ;;  %v11945_v19 = vpop.f32.mrb[195].mxu0  ;;  %v11543_v58 = vadd.f32 %v11542_v31, %v11541_v60  ;;  %v19854_v47 = vadd.f32 %v19447_v40, %v6294_v63 }
 0x634   :  { %v19848_v45 = vadd.f32 %v11945_v19, %v11944_v0 }
 0x635   :  { %v6615_v35 = vadd.f32 %v11543_v58, %v19707_v59  ;;  %v11544_v51 = vpop.f32.mrb[162].mxu1 }
 0x636   :  { %12360 = vmatmul.mubr.msk.f32.vlgmr.msra.gmra.mrb[18].mxu1 %vm8295_vm6, %v19161_v30  ;;  %22903 = vst [vmem:[#allocation132_spill] sm:$0xff] %v19848_v45  ;;  %v11947_v5 = vpop.f32.mrb[196].mxu0  ;;  %v11545_v12 = vpop.f32.mrb[163].mxu1  ;;  %v22924_v45 = vld [vmem:[#allocation145_spill] sm:$0xff] }
 0x637   :  { %12372 = vmatpush3.msra.mxu1 %v19771_v14  ;;  %12362 = vmatprep.mubr.msk.f32.mxu1 %vm8295_vm6, %v19181_v25  ;;  %v11948_v8 = vpop.f32.mrb[197].mxu0  ;;  %v11546_v41 = vadd.f32 %v11545_v12, %v11544_v51  ;;  %v19865_v40 = vadd.f32 %v19466_v39, %v6615_v35 }
 0x638   :  { %12385 = vmatprep.subr.mxu1 %v19716_v32  ;;  %v19860_v17 = vadd.f32 %v11948_v8, %v11947_v5 }
 0x639   :  { %v6630_v14 = vadd.f32 %v11546_v41, %v19724_v50  ;;  %v11547_v63 = vpop.f32.mrb[164].mxu1 }
 0x63a   :  { %12363 = vmatmul.mubr.msk.f32.gmra.mrb[20].mxu1 %vm8295_vm6, %v19233_v23  ;;  %22904 = vst [vmem:[#allocation20_spill] sm:$0xff] %v19860_v17  ;;  %v11950_v59 = vpop.f32.mrb[198].mxu0  ;;  %v11548_v60 = vpop.f32.mrb[165].mxu1 }
 0x63b   :  { %12365 = vmatprep.mubr.msk.f32.mxu1 %vm8295_vm6, %v19285_v21  ;;  %v11951_v0 = vpop.f32.mrb[199].mxu0  ;;  %v11549_v31 = vadd.f32 %v11548_v60, %v11547_v63  ;;  %v19875_v58 = vadd.f32 %v19487_v1, %v6630_v14 }
 0x63c   :  { %v19870_v19 = vadd.f32 %v11951_v0, %v11950_v59 }
 0x63d   :  { %v6645_v39 = vadd.f32 %v11549_v31, %v19735_v22  ;;  %v11550_v35 = vpop.f32.mrb[166].mxu1 }
 0x63e   :  { %12366 = vmatmul.mubr.msk.f32.gmra.mrb[22].mxu1 %vm8295_vm6, %v19321_v16  ;;  %22905 = vst [vmem:[#allocation120_spill] sm:$0xff] %v19870_v19  ;;  %v11953_v50 = vpop.f32.mrb[200].mxu0  ;;  %v11551_v51 = vpop.f32.mrb[167].mxu1 }
 0x63f   :  { %12368 = vmatprep.mubr.msk.f32.mxu1 %vm8295_vm6, %v19351_v11  ;;  %v11954_v5 = vpop.f32.mrb[201].mxu0  ;;  %v11552_v12 = vadd.f32 %v11551_v51, %v11550_v35  ;;  %v19884_v41 = vadd.f32 %v19508_v42, %v6645_v39 }
 0x640   :  { %v19880_v8 = vadd.f32 %v11954_v5, %v11953_v50 }
 0x641   :  { %v6660_v1 = vadd.f32 %v11552_v12, %v19743_v9  ;;  %v11553_v14 = vpop.f32.mrb[168].mxu1 }
 0x642   :  { %12369 = vmatmul.mubr.msk.f32.gmra.mrb[24].mxu1 %vm8295_vm6, %v19392_v18  ;;  %22906 = vst [vmem:[#allocation155_spill] sm:$0xff] %v19880_v8  ;;  %v11956_v63 = vpop.f32.mrb[202].mxu0  ;;  %v11554_v22 = vpop.f32.mrb[169].mxu1 }
 0x643   :  { %12373 = vmatprep.mubr.f32.mxu1 %v19168_v43  ;;  %v11957_v59 = vpop.f32.mrb[203].mxu0  ;;  %v11555_v60 = vadd.f32 %v11554_v22, %v11553_v14  ;;  %v19893_v31 = vadd.f32 %v19520_v24, %v6660_v1 }
 0x644   :  { %v19888_v0 = vadd.f32 %v11957_v59, %v11956_v63 }
 0x645   :  { %v6675_v42 = vadd.f32 %v11555_v60, %v19751_v26  ;;  %v11556_v9 = vpop.f32.mrb[170].mxu1 }
 0x646   :  { %12374 = vmatmul.mubr.f32.vlgmr.msra.gmra.mrb[18].mxu1 %v19178_v20  ;;  %22907 = vst [vmem:[#allocation124_spill] sm:$0xff] %v19888_v0  ;;  %v11959_v39 = vpop.f32.mrb[204].mxu0  ;;  %v11557_v35 = vpop.f32.mrb[171].mxu1  ;;  %v22918_v0 = vld [vmem:[#allocation5_spill] sm:$0xff] }
 0x647   :  { %12386 = vmatpush3.msra.mxu1 %v19716_v32  ;;  %12376 = vmatprep.mubr.f32.mxu1 %v19219_v3  ;;  %v11960_v50 = vpop.f32.mrb[205].mxu0  ;;  %v11558_v51 = vadd.f32 %v11557_v35, %v11556_v9  ;;  %v19902_v12 = vadd.f32 %v19532_v44, %v6675_v42 }
 0x648   :  { %12399 = vmatprep.subr.mxu1 %v19782_v7  ;;  %v19898_v5 = vadd.f32 %v11960_v50, %v11959_v39 }
 0x649   :  { %v6690_v24 = vadd.f32 %v11558_v51, %v19759_v28  ;;  %v11559_v1 = vpop.f32.mrb[172].mxu1  ;;  %v22911_v51 = vld [vmem:[#allocation160_spill] sm:$0xff] }
 0x64a   :  { %12377 = vmatmul.mubr.f32.gmra.mrb[20].mxu1 %v19261_v57  ;;  %22908 = vst [vmem:[#allocation149_spill] sm:$0xff] %v19898_v5  ;;  %v11962_v14 = vpop.f32.mrb[206].mxu0  ;;  %v11560_v63 = vpop.f32.mrb[173].mxu1 }
 0x64b   :  { %12379 = vmatprep.mubr.f32.mxu1 %v19299_v46  ;;  %v11963_v26 = vpop.f32.mrb[207].mxu0  ;;  %v11561_v22 = vadd.f32 %v11560_v63, %v11559_v1  ;;  %v19910_v60 = vadd.f32 %v19544_v52, %v6690_v24 }
 0x64c   :  { %v19906_v59 = vadd.f32 %v11963_v26, %v11962_v14  ;;  %v22912_v14 = vld [vmem:[#allocation122_spill] sm:$0xff] }
 0x64d   :  { %v6705_v9 = vadd.f32 %v11561_v22, %v19767_v56  ;;  %v11562_v44 = vpop.f32.mrb[174].mxu1  ;;  %v22913_v22 = vld [vmem:[#allocation82_spill] sm:$0xff] }
 0x64e   :  { %12380 = vmatmul.mubr.f32.gmra.mrb[22].mxu1 %v19348_v34  ;;  %22909 = vst [vmem:[#allocation38_spill] sm:$0xff] %v19906_v59  ;;  %v11965_v42 = vpop.f32.mrb[208].mxu0  ;;  %v11563_v39 = vpop.f32.mrb[175].mxu1 }
 0x64f   :  { %12382 = vmatprep.mubr.f32.mxu1 %v19368_v29  ;;  %v11966_v28 = vpop.f32.mrb[209].mxu0  ;;  %v11564_v35 = vadd.f32 %v11563_v39, %v11562_v44  ;;  %v19918_v1 = vadd.f32 %v22911_v51, %v6705_v9  ;;  %v22915_v44 = vld [vmem:[#allocation123_spill] sm:$0xff]  ;;  %v22917_v9 = vld [vmem:[#allocation152_spill] sm:$0xff] }
 0x650   :  { %v19914_v50 = vadd.f32 %v11966_v28, %v11965_v42  ;;  %v22916_v42 = vld [vmem:[#allocation161_spill] sm:$0xff] }
 0x651   :  { %v6720_v63 = vadd.f32 %v11564_v35, %v22912_v14  ;;  %v11565_v52 = vpop.f32.mrb[176].mxu1 }
 0x652   :  { %12383 = vmatmul.mubr.f32.gmra.mrb[24].mxu1 %v19411_v54  ;;  %22910 = vst [vmem:[#allocation126_spill] sm:$0xff] %v19914_v50  ;;  %v11968_v24 = vpop.f32.mrb[210].mxu0  ;;  %v11566_v26 = vpop.f32.mrb[177].mxu1 }
 0x653   :  { %12387 = vmatprep.mubr.f32.mxu1 %v19191_v48  ;;  %v11969_v56 = vpop.f32.mrb[211].mxu0  ;;  %v11567_v59 = vadd.f32 %v11566_v26, %v11565_v52  ;;  %v19927_v39 = vadd.f32 %v22916_v42, %v6720_v63  ;;  %v22920_v26 = vld [vmem:[#allocation81_spill] sm:$0xff] }
 0x654   :  { %v19922_v5 = vadd.f32 %v11969_v56, %v11968_v24 }
 0x655   :  { %v6735_v28 = vadd.f32 %v11567_v59, %v22917_v9  ;;  %v11568_v35 = vpop.f32.mrb[178].mxu1  ;;  %v22922_v9 = vld [vmem:[#allocation23_spill] sm:$0xff] }
 0x656   :  { %12388 = vmatmul.mubr.f32.vlgmr.msra.gmra.mrb[18].mxu1 %v22913_v22  ;;  %22914 = vst [vmem:[#allocation121_spill] sm:$0xff] %v19922_v5  ;;  %v11971_v51 = vpop.f32.mrb[212].mxu0  ;;  %v11569_v14 = vpop.f32.mrb[179].mxu1 }
 0x657   :  { %12400 = vmatpush3.msra.mxu1 %v19782_v7  ;;  %12390 = vmatprep.mubr.f32.mxu1 %v22915_v44  ;;  %v11972_v50 = vpop.f32.mrb[213].mxu0  ;;  %v11570_v52 = vadd.f32 %v11569_v14, %v11568_v35  ;;  %v22921_v7 = vld [vmem:[#allocation164_spill] sm:$0xff] }
 0x658   :  { %12413 = vmatprep.subr.mxu1 %v19716_v32  ;;  %v19932_v24 = vadd.f32 %v11972_v50, %v11971_v51  ;;  %v19936_v56 = vadd.f32 %v22921_v7, %v6735_v28  ;;  %v22925_v50 = vld [vmem:[#allocation165_spill] sm:$0xff] }
 0x659   :  { %v6750_v63 = vadd.f32 %v11570_v52, %v19800_v38  ;;  %v11571_v42 = vpop.f32.mrb[180].mxu1  ;;  %v22926_v52 = vld [vmem:[#allocation156_spill] sm:$0xff] }
 0x65a   :  { %12391 = vmatmul.mubr.f32.gmra.mrb[20].mxu1 %v22918_v0  ;;  %22919 = vst [vmem:[#allocation146_spill] sm:$0xff] %v19932_v24  ;;  %v11974_v5 = vpop.f32.mrb[214].mxu0  ;;  %v11572_v8 = vpop.f32.mrb[181].mxu1 }
 0x65b   :  { %12393 = vmatprep.mubr.f32.mxu1 %v22920_v26  ;;  %v11975_v59 = vpop.f32.mrb[215].mxu0  ;;  %v11573_v19 = vadd.f32 %v11572_v8, %v11571_v42  ;;  %v19944_v35 = vadd.f32 %v22925_v50, %v6750_v63  ;;  %v22928_v8 = vld [vmem:[#allocation166_spill] sm:$0xff] }
 0x65c   :  { %v19940_v17 = vadd.f32 %v11975_v59, %v11974_v5 }
 0x65d   :  { %v6765_v51 = vadd.f32 %v11573_v19, %v19809_v2  ;;  %v11574_v28 = vpop.f32.mrb[182].mxu1  ;;  %v22929_v2 = vld [vmem:[#allocation157_spill] sm:$0xff] }
 0x65e   :  { %12394 = vmatmul.mubr.f32.gmra.mrb[22].mxu1 %v22922_v9  ;;  %22923 = vst [vmem:[#allocation147_spill] sm:$0xff] %v19940_v17  ;;  %v11977_v14 = vpop.f32.mrb[216].mxu0  ;;  %v11575_v7 = vpop.f32.mrb[183].mxu1  ;;  %v19957_v19 = vand.u32 4294901760, %v22929_v2 }
 0x65f   :  { %12396 = vmatprep.mubr.f32.mxu1 %v22924_v45  ;;  %v11978_v38 = vpop.f32.mrb[217].mxu0  ;;  %v11576_v24 = vadd.f32 %v11575_v7, %v11574_v28  ;;  %v19953_v5 = vadd.f32 %v22928_v8, %v6765_v51  ;;  %v22931_v51 = vld [vmem:[#allocation167_spill] sm:$0xff] }
 0x660   :  { %v19948_v26 = vadd.f32 %v11978_v38, %v11977_v14 }
 0x661   :  { %v6780_v63 = vadd.f32 %v11576_v24, %v19817_v15  ;;  %v11577_v42 = vpop.f32.mrb[184].mxu1 }
 0x662   :  { %12397 = vmatmul.mubr.f32.gmra.mrb[24].mxu1 %v22926_v52  ;;  %22927 = vst [vmem:[#allocation148_spill] sm:$0xff] %v19948_v26  ;;  %v11980_v59 = vpop.f32.mrb[218].mxu0  ;;  %v11578_v50 = vpop.f32.mrb[185].mxu1 }
 0x663   :  { %12401 = vmatprep.mubr.msk.f32.mxu1 %vm8295_vm6, %v19147_v6  ;;  %v11981_v17 = vpop.f32.mrb[219].mxu0  ;;  %v11579_v28 = vadd.f32 %v11578_v50, %v11577_v42  ;;  %v19967_v15 = vadd.f32 %v22931_v51, %v6780_v63  ;;  %v22933_v63 = vld [vmem:[#allocation48_spill] sm:$0xff] }
 0x664   :  { %v19961_v14 = vadd.f32 %v11981_v17, %v11980_v59 }
 0x665   :  { %v6795_v24 = vadd.f32 %v11579_v28, %v19826_v61  ;;  %v11580_v7 = vpop.f32.mrb[186].mxu1 }
 0x666   :  { %12402 = vmatmul.mubr.msk.f32.vlgmr.msra.gmra.mrb[18].mxu1 %vm8295_vm6, %v19161_v30  ;;  %22930 = vst [vmem:[#allocation151_spill] sm:$0xff] %v19961_v14  ;;  %v11983_v38 = vpop.f32.mrb[220].mxu0  ;;  %v11581_v8 = vpop.f32.mrb[187].mxu1 }
 0x667   :  { %12414 = vmatpush3.msra.mxu1 %v19716_v32  ;;  %12404 = vmatprep.mubr.msk.f32.mxu1 %vm8295_vm6, %v19181_v25  ;;  %v11984_v26 = vpop.f32.mrb[221].mxu0  ;;  %v19975_v32 = vsub.f32 %v22929_v2, %v19957_v19  ;;  %v11582_v17 = vadd.f32 %v11581_v8, %v11580_v7  ;;  %v19982_v59 = vadd.f32 %v22933_v63, %v6795_v24  ;;  %v22935_v63 = vld [vmem:[#allocation90_spill] sm:$0xff] }
 0x668   :  { %12511 = vmatprep.subr.mxu1 %v19957_v19  ;;  %v19977_v42 = vadd.f32 %v11984_v26, %v11983_v38  ;;  %v22934_v26 = vld [vmem:[#allocation35_spill] sm:$0xff] }
 0x669   :  { %v6810_v61 = vadd.f32 %v11582_v17, %v19834_v33  ;;  %v19988_v51 = vand.u32 4294901760, %v19975_v32 }
 0x66a   :  { %12405 = vmatmul.mubr.msk.f32.gmra.mrb[20].mxu1 %vm8295_vm6, %v19233_v23  ;;  %22932 = vst [vmem:[#allocation113_spill] sm:$0xff] %v19977_v42 }
 0x66b   :  { %12407 = vmatprep.mubr.msk.f32.mxu1 %vm8295_vm6, %v19285_v21  ;;  %v11583_v50 = vpop.f32.mrb[188].mxu1  ;;  %v19993_v7 = vadd.f32 %v22934_v26, %v6810_v61  ;;  %v9974_v33 = vsub.f32 %v19975_v32, %v19988_v51 }
 0x66c   :  { %v11584_v28 = vpop.f32.mrb[189].mxu1 }
 0x66d   :  { %v11585_v2 = vadd.f32 %v11584_v28, %v11583_v50 }
 0x66e   :  { %12408 = vmatmul.mubr.msk.f32.gmra.mrb[22].mxu1 %vm8295_vm6, %v19321_v16 }
 0x66f   :  { %12410 = vmatprep.mubr.msk.f32.mxu1 %vm8295_vm6, %v19351_v11  ;;  %v6825_v24 = vadd.f32 %v11585_v2, %v19843_v36  ;;  %v9975_v36 = vand.u32 4294901760, %v9974_v33  ;;  %v22937_v33 = vld [vmem:[#allocation91_spill] sm:$0xff] }
 0x670   :  { %v11586_v38 = vpop.f32.mrb[190].mxu1 }
 0x671   :  { %v11587_v8 = vpop.f32.mrb[191].mxu1  ;;  %v20003_v50 = vadd.f32 %v22935_v63, %v6825_v24 }
 0x672   :  { %12411 = vmatmul.mubr.msk.f32.gmra.mrb[24].mxu1 %vm8295_vm6, %v19392_v18  ;;  %v11588_v17 = vadd.f32 %v11587_v8, %v11586_v38  ;;  %v22936_v38 = vld [vmem:[#allocation32_spill] sm:$0xff] }
 0x673   :  { %12415 = vmatprep.mubr.msk.f32.mxu1 %vm8295_vm6, %v19147_v6 }
 0x674   :  { %v6840_v61 = vadd.f32 %v11588_v17, %v19854_v47  ;;  %v11701_v28 = vpop.f32.mrb[192].mxu1 }
 0x675   :  { %v11702_v26 = vpop.f32.mrb[193].mxu1 }
 0x676   :  { %12416 = vmatmul.mubr.msk.f32.vlgmr.msra.gmra.mrb[18].mxu1 %vm8295_vm6, %v19161_v30  ;;  %v11703_v2 = vadd.f32 %v11702_v26, %v11701_v28  ;;  %v20012_v8 = vadd.f32 %v22936_v38, %v6840_v61 }
 0x677   :  { %12512 = vmatpush3.msra.mxu1 %v19957_v19  ;;  %12418 = vmatprep.mubr.msk.f32.mxu1 %vm8295_vm6, %v19181_v25 }
 0x678   :  { %12525 = vmatprep.subr.mxu1 %v9975_v36  ;;  %v7315_v24 = vadd.f32 %v11703_v2, %v19865_v40  ;;  %v11704_v63 = vpop.f32.mrb[194].mxu1  ;;  %v22938_v2 = vld [vmem:[#allocation144_spill] sm:$0xff] }
 0x679   :  { %v11705_v47 = vpop.f32.mrb[195].mxu1 }
 0x67a   :  { %12419 = vmatmul.mubr.msk.f32.gmra.mrb[20].mxu1 %vm8295_vm6, %v19233_v23  ;;  %v11706_v17 = vadd.f32 %v11705_v47, %v11704_v63  ;;  %v20020_v28 = vadd.f32 %v22937_v33, %v7315_v24  ;;  %v22939_v24 = vld [vmem:[#allocation104_spill] sm:$0xff] }
 0x67b   :  { %12421 = vmatprep.mubr.msk.f32.mxu1 %vm8295_vm6, %v19285_v21 }
 0x67c   :  { %v7324_v26 = vadd.f32 %v11706_v17, %v19875_v58 }
 0x67d   :  { %v11707_v42 = vpop.f32.mrb[196].mxu1 }
 0x67e   :  { %v11708_v61 = vpop.f32.mrb[197].mxu1  ;;  %12422 = vmatmul.mubr.msk.f32.gmra.mrb[22].mxu1 %vm8295_vm6, %v19321_v16  ;;  %v20028_v38 = vadd.f32 %v22938_v2, %v7324_v26 }
 0x67f   :  { %v11709_v40 = vadd.f32 %v11708_v61, %v11707_v42  ;;  %12424 = vmatprep.mubr.msk.f32.mxu1 %vm8295_vm6, %v19351_v11 }
 0x681   :  { %v7333_v63 = vadd.f32 %v11709_v40, %v19884_v41  ;;  %v11710_v47 = vpop.f32.mrb[198].mxu1  ;;  %v22940_v41 = vld [vmem:[#allocation100_spill] sm:$0xff] }
 0x682   :  { %v11711_v14 = vpop.f32.mrb[199].mxu1  ;;  %12425 = vmatmul.mubr.msk.f32.gmra.mrb[24].mxu1 %vm8295_vm6, %v19392_v18  ;;  %v22941_v40 = vld [vmem:[#allocation8_spill] sm:$0xff] }
 0x683   :  { %v11712_v58 = vadd.f32 %v11711_v14, %v11710_v47  ;;  %12513 = vmatprep.mubr.f32.mxu1 %v22892_v49  ;;  %v20035_v17 = vadd.f32 %v22939_v24, %v7333_v63  ;;  %v22942_v47 = vld [vmem:[#allocation67_spill] sm:$0xff] }
 0x685   :  { %v7342_v42 = vadd.f32 %v11712_v58, %v19893_v31  ;;  %v11713_v33 = vpop.f32.mrb[200].mxu1 }
 0x686   :  { %v11714_v61 = vpop.f32.mrb[201].mxu1  ;;  %12514 = vmatmul.mubr.f32.vlgmr.msra.gmra.mrb[26].mxu1 %v22894_v4 }
 0x687   :  { %v11715_v26 = vadd.f32 %v11714_v61, %v11713_v33  ;;  %12526 = vmatpush3.msra.mxu1 %v9975_v36  ;;  %12516 = vmatprep.mubr.f32.mxu1 %v22940_v41  ;;  %v20041_v2 = vadd.f32 %v22941_v40, %v7342_v42 }
 0x688   :  { %12539 = vmatprep.subr.mxu1 %v19975_v32 }
 0x689   :  { %v7351_v49 = vadd.f32 %v11715_v26, %v19902_v12  ;;  %v11716_v14 = vpop.f32.mrb[202].mxu1  ;;  %v22943_v12 = vld [vmem:[#allocation133_spill] sm:$0xff] }
 0x68a   :  { %v11717_v63 = vpop.f32.mrb[203].mxu1  ;;  %12517 = vmatmul.mubr.f32.gmra.mrb[28].mxu1 %v22898_v10 }
 0x68b   :  { %v11718_v31 = vadd.f32 %v11717_v63, %v11716_v14  ;;  %12519 = vmatprep.mubr.f32.mxu1 %v22900_v13  ;;  %v20048_v4 = vadd.f32 %v22942_v47, %v7351_v49 }
 0x68d   :  { %v7360_v36 = vadd.f32 %v11718_v31, %v19910_v60  ;;  %v11719_v58 = vpop.f32.mrb[204].mxu1  ;;  %v22944_v60 = vld [vmem:[#allocation96_spill] sm:$0xff] }
 0x68e   :  { %v11720_v24 = vpop.f32.mrb[205].mxu1  ;;  %12520 = vmatmul.mubr.f32.gmra.mrb[30].mxu1 %v19407_v37 }
 0x68f   :  { %v11721_v42 = vadd.f32 %v11720_v24, %v11719_v58  ;;  %12522 = vmatprep.mubr.f32.mxu1 %v19418_v53  ;;  %v20054_v33 = vadd.f32 %v22943_v12, %v7360_v36 }
 0x691   :  { %v7369_v10 = vadd.f32 %v11721_v42, %v19918_v1  ;;  %v11722_v61 = vpop.f32.mrb[206].mxu1  ;;  %v22947_v42 = vld [vmem:[#allocation142_spill] sm:$0xff] }
 0x692   :  { %v11723_v26 = vpop.f32.mrb[207].mxu1  ;;  %12523 = vmatmul.mubr.f32.gmra.mrb[0].mxu1 %v19445_v27  ;;  %v22945_v27 = vld [vmem:[#allocation85_spill] sm:$0xff] }
 0x693   :  { %v11724_v13 = vadd.f32 %v11723_v26, %v11722_v61  ;;  %12527 = vmatprep.mubr.msk.f32.mxu1 %vm8295_vm6, %v19147_v6  ;;  %v20061_v41 = vadd.f32 %v22944_v60, %v7369_v10 }
 0x695   :  { %v7378_v37 = vadd.f32 %v11724_v13, %v19927_v39  ;;  %v11725_v40 = vpop.f32.mrb[208].mxu1  ;;  %v22948_v13 = vld [vmem:[#allocation118_spill] sm:$0xff] }
 0x696   :  { %v11726_v53 = vpop.f32.mrb[209].mxu1  ;;  %12528 = vmatmul.mubr.msk.f32.vlgmr.msra.gmra.mrb[26].mxu1 %vm8295_vm6, %v19161_v30 }
 0x697   :  { %v11727_v49 = vadd.f32 %v11726_v53, %v11725_v40  ;;  %12540 = vmatpush3.msra.mxu1 %v19975_v32  ;;  %12530 = vmatprep.mubr.msk.f32.mxu1 %vm8295_vm6, %v19181_v25  ;;  %v20070_v1 = vadd.f32 %v22945_v27, %v7378_v37  ;;  %v22946_v32 = vld [vmem:[#allocation33_spill] sm:$0xff] }
 0x698   :  { %12553 = vmatprep.subr.mxu1 %v19957_v19 }
 0x699   :  { %v7387_v14 = vadd.f32 %v11727_v49, %v19936_v56  ;;  %v11728_v63 = vpop.f32.mrb[210].mxu1 }
 0x69a   :  { %v11729_v39 = vpop.f32.mrb[211].mxu1  ;;  %12531 = vmatmul.mubr.msk.f32.gmra.mrb[28].mxu1 %vm8295_vm6, %v19233_v23 }
 0x69b   :  { %v11730_v31 = vadd.f32 %v11729_v39, %v11728_v63  ;;  %12533 = vmatprep.mubr.msk.f32.mxu1 %vm8295_vm6, %v19285_v21  ;;  %v20079_v47 = vadd.f32 %v22946_v32, %v7387_v14 }
 0x69d   :  { %v7396_v36 = vadd.f32 %v11730_v31, %v19944_v35  ;;  %v11731_v58 = vpop.f32.mrb[212].mxu1 }
 0x69e   :  { %v11732_v24 = vpop.f32.mrb[213].mxu1  ;;  %12534 = vmatmul.mubr.msk.f32.gmra.mrb[30].mxu1 %vm8295_vm6, %v19321_v16 }
 0x69f   :  { %v11733_v56 = vadd.f32 %v11732_v24, %v11731_v58  ;;  %12536 = vmatprep.mubr.msk.f32.mxu1 %vm8295_vm6, %v19351_v11  ;;  %v20087_v12 = vadd.f32 %v22947_v42, %v7396_v36 }
 0x6a1   :  { %v7405_v10 = vadd.f32 %v11733_v56, %v19953_v5  ;;  %v11734_v61 = vpop.f32.mrb[214].mxu1  ;;  %v22949_v5 = vld [vmem:[#allocation110_spill] sm:$0xff] }
 0x6a2   :  { %v11735_v26 = vpop.f32.mrb[215].mxu1  ;;  %12537 = vmatmul.mubr.msk.f32.gmra.mrb[0].mxu1 %vm8295_vm6, %v19392_v18 }
 0x6a3   :  { %v11736_v35 = vadd.f32 %v11735_v26, %v11734_v61  ;;  %12541 = vmatprep.mubr.f32.mxu1 %v19168_v43  ;;  %v20094_v60 = vadd.f32 %v22948_v13, %v7405_v10 }
 0x6a5   :  { %v7414_v37 = vadd.f32 %v11736_v35, %v19967_v15  ;;  %v11737_v40 = vpop.f32.mrb[216].mxu1  ;;  %v22953_v35 = vld [vmem:[#allocation81_spill] sm:$0xff] }
 0x6a6   :  { %v11738_v53 = vpop.f32.mrb[217].mxu1  ;;  %12542 = vmatmul.mubr.f32.vlgmr.msra.gmra.mrb[26].mxu1 %v19178_v20  ;;  %v22950_v20 = vld [vmem:[#allocation55_spill] sm:$0xff] }
 0x6a7   :  { %v11739_v49 = vadd.f32 %v11738_v53, %v11737_v40  ;;  %12554 = vmatpush3.msra.mxu1 %v19957_v19  ;;  %12544 = vmatprep.mubr.f32.mxu1 %v19219_v3  ;;  %v20101_v27 = vadd.f32 %v22949_v5, %v7414_v37  ;;  %v22955_v53 = vld [vmem:[#allocation20_spill] sm:$0xff] }
 0x6a8   :  { %12567 = vmatprep.subr.mxu1 %v19988_v51 }
 0x6a9   :  { %v7423_v43 = vadd.f32 %v11739_v49, %v19982_v59  ;;  %v11740_v14 = vpop.f32.mrb[218].mxu1  ;;  %v22951_v59 = vld [vmem:[#allocation17_spill] sm:$0xff] }
 0x6aa   :  { %v11741_v63 = vpop.f32.mrb[219].mxu1  ;;  %12545 = vmatmul.mubr.f32.gmra.mrb[28].mxu1 %v19261_v57 }
 0x6ab   :  { %v11742_v15 = vadd.f32 %v11741_v63, %v11740_v14  ;;  %12547 = vmatprep.mubr.f32.mxu1 %v19299_v46  ;;  %v20108_v39 = vadd.f32 %v22950_v20, %v7423_v43  ;;  %v22957_v20 = vld [vmem:[#allocation155_spill] sm:$0xff] }
 0x6ad   :  { %v7432_v31 = vadd.f32 %v11742_v15, %v19993_v7  ;;  %v11743_v3 = vpop.f32.mrb[220].mxu1  ;;  %v22952_v7 = vld [vmem:[#allocation106_spill] sm:$0xff] }
 0x6ae   :  { %v11744_v32 = vpop.f32.mrb[221].mxu1  ;;  %12548 = vmatmul.mubr.f32.gmra.mrb[30].mxu1 %v19348_v34 }
 0x6af   :  { %v11745_v36 = vadd.f32 %v11744_v32, %v11743_v3  ;;  %12550 = vmatprep.mubr.f32.mxu1 %v19368_v29  ;;  %v20114_v58 = vadd.f32 %v22951_v59, %v7432_v31 }
 0x6b1   :  { %v7441_v57 = vadd.f32 %v11745_v36, %v20003_v50  ;;  %v11746_v24 = vpop.f32.mrb[222].mxu1 }
 0x6b2   :  { %v11747_v56 = vpop.f32.mrb[223].mxu1  ;;  %12551 = vmatmul.mubr.f32.gmra.mrb[0].mxu1 %v19411_v54 }
 0x6b3   :  { %v11748_v46 = vadd.f32 %v11747_v56, %v11746_v24  ;;  %12555 = vmatprep.mubr.f32.mxu1 %v19191_v48  ;;  %v20120_v42 = vadd.f32 %v22952_v7, %v7441_v57  ;;  %v22958_v57 = vld [vmem:[#allocation124_spill] sm:$0xff] }
 0x6b5   :  { %v7450_v34 = vadd.f32 %v11748_v46, %v20012_v8  ;;  %v11861_v10 = vpop.f32.mrb[224].mxu1 }
 0x6b6   :  { %v11862_v61 = vpop.f32.mrb[225].mxu1  ;;  %12556 = vmatmul.mubr.f32.vlgmr.msra.gmra.mrb[26].mxu1 %v22913_v22 }
 0x6b7   :  { %v11863_v29 = vadd.f32 %v11862_v61, %v11861_v10  ;;  %12568 = vmatpush3.msra.mxu1 %v19988_v51  ;;  %12558 = vmatprep.mubr.f32.mxu1 %v22915_v44  ;;  %v20127_v50 = vadd.f32 %v19830_v55, %v7450_v34  ;;  %v22954_v55 = vld [vmem:[#allocation132_spill] sm:$0xff]  ;;  %v22959_v61 = vld [vmem:[#allocation149_spill] sm:$0xff] }
 0x6b8   :  { %12581 = vmatprep.subr.mxu1 %v19957_v19 }
 0x6b9   :  { %v7891_v48 = vadd.f32 %v11863_v29, %v20020_v28  ;;  %v11864_v54 = vpop.f32.mrb[226].mxu1 }
 0x6ba   :  { %v11865_v26 = vpop.f32.mrb[227].mxu1  ;;  %12559 = vmatmul.mubr.f32.gmra.mrb[28].mxu1 %v22918_v0 }
 0x6bb   :  { %v20133_v8 = vadd.f32 %v19838_v62, %v7891_v48  ;;  %v11866_v22 = vadd.f32 %v11865_v26, %v11864_v54  ;;  %12561 = vmatprep.mubr.f32.mxu1 %v22953_v35 }
 0x6bd   :  { %v7898_v51 = vadd.f32 %v11866_v22, %v20028_v38  ;;  %v11867_v44 = vpop.f32.mrb[228].mxu1 }
 0x6be   :  { %v11868_v13 = vpop.f32.mrb[229].mxu1  ;;  %12562 = vmatmul.mubr.f32.gmra.mrb[30].mxu1 %v22922_v9 }
 0x6bf   :  { %v20139_v37 = vadd.f32 %v22954_v55, %v7898_v51  ;;  %v11869_v28 = vadd.f32 %v11868_v13, %v11867_v44  ;;  %12564 = vmatprep.mubr.f32.mxu1 %v22924_v45  ;;  %v22956_v45 = vld [vmem:[#allocation120_spill] sm:$0xff]  ;;  %v22960_v51 = vld [vmem:[#allocation38_spill] sm:$0xff] }
 0x6c1   :  { %v7905_v0 = vadd.f32 %v11869_v28, %v20035_v17  ;;  %v11870_v40 = vpop.f32.mrb[230].mxu1 }
 0x6c2   :  { %v11871_v62 = vpop.f32.mrb[231].mxu1  ;;  %12565 = vmatmul.mubr.f32.gmra.mrb[0].mxu1 %v22926_v52 }
 0x6c3   :  { %v20145_v49 = vadd.f32 %v22955_v53, %v7905_v0  ;;  %v11872_v38 = vadd.f32 %v11871_v62, %v11870_v40  ;;  %12569 = vmatprep.mubr.msk.f32.mxu1 %vm8295_vm6, %v19147_v6  ;;  %v22961_v0 = vld [vmem:[#allocation126_spill] sm:$0xff] }
 0x6c5   :  { %v7912_v9 = vadd.f32 %v11872_v38, %v20041_v2  ;;  %v11873_v5 = vpop.f32.mrb[232].mxu1  ;;  %v22962_v38 = vld [vmem:[#allocation121_spill] sm:$0xff] }
 0x6c6   :  { %v11874_v43 = vpop.f32.mrb[233].mxu1  ;;  %12570 = vmatmul.mubr.msk.f32.vlgmr.msra.gmra.mrb[26].mxu1 %vm8295_vm6, %v19161_v30 }
 0x6c7   :  { %v20153_v17 = vadd.f32 %v22956_v45, %v7912_v9  ;;  %v11875_v14 = vadd.f32 %v11874_v43, %v11873_v5  ;;  %12582 = vmatpush3.msra.mxu1 %v19957_v19  ;;  %12572 = vmatprep.mubr.msk.f32.mxu1 %vm8295_vm6, %v19181_v25  ;;  %v20161_v2 = vpop.f32.mrb[222].mxu0  ;;  %v22963_v45 = vld [vmem:[#allocation146_spill] sm:$0xff] }
 0x6c8   :  { %v20168_v19 = vpop.f32.mrb[223].mxu0 }
 0x6c9   :  { %v7919_v52 = vadd.f32 %v11875_v14, %v20048_v4  ;;  %v11876_v63 = vpop.f32.mrb[234].mxu1 }
 0x6ca   :  { %v11877_v15 = vpop.f32.mrb[235].mxu1  ;;  %12573 = vmatmul.mubr.msk.f32.gmra.mrb[28].mxu1 %vm8295_vm6, %v19233_v23 }
 0x6cb   :  { %v20164_v31 = vadd.f32 %v22957_v20, %v7919_v52  ;;  %v11878_v3 = vadd.f32 %v11877_v15, %v11876_v63  ;;  %12575 = vmatprep.mubr.msk.f32.mxu1 %vm8295_vm6, %v19285_v21  ;;  %v20173_v59 = vpop.f32.mrb[224].mxu0  ;;  %v22964_v20 = vld [vmem:[#allocation147_spill] sm:$0xff] }
 0x6cc   :  { %v20180_v46 = vpop.f32.mrb[225].mxu0 }
 0x6cd   :  { %v7926_v32 = vadd.f32 %v11878_v3, %v20054_v33  ;;  %v11879_v36 = vpop.f32.mrb[236].mxu1 }
 0x6ce   :  { %v11880_v4 = vpop.f32.mrb[237].mxu1  ;;  %12576 = vmatmul.mubr.msk.f32.gmra.mrb[30].mxu1 %vm8295_vm6, %v19321_v16 }
 0x6cf   :  { %v20176_v24 = vadd.f32 %v22958_v57, %v7926_v32  ;;  %v11881_v56 = vadd.f32 %v11880_v4, %v11879_v36  ;;  %12578 = vmatprep.mubr.msk.f32.mxu1 %vm8295_vm6, %v19351_v11  ;;  %v20185_v10 = vpop.f32.mrb[226].mxu0  ;;  %v22965_v57 = vld [vmem:[#allocation148_spill] sm:$0xff] }
 0x6d0   :  { %v20192_v54 = vpop.f32.mrb[227].mxu0 }
 0x6d1   :  { %v7933_v7 = vadd.f32 %v11881_v56, %v20061_v41  ;;  %v11882_v34 = vpop.f32.mrb[238].mxu1 }
 0x6d2   :  { %v11883_v33 = vpop.f32.mrb[239].mxu1  ;;  %12579 = vmatmul.mubr.msk.f32.gmra.mrb[0].mxu1 %vm8295_vm6, %v19392_v18 }
 0x6d3   :  { %v20188_v29 = vadd.f32 %v22959_v61, %v7933_v7  ;;  %v11884_v48 = vadd.f32 %v11883_v33, %v11882_v34  ;;  %12583 = vmatprep.mubr.msk.f32.mxu1 %vm8295_vm6, %v19147_v6  ;;  %v20197_v35 = vpop.f32.mrb[228].mxu0 }
 0x6d4   :  { %v20204_v55 = vpop.f32.mrb[229].mxu0 }
 0x6d5   :  { %v7940_v26 = vadd.f32 %v11884_v48, %v20070_v1  ;;  %v11885_v22 = vpop.f32.mrb[240].mxu1  ;;  %v22966_v48 = vld [vmem:[#allocation151_spill] sm:$0xff] }
 0x6d6   :  { %v11886_v41 = vpop.f32.mrb[241].mxu1  ;;  %12584 = vmatmul.mubr.msk.f32.vlgmr.msra.gmra.mrb[26].mxu1 %vm8295_vm6, %v19161_v30 }
 0x6d7   :  { %v20200_v44 = vadd.f32 %v22960_v51, %v7940_v26  ;;  %v11887_v13 = vadd.f32 %v11886_v41, %v11885_v22  ;;  %12586 = vmatprep.mubr.msk.f32.mxu1 %vm8295_vm6, %v19181_v25 }
 0x6d9   :  { %v7947_v6 = vadd.f32 %v11887_v13, %v20079_v47  ;;  %v11888_v28 = vpop.f32.mrb[242].mxu1 }
 0x6da   :  { %v11889_v1 = vpop.f32.mrb[243].mxu1  ;;  %12587 = vmatmul.mubr.msk.f32.gmra.mrb[28].mxu1 %vm8295_vm6, %v19233_v23 }
 0x6db   :  { %v20210_v30 = vadd.f32 %v22961_v0, %v7947_v6  ;;  %v11890_v40 = vadd.f32 %v11889_v1, %v11888_v28  ;;  %12589 = vmatprep.mubr.msk.f32.mxu1 %vm8295_vm6, %v19285_v21  ;;  %v22967_v6 = vld [vmem:[#allocation113_spill] sm:$0xff] }
 0x6dd   :  { %v20216_v62 = vsub.f32 %v20133_v8, %v20210_v30  ;;  %v7954_v25 = vadd.f32 %v11890_v40, %v20087_v12  ;;  %v11891_v53 = vpop.f32.mrb[244].mxu1 }
 0x6de   :  { %v11892_v47 = vpop.f32.mrb[245].mxu1  ;;  %12590 = vmatmul.mubr.msk.f32.gmra.mrb[30].mxu1 %vm8295_vm6, %v19321_v16 }
 0x6df   :  { %v20222_v23 = vadd.f32 %v22962_v38, %v7954_v25  ;;  %v11893_v9 = vadd.f32 %v11892_v47, %v11891_v53  ;;  %12592 = vmatprep.mubr.msk.f32.mxu1 %vm8295_vm6, %v19351_v11  ;;  %v22968_v38 = vld [vmem:[#allocation76_spill] sm:$0xff] }
 0x6e1   :  { %v20228_v21 = vsub.f32 %v20139_v37, %v20222_v23  ;;  %v7961_v5 = vadd.f32 %v11893_v9, %v20094_v60  ;;  %v11894_v43 = vpop.f32.mrb[246].mxu1  ;;  %v10571_v9 = vcvt.s32.f32 %v22968_v38 }
 0x6e2   :  { %v11895_v12 = vpop.f32.mrb[247].mxu1  ;;  %12593 = vmatmul.mubr.msk.f32.gmra.mrb[0].mxu1 %vm8295_vm6, %v19392_v18 }
 0x6e3   :  { %v20234_v16 = vadd.f32 %v22963_v45, %v7961_v5  ;;  %v11896_v14 = vadd.f32 %v11895_v12, %v11894_v43  ;;  %vm20281_vm6 = vcmp.lt.f32.partialorder %v10571_v9, %v20161_v2  ;;  %v22971_v43 = vld [vmem:[#allocation30_spill] sm:$0xff] }
 0x6e4   :  { %v10573_v12 = vcvt.s32.f32 %v22971_v43 }
 0x6e5   :  { %v20238_v52 = vsub.f32 %v20145_v49, %v20234_v16  ;;  %v7968_v11 = vadd.f32 %v11896_v14, %v20101_v27  ;;  %v11897_v63 = vpop.f32.mrb[248].mxu1  ;;  %v22973_v14 = vld [vmem:[#allocation25_spill] sm:$0xff] }
 0x6e6   :  { %v11898_v15 = vpop.f32.mrb[249].mxu1  ;;  %vm20299_vm4 = vcmp.lt.f32.partialorder %v10573_v12, %v20173_v59 }
 0x6e7   :  { %v20242_v3 = vadd.f32 %v22964_v20, %v7968_v11  ;;  %v11899_v60 = vadd.f32 %v11898_v15, %v11897_v63  ;;  %v10572_v11 = vcvt.s32.f32 %v22973_v14  ;;  %v10636_v38 = vand.u32 2147483647, %v20238_v52 }
 0x6e9   :  { %v20246_v32 = vsub.f32 %v20153_v17, %v20242_v3  ;;  %v7975_v18 = vadd.f32 %v11899_v60, %v20108_v39  ;;  %v11900_v36 = vpop.f32.mrb[250].mxu1  ;;  %vm20309_vm7 = vcmp.lt.f32.partialorder %v10572_v11, %v20180_v46 }
 0x6ea   :  { %v11901_v4 = vpop.f32.mrb[251].mxu1 }
 0x6eb   :  { %v20250_v56 = vadd.f32 %v22965_v57, %v7975_v18  ;;  %v11902_v7 = vadd.f32 %v11901_v4, %v11900_v36  ;;  %v22983_v4 = vld [vmem:[#allocation105_spill] sm:$0xff] }
 0x6ec   :  { %v10574_v57 = vcvt.s32.f32 %v22983_v4 }
 0x6ed   :  { %v20254_v27 = vsub.f32 %v20164_v31, %v20250_v56  ;;  %v7982_v34 = vadd.f32 %v11902_v7, %v20114_v58  ;;  %v11903_v33 = vpop.f32.mrb[252].mxu1 }
 0x6ee   :  { %v11904_v61 = vpop.f32.mrb[253].mxu1  ;;  %vm20337_vm14 = vcmp.lt.f32.partialorder %v10574_v57, %v20192_v54 }
 0x6ef   :  { %v20258_v26 = vadd.f32 %v22966_v48, %v7982_v34  ;;  %v11905_v22 = vadd.f32 %v11904_v61, %v11903_v33  ;;  %v22990_v33 = vld [vmem:[#allocation57_spill] sm:$0xff] }
 0x6f0   :  { %v10577_v61 = vcvt.s32.f32 %v22990_v33 }
 0x6f1   :  { %v20262_v39 = vsub.f32 %v20176_v24, %v20258_v26  ;;  %v7989_v41 = vadd.f32 %v11905_v22, %v20120_v42  ;;  %v11906_v51 = vpop.f32.mrb[254].mxu1  ;;  %v22991_v22 = vmov 0 }
 0x6f2   :  { %v11907_v13 = vpop.f32.mrb[255].mxu1  ;;  %v22992_v22 = vsel %vm20337_vm14, 4294967295, %v22991_v22 }
 0x6f3   :  { %v20266_v28 = vadd.f32 %v22967_v6, %v7989_v41  ;;  %v11908_v1 = vadd.f32 %v11907_v13, %v11906_v51  ;;  %v22993_v41 = vld [vmem:[#allocation139_spill] sm:$0xff] }
 0x6f4   :  { %v10576_v51 = vcvt.s32.f32 %v22993_v41 }
 0x6f5   :  { %v20270_v58 = vsub.f32 %v20188_v29, %v20266_v28  ;;  %v7996_v0 = vadd.f32 %v11908_v1, %v20127_v50  ;;  %v11986_v40 = vpop.f32.mrb[16].mxu1  ;;  %v22972_v50 = vld [vmem:[#allocation70_spill] sm:$0xff] }
 0x6f6   :  { %v11987_v25 = vpop.f32.mrb[17].mxu1  ;;  %vm10586_vm10 = vcmp.lt.f32.partialorder %v22972_v50, %v20168_v19  ;;  %v22978_v19 = vld [vmem:[#allocation36_spill] sm:$0xff]  ;;  %vm20364_vm11 = vcmp.lt.f32.partialorder %v10576_v51, %v20204_v55  ;;  %v10634_v55 = vand.u32 2147483647, %v20216_v62 }
 0x6f7   :  { %v11988_v53 = vadd.f32 %v11987_v25, %v11986_v40  ;;  %v10575_v20 = vcvt.s32.f32 %v22978_v19 }
 0x6f8   :  { %v10642_v43 = vsub.f32 0.0, %v10634_v55 }
 0x6f9   :  { %v20273_v47 = vadd.f32 %v11988_v53, %v7996_v0  ;;  %vm20327_vm12 = vcmp.lt.f32.partialorder %v10575_v20, %v20185_v10  ;;  %v10635_v53 = vand.u32 2147483647, %v20228_v21 }
 0x6fb   :  { %v20277_v42 = vsub.f32 %v20200_v44, %v20273_v47 }
 0x749   :  { %v12417_v45 = vpop.f32.mrb[18].mxu1 }
 0x74a   :  { %vm20289_vm1 = vcmp.ge.f32.partialorder %v10571_v9, %v12417_v45  ;;  %v9025_v15 = vpop.f32.mrb[19].mxu1  ;;  %v10637_v9 = vand.u32 2147483647, %v20246_v32  ;;  %v10644_v45 = vsub.f32 0.0, %v10636_v38 }
 0x74b   :  { %vm10578_vm2 = vcmp.ge.f32.partialorder %v22972_v50, %v9025_v15  ;;  %v10638_v50 = vand.u32 2147483647, %v20254_v27  ;;  %v10650_v15 = vmul.f32 1.442695, %v10642_v43  ;;  %vm23006_vm14 = vmand %vm20289_vm1, %vm20281_vm6 }
 0x74c   :  { %vm20304_vm5 = vmand %vm10578_vm2, %vm10586_vm10  ;;  %vm20355_vm2 = vcmp.lt.f32.partialorder %v10577_v61, %v20197_v35  ;;  %v10645_v14 = vsub.f32 0.0, %v10637_v9 }
 0x74d   :  { %v12420_v18 = vpop.f32.mrb[20].mxu1  ;;  %v10646_v4 = vsub.f32 0.0, %v10638_v50  ;;  %14097 = vpow2.f32 %v10650_v15 }
 0x74e   :  { %vm20314_vm8 = vcmp.ge.f32.partialorder %v10573_v12, %v12420_v18  ;;  %v9037_v59 = vpop.f32.mrb[21].mxu1  ;;  %v10643_v12 = vsub.f32 0.0, %v10635_v53  ;;  %v10654_v18 = vmul.f32 1.442695, %v10644_v45 }
 0x74f   :  { %vm20318_vm9 = vcmp.ge.f32.partialorder %v10572_v11, %v9037_v59  ;;  %v10639_v11 = vand.u32 2147483647, %v20262_v39  ;;  %v10656_v59 = vmul.f32 1.442695, %v10645_v14  ;;  %vm23007_vm6 = vmand %vm20314_vm8, %vm20299_vm4 }
 0x750   :  { %v10652_v19 = vmul.f32 1.442695, %v10643_v12  ;;  %vm23008_vm1 = vmand %vm20318_vm9, %vm20309_vm7 }
 0x751   :  { %v12423_v48 = vpop.f32.mrb[22].mxu1  ;;  %v10647_v33 = vsub.f32 0.0, %v10639_v11 }
 0x752   :  { %vm20342_vm15 = vcmp.ge.f32.partialorder %v10575_v20, %v12423_v48  ;;  %v9049_v13 = vpop.f32.mrb[23].mxu1  ;;  %v10640_v20 = vand.u32 2147483647, %v20270_v58  ;;  %14099 = vpow2.f32 %v10652_v19  ;;  %v10658_v48 = vmul.f32 1.442695, %v10646_v4 }
 0x753   :  { %vm20346_vm0 = vcmp.ge.f32.partialorder %v10574_v57, %v9049_v13  ;;  %v10641_v57 = vand.u32 2147483647, %v20277_v42  ;;  %14101 = vpow2.f32 %v10654_v18  ;;  %vm23009_vm4 = vmand %vm20342_vm15, %vm20327_vm12 }
 0x754   :  { %14103 = vpow2.f32 %v10656_v59 }
 0x755   :  { %v12426_v1 = vpop.f32.mrb[24].mxu1  ;;  %v10649_v41 = vsub.f32 0.0, %v10641_v57  ;;  %14105 = vpow2.f32 %v10658_v48 }
 0x756   :  { %vm20368_vm3 = vcmp.ge.f32.partialorder %v10577_v61, %v12426_v1  ;;  %v9061_v25 = vpop.f32.mrb[25].mxu1  ;;  %v10648_v61 = vsub.f32 0.0, %v10640_v20 }
 0x757   :  { %vm20372_vm10 = vcmp.ge.f32.partialorder %v10576_v51, %v9061_v25  ;;  %v10660_v51 = vmul.f32 1.442695, %v10647_v33  ;;  %v10664_v1 = vmul.f32 1.442695, %v10649_v41  ;;  %v14098_v25 = vpop.eup %14097  ;;  %v10619_v41 = vsub.f32 0.0, %v20228_v21  ;;  %vm23012_vm8 = vmand %vm20368_vm3, %vm20355_vm2 }
 0x758   :  { %v10662_v13 = vmul.f32 1.442695, %v10648_v61  ;;  %v10666_v9 = vadd.f32 1.0, %v14098_v25  ;;  %v10618_v61 = vsub.f32 0.0, %v20216_v62  ;;  %v10623_v25 = vsub.f32 0.0, %v20262_v39  ;;  %vm23013_vm9 = vmand %vm20372_vm10, %vm20364_vm11 }
 0x759   :  { %14107 = vpow2.f32 %v10660_v51  ;;  %v10621_v51 = vsub.f32 0.0, %v20246_v32  ;;  %v10627_v21 = vmax.f32 %v10619_v41, 0.0 }
 0x75a   :  { %14109 = vpow2.f32 %v10662_v13  ;;  %v10620_v13 = vsub.f32 0.0, %v20238_v52  ;;  %v10626_v62 = vmax.f32 %v10618_v61, 0.0  ;;  %v10631_v52 = vmax.f32 %v10623_v25, 0.0 }
 0x75b   :  { %14111 = vpow2.f32 %v10664_v1 }
 0x75c   :  { %v14100_v55 = vpop.eup %14099  ;;  %14113 = vlog2.f32 %v10666_v9  ;;  %v10628_v32 = vmax.f32 %v10620_v13, 0.0 }
 0x75d   :  { %v14102_v53 = vpop.eup %14101  ;;  %v10667_v43 = vadd.f32 1.0, %v14100_v55  ;;  %v10622_v55 = vsub.f32 0.0, %v20254_v27 }
 0x75e   :  { %v14104_v38 = vpop.eup %14103  ;;  %v10668_v12 = vadd.f32 1.0, %v14102_v53  ;;  %v10624_v53 = vsub.f32 0.0, %v20270_v58 }
 0x75f   :  { %v14106_v45 = vpop.eup %14105  ;;  %v10669_v50 = vadd.f32 1.0, %v14104_v38  ;;  %14115 = vlog2.f32 %v10667_v43  ;;  %v10625_v38 = vsub.f32 0.0, %v20277_v42 }
 0x760   :  { %14117 = vlog2.f32 %v10668_v12  ;;  %v10670_v15 = vadd.f32 1.0, %v14106_v45 }
 0x761   :  { %14119 = vlog2.f32 %v10669_v50 }
 0x762   :  { %14121 = vlog2.f32 %v10670_v15  ;;  %v10630_v15 = vmax.f32 %v10622_v55, 0.0 }
 0x763   :  { %v14108_v14 = vpop.eup %14107 }
 0x764   :  { %v14110_v11 = vpop.eup %14109  ;;  %v10671_v20 = vadd.f32 1.0, %v14108_v14  ;;  %v10629_v14 = vmax.f32 %v10621_v51, 0.0 }
 0x765   :  { %v14112_v19 = vpop.eup %14111  ;;  %v10672_v18 = vadd.f32 1.0, %v14110_v11 }
 0x766   :  { %v10673_v4 = vadd.f32 1.0, %v14112_v19  ;;  %14123 = vlog2.f32 %v10671_v20  ;;  %v14114_v57 = vpop.eup %14113  ;;  %v10632_v19 = vmax.f32 %v10624_v53, 0.0 }
 0x767   :  { %14125 = vlog2.f32 %v10672_v18  ;;  %v10675_v1 = vmul.f32 0.6931472, %v14114_v57 }
 0x768   :  { %14127 = vlog2.f32 %v10673_v4  ;;  %v10633_v4 = vmax.f32 %v10625_v38, 0.0 }
 0x769   :  { %v14116_v59 = vpop.eup %14115  ;;  %v10690_v11 = vadd.f32 %v10675_v1, %v10626_v62 }
 0x76a   :  { %v14118_v33 = vpop.eup %14117  ;;  %v10677_v9 = vmul.f32 0.6931472, %v14116_v59 }
 0x76b   :  { %v14120_v48 = vpop.eup %14119  ;;  %v10679_v43 = vmul.f32 0.6931472, %v14118_v33 }
 0x76c   :  { %v14122_v12 = vpop.eup %14121  ;;  %v10681_v45 = vmul.f32 0.6931472, %v14120_v48  ;;  %v10691_v27 = vadd.f32 %v10677_v9, %v10627_v21 }
 0x76d   :  { %v10692_v18 = vadd.f32 %v10679_v43, %v10628_v32  ;;  %v10683_v58 = vmul.f32 0.6931472, %v14122_v12 }
 0x76e   :  { %v10693_v33 = vadd.f32 %v10681_v45, %v10629_v14 }
 0x76f   :  { %v10694_v7 = vadd.f32 %v10683_v58, %v10630_v15 }
 0x770   :  { %v14124_v50 = vpop.eup %14123 }
 0x771   :  { %v14126_v39 = vpop.eup %14125  ;;  %v10685_v61 = vmul.f32 0.6931472, %v14124_v50 }
 0x772   :  { %v14128_v42 = vpop.eup %14127  ;;  %v10687_v5 = vmul.f32 0.6931472, %v14126_v39 }
 0x773   :  { %v10689_v43 = vmul.f32 0.6931472, %v14128_v42 }
 0x774   :  { %v10696_v34 = vadd.f32 %v10687_v5, %v10632_v19 }
 0x775   :  { %v10697_v36 = vadd.f32 %v10689_v43, %v10633_v4 }
 0x7a9   :  { %v12585_v20 = vpop.f32.mrb[26].mxu1 }
 0x7aa   :  { %v10603_v57 = vsel %vm23006_vm14, %v12585_v20, 0.0  ;;  %v10525_v59 = vpop.f32.mrb[27].mxu1 }
 0x7ab   :  { %v10699_v48 = vmul.f32 %v10691_v27, %v10603_v57  ;;  %v10730_v41 = vmul.f32 %v10603_v57, %v20139_v37  ;;  %v10759_v51 = vmul.f32 %v10603_v57, %v20222_v23  ;;  %v10602_v13 = vsel %vm20304_vm5, %v10525_v59, 0.0 }
 0x7ac   :  { %v10698_v1 = vmul.f32 %v10690_v11, %v10602_v13  ;;  %v10729_v25 = vmul.f32 %v10602_v13, %v20133_v8  ;;  %v10758_v63 = vmul.f32 %v10602_v13, %v20210_v30  ;;  %v10695_v27 = vadd.f32 %v10685_v61, %v10631_v52 }
 0x7ad   :  { %v10708_v55 = vsel %vm10706_vm13, %v10699_v48, 0.0  ;;  %v10738_v53 = vsel %vm10706_vm13, %v10730_v41, 0.0  ;;  %v10767_v38 = vsel %vm10706_vm13, %v10759_v51, 0.0  ;;  %v12588_v9 = vpop.f32.mrb[28].mxu1  ;;  %vm23010_vm5 = vnez %v22992_v22 }
 0x7ae   :  { %v10707_v37 = vsel %vm10706_vm13, %v10698_v1, 0.0  ;;  %v10737_v23 = vsel %vm10706_vm13, %v10729_v25, 0.0  ;;  %v10766_v60 = vsel %vm10706_vm13, %v10758_v63, 0.0  ;;  %v10605_v8 = vsel %vm23007_vm6, %v12588_v9, 0.0  ;;  %v10537_v30 = vpop.f32.mrb[29].mxu1  ;;  %vm23011_vm7 = vmand %vm20346_vm0, %vm23010_vm5 }
 0x7af   :  { %v10709_v12 = vadd.f32 %v10708_v55, %v10707_v37  ;;  %v10739_v62 = vadd.f32 %v10738_v53, %v10737_v23  ;;  %v10768_v45 = vadd.f32 %v10767_v38, %v10766_v60  ;;  %v10701_v50 = vmul.f32 %v10693_v33, %v10605_v8 }
 0x7b0   :  { %v10732_v21 = vmul.f32 %v10605_v8, %v20153_v17  ;;  %v10761_v14 = vmul.f32 %v10605_v8, %v20242_v3  ;;  %v10604_v32 = vsel %vm23008_vm1, %v10537_v30, 0.0 }
 0x7b1   :  { %v10700_v11 = vmul.f32 %v10692_v18, %v10604_v32  ;;  %v10731_v2 = vmul.f32 %v10604_v32, %v20145_v49  ;;  %v10760_v39 = vmul.f32 %v10604_v32, %v20234_v16  ;;  %v12591_v20 = vpop.f32.mrb[30].mxu1  ;;  %v10712_v42 = vsel %vm10706_vm13, %v10701_v50, 0.0 }
 0x7b2   :  { %v10607_v17 = vsel %vm23009_vm4, %v12591_v20, 0.0  ;;  %v10549_v3 = vpop.f32.mrb[31].mxu1  ;;  %v10742_v10 = vsel %vm10706_vm13, %v10732_v21, 0.0  ;;  %v10771_v46 = vsel %vm10706_vm13, %v10761_v14, 0.0 }
 0x7b3   :  { %v10710_v15 = vsel %vm10706_vm13, %v10700_v11, 0.0  ;;  %v10740_v18 = vsel %vm10706_vm13, %v10731_v2, 0.0  ;;  %v10769_v49 = vsel %vm10706_vm13, %v10760_v39, 0.0  ;;  %v10703_v16 = vmul.f32 %v10695_v27, %v10607_v17 }
 0x7b4   :  { %v10711_v58 = vadd.f32 %v10710_v15, %v10709_v12  ;;  %v10741_v52 = vadd.f32 %v10740_v18, %v10739_v62  ;;  %v10770_v57 = vadd.f32 %v10769_v49, %v10768_v45  ;;  %v10734_v59 = vmul.f32 %v10607_v17, %v20176_v24 }
 0x7b5   :  { %v10763_v33 = vmul.f32 %v10607_v17, %v20258_v26  ;;  %v10606_v19 = vsel %vm23011_vm7, %v10549_v3, 0.0  ;;  %v12594_v4 = vpop.f32.mrb[0].mxu1  ;;  %v10716_v61 = vsel %vm10706_vm13, %v10703_v16, 0.0 }
 0x7b6   :  { %v10702_v48 = vmul.f32 %v10694_v7, %v10606_v19  ;;  %v10713_v41 = vadd.f32 %v10712_v42, %v10711_v58  ;;  %v10733_v51 = vmul.f32 %v10606_v19, %v20164_v31  ;;  %v10561_v24 = vpop.f32.mrb[1].mxu1  ;;  %v10746_v13 = vsel %vm10706_vm13, %v10734_v59, 0.0  ;;  %v23014_v59 = vld [vmem:[#allocation2_spill] sm:$0xff] }
 0x7b7   :  { %v10743_v1 = vadd.f32 %v10742_v10, %v10741_v52  ;;  %v10762_v25 = vmul.f32 %v10606_v19, %v20250_v56  ;;  %v10772_v26 = vadd.f32 %v10771_v46, %v10770_v57  ;;  %v10609_v63 = vsel %vm23012_vm8, %v12594_v4, 0.0 }
 0x7b8   :  { %v10714_v6 = vsel %vm10706_vm13, %v10702_v48, 0.0  ;;  %v10744_v22 = vsel %vm10706_vm13, %v10733_v51, 0.0  ;;  %v10608_v31 = vsel %vm23013_vm9, %v10561_v24, 0.0  ;;  %v10705_v53 = vmul.f32 %v10697_v36, %v10609_v63 }
 0x7b9   :  { %v10715_v5 = vadd.f32 %v10714_v6, %v10713_v41  ;;  %v10745_v55 = vadd.f32 %v10744_v22, %v10743_v1  ;;  %v10773_v56 = vsel %vm10706_vm13, %v10762_v25, 0.0  ;;  %v10736_v9 = vmul.f32 %v10609_v63, %v20200_v44 }
 0x7ba   :  { %v10774_v38 = vadd.f32 %v10773_v56, %v10772_v26  ;;  %v10765_v40 = vmul.f32 %v10609_v63, %v20273_v47  ;;  %v10704_v43 = vmul.f32 %v10696_v34, %v10608_v31  ;;  %v10735_v37 = vmul.f32 %v10608_v31, %v20188_v29 }
 0x7bb   :  { %v10717_v54 = vadd.f32 %v10716_v61, %v10715_v5  ;;  %v10747_v23 = vadd.f32 %v10746_v13, %v10745_v55  ;;  %v10775_v35 = vsel %vm10706_vm13, %v10763_v33, 0.0  ;;  %v10764_v60 = vmul.f32 %v10608_v31, %v20266_v28 }
 0x7bc   :  { %v10718_v0 = vsel %vm10706_vm13, %v10704_v43, 0.0  ;;  %v10748_v30 = vsel %vm10706_vm13, %v10735_v37, 0.0  ;;  %v10776_v12 = vadd.f32 %v10775_v35, %v10774_v38  ;;  %v10720_v62 = vsel %vm10706_vm13, %v10705_v53, 0.0 }
 0x7bd   :  { %v10719_v8 = vadd.f32 %v10718_v0, %v10717_v54  ;;  %v10749_v44 = vadd.f32 %v10748_v30, %v10747_v23  ;;  %v10777_v47 = vsel %vm10706_vm13, %v10764_v60, 0.0  ;;  %v10750_v45 = vsel %vm10706_vm13, %v10736_v9, 0.0 }
 0x7be   :  { %v10778_v29 = vadd.f32 %v10777_v47, %v10776_v12  ;;  %v10779_v21 = vsel %vm10706_vm13, %v10765_v40, 0.0  ;;  %vm10789_vm3 = vcmp.eq.s32.totalorder %v23014_v59, 2  ;;  %vm10788_vm11 = vcmp.eq.s32.totalorder %v23014_v59, 1 }
 0x7bf   :  { %v10721_v50 = vadd.f32 %v10720_v62, %v10719_v8  ;;  %v10751_v14 = vadd.f32 %v10750_v45, %v10749_v44  ;;  %vm10787_vm12 = vcmp.eq.s32.totalorder %v23014_v59, 0 }
 0x7c0   :  { %v10780_v7 = vadd.f32 %v10779_v21, %v10778_v29 }
 0x7c1   :  { %v10722_v32 = vrot.slane %v10721_v50, 4  ;;  %v10752_v11 = vrot.slane %v10751_v14, 4 }
 0x7c2   :  { %v10781_v28 = vrot.slane %v10780_v7, 4 }
 0x7c3   :  { %v10723_v2 = vadd.f32 %v10722_v32, %v10721_v50  ;;  %v10753_v39 = vadd.f32 %v10752_v11, %v10751_v14 }
 0x7c4   :  { %v10782_v20 = vadd.f32 %v10781_v28, %v10780_v7 }
 0x7c5   :  { %v10724_v27 = vrot.slane %v10723_v2, 2  ;;  %v10754_v42 = vrot.slane %v10753_v39, 2 }
 0x7c6   :  { %v10783_v17 = vrot.slane %v10782_v20, 2 }
 0x7c7   :  { %v10725_v3 = vadd.f32 %v10724_v27, %v10723_v2  ;;  %v10755_v36 = vadd.f32 %v10754_v42, %v10753_v39 }
 0x7c8   :  { %v10784_v34 = vadd.f32 %v10783_v17, %v10782_v20 }
 0x7c9   :  { %v10726_v15 = vrot.slane %v10725_v3, 1  ;;  %v10756_v18 = vrot.slane %v10755_v36, 1 }
 0x7ca   :  { %v10785_v49 = vrot.slane %v10784_v34, 1 }
 0x7cb   :  { %v10757_v16 = vadd.f32 %v10756_v18, %v10755_v36  ;;  %v10727_v58 = vadd.f32 %v10726_v15, %v10725_v3 }
 0x7cc   :  { %v10786_v52 = vadd.f32 %v10785_v49, %v10784_v34 }
 0x7cd   :  { %10798 = vperm.xlu1 %13966, %v10757_v16   ;;  %v10728_v57 = vmul.f32 0.25, %v10727_v58 }
 0x7ce   :  { %10792 = vperm.xlu0 %13965, %v10786_v52  }
 0x7d1   :  { %10804 = vperm.xlu1 %13966, %v10728_v57  }
 0x84c   :  { %v10799_v10 = vpop.permute.xlu1 %10798 }
 0x84d   :  { %v10793_v46 = vpop.permute.xlu0 %10792 }
 0x84e   :  { %v10795_v33 = vsel %vm10789_vm3, %v10793_v46, 0.0 }
 0x84f   :  { %v10801_v19 = vsel %vm10788_vm11, %v10799_v10, %v10795_v33 }
 0x850   :  { %v10805_v4 = vpop.permute.xlu1 %10804 }
 0x851   :  { %v10807_v61 = vsel %vm10787_vm12, %v10805_v4, %v10801_v19 }
 0x852   :  { %10808 = vst [vmem:[%s20489_s6] sm:$0x1] %v10807_v61 }

</bundles_post_ra>
